<compile_context>
chip_gen: v5e
topology: v5e:2x2
jax: 0.10.0
libtpu: 0.0.40
codegen_flags: <defaults>
</compile_context>

<pallas_src>
import functools

import jax
import jax.numpy as jnp
from jax.experimental import pallas as pl
from jax.experimental.pallas import tpu as pltpu


# ----------------------------------------------------------------------------
# Fused Pallas kernel: n-layer LSTM recurrence + relu + fc epilogue
# ----------------------------------------------------------------------------
def fused_lstm_fc_kernel(x2d_ref, wih0_ref, whh0_ref, b0_ref,
                         wihr_ref, whhr_ref, br_ref,
                         h0_ref, c0_ref, fcw_ref, fcb_ref,
                         out_ref, hT_ref, cT_ref):
    """All shapes use Hp = H padded to a multiple of 128, Op likewise.

    x2d   : (T*B, D)        time-major flattened layer-0 input
    wih0  : (D, 4*Hp)       layer-0 input->gates weights (gate order i,f,o,g)
    whh0  : (Hp, 4*Hp)      layer-0 hidden->gates weights
    b0    : (1, 4*Hp)       layer-0 combined bias
    wihr  : (L-1, Hp, 4*Hp) upper-layer input->gates weights
    whhr  : (L-1, Hp, 4*Hp) upper-layer hidden->gates weights
    br    : (L-1, 1, 4*Hp)  upper-layer combined biases
    h0,c0 : (L, B, Hp)      initial states (padded lanes are zero)
    fcw   : (Hp, Op)        fc weights;  fcb: (1, Op)
    out   : (B, Op)         fc(relu(h_top[T-1]))
    hT,cT : (L, B, Hp)      final states
    """
    L, B, Hp = h0_ref.shape
    T = x2d_ref.shape[0] // B

    # --- Prologue: hoisted layer-0 input projection for the whole sequence.
    # One big (T*B, D) x (D, 4Hp) matmul; the bias broadcast happens once,
    # not per timestep.
    xp = (jnp.dot(x2d_ref[...], wih0_ref[...],
                  preferred_element_type=jnp.float32) + b0_ref[...])

    whh0 = whh0_ref[...]
    # Upper-layer weights, loaded once (static leading-axis indices).
    wih_u = [wihr_ref[l] for l in range(L - 1)]
    whh_u = [whhr_ref[l] for l in range(L - 1)]
    b_u = [br_ref[l] for l in range(L - 1)]

    h = [h0_ref[l] for l in range(L)]
    c = [c0_ref[l] for l in range(L)]

    def cell(gates, c_prev):
        # Gate order (i, f, o, g): one wide sigmoid over the i/f/o slab and
        # one tanh over g -> two wide EUP calls; every slice is 128-lane
        # aligned because H is padded to a multiple of 128.
        ifo = jax.nn.sigmoid(gates[:, :3 * Hp])
        g_g = jnp.tanh(gates[:, 3 * Hp:])
        i_g = ifo[:, :Hp]
        f_g = ifo[:, Hp:2 * Hp]
        o_g = ifo[:, 2 * Hp:]
        c_new = f_g * c_prev + i_g * g_g
        h_new = o_g * jnp.tanh(c_new)
        return h_new, c_new

    # --- Recurrence, fully unrolled (T small & static). Layer l's step t runs
    # immediately after layer l-1's step t; inter-layer activations stay in
    # VMEM/vregs, nothing round-trips through HBM.
    for t in range(T):
        g0 = xp[t * B:(t + 1) * B, :] + jnp.dot(
            h[0], whh0, preferred_element_type=jnp.float32)
        h[0], c[0] = cell(g0, c[0])
        for l in range(1, L):
            gl = (jnp.dot(h[l - 1], wih_u[l - 1],
                          preferred_element_type=jnp.float32)
                  + jnp.dot(h[l], whh_u[l - 1],
                            preferred_element_type=jnp.float32)
                  + b_u[l - 1])
            h[l], c[l] = cell(gl, c[l])

    # --- Epilogue: fc(relu(h_top)) fused in; output is lane-dense (Op is a
    # multiple of 128), the wrapper slices back the real columns.
    top = jnp.maximum(h[L - 1], 0.0)
    out_ref[...] = (jnp.dot(top, fcw_ref[...],
                            preferred_element_type=jnp.float32)
                    + fcb_ref[...])
    for l in range(L):
        hT_ref[l] = h[l]
        cT_ref[l] = c[l]


# ----------------------------------------------------------------------------
# Wrappers
# ----------------------------------------------------------------------------
_VMEM = pl.BlockSpec(memory_space=pltpu.MemorySpace.VMEM)


def _round_up(n, m):
    return ((n + m - 1) // m) * m


def prepare_params(params, hidden_dim, output_dim):
    """Reorder gates (i,f,g,o) -> (i,f,o,g) and pad H/O to 128 lanes.

    Padded weight rows/cols and bias entries are zero, so padded lanes of the
    hidden/cell state stay exactly zero through the recurrence and the fc.
    Done once, outside the jitted forward.
    """
    H = hidden_dim
    Hp = _round_up(H, 128)
    Op = _round_up(output_dim, 128)

    def pack_cols(w):  # w: (rows, 4H), PyTorch gate order i, f, g, o
        i, f, g, o = (w[:, k * H:(k + 1) * H] for k in range(4))
        pad = lambda m: jnp.pad(m, ((0, 0), (0, Hp - H)))
        return jnp.concatenate([pad(i), pad(f), pad(o), pad(g)], axis=1)

    def pad_rows(w):  # (H, cols) -> (Hp, cols)
        return jnp.pad(w, ((0, Hp - H), (0, 0)))

    layers = params["lstm"]
    L = len(layers)

    wih0 = pack_cols(layers[0]["w_ih"])                    # (D, 4Hp)
    whh0 = pack_cols(pad_rows(layers[0]["w_hh"]))          # (Hp, 4Hp)
    b0 = pack_cols(layers[0]["b"])                         # (1, 4Hp)

    if L > 1:
        ups = []
        for l in range(1, L):
            ups.append((pack_cols(pad_rows(layers[l]["w_ih"])),
                        pack_cols(pad_rows(layers[l]["w_hh"])),
                        pack_cols(layers[l]["b"])))
        wih_u = jnp.stack([u[0] for u in ups])             # (L-1, Hp, 4Hp)
        whh_u = jnp.stack([u[1] for u in ups])
        b_u = jnp.stack([u[2] for u in ups])               # (L-1, 1, 4Hp)
    else:  # dummies, never read by the kernel when L == 1
        wih_u = jnp.zeros((1, Hp, 4 * Hp), jnp.float32)
        whh_u = jnp.zeros((1, Hp, 4 * Hp), jnp.float32)
        b_u = jnp.zeros((1, 1, 4 * Hp), jnp.float32)

    fcw = jnp.pad(params["fc_w"], ((0, Hp - H), (0, Op - output_dim)))
    fcb = jnp.pad(params["fc_b"], ((0, 0), (0, Op - output_dim)))

    return dict(wih0=wih0, whh0=whh0, b0=b0,
                wih_u=wih_u, whh_u=whh_u, b_u=b_u,
                fcw=fcw, fcb=fcb)


@functools.partial(jax.jit, static_argnames=("output_dim",))
def lstm_net_forward(x, h, prepped, output_dim):
    """x: (B, T, D) batch_first; h: (h0, c0), each (n_layers, B, H)."""
    h0_all, c0_all = h
    L, B, H = h0_all.shape
    T, D = x.shape[1], x.shape[2]
    Hp = prepped["whh0"].shape[0]
    Op = prepped["fcw"].shape[1]

    # time-major, flattened over (T, B) for the hoisted input projection
    x2d = jnp.transpose(x, (1, 0, 2)).reshape(T * B, D)

    h0p = jnp.pad(h0_all, ((0, 0), (0, 0), (0, Hp - H)))
    c0p = jnp.pad(c0_all, ((0, 0), (0, 0), (0, Hp - H)))

    out_p, hT_p, cT_p = pl.pallas_call(
        fused_lstm_fc_kernel,
        out_shape=(
            jax.ShapeDtypeStruct((B, Op), jnp.float32),
            jax.ShapeDtypeStruct((L, B, Hp), jnp.float32),
            jax.ShapeDtypeStruct((L, B, Hp), jnp.float32),
        ),
        in_specs=[_VMEM] * 11,
        out_specs=(_VMEM, _VMEM, _VMEM),
        input_output_aliases={7: 1, 8: 2},   # h0 -> hT, c0 -> cT buffers
        compiler_params=pltpu.CompilerParams(
            vmem_limit_bytes=32 * 1024 * 1024),
    )(x2d, prepped["wih0"], prepped["whh0"], prepped["b0"],
      prepped["wih_u"], prepped["whh_u"], prepped["b_u"],
      h0p, c0p, prepped["fcw"], prepped["fcb"])

    out = out_p[:, :output_dim]
    hT = hT_p[:, :, :H]
    cT = cT_p[:, :, :H]
    return out, (hT, cT)


# ----------------------------------------------------------------------------
# Pure-JAX reference (for a correctness sanity check)
# ----------------------------------------------------------------------------
def lstm_net_reference(x, h, params):
    h0_all, c0_all = h
    B, T, _ = x.shape
    seq = x
    hs, cs = [], []
    for l, layer in enumerate(params["lstm"]):
        H = layer["w_hh"].shape[0]
        hc = (h0_all[l], c0_all[l])
        outs = []
        for t in range(T):
            h_prev, c_prev = hc
            gates = seq[:, t, :] @ layer["w_ih"] + h_prev @ layer["w_hh"] + layer["b"]
            i_g = jax.nn.sigmoid(gates[:, 0 * H:1 * H])
            f_g = jax.nn.sigmoid(gates[:, 1 * H:2 * H])
            g_g = jnp.tanh(gates[:, 2 * H:3 * H])
            o_g = jax.nn.sigmoid(gates[:, 3 * H:4 * H])
            c_new = f_g * c_prev + i_g * g_g
            h_new = o_g * jnp.tanh(c_new)
            outs.append(h_new)
            hc = (h_new, c_new)
        seq = jnp.stack(outs, axis=1)
        hs.append(hc[0])
        cs.append(hc[1])
    out = jnp.maximum(seq[:, -1], 0.0) @ params["fc_w"] + params["fc_b"]
    return out, (jnp.stack(hs, axis=0), jnp.stack(cs, axis=0))


# ----------------------------------------------------------------------------
# Deterministic parameter init (shapes follow nn.LSTM / nn.Linear)
# ----------------------------------------------------------------------------
def init_params(key, input_dim, hidden_dim, output_dim, n_layers):
    params = {"lstm": []}
    bound = 1.0 / jnp.sqrt(hidden_dim)
    for l in range(n_layers):
        d_in = input_dim if l == 0 else hidden_dim
        key, k1, k2, k3 = jax.random.split(key, 4)
        params["lstm"].append(
            {
                # stored transposed relative to PyTorch: (d_in, 4H) / (H, 4H)
                "w_ih": jax.random.uniform(
                    k1, (d_in, 4 * hidden_dim), jnp.float32, -bound, bound
                ),
                "w_hh": jax.random.uniform(
                    k2, (hidden_dim, 4 * hidden_dim), jnp.float32, -bound, bound
                ),
                # combined b_ih + b_hh, kept 2D for TPU-friendly layout
                "b": jax.random.uniform(
                    k3, (1, 4 * hidden_dim), jnp.float32, -bound, bound
                ),
            }
        )
    key, k1, k2 = jax.random.split(key, 3)
    params["fc_w"] = jax.random.uniform(
        k1, (hidden_dim, output_dim), jnp.float32, -bound, bound
    )
    params["fc_b"] = jax.random.uniform(
        k2, (1, output_dim), jnp.float32, -bound, bound
    )
    return params


# ----------------------------------------------------------------------------
if __name__ == "__main__":
    input_dim, hidden_dim, output_dim, n_layers = 4, 32, 1, 2
    B, T = 2, 8

    key = jax.random.PRNGKey(0)
    key, kx = jax.random.split(key)
    x = jax.random.normal(kx, (B, T, input_dim), jnp.float32)

    # init_hidden(batch_size): zeros of shape (n_layers, B, hidden_dim)
    h0 = jnp.zeros((n_layers, B, hidden_dim), jnp.float32)
    c0 = jnp.zeros((n_layers, B, hidden_dim), jnp.float32)

    params = init_params(key, input_dim, hidden_dim, output_dim, n_layers)
    prepped = prepare_params(params, hidden_dim, output_dim)

    out, (hT, cT) = lstm_net_forward(x, (h0, c0), prepped,
                                     output_dim=output_dim)
    jax.block_until_ready((out, hT, cT))

    # sanity check against pure-JAX reference
    ref_out, (ref_hT, ref_cT) = lstm_net_reference(x, (h0, c0), params)
    assert out.shape == (B, output_dim)
    assert hT.shape == (n_layers, B, hidden_dim)
    assert cT.shape == (n_layers, B, hidden_dim)
    assert jnp.allclose(out, ref_out, atol=1e-4), "fc output mismatch"
    assert jnp.allclose(hT, ref_hT, atol=1e-4), "hidden state mismatch"
    assert jnp.allclose(cT, ref_cT, atol=1e-4), "cell state mismatch"

    print("KERNEL_OK")
</pallas_src>

<mosaic_0001>
module attributes {stable_mosaic.version = 11 : i64} {
  func.func @fused_lstm_fc_kernel(%arg0: memref<16x4xf32, #tpu.memory_space<vmem>>, %arg1: memref<4x512xf32, #tpu.memory_space<vmem>>, %arg2: memref<128x512xf32, #tpu.memory_space<vmem>>, %arg3: memref<1x512xf32, #tpu.memory_space<vmem>>, %arg4: memref<1x128x512xf32, #tpu.memory_space<vmem>>, %arg5: memref<1x128x512xf32, #tpu.memory_space<vmem>>, %arg6: memref<1x1x512xf32, #tpu.memory_space<vmem>>, %arg7: memref<2x2x128xf32, #tpu.memory_space<vmem>>, %arg8: memref<2x2x128xf32, #tpu.memory_space<vmem>>, %arg9: memref<128x128xf32, #tpu.memory_space<vmem>>, %arg10: memref<1x128xf32, #tpu.memory_space<vmem>>, %arg11: memref<2x128xf32, #tpu.memory_space<vmem>>, %arg12: memref<2x2x128xf32, #tpu.memory_space<vmem>>, %arg13: memref<2x2x128xf32, #tpu.memory_space<vmem>>) attributes {dimension_semantics = [], scalar_prefetch = 0 : i64, scratch_operands = 0 : i64, tpu.core_type = #tpu.core_type<tc>} {
    %c0 = arith.constant 0 : index
    %c0_0 = arith.constant 0 : index
    %0 = vector.load %arg0[%c0, %c0_0] : memref<16x4xf32, #tpu.memory_space<vmem>>, vector<16x4xf32>
    %c0_1 = arith.constant 0 : index
    %c0_2 = arith.constant 0 : index
    %1 = vector.load %arg1[%c0_1, %c0_2] : memref<4x512xf32, #tpu.memory_space<vmem>>, vector<4x512xf32>
    %cst = arith.constant dense<0.000000e+00> : vector<16x512xf32>
    %2 = tpu.matmul %0, %1, %cst {dimension_numbers = #tpu.dot_dimension_numbers<[1], [0], [0], [1], [0, 0, 1, 1], [], []>} : vector<16x4xf32>, vector<4x512xf32>, vector<16x512xf32> -> vector<16x512xf32>
    %c0_3 = arith.constant 0 : index
    %c0_4 = arith.constant 0 : index
    %3 = vector.load %arg3[%c0_3, %c0_4] : memref<1x512xf32, #tpu.memory_space<vmem>>, vector<1x512xf32>
    %4 = vector.broadcast %3 : vector<1x512xf32> to vector<16x512xf32>
    %5 = arith.addf %2, %4 : vector<16x512xf32>
    %c0_5 = arith.constant 0 : index
    %c0_6 = arith.constant 0 : index
    %6 = vector.load %arg2[%c0_5, %c0_6] : memref<128x512xf32, #tpu.memory_space<vmem>>, vector<128x512xf32>
    %c0_7 = arith.constant 0 : index
    %c0_8 = arith.constant 0 : index
    %c0_9 = arith.constant 0 : index
    %7 = vector.load %arg4[%c0_7, %c0_8, %c0_9] : memref<1x128x512xf32, #tpu.memory_space<vmem>>, vector<1x128x512xf32>
    %8 = vector.shape_cast %7 : vector<1x128x512xf32> to vector<128x512xf32>
    %c0_10 = arith.constant 0 : index
    %c0_11 = arith.constant 0 : index
    %c0_12 = arith.constant 0 : index
    %9 = vector.load %arg5[%c0_10, %c0_11, %c0_12] : memref<1x128x512xf32, #tpu.memory_space<vmem>>, vector<1x128x512xf32>
    %10 = vector.shape_cast %9 : vector<1x128x512xf32> to vector<128x512xf32>
    %c0_13 = arith.constant 0 : index
    %c0_14 = arith.constant 0 : index
    %c0_15 = arith.constant 0 : index
    %11 = vector.load %arg6[%c0_13, %c0_14, %c0_15] : memref<1x1x512xf32, #tpu.memory_space<vmem>>, vector<1x1x512xf32>
    %12 = vector.shape_cast %11 : vector<1x1x512xf32> to vector<1x512xf32>
    %c0_16 = arith.constant 0 : index
    %c0_17 = arith.constant 0 : index
    %c0_18 = arith.constant 0 : index
    %13 = vector.load %arg7[%c0_16, %c0_17, %c0_18] : memref<2x2x128xf32, #tpu.memory_space<vmem>>, vector<1x2x128xf32>
    %14 = vector.shape_cast %13 : vector<1x2x128xf32> to vector<2x128xf32>
    %c1 = arith.constant 1 : index
    %c0_19 = arith.constant 0 : index
    %c0_20 = arith.constant 0 : index
    %15 = vector.load %arg7[%c1, %c0_19, %c0_20] : memref<2x2x128xf32, #tpu.memory_space<vmem>>, vector<1x2x128xf32>
    %16 = vector.shape_cast %15 : vector<1x2x128xf32> to vector<2x128xf32>
    %c0_21 = arith.constant 0 : index
    %c0_22 = arith.constant 0 : index
    %c0_23 = arith.constant 0 : index
    %17 = vector.load %arg8[%c0_21, %c0_22, %c0_23] : memref<2x2x128xf32, #tpu.memory_space<vmem>>, vector<1x2x128xf32>
    %18 = vector.shape_cast %17 : vector<1x2x128xf32> to vector<2x128xf32>
    %c1_24 = arith.constant 1 : index
    %c0_25 = arith.constant 0 : index
    %c0_26 = arith.constant 0 : index
    %19 = vector.load %arg8[%c1_24, %c0_25, %c0_26] : memref<2x2x128xf32, #tpu.memory_space<vmem>>, vector<1x2x128xf32>
    %20 = vector.shape_cast %19 : vector<1x2x128xf32> to vector<2x128xf32>
    %21 = vector.extract_strided_slice %5 {offsets = [0, 0], sizes = [2, 512], strides = [1, 1]} : vector<16x512xf32> to vector<2x512xf32>
    %cst_27 = arith.constant dense<0.000000e+00> : vector<2x512xf32>
    %22 = tpu.matmul %14, %6, %cst_27 {dimension_numbers = #tpu.dot_dimension_numbers<[1], [0], [0], [1], [0, 0, 1, 1], [], []>} : vector<2x128xf32>, vector<128x512xf32>, vector<2x512xf32> -> vector<2x512xf32>
    %23 = arith.addf %21, %22 : vector<2x512xf32>
    %24 = vector.extract_strided_slice %23 {offsets = [0, 0], sizes = [2, 384], strides = [1, 1]} : vector<2x512xf32> to vector<2x384xf32>
    %25 = arith.negf %24 : vector<2x384xf32>
    %26 = math.exp %25 : vector<2x384xf32>
    %cst_28 = arith.constant 1.000000e+00 : f32
    %27 = vector.broadcast %cst_28 : f32 to vector<2x384xf32>
    %28 = arith.addf %27, %26 : vector<2x384xf32>
    %29 = arith.divf %27, %28 : vector<2x384xf32>
    %30 = vector.extract_strided_slice %23 {offsets = [0, 384], sizes = [2, 128], strides = [1, 1]} : vector<2x512xf32> to vector<2x128xf32>
    %31 = math.tanh %30 : vector<2x128xf32>
    %32 = vector.extract_strided_slice %29 {offsets = [0, 0], sizes = [2, 128], strides = [1, 1]} : vector<2x384xf32> to vector<2x128xf32>
    %33 = vector.extract_strided_slice %29 {offsets = [0, 128], sizes = [2, 128], strides = [1, 1]} : vector<2x384xf32> to vector<2x128xf32>
    %34 = vector.extract_strided_slice %29 {offsets = [0, 256], sizes = [2, 128], strides = [1, 1]} : vector<2x384xf32> to vector<2x128xf32>
    %35 = arith.mulf %33, %18 : vector<2x128xf32>
    %36 = arith.mulf %32, %31 : vector<2x128xf32>
    %37 = arith.addf %35, %36 : vector<2x128xf32>
    %38 = math.tanh %37 : vector<2x128xf32>
    %39 = arith.mulf %34, %38 : vector<2x128xf32>
    %cst_29 = arith.constant dense<0.000000e+00> : vector<2x512xf32>
    %40 = tpu.matmul %39, %8, %cst_29 {dimension_numbers = #tpu.dot_dimension_numbers<[1], [0], [0], [1], [0, 0, 1, 1], [], []>} : vector<2x128xf32>, vector<128x512xf32>, vector<2x512xf32> -> vector<2x512xf32>
    %cst_30 = arith.constant dense<0.000000e+00> : vector<2x512xf32>
    %41 = tpu.matmul %16, %10, %cst_30 {dimension_numbers = #tpu.dot_dimension_numbers<[1], [0], [0], [1], [0, 0, 1, 1], [], []>} : vector<2x128xf32>, vector<128x512xf32>, vector<2x512xf32> -> vector<2x512xf32>
    %42 = arith.addf %40, %41 : vector<2x512xf32>
    %43 = vector.broadcast %12 : vector<1x512xf32> to vector<2x512xf32>
    %44 = arith.addf %42, %43 : vector<2x512xf32>
    %45 = vector.extract_strided_slice %44 {offsets = [0, 0], sizes = [2, 384], strides = [1, 1]} : vector<2x512xf32> to vector<2x384xf32>
    %46 = arith.negf %45 : vector<2x384xf32>
    %47 = math.exp %46 : vector<2x384xf32>
    %cst_31 = arith.constant 1.000000e+00 : f32
    %48 = vector.broadcast %cst_31 : f32 to vector<2x384xf32>
    %49 = arith.addf %48, %47 : vector<2x384xf32>
    %50 = arith.divf %48, %49 : vector<2x384xf32>
    %51 = vector.extract_strided_slice %44 {offsets = [0, 384], sizes = [2, 128], strides = [1, 1]} : vector<2x512xf32> to vector<2x128xf32>
    %52 = math.tanh %51 : vector<2x128xf32>
    %53 = vector.extract_strided_slice %50 {offsets = [0, 0], sizes = [2, 128], strides = [1, 1]} : vector<2x384xf32> to vector<2x128xf32>
    %54 = vector.extract_strided_slice %50 {offsets = [0, 128], sizes = [2, 128], strides = [1, 1]} : vector<2x384xf32> to vector<2x128xf32>
    %55 = vector.extract_strided_slice %50 {offsets = [0, 256], sizes = [2, 128], strides = [1, 1]} : vector<2x384xf32> to vector<2x128xf32>
    %56 = arith.mulf %54, %20 : vector<2x128xf32>
    %57 = arith.mulf %53, %52 : vector<2x128xf32>
    %58 = arith.addf %56, %57 : vector<2x128xf32>
    %59 = math.tanh %58 : vector<2x128xf32>
    %60 = arith.mulf %55, %59 : vector<2x128xf32>
    %61 = vector.extract_strided_slice %5 {offsets = [2, 0], sizes = [2, 512], strides = [1, 1]} : vector<16x512xf32> to vector<2x512xf32>
    %cst_32 = arith.constant dense<0.000000e+00> : vector<2x512xf32>
    %62 = tpu.matmul %39, %6, %cst_32 {dimension_numbers = #tpu.dot_dimension_numbers<[1], [0], [0], [1], [0, 0, 1, 1], [], []>} : vector<2x128xf32>, vector<128x512xf32>, vector<2x512xf32> -> vector<2x512xf32>
    %63 = arith.addf %61, %62 : vector<2x512xf32>
    %64 = vector.extract_strided_slice %63 {offsets = [0, 0], sizes = [2, 384], strides = [1, 1]} : vector<2x512xf32> to vector<2x384xf32>
    %65 = arith.negf %64 : vector<2x384xf32>
    %66 = math.exp %65 : vector<2x384xf32>
    %cst_33 = arith.constant 1.000000e+00 : f32
    %67 = vector.broadcast %cst_33 : f32 to vector<2x384xf32>
    %68 = arith.addf %67, %66 : vector<2x384xf32>
    %69 = arith.divf %67, %68 : vector<2x384xf32>
    %70 = vector.extract_strided_slice %63 {offsets = [0, 384], sizes = [2, 128], strides = [1, 1]} : vector<2x512xf32> to vector<2x128xf32>
    %71 = math.tanh %70 : vector<2x128xf32>
    %72 = vector.extract_strided_slice %69 {offsets = [0, 0], sizes = [2, 128], strides = [1, 1]} : vector<2x384xf32> to vector<2x128xf32>
    %73 = vector.extract_strided_slice %69 {offsets = [0, 128], sizes = [2, 128], strides = [1, 1]} : vector<2x384xf32> to vector<2x128xf32>
    %74 = vector.extract_strided_slice %69 {offsets = [0, 256], sizes = [2, 128], strides = [1, 1]} : vector<2x384xf32> to vector<2x128xf32>
    %75 = arith.mulf %73, %37 : vector<2x128xf32>
    %76 = arith.mulf %72, %71 : vector<2x128xf32>
    %77 = arith.addf %75, %76 : vector<2x128xf32>
    %78 = math.tanh %77 : vector<2x128xf32>
    %79 = arith.mulf %74, %78 : vector<2x128xf32>
    %cst_34 = arith.constant dense<0.000000e+00> : vector<2x512xf32>
    %80 = tpu.matmul %79, %8, %cst_34 {dimension_numbers = #tpu.dot_dimension_numbers<[1], [0], [0], [1], [0, 0, 1, 1], [], []>} : vector<2x128xf32>, vector<128x512xf32>, vector<2x512xf32> -> vector<2x512xf32>
    %cst_35 = arith.constant dense<0.000000e+00> : vector<2x512xf32>
    %81 = tpu.matmul %60, %10, %cst_35 {dimension_numbers = #tpu.dot_dimension_numbers<[1], [0], [0], [1], [0, 0, 1, 1], [], []>} : vector<2x128xf32>, vector<128x512xf32>, vector<2x512xf32> -> vector<2x512xf32>
    %82 = arith.addf %80, %81 : vector<2x512xf32>
    %83 = vector.broadcast %12 : vector<1x512xf32> to vector<2x512xf32>
    %84 = arith.addf %82, %83 : vector<2x512xf32>
    %85 = vector.extract_strided_slice %84 {offsets = [0, 0], sizes = [2, 384], strides = [1, 1]} : vector<2x512xf32> to vector<2x384xf32>
    %86 = arith.negf %85 : vector<2x384xf32>
    %87 = math.exp %86 : vector<2x384xf32>
    %cst_36 = arith.constant 1.000000e+00 : f32
    %88 = vector.broadcast %cst_36 : f32 to vector<2x384xf32>
    %89 = arith.addf %88, %87 : vector<2x384xf32>
    %90 = arith.divf %88, %89 : vector<2x384xf32>
    %91 = vector.extract_strided_slice %84 {offsets = [0, 384], sizes = [2, 128], strides = [1, 1]} : vector<2x512xf32> to vector<2x128xf32>
    %92 = math.tanh %91 : vector<2x128xf32>
    %93 = vector.extract_strided_slice %90 {offsets = [0, 0], sizes = [2, 128], strides = [1, 1]} : vector<2x384xf32> to vector<2x128xf32>
    %94 = vector.extract_strided_slice %90 {offsets = [0, 128], sizes = [2, 128], strides = [1, 1]} : vector<2x384xf32> to vector<2x128xf32>
    %95 = vector.extract_strided_slice %90 {offsets = [0, 256], sizes = [2, 128], strides = [1, 1]} : vector<2x384xf32> to vector<2x128xf32>
    %96 = arith.mulf %94, %58 : vector<2x128xf32>
    %97 = arith.mulf %93, %92 : vector<2x128xf32>
    %98 = arith.addf %96, %97 : vector<2x128xf32>
    %99 = math.tanh %98 : vector<2x128xf32>
    %100 = arith.mulf %95, %99 : vector<2x128xf32>
    %101 = vector.extract_strided_slice %5 {offsets = [4, 0], sizes = [2, 512], strides = [1, 1]} : vector<16x512xf32> to vector<2x512xf32>
    %cst_37 = arith.constant dense<0.000000e+00> : vector<2x512xf32>
    %102 = tpu.matmul %79, %6, %cst_37 {dimension_numbers = #tpu.dot_dimension_numbers<[1], [0], [0], [1], [0, 0, 1, 1], [], []>} : vector<2x128xf32>, vector<128x512xf32>, vector<2x512xf32> -> vector<2x512xf32>
    %103 = arith.addf %101, %102 : vector<2x512xf32>
    %104 = vector.extract_strided_slice %103 {offsets = [0, 0], sizes = [2, 384], strides = [1, 1]} : vector<2x512xf32> to vector<2x384xf32>
    %105 = arith.negf %104 : vector<2x384xf32>
    %106 = math.exp %105 : vector<2x384xf32>
    %cst_38 = arith.constant 1.000000e+00 : f32
    %107 = vector.broadcast %cst_38 : f32 to vector<2x384xf32>
    %108 = arith.addf %107, %106 : vector<2x384xf32>
    %109 = arith.divf %107, %108 : vector<2x384xf32>
    %110 = vector.extract_strided_slice %103 {offsets = [0, 384], sizes = [2, 128], strides = [1, 1]} : vector<2x512xf32> to vector<2x128xf32>
    %111 = math.tanh %110 : vector<2x128xf32>
    %112 = vector.extract_strided_slice %109 {offsets = [0, 0], sizes = [2, 128], strides = [1, 1]} : vector<2x384xf32> to vector<2x128xf32>
    %113 = vector.extract_strided_slice %109 {offsets = [0, 128], sizes = [2, 128], strides = [1, 1]} : vector<2x384xf32> to vector<2x128xf32>
    %114 = vector.extract_strided_slice %109 {offsets = [0, 256], sizes = [2, 128], strides = [1, 1]} : vector<2x384xf32> to vector<2x128xf32>
    %115 = arith.mulf %113, %77 : vector<2x128xf32>
    %116 = arith.mulf %112, %111 : vector<2x128xf32>
    %117 = arith.addf %115, %116 : vector<2x128xf32>
    %118 = math.tanh %117 : vector<2x128xf32>
    %119 = arith.mulf %114, %118 : vector<2x128xf32>
    %cst_39 = arith.constant dense<0.000000e+00> : vector<2x512xf32>
    %120 = tpu.matmul %119, %8, %cst_39 {dimension_numbers = #tpu.dot_dimension_numbers<[1], [0], [0], [1], [0, 0, 1, 1], [], []>} : vector<2x128xf32>, vector<128x512xf32>, vector<2x512xf32> -> vector<2x512xf32>
    %cst_40 = arith.constant dense<0.000000e+00> : vector<2x512xf32>
    %121 = tpu.matmul %100, %10, %cst_40 {dimension_numbers = #tpu.dot_dimension_numbers<[1], [0], [0], [1], [0, 0, 1, 1], [], []>} : vector<2x128xf32>, vector<128x512xf32>, vector<2x512xf32> -> vector<2x512xf32>
    %122 = arith.addf %120, %121 : vector<2x512xf32>
    %123 = vector.broadcast %12 : vector<1x512xf32> to vector<2x512xf32>
    %124 = arith.addf %122, %123 : vector<2x512xf32>
    %125 = vector.extract_strided_slice %124 {offsets = [0, 0], sizes = [2, 384], strides = [1, 1]} : vector<2x512xf32> to vector<2x384xf32>
    %126 = arith.negf %125 : vector<2x384xf32>
    %127 = math.exp %126 : vector<2x384xf32>
    %cst_41 = arith.constant 1.000000e+00 : f32
    %128 = vector.broadcast %cst_41 : f32 to vector<2x384xf32>
    %129 = arith.addf %128, %127 : vector<2x384xf32>
    %130 = arith.divf %128, %129 : vector<2x384xf32>
    %131 = vector.extract_strided_slice %124 {offsets = [0, 384], sizes = [2, 128], strides = [1, 1]} : vector<2x512xf32> to vector<2x128xf32>
    %132 = math.tanh %131 : vector<2x128xf32>
    %133 = vector.extract_strided_slice %130 {offsets = [0, 0], sizes = [2, 128], strides = [1, 1]} : vector<2x384xf32> to vector<2x128xf32>
    %134 = vector.extract_strided_slice %130 {offsets = [0, 128], sizes = [2, 128], strides = [1, 1]} : vector<2x384xf32> to vector<2x128xf32>
    %135 = vector.extract_strided_slice %130 {offsets = [0, 256], sizes = [2, 128], strides = [1, 1]} : vector<2x384xf32> to vector<2x128xf32>
    %136 = arith.mulf %134, %98 : vector<2x128xf32>
    %137 = arith.mulf %133, %132 : vector<2x128xf32>
    %138 = arith.addf %136, %137 : vector<2x128xf32>
    %139 = math.tanh %138 : vector<2x128xf32>
    %140 = arith.mulf %135, %139 : vector<2x128xf32>
    %141 = vector.extract_strided_slice %5 {offsets = [6, 0], sizes = [2, 512], strides = [1, 1]} : vector<16x512xf32> to vector<2x512xf32>
    %cst_42 = arith.constant dense<0.000000e+00> : vector<2x512xf32>
    %142 = tpu.matmul %119, %6, %cst_42 {dimension_numbers = #tpu.dot_dimension_numbers<[1], [0], [0], [1], [0, 0, 1, 1], [], []>} : vector<2x128xf32>, vector<128x512xf32>, vector<2x512xf32> -> vector<2x512xf32>
    %143 = arith.addf %141, %142 : vector<2x512xf32>
    %144 = vector.extract_strided_slice %143 {offsets = [0, 0], sizes = [2, 384], strides = [1, 1]} : vector<2x512xf32> to vector<2x384xf32>
    %145 = arith.negf %144 : vector<2x384xf32>
    %146 = math.exp %145 : vector<2x384xf32>
    %cst_43 = arith.constant 1.000000e+00 : f32
    %147 = vector.broadcast %cst_43 : f32 to vector<2x384xf32>
    %148 = arith.addf %147, %146 : vector<2x384xf32>
    %149 = arith.divf %147, %148 : vector<2x384xf32>
    %150 = vector.extract_strided_slice %143 {offsets = [0, 384], sizes = [2, 128], strides = [1, 1]} : vector<2x512xf32> to vector<2x128xf32>
    %151 = math.tanh %150 : vector<2x128xf32>
    %152 = vector.extract_strided_slice %149 {offsets = [0, 0], sizes = [2, 128], strides = [1, 1]} : vector<2x384xf32> to vector<2x128xf32>
    %153 = vector.extract_strided_slice %149 {offsets = [0, 128], sizes = [2, 128], strides = [1, 1]} : vector<2x384xf32> to vector<2x128xf32>
    %154 = vector.extract_strided_slice %149 {offsets = [0, 256], sizes = [2, 128], strides = [1, 1]} : vector<2x384xf32> to vector<2x128xf32>
    %155 = arith.mulf %153, %117 : vector<2x128xf32>
    %156 = arith.mulf %152, %151 : vector<2x128xf32>
    %157 = arith.addf %155, %156 : vector<2x128xf32>
    %158 = math.tanh %157 : vector<2x128xf32>
    %159 = arith.mulf %154, %158 : vector<2x128xf32>
    %cst_44 = arith.constant dense<0.000000e+00> : vector<2x512xf32>
    %160 = tpu.matmul %159, %8, %cst_44 {dimension_numbers = #tpu.dot_dimension_numbers<[1], [0], [0], [1], [0, 0, 1, 1], [], []>} : vector<2x128xf32>, vector<128x512xf32>, vector<2x512xf32> -> vector<2x512xf32>
    %cst_45 = arith.constant dense<0.000000e+00> : vector<2x512xf32>
    %161 = tpu.matmul %140, %10, %cst_45 {dimension_numbers = #tpu.dot_dimension_numbers<[1], [0], [0], [1], [0, 0, 1, 1], [], []>} : vector<2x128xf32>, vector<128x512xf32>, vector<2x512xf32> -> vector<2x512xf32>
    %162 = arith.addf %160, %161 : vector<2x512xf32>
    %163 = vector.broadcast %12 : vector<1x512xf32> to vector<2x512xf32>
    %164 = arith.addf %162, %163 : vector<2x512xf32>
    %165 = vector.extract_strided_slice %164 {offsets = [0, 0], sizes = [2, 384], strides = [1, 1]} : vector<2x512xf32> to vector<2x384xf32>
    %166 = arith.negf %165 : vector<2x384xf32>
    %167 = math.exp %166 : vector<2x384xf32>
    %cst_46 = arith.constant 1.000000e+00 : f32
    %168 = vector.broadcast %cst_46 : f32 to vector<2x384xf32>
    %169 = arith.addf %168, %167 : vector<2x384xf32>
    %170 = arith.divf %168, %169 : vector<2x384xf32>
    %171 = vector.extract_strided_slice %164 {offsets = [0, 384], sizes = [2, 128], strides = [1, 1]} : vector<2x512xf32> to vector<2x128xf32>
    %172 = math.tanh %171 : vector<2x128xf32>
    %173 = vector.extract_strided_slice %170 {offsets = [0, 0], sizes = [2, 128], strides = [1, 1]} : vector<2x384xf32> to vector<2x128xf32>
    %174 = vector.extract_strided_slice %170 {offsets = [0, 128], sizes = [2, 128], strides = [1, 1]} : vector<2x384xf32> to vector<2x128xf32>
    %175 = vector.extract_strided_slice %170 {offsets = [0, 256], sizes = [2, 128], strides = [1, 1]} : vector<2x384xf32> to vector<2x128xf32>
    %176 = arith.mulf %174, %138 : vector<2x128xf32>
    %177 = arith.mulf %173, %172 : vector<2x128xf32>
    %178 = arith.addf %176, %177 : vector<2x128xf32>
    %179 = math.tanh %178 : vector<2x128xf32>
    %180 = arith.mulf %175, %179 : vector<2x128xf32>
    %181 = vector.extract_strided_slice %5 {offsets = [8, 0], sizes = [2, 512], strides = [1, 1]} : vector<16x512xf32> to vector<2x512xf32>
    %cst_47 = arith.constant dense<0.000000e+00> : vector<2x512xf32>
    %182 = tpu.matmul %159, %6, %cst_47 {dimension_numbers = #tpu.dot_dimension_numbers<[1], [0], [0], [1], [0, 0, 1, 1], [], []>} : vector<2x128xf32>, vector<128x512xf32>, vector<2x512xf32> -> vector<2x512xf32>
    %183 = arith.addf %181, %182 : vector<2x512xf32>
    %184 = vector.extract_strided_slice %183 {offsets = [0, 0], sizes = [2, 384], strides = [1, 1]} : vector<2x512xf32> to vector<2x384xf32>
    %185 = arith.negf %184 : vector<2x384xf32>
    %186 = math.exp %185 : vector<2x384xf32>
    %cst_48 = arith.constant 1.000000e+00 : f32
    %187 = vector.broadcast %cst_48 : f32 to vector<2x384xf32>
    %188 = arith.addf %187, %186 : vector<2x384xf32>
    %189 = arith.divf %187, %188 : vector<2x384xf32>
    %190 = vector.extract_strided_slice %183 {offsets = [0, 384], sizes = [2, 128], strides = [1, 1]} : vector<2x512xf32> to vector<2x128xf32>
    %191 = math.tanh %190 : vector<2x128xf32>
    %192 = vector.extract_strided_slice %189 {offsets = [0, 0], sizes = [2, 128], strides = [1, 1]} : vector<2x384xf32> to vector<2x128xf32>
    %193 = vector.extract_strided_slice %189 {offsets = [0, 128], sizes = [2, 128], strides = [1, 1]} : vector<2x384xf32> to vector<2x128xf32>
    %194 = vector.extract_strided_slice %189 {offsets = [0, 256], sizes = [2, 128], strides = [1, 1]} : vector<2x384xf32> to vector<2x128xf32>
    %195 = arith.mulf %193, %157 : vector<2x128xf32>
    %196 = arith.mulf %192, %191 : vector<2x128xf32>
    %197 = arith.addf %195, %196 : vector<2x128xf32>
    %198 = math.tanh %197 : vector<2x128xf32>
    %199 = arith.mulf %194, %198 : vector<2x128xf32>
    %cst_49 = arith.constant dense<0.000000e+00> : vector<2x512xf32>
    %200 = tpu.matmul %199, %8, %cst_49 {dimension_numbers = #tpu.dot_dimension_numbers<[1], [0], [0], [1], [0, 0, 1, 1], [], []>} : vector<2x128xf32>, vector<128x512xf32>, vector<2x512xf32> -> vector<2x512xf32>
    %cst_50 = arith.constant dense<0.000000e+00> : vector<2x512xf32>
    %201 = tpu.matmul %180, %10, %cst_50 {dimension_numbers = #tpu.dot_dimension_numbers<[1], [0], [0], [1], [0, 0, 1, 1], [], []>} : vector<2x128xf32>, vector<128x512xf32>, vector<2x512xf32> -> vector<2x512xf32>
    %202 = arith.addf %200, %201 : vector<2x512xf32>
    %203 = vector.broadcast %12 : vector<1x512xf32> to vector<2x512xf32>
    %204 = arith.addf %202, %203 : vector<2x512xf32>
    %205 = vector.extract_strided_slice %204 {offsets = [0, 0], sizes = [2, 384], strides = [1, 1]} : vector<2x512xf32> to vector<2x384xf32>
    %206 = arith.negf %205 : vector<2x384xf32>
    %207 = math.exp %206 : vector<2x384xf32>
    %cst_51 = arith.constant 1.000000e+00 : f32
    %208 = vector.broadcast %cst_51 : f32 to vector<2x384xf32>
    %209 = arith.addf %208, %207 : vector<2x384xf32>
    %210 = arith.divf %208, %209 : vector<2x384xf32>
    %211 = vector.extract_strided_slice %204 {offsets = [0, 384], sizes = [2, 128], strides = [1, 1]} : vector<2x512xf32> to vector<2x128xf32>
    %212 = math.tanh %211 : vector<2x128xf32>
    %213 = vector.extract_strided_slice %210 {offsets = [0, 0], sizes = [2, 128], strides = [1, 1]} : vector<2x384xf32> to vector<2x128xf32>
    %214 = vector.extract_strided_slice %210 {offsets = [0, 128], sizes = [2, 128], strides = [1, 1]} : vector<2x384xf32> to vector<2x128xf32>
    %215 = vector.extract_strided_slice %210 {offsets = [0, 256], sizes = [2, 128], strides = [1, 1]} : vector<2x384xf32> to vector<2x128xf32>
    %216 = arith.mulf %214, %178 : vector<2x128xf32>
    %217 = arith.mulf %213, %212 : vector<2x128xf32>
    %218 = arith.addf %216, %217 : vector<2x128xf32>
    %219 = math.tanh %218 : vector<2x128xf32>
    %220 = arith.mulf %215, %219 : vector<2x128xf32>
    %221 = vector.extract_strided_slice %5 {offsets = [10, 0], sizes = [2, 512], strides = [1, 1]} : vector<16x512xf32> to vector<2x512xf32>
    %cst_52 = arith.constant dense<0.000000e+00> : vector<2x512xf32>
    %222 = tpu.matmul %199, %6, %cst_52 {dimension_numbers = #tpu.dot_dimension_numbers<[1], [0], [0], [1], [0, 0, 1, 1], [], []>} : vector<2x128xf32>, vector<128x512xf32>, vector<2x512xf32> -> vector<2x512xf32>
    %223 = arith.addf %221, %222 : vector<2x512xf32>
    %224 = vector.extract_strided_slice %223 {offsets = [0, 0], sizes = [2, 384], strides = [1, 1]} : vector<2x512xf32> to vector<2x384xf32>
    %225 = arith.negf %224 : vector<2x384xf32>
    %226 = math.exp %225 : vector<2x384xf32>
    %cst_53 = arith.constant 1.000000e+00 : f32
    %227 = vector.broadcast %cst_53 : f32 to vector<2x384xf32>
    %228 = arith.addf %227, %226 : vector<2x384xf32>
    %229 = arith.divf %227, %228 : vector<2x384xf32>
    %230 = vector.extract_strided_slice %223 {offsets = [0, 384], sizes = [2, 128], strides = [1, 1]} : vector<2x512xf32> to vector<2x128xf32>
    %231 = math.tanh %230 : vector<2x128xf32>
    %232 = vector.extract_strided_slice %229 {offsets = [0, 0], sizes = [2, 128], strides = [1, 1]} : vector<2x384xf32> to vector<2x128xf32>
    %233 = vector.extract_strided_slice %229 {offsets = [0, 128], sizes = [2, 128], strides = [1, 1]} : vector<2x384xf32> to vector<2x128xf32>
    %234 = vector.extract_strided_slice %229 {offsets = [0, 256], sizes = [2, 128], strides = [1, 1]} : vector<2x384xf32> to vector<2x128xf32>
    %235 = arith.mulf %233, %197 : vector<2x128xf32>
    %236 = arith.mulf %232, %231 : vector<2x128xf32>
    %237 = arith.addf %235, %236 : vector<2x128xf32>
    %238 = math.tanh %237 : vector<2x128xf32>
    %239 = arith.mulf %234, %238 : vector<2x128xf32>
    %cst_54 = arith.constant dense<0.000000e+00> : vector<2x512xf32>
    %240 = tpu.matmul %239, %8, %cst_54 {dimension_numbers = #tpu.dot_dimension_numbers<[1], [0], [0], [1], [0, 0, 1, 1], [], []>} : vector<2x128xf32>, vector<128x512xf32>, vector<2x512xf32> -> vector<2x512xf32>
    %cst_55 = arith.constant dense<0.000000e+00> : vector<2x512xf32>
    %241 = tpu.matmul %220, %10, %cst_55 {dimension_numbers = #tpu.dot_dimension_numbers<[1], [0], [0], [1], [0, 0, 1, 1], [], []>} : vector<2x128xf32>, vector<128x512xf32>, vector<2x512xf32> -> vector<2x512xf32>
    %242 = arith.addf %240, %241 : vector<2x512xf32>
    %243 = vector.broadcast %12 : vector<1x512xf32> to vector<2x512xf32>
    %244 = arith.addf %242, %243 : vector<2x512xf32>
    %245 = vector.extract_strided_slice %244 {offsets = [0, 0], sizes = [2, 384], strides = [1, 1]} : vector<2x512xf32> to vector<2x384xf32>
    %246 = arith.negf %245 : vector<2x384xf32>
    %247 = math.exp %246 : vector<2x384xf32>
    %cst_56 = arith.constant 1.000000e+00 : f32
    %248 = vector.broadcast %cst_56 : f32 to vector<2x384xf32>
    %249 = arith.addf %248, %247 : vector<2x384xf32>
    %250 = arith.divf %248, %249 : vector<2x384xf32>
    %251 = vector.extract_strided_slice %244 {offsets = [0, 384], sizes = [2, 128], strides = [1, 1]} : vector<2x512xf32> to vector<2x128xf32>
    %252 = math.tanh %251 : vector<2x128xf32>
    %253 = vector.extract_strided_slice %250 {offsets = [0, 0], sizes = [2, 128], strides = [1, 1]} : vector<2x384xf32> to vector<2x128xf32>
    %254 = vector.extract_strided_slice %250 {offsets = [0, 128], sizes = [2, 128], strides = [1, 1]} : vector<2x384xf32> to vector<2x128xf32>
    %255 = vector.extract_strided_slice %250 {offsets = [0, 256], sizes = [2, 128], strides = [1, 1]} : vector<2x384xf32> to vector<2x128xf32>
    %256 = arith.mulf %254, %218 : vector<2x128xf32>
    %257 = arith.mulf %253, %252 : vector<2x128xf32>
    %258 = arith.addf %256, %257 : vector<2x128xf32>
    %259 = math.tanh %258 : vector<2x128xf32>
    %260 = arith.mulf %255, %259 : vector<2x128xf32>
    %261 = vector.extract_strided_slice %5 {offsets = [12, 0], sizes = [2, 512], strides = [1, 1]} : vector<16x512xf32> to vector<2x512xf32>
    %cst_57 = arith.constant dense<0.000000e+00> : vector<2x512xf32>
    %262 = tpu.matmul %239, %6, %cst_57 {dimension_numbers = #tpu.dot_dimension_numbers<[1], [0], [0], [1], [0, 0, 1, 1], [], []>} : vector<2x128xf32>, vector<128x512xf32>, vector<2x512xf32> -> vector<2x512xf32>
    %263 = arith.addf %261, %262 : vector<2x512xf32>
    %264 = vector.extract_strided_slice %263 {offsets = [0, 0], sizes = [2, 384], strides = [1, 1]} : vector<2x512xf32> to vector<2x384xf32>
    %265 = arith.negf %264 : vector<2x384xf32>
    %266 = math.exp %265 : vector<2x384xf32>
    %cst_58 = arith.constant 1.000000e+00 : f32
    %267 = vector.broadcast %cst_58 : f32 to vector<2x384xf32>
    %268 = arith.addf %267, %266 : vector<2x384xf32>
    %269 = arith.divf %267, %268 : vector<2x384xf32>
    %270 = vector.extract_strided_slice %263 {offsets = [0, 384], sizes = [2, 128], strides = [1, 1]} : vector<2x512xf32> to vector<2x128xf32>
    %271 = math.tanh %270 : vector<2x128xf32>
    %272 = vector.extract_strided_slice %269 {offsets = [0, 0], sizes = [2, 128], strides = [1, 1]} : vector<2x384xf32> to vector<2x128xf32>
    %273 = vector.extract_strided_slice %269 {offsets = [0, 128], sizes = [2, 128], strides = [1, 1]} : vector<2x384xf32> to vector<2x128xf32>
    %274 = vector.extract_strided_slice %269 {offsets = [0, 256], sizes = [2, 128], strides = [1, 1]} : vector<2x384xf32> to vector<2x128xf32>
    %275 = arith.mulf %273, %237 : vector<2x128xf32>
    %276 = arith.mulf %272, %271 : vector<2x128xf32>
    %277 = arith.addf %275, %276 : vector<2x128xf32>
    %278 = math.tanh %277 : vector<2x128xf32>
    %279 = arith.mulf %274, %278 : vector<2x128xf32>
    %cst_59 = arith.constant dense<0.000000e+00> : vector<2x512xf32>
    %280 = tpu.matmul %279, %8, %cst_59 {dimension_numbers = #tpu.dot_dimension_numbers<[1], [0], [0], [1], [0, 0, 1, 1], [], []>} : vector<2x128xf32>, vector<128x512xf32>, vector<2x512xf32> -> vector<2x512xf32>
    %cst_60 = arith.constant dense<0.000000e+00> : vector<2x512xf32>
    %281 = tpu.matmul %260, %10, %cst_60 {dimension_numbers = #tpu.dot_dimension_numbers<[1], [0], [0], [1], [0, 0, 1, 1], [], []>} : vector<2x128xf32>, vector<128x512xf32>, vector<2x512xf32> -> vector<2x512xf32>
    %282 = arith.addf %280, %281 : vector<2x512xf32>
    %283 = vector.broadcast %12 : vector<1x512xf32> to vector<2x512xf32>
    %284 = arith.addf %282, %283 : vector<2x512xf32>
    %285 = vector.extract_strided_slice %284 {offsets = [0, 0], sizes = [2, 384], strides = [1, 1]} : vector<2x512xf32> to vector<2x384xf32>
    %286 = arith.negf %285 : vector<2x384xf32>
    %287 = math.exp %286 : vector<2x384xf32>
    %cst_61 = arith.constant 1.000000e+00 : f32
    %288 = vector.broadcast %cst_61 : f32 to vector<2x384xf32>
    %289 = arith.addf %288, %287 : vector<2x384xf32>
    %290 = arith.divf %288, %289 : vector<2x384xf32>
    %291 = vector.extract_strided_slice %284 {offsets = [0, 384], sizes = [2, 128], strides = [1, 1]} : vector<2x512xf32> to vector<2x128xf32>
    %292 = math.tanh %291 : vector<2x128xf32>
    %293 = vector.extract_strided_slice %290 {offsets = [0, 0], sizes = [2, 128], strides = [1, 1]} : vector<2x384xf32> to vector<2x128xf32>
    %294 = vector.extract_strided_slice %290 {offsets = [0, 128], sizes = [2, 128], strides = [1, 1]} : vector<2x384xf32> to vector<2x128xf32>
    %295 = vector.extract_strided_slice %290 {offsets = [0, 256], sizes = [2, 128], strides = [1, 1]} : vector<2x384xf32> to vector<2x128xf32>
    %296 = arith.mulf %294, %258 : vector<2x128xf32>
    %297 = arith.mulf %293, %292 : vector<2x128xf32>
    %298 = arith.addf %296, %297 : vector<2x128xf32>
    %299 = math.tanh %298 : vector<2x128xf32>
    %300 = arith.mulf %295, %299 : vector<2x128xf32>
    %301 = vector.extract_strided_slice %5 {offsets = [14, 0], sizes = [2, 512], strides = [1, 1]} : vector<16x512xf32> to vector<2x512xf32>
    %cst_62 = arith.constant dense<0.000000e+00> : vector<2x512xf32>
    %302 = tpu.matmul %279, %6, %cst_62 {dimension_numbers = #tpu.dot_dimension_numbers<[1], [0], [0], [1], [0, 0, 1, 1], [], []>} : vector<2x128xf32>, vector<128x512xf32>, vector<2x512xf32> -> vector<2x512xf32>
    %303 = arith.addf %301, %302 : vector<2x512xf32>
    %304 = vector.extract_strided_slice %303 {offsets = [0, 0], sizes = [2, 384], strides = [1, 1]} : vector<2x512xf32> to vector<2x384xf32>
    %305 = arith.negf %304 : vector<2x384xf32>
    %306 = math.exp %305 : vector<2x384xf32>
    %cst_63 = arith.constant 1.000000e+00 : f32
    %307 = vector.broadcast %cst_63 : f32 to vector<2x384xf32>
    %308 = arith.addf %307, %306 : vector<2x384xf32>
    %309 = arith.divf %307, %308 : vector<2x384xf32>
    %310 = vector.extract_strided_slice %303 {offsets = [0, 384], sizes = [2, 128], strides = [1, 1]} : vector<2x512xf32> to vector<2x128xf32>
    %311 = math.tanh %310 : vector<2x128xf32>
    %312 = vector.extract_strided_slice %309 {offsets = [0, 0], sizes = [2, 128], strides = [1, 1]} : vector<2x384xf32> to vector<2x128xf32>
    %313 = vector.extract_strided_slice %309 {offsets = [0, 128], sizes = [2, 128], strides = [1, 1]} : vector<2x384xf32> to vector<2x128xf32>
    %314 = vector.extract_strided_slice %309 {offsets = [0, 256], sizes = [2, 128], strides = [1, 1]} : vector<2x384xf32> to vector<2x128xf32>
    %315 = arith.mulf %313, %277 : vector<2x128xf32>
    %316 = arith.mulf %312, %311 : vector<2x128xf32>
    %317 = arith.addf %315, %316 : vector<2x128xf32>
    %318 = math.tanh %317 : vector<2x128xf32>
    %319 = arith.mulf %314, %318 : vector<2x128xf32>
    %cst_64 = arith.constant dense<0.000000e+00> : vector<2x512xf32>
    %320 = tpu.matmul %319, %8, %cst_64 {dimension_numbers = #tpu.dot_dimension_numbers<[1], [0], [0], [1], [0, 0, 1, 1], [], []>} : vector<2x128xf32>, vector<128x512xf32>, vector<2x512xf32> -> vector<2x512xf32>
    %cst_65 = arith.constant dense<0.000000e+00> : vector<2x512xf32>
    %321 = tpu.matmul %300, %10, %cst_65 {dimension_numbers = #tpu.dot_dimension_numbers<[1], [0], [0], [1], [0, 0, 1, 1], [], []>} : vector<2x128xf32>, vector<128x512xf32>, vector<2x512xf32> -> vector<2x512xf32>
    %322 = arith.addf %320, %321 : vector<2x512xf32>
    %323 = vector.broadcast %12 : vector<1x512xf32> to vector<2x512xf32>
    %324 = arith.addf %322, %323 : vector<2x512xf32>
    %325 = vector.extract_strided_slice %324 {offsets = [0, 0], sizes = [2, 384], strides = [1, 1]} : vector<2x512xf32> to vector<2x384xf32>
    %326 = arith.negf %325 : vector<2x384xf32>
    %327 = math.exp %326 : vector<2x384xf32>
    %cst_66 = arith.constant 1.000000e+00 : f32
    %328 = vector.broadcast %cst_66 : f32 to vector<2x384xf32>
    %329 = arith.addf %328, %327 : vector<2x384xf32>
    %330 = arith.divf %328, %329 : vector<2x384xf32>
    %331 = vector.extract_strided_slice %324 {offsets = [0, 384], sizes = [2, 128], strides = [1, 1]} : vector<2x512xf32> to vector<2x128xf32>
    %332 = math.tanh %331 : vector<2x128xf32>
    %333 = vector.extract_strided_slice %330 {offsets = [0, 0], sizes = [2, 128], strides = [1, 1]} : vector<2x384xf32> to vector<2x128xf32>
    %334 = vector.extract_strided_slice %330 {offsets = [0, 128], sizes = [2, 128], strides = [1, 1]} : vector<2x384xf32> to vector<2x128xf32>
    %335 = vector.extract_strided_slice %330 {offsets = [0, 256], sizes = [2, 128], strides = [1, 1]} : vector<2x384xf32> to vector<2x128xf32>
    %336 = arith.mulf %334, %298 : vector<2x128xf32>
    %337 = arith.mulf %333, %332 : vector<2x128xf32>
    %338 = arith.addf %336, %337 : vector<2x128xf32>
    %339 = math.tanh %338 : vector<2x128xf32>
    %340 = arith.mulf %335, %339 : vector<2x128xf32>
    %cst_67 = arith.constant 0.000000e+00 : f32
    %341 = vector.broadcast %cst_67 : f32 to vector<2x128xf32>
    %342 = arith.maximumf %340, %341 : vector<2x128xf32>
    %c0_68 = arith.constant 0 : index
    %c0_69 = arith.constant 0 : index
    %343 = vector.load %arg9[%c0_68, %c0_69] : memref<128x128xf32, #tpu.memory_space<vmem>>, vector<128x128xf32>
    %cst_70 = arith.constant dense<0.000000e+00> : vector<2x128xf32>
    %344 = tpu.matmul %342, %343, %cst_70 {dimension_numbers = #tpu.dot_dimension_numbers<[1], [0], [0], [1], [0, 0, 1, 1], [], []>} : vector<2x128xf32>, vector<128x128xf32>, vector<2x128xf32> -> vector<2x128xf32>
    %c0_71 = arith.constant 0 : index
    %c0_72 = arith.constant 0 : index
    %345 = vector.load %arg10[%c0_71, %c0_72] : memref<1x128xf32, #tpu.memory_space<vmem>>, vector<1x128xf32>
    %346 = vector.broadcast %345 : vector<1x128xf32> to vector<2x128xf32>
    %347 = arith.addf %344, %346 : vector<2x128xf32>
    %c0_73 = arith.constant 0 : index
    %c0_74 = arith.constant 0 : index
    %348 = vector.load %arg11[%c0_73, %c0_74] : memref<2x128xf32, #tpu.memory_space<vmem>>, vector<2x128xf32>
    tpu.vector_store %arg11[%c0_73, %c0_74], %347 {strides = array<i32>} : memref<2x128xf32, #tpu.memory_space<vmem>>, vector<2x128xf32>,
    %c0_75 = arith.constant 0 : index
    %c0_76 = arith.constant 0 : index
    %c0_77 = arith.constant 0 : index
    %349 = vector.load %arg12[%c0_75, %c0_76, %c0_77] : memref<2x2x128xf32, #tpu.memory_space<vmem>>, vector<1x2x128xf32>
    %350 = vector.shape_cast %349 : vector<1x2x128xf32> to vector<2x128xf32>
    %351 = vector.shape_cast %319 : vector<2x128xf32> to vector<1x2x128xf32>
    tpu.vector_store %arg12[%c0_75, %c0_76, %c0_77], %351 {strides = array<i32>} : memref<2x2x128xf32, #tpu.memory_space<vmem>>, vector<1x2x128xf32>,
    %c0_78 = arith.constant 0 : index
    %c0_79 = arith.constant 0 : index
    %c0_80 = arith.constant 0 : index
    %352 = vector.load %arg13[%c0_78, %c0_79, %c0_80] : memref<2x2x128xf32, #tpu.memory_space<vmem>>, vector<1x2x128xf32>
    %353 = vector.shape_cast %352 : vector<1x2x128xf32> to vector<2x128xf32>
    %354 = vector.shape_cast %317 : vector<2x128xf32> to vector<1x2x128xf32>
    tpu.vector_store %arg13[%c0_78, %c0_79, %c0_80], %354 {strides = array<i32>} : memref<2x2x128xf32, #tpu.memory_space<vmem>>, vector<1x2x128xf32>,
    %c1_81 = arith.constant 1 : index
    %c0_82 = arith.constant 0 : index
    %c0_83 = arith.constant 0 : index
    %355 = vector.load %arg12[%c1_81, %c0_82, %c0_83] : memref<2x2x128xf32, #tpu.memory_space<vmem>>, vector<1x2x128xf32>
    %356 = vector.shape_cast %355 : vector<1x2x128xf32> to vector<2x128xf32>
    %357 = vector.shape_cast %340 : vector<2x128xf32> to vector<1x2x128xf32>
    tpu.vector_store %arg12[%c1_81, %c0_82, %c0_83], %357 {strides = array<i32>} : memref<2x2x128xf32, #tpu.memory_space<vmem>>, vector<1x2x128xf32>,
    %c1_84 = arith.constant 1 : index
    %c0_85 = arith.constant 0 : index
    %c0_86 = arith.constant 0 : index
    %358 = vector.load %arg13[%c1_84, %c0_85, %c0_86] : memref<2x2x128xf32, #tpu.memory_space<vmem>>, vector<1x2x128xf32>
    %359 = vector.shape_cast %358 : vector<1x2x128xf32> to vector<2x128xf32>
    %360 = vector.shape_cast %338 : vector<2x128xf32> to vector<1x2x128xf32>
    tpu.vector_store %arg13[%c1_84, %c0_85, %c0_86], %360 {strides = array<i32>} : memref<2x2x128xf32, #tpu.memory_space<vmem>>, vector<1x2x128xf32>,
    return
  }
}

</mosaic_0001>

<bundles_post_ra>
// kernel: lstm_net_forward.1
= control target key start
LH: loop header
LB: loop body
LE: loop exit
PB: predicated region body
PF: predicated region fallthrough
CT: control target
= control target key end

     0   :  { %19 = vsyncpa [#allocation3], 0  ;;  %s8409_s0 = inlined_call_operand.vmem [shape: f32[16,4], index: 0, kind: input, shape index: {}]   ;;  %s8410_s1 = inlined_call_operand.vmem [shape: f32[4,512], index: 1, kind: input, shape index: {}]   ;;  %s8411_s2 = inlined_call_operand.hbm [shape: f32[128,512], index: 2, kind: input, shape index: {}]   ;;  %s8412_s3 = inlined_call_operand.vmem [shape: f32[1,512], index: 3, kind: input, shape index: {}]   ;;  %s8413_s4 = inlined_call_operand.hbm [shape: f32[1,128,512], index: 4, kind: input, shape index: {}]   ;;  %s8414_s5 = inlined_call_operand.hbm [shape: f32[1,128,512], index: 5, kind: input, shape index: {}]   ;;  %s8415_s6 = inlined_call_operand.vmem [shape: f32[1,1,512], index: 6, kind: input, shape index: {}]   ;;  %s8416_s7 = inlined_call_operand.vmem [shape: f32[2,2,128], index: 7, kind: input, shape index: {}, may-alias: {7,12}]   ;;  %s8417_s8 = inlined_call_operand.vmem [shape: f32[2,2,128], index: 8, kind: input, shape index: {}, may-alias: {8,13}]   ;;  %s8418_s9 = inlined_call_operand.hbm [shape: f32[128,128], index: 9, kind: input, shape index: {}]   ;;  %s8419_s10 = inlined_call_operand.vmem [shape: f32[1,128], index: 10, kind: input, shape index: {}]   ;;  %s8420_s11 = inlined_call_operand.vmem [shape: f32[2,128], index: 11, kind: output, shape index: {0}]   ;;  %s8421_s12 = inlined_call_operand.vmem [shape: f32[2,2,128], index: 12, kind: output, shape index: {1}, may-alias: {7,12}]   ;;  %s8422_s13 = inlined_call_operand.vmem [shape: f32[2,2,128], index: 13, kind: output, shape index: {2}, may-alias: {8,13}]  }
   0x1   :  { %20 = vsyncpa [#allocation5], 0 }
   0x2   :  { %21 = vsyncpa [#allocation8], 0  ;;  %s45_s27 = sshll.u32 %s8413_s4, 4  ;;  %s4616_s28 = smov [#allocation4]   ;;  %s46_s27 = int_to_ptr.hbm [resolvable:$true] %s45_s27 }
   0x3   :  { %s47_s29 = sshll.u32 %s4616_s28, 4  ;;  %s30_s15 = sshll.u32 %s8411_s2, 4  ;;  %s48_s29 = int_to_ptr.vmem [resolvable:$true] %s47_s29  ;;  %s31_s15 = int_to_ptr.hbm [resolvable:$true] %s30_s15 }
   0x4   :  { %s4617_s16 = smov 512   ;;  %s4618_s17 = smov 32  }
   0x5   :  { %53 = dma.hbm_to_vmem [thread:$0]  %s46_s27, 8192, %s48_s29, [#allocation5], %s4617_s16, %s4617_s16, %s4618_s17  }
   0x6   :  { %s4619_s18 = smov [#allocation2]   ;;  %s58_s22 = sshll.u32 %s8414_s5, 4  ;;  %s59_s22 = int_to_ptr.hbm [resolvable:$true] %s58_s22 }
   0x7   :  { %s32_s19 = sshll.u32 %s4619_s18, 4  ;;  %s77_s24 = sshll.u32 %s8418_s9, 4  ;;  %s33_s19 = int_to_ptr.vmem [resolvable:$true] %s32_s19  ;;  %s78_s24 = int_to_ptr.hbm [resolvable:$true] %s77_s24 }
   0x8   :  { %38 = dma.hbm_to_vmem [thread:$0]  %s31_s15, 8192, %s33_s19, [#allocation3], %s4617_s16, %s4617_s16, %s4618_s17  }
   0x9   :  { %s4620_s25 = smov [#allocation6]   ;;  %s4621_s2 = smov [#allocation7]  }
   0xa   :  { %s60_s26 = sshll.u32 %s4620_s25, 4  ;;  %s79_s27 = sshll.u32 %s4621_s2, 4  ;;  %s61_s26 = int_to_ptr.vmem [resolvable:$true] %s60_s26  ;;  %s80_s27 = int_to_ptr.vmem [resolvable:$true] %s79_s27 }
   0xb   :  { %66 = dma.hbm_to_vmem [thread:$0]  %s59_s22, 8192, %s61_s26, [#allocation5], %s4617_s16, %s4617_s16, %s4618_s17  }
   0xc   :  { %s4622_s28 = smov 128   ;;  %s4623_s29 = smov 8  }
   0xd   :  { %85 = dma.hbm_to_vmem [thread:$0]  %s78_s24, 2048, %s80_s27, [#allocation8], %s4622_s28, %s4622_s28, %s4623_s29  }
   0xe   :  { %4610 = dma.done.wait [#allocation3], 8192  }
   0xf   :  { %4611 = vsyncadd [#allocation3], 4294959104 }
  0x10   :  { %4612 = dma.done.wait [#allocation5], 16384  }
  0x11   :  { %4613 = vsyncadd [#allocation5], 4294950912 }
  0x12   :  { %4614 = dma.done.wait [#allocation8], 2048  }
  0x13   :  { %4615 = vsyncadd [#allocation8], 4294965248  ;;  %v4706_v0 = vld [vmem:[#allocation2 + $0x1e0] sm:$0xff]  ;;  %v106_v2 = vld [vmem:[%s8410_s1] sm:$0xff]  ;;  %vm134_vm0 = vcmask 1043456   ;;  %vm127_vm1 = vcmask 31744  }
  0x14   :  { %v4708_v1 = vld [vmem:[#allocation2 + $0x1c0] sm:$0xff]  ;;  %434 = vmatpush.msra.mxu0 %v4706_v0  ;;  %120 = vst [vmem:[#allocation1] ss:$2 sm:$0xff] %v106_v2  ;;  %v4729_v7 = vld [vmem:[%s8409_s0] sm:$0xff]  ;;  %v4731_v8 = vld [vmem:[#allocation2 + $0x1f0] sm:$0xff] }
  0x15   :  { %v107_v3 = vld [vmem:[%s8410_s1 + $0x8] sm:$0xff]  ;;  %v4740_v14 = vld [vmem:[#allocation2 + $0x1e8] sm:$0xff]  ;;  %v4742_v15 = vld [vmem:[#allocation2 + $0x1d0] sm:$0xff] }
  0x16   :  { %v4717_v4 = vld [vmem:[#allocation2 + $0x1a0] sm:$0xff]  ;;  %435 = vmatpush.msra.mxu0 %v4708_v1  ;;  %122 = vst [vmem:[#allocation1 + $0x10] ss:$2 sm:$0xff] %v107_v3  ;;  %v4746_v16 = vld [vmem:[#allocation2 + $0x1f8] sm:$0xff]  ;;  %v4752_v18 = vld [vmem:[#allocation2 + $0x1c8] sm:$0xff] }
  0x17   :  { %v4720_v5 = vld [vmem:[#allocation2 + $0x180] sm:$0xff]  ;;  %v4754_v19 = vld [vmem:[#allocation2 + $0x1b0] sm:$0xff]  ;;  %v4758_v20 = vld [vmem:[#allocation2 + $0x1d8] sm:$0xff] }
  0x18   :  { %436 = vmatpush.msra.mxu0 %v4717_v4  ;;  %v4723_v6 = vld [vmem:[#allocation2 + $0x160] sm:$0xff]  ;;  %v4764_v22 = vld [vmem:[#allocation2 + $0x1a8] sm:$0xff]  ;;  %v4766_v23 = vld [vmem:[#allocation2 + $0x190] sm:$0xff] }
  0x19   :  { %v4733_v9 = vld [vmem:[#allocation2 + $0x140] sm:$0xff]  ;;  %v4770_v24 = vld [vmem:[#allocation2 + $0x1b8] sm:$0xff]  ;;  %v4776_v26 = vld [vmem:[#allocation2 + $0x188] sm:$0xff] }
  0x1a   :  { %437 = vmatpush.msra.mxu0 %v4720_v5  ;;  %v4748_v17 = vld [vmem:[#allocation2 + $0x120] sm:$0xff]  ;;  %v4778_v27 = vld [vmem:[#allocation2 + $0x170] sm:$0xff]  ;;  %v4787_v29 = vld [vmem:[#allocation2 + $0x198] sm:$0xff] }
  0x1b   :  { %v123_v10 = vld.sshfl [vmem:[#allocation1] sm:$0xff pattern:$0x75316420]  ;;  %v124_v11 = vld.sshfl [vmem:[#allocation1 + $0x8] sm:$0xff pattern:$0x75316420] }
  0x1c   :  { %438 = vmatpush.msra.mxu0 %v4723_v6  ;;  %3609 = vmatpush.msk.msra.mxu1 %vm134_vm0, %v123_v10  ;;  %v4760_v21 = vld [vmem:[#allocation2 + $0x100] sm:$0xff]  ;;  %v4793_v31 = vld [vmem:[#allocation2 + $0x168] sm:$0xff]  ;;  %v4797_v32 = vld [vmem:[#allocation2 + $0x150] sm:$0xff] }
  0x1d   :  { %v125_v12 = vld.sshfl [vmem:[#allocation1 + $0x10] sm:$0xff pattern:$0x75316420]  ;;  %v126_v13 = vld.sshfl [vmem:[#allocation1 + $0x18] sm:$0xff pattern:$0x75316420]  ;;  %3610 = vmatmul.msk.f32.vlgmr.msra.gmra.mxu1 %vm127_vm1, %v4729_v7 }
  0x1e   :  { %3615 = vmatpush.msk.msra.mxu2 %vm134_vm0, %v125_v12  ;;  %3612 = vmatpush.msk.msrb.mxu1 %vm134_vm0, %v124_v11  ;;  %v4772_v25 = vld [vmem:[#allocation2 + $0xe0] sm:$0xff]  ;;  %v4799_v33 = vld [vmem:[#allocation2 + $0x178] sm:$0xff]  ;;  %v4806_v35 = vld [vmem:[#allocation2 + $0x148] sm:$0xff] }
  0x1f   :  { %3618 = vmatpush.msk.msra.mxu3 %vm134_vm0, %v126_v13  ;;  %439 = vmatpush.msra.mxu0 %v4733_v9  ;;  %v4785_v28 = vld [vmem:[%s8409_s0 + $0x8] sm:$0xff]  ;;  %v4810_v36 = vld [vmem:[#allocation2 + $0x130] sm:$0xff]  ;;  %v4812_v37 = vld [vmem:[#allocation2 + $0x158] sm:$0xff] }
  0x20   :  { %474 = vmatpush.msrb.mxu2 %v4731_v8  ;;  %454 = vmatpush.msra.mxu1 %v4740_v14  ;;  %v4791_v30 = vld [vmem:[#allocation2 + $0xc0] sm:$0xff]  ;;  %v4818_v39 = vld [vmem:[#allocation2 + $0x128] sm:$0xff]  ;;  %v4822_v40 = vld [vmem:[#allocation2 + $0x110] sm:$0xff] }
  0x21   :  { %494 = vmatpush.msrb.mxu3 %v4746_v16  ;;  %440 = vmatpush.msra.mxu0 %v4748_v17  ;;  %v4804_v34 = vld [vmem:[#allocation2 + $0xa0] sm:$0xff]  ;;  %v4824_v41 = vld [vmem:[#allocation2 + $0x138] sm:$0xff]  ;;  %v4832_v43 = vld [vmem:[#allocation2 + $0x108] sm:$0xff] }
  0x22   :  { %475 = vmatpush.msrb.mxu2 %v4742_v15  ;;  %455 = vmatpush.msra.mxu1 %v4752_v18  ;;  %v4816_v38 = vld [vmem:[#allocation2 + $0x80] sm:$0xff]  ;;  %v4834_v44 = vld [vmem:[#allocation2 + $0xf0] sm:$0xff]  ;;  %v4838_v45 = vld [vmem:[#allocation2 + $0x118] sm:$0xff] }
  0x23   :  { %495 = vmatpush.msrb.mxu3 %v4758_v20  ;;  %441 = vmatpush.msra.mxu0 %v4760_v21  ;;  %v4828_v42 = vld [vmem:[#allocation2 + $0x60] sm:$0xff]  ;;  %v4847_v47 = vld [vmem:[#allocation2 + $0xe8] sm:$0xff]  ;;  %v4849_v48 = vld [vmem:[#allocation2 + $0xd0] sm:$0xff] }
  0x24   :  { %476 = vmatpush.msrb.mxu2 %v4754_v19  ;;  %456 = vmatpush.msra.mxu1 %v4764_v22  ;;  %v4843_v46 = vld [vmem:[#allocation2 + $0x40] sm:$0xff]  ;;  %v4854_v49 = vld [vmem:[#allocation2 + $0xf8] sm:$0xff]  ;;  %v4861_v51 = vld [vmem:[#allocation2 + $0xc8] sm:$0xff] }
  0x25   :  { %496 = vmatpush.msrb.mxu3 %v4770_v24  ;;  %442 = vmatpush.msra.mxu0 %v4772_v25  ;;  %9068 = vst [vmem:[#allocation12_spill] sm:$0xff] %v4843_v46  ;;  %v4856_v50 = vld [vmem:[#allocation2 + $0x20] sm:$0xff]  ;;  %v4863_v52 = vld [vmem:[#allocation2 + $0xb0] sm:$0xff]  ;;  %v4867_v53 = vld [vmem:[#allocation2 + $0xd8] sm:$0xff] }
  0x26   :  { %477 = vmatpush.msrb.mxu2 %v4766_v23  ;;  %457 = vmatpush.msra.mxu1 %v4776_v26  ;;  %9069 = vst [vmem:[#allocation13_spill] sm:$0xff] %v4856_v50  ;;  %v4869_v54 = vld [vmem:[#allocation2] sm:$0xff]  ;;  %v4873_v55 = vld [vmem:[#allocation2 + $0xa8] sm:$0xff]  ;;  %v428_v56 = vld [vmem:[%s8416_s7] sm:$0x3] }
  0x27   :  { %3611 = vmatmul.msk.f32.gmra.mxu1 %vm127_vm1, %v4785_v28  ;;  %497 = vmatpush.msrb.mxu3 %v4787_v29  ;;  %9070 = vst [vmem:[#allocation14_spill] sm:$0xff] %v4869_v54  ;;  %v4880_v57 = vld [vmem:[#allocation2 + $0x90] sm:$0xff]  ;;  %v4882_v58 = vld [vmem:[#allocation2 + $0xb8] sm:$0xff]  ;;  %v4886_v59 = vld [vmem:[#allocation2 + $0x88] sm:$0xff] }
  0x28   :  { %478 = vmatpush.msrb.mxu2 %v4778_v27  ;;  %443 = vmatpush.msra.mxu0 %v4791_v30  ;;  %v4889_v60 = vld [vmem:[#allocation2 + $0x70] sm:$0xff]  ;;  %v4893_v61 = vld [vmem:[#allocation2 + $0x98] sm:$0xff]  ;;  %v4895_v62 = vld [vmem:[#allocation2 + $0x68] sm:$0xff] }
  0x29   :  { %458 = vmatpush.msra.mxu1 %v4793_v31  ;;  %498 = vmatpush.msrb.mxu3 %v4799_v33  ;;  %9071 = vst [vmem:[#allocation15_spill] sm:$0xff] %v4889_v60  ;;  %v4900_v63 = vld [vmem:[#allocation2 + $0x50] sm:$0xff]  ;;  %v4905_v2 = vld [vmem:[#allocation2 + $0x78] sm:$0xff]  ;;  %v4907_v3 = vld [vmem:[#allocation2 + $0x48] sm:$0xff] }
  0x2a   :  { %479 = vmatpush.msrb.mxu2 %v4797_v32  ;;  %444 = vmatpush.msra.mxu0 %v4804_v34  ;;  %9072 = vst [vmem:[#allocation16_spill] sm:$0xff] %v4900_v63  ;;  %v4913_v10 = vld [vmem:[#allocation6 + $0x1e0] sm:$0xff]  ;;  %v4918_v11 = vld [vmem:[#allocation2 + $0x58] sm:$0xff]  ;;  %v4920_v12 = vld [vmem:[#allocation2 + $0x28] sm:$0xff] }
  0x2b   :  { %459 = vmatpush.msra.mxu1 %v4806_v35  ;;  %499 = vmatpush.msrb.mxu3 %v4812_v37  ;;  %9073 = vst [vmem:[#allocation17_spill] sm:$0xff] %v4905_v2  ;;  %v4924_v13 = vld [vmem:[#allocation2 + $0x10] sm:$0xff] }
  0x2c   :  { %480 = vmatpush.msrb.mxu2 %v4810_v36  ;;  %445 = vmatpush.msra.mxu0 %v4816_v38  ;;  %9074 = vst [vmem:[#allocation18_spill] sm:$0xff] %v4907_v3 }
  0x2d   :  { %460 = vmatpush.msra.mxu1 %v4818_v39  ;;  %500 = vmatpush.msrb.mxu3 %v4824_v41  ;;  %9076 = vst [vmem:[#allocation20_spill] sm:$0xff] %v4913_v10 }
  0x2e   :  { %481 = vmatpush.msrb.mxu2 %v4822_v40  ;;  %446 = vmatpush.msra.mxu0 %v4828_v42  ;;  %9077 = vst [vmem:[#allocation21_spill] sm:$0xff] %v4918_v11 }
  0x2f   :  { %3616 = vmatmul.msk.f32.vlgmr.msra.gmra.mxu2 %vm127_vm1, %v4729_v7  ;;  %461 = vmatpush.msra.mxu1 %v4832_v43  ;;  %9078 = vst [vmem:[#allocation22_spill] sm:$0xff] %v4920_v12 }
  0x30   :  { %482 = vmatpush.msrb.mxu2 %v4834_v44  ;;  %3613 = vmatmul.msk.f32.vlgmr.msrb.gmra.mxu1 %vm127_vm1, %v4729_v7  ;;  %9079 = vst [vmem:[#allocation23_spill] sm:$0xff] %v4924_v13 }
  0x31   :  { %501 = vmatpush.msrb.mxu3 %v4838_v45  ;;  %447 = vmatpush.msra.mxu0 %v4843_v46  ;;  %v4931_v46 = vld [vmem:[#allocation2 + $0x8] sm:$0xff] }
  0x32   :  { %3619 = vmatmul.msk.f32.vlgmr.msra.gmra.mxu3 %vm127_vm1, %v4729_v7  ;;  %462 = vmatpush.msra.mxu1 %v4847_v47  ;;  %v4911_v7 = vld [vmem:[#allocation2 + $0x30] sm:$0xff]  ;;  %9082 = vst [vmem:[#allocation26_spill] sm:$0xff] %v4931_v46 }
  0x33   :  { %483 = vmatpush.msrb.mxu2 %v4849_v48  ;;  %502 = vmatpush.msrb.mxu3 %v4854_v49  ;;  %9075 = vst [vmem:[#allocation19_spill] sm:$0xff] %v4911_v7 }
  0x34   :  { %448 = vmatpush.msra.mxu0 %v4856_v50  ;;  %463 = vmatpush.msra.mxu1 %v4861_v51  ;;  %v4929_v50 = vld [vmem:[#allocation2 + $0x38] sm:$0xff] }
  0x35   :  { %484 = vmatpush.msrb.mxu2 %v4863_v52  ;;  %503 = vmatpush.msrb.mxu3 %v4867_v53  ;;  %9081 = vst [vmem:[#allocation25_spill] sm:$0xff] %v4929_v50 }
  0x36   :  { %449 = vmatpush.msra.mxu0 %v4869_v54  ;;  %464 = vmatpush.msra.mxu1 %v4873_v55  ;;  %v4926_v54 = vld [vmem:[#allocation6 + $0x1c0] sm:$0xff] }
  0x37   :  { %450 = vmatmul.f32.vlgmr.msra.gmra.mxu0 %v428_v56  ;;  %485 = vmatpush.msrb.mxu2 %v4880_v57  ;;  %9080 = vst [vmem:[#allocation24_spill] sm:$0xff] %v4926_v54 }
  0x38   :  { %504 = vmatpush.msrb.mxu3 %v4882_v58  ;;  %3617 = vmatmul.msk.f32.gmra.mxu2 %vm127_vm1, %v4785_v28 }
  0x39   :  { %465 = vmatpush.msra.mxu1 %v4886_v59  ;;  %486 = vmatpush.msrb.mxu2 %v4889_v60  ;;  %v5330_v60 = vld [vmem:[#allocation4 + $0x10] sm:$0xff] }
  0x3a   :  { %3614 = vmatmul.msk.f32.gmra.mxu1 %vm127_vm1, %v4785_v28  ;;  %505 = vmatpush.msrb.mxu3 %v4893_v61 }
  0x3b   :  { %466 = vmatpush.msra.mxu1 %v4895_v62  ;;  %3620 = vmatmul.msk.f32.gmra.mxu3 %vm127_vm1, %v4785_v28  ;;  %v4937_v28 = vld [vmem:[#allocation2 + $0x18] sm:$0xff] }
  0x3c   :  { %487 = vmatpush.msrb.mxu2 %v4900_v63  ;;  %506 = vmatpush.msrb.mxu3 %v4905_v2  ;;  %9083 = vst [vmem:[#allocation27_spill] sm:$0xff] %v4937_v28  ;;  %v4939_v63 = vld [vmem:[#allocation6 + $0x1e8] sm:$0xff] }
  0x3d   :  { %467 = vmatpush.msra.mxu1 %v4907_v3  ;;  %581 = vmatpush.msrb.mxu0 %v4913_v10  ;;  %9084 = vst [vmem:[#allocation28_spill] sm:$0xff] %v4939_v63  ;;  %v4946_v10 = vld [vmem:[#allocation6 + $0x1f8] sm:$0xff]  ;;  %v5328_v2 = vld [vmem:[#allocation4 + $0x8] sm:$0xff] }
  0x3e   :  { %488 = vmatpush.msrb.mxu2 %v4911_v7  ;;  %507 = vmatpush.msrb.mxu3 %v4918_v11  ;;  %v4944_v7 = vld [vmem:[#allocation6 + $0x1f0] sm:$0xff]  ;;  %9086 = vst [vmem:[#allocation30_spill] sm:$0xff] %v4946_v10  ;;  %v4948_v11 = vld [vmem:[#allocation6 + $0x1c8] sm:$0xff] }
  0x3f   :  { %468 = vmatpush.msra.mxu1 %v4920_v12  ;;  %582 = vmatpush.msrb.mxu0 %v4926_v54  ;;  %9085 = vst [vmem:[#allocation29_spill] sm:$0xff] %v4944_v7  ;;  %v4954_v12 = vld [vmem:[#allocation6 + $0x1a0] sm:$0xff]  ;;  %v4957_v54 = vld [vmem:[#allocation6 + $0x1d8] sm:$0xff] }
  0x40   :  { %489 = vmatpush.msrb.mxu2 %v4924_v13  ;;  %508 = vmatpush.msrb.mxu3 %v4929_v50  ;;  %9087 = vst [vmem:[#allocation31_spill] sm:$0xff] %v4948_v11  ;;  %v4952_v13 = vld [vmem:[#allocation6 + $0x1d0] sm:$0xff] }
  0x41   :  { %469 = vmatpush.msra.mxu1 %v4931_v46  ;;  %490 = vmatmul.f32.vlgmr.msrb.gmra.mxu2 %v428_v56  ;;  %9088 = vst [vmem:[#allocation32_spill] sm:$0xff] %v4952_v13  ;;  %v4959_v46 = vld [vmem:[#allocation6 + $0x1a8] sm:$0xff]  ;;  %v4963_v50 = vld [vmem:[#allocation6 + $0x1b0] sm:$0xff] }
  0x42   :  { %470 = vmatmul.f32.vlgmr.msra.gmra.mxu1 %v428_v56  ;;  %509 = vmatpush.msrb.mxu3 %v4937_v28  ;;  %9089 = vst [vmem:[#allocation33_spill] sm:$0xff] %v4954_v12  ;;  %v4965_v28 = vld [vmem:[#allocation6 + $0x180] sm:$0xff] }
  0x43   :  { %601 = vmatpush.msrb.mxu1 %v4939_v63  ;;  %510 = vmatmul.f32.vlgmr.msrb.gmra.mxu3 %v428_v56  ;;  %9090 = vst [vmem:[#allocation34_spill] sm:$0xff] %v4957_v54  ;;  %v4969_v63 = vld [vmem:[#allocation6 + $0x1b8] sm:$0xff]  ;;  %v4971_v56 = vld [vmem:[#allocation6 + $0x188] sm:$0xff] }
  0x44   :  { %621 = vmatpush.msra.mxu2 %v4944_v7  ;;  %9091 = vst [vmem:[#allocation35_spill] sm:$0xff] %v4959_v46  ;;  %641 = vmatpush.msra.mxu3 %v4946_v10  ;;  %v4975_v7 = vld [vmem:[#allocation6 + $0x190] sm:$0xff]  ;;  %v4977_v10 = vld [vmem:[#allocation6 + $0x160] sm:$0xff] }
  0x45   :  { %602 = vmatpush.msrb.mxu1 %v4948_v11  ;;  %9092 = vst [vmem:[#allocation36_spill] sm:$0xff] %v4963_v50  ;;  %583 = vmatpush.msrb.mxu0 %v4954_v12  ;;  %v4981_v11 = vld [vmem:[#allocation6 + $0x198] sm:$0xff]  ;;  %v4987_v12 = vld [vmem:[#allocation6 + $0x170] sm:$0xff] }
  0x46   :  { %9093 = vst [vmem:[#allocation37_spill] sm:$0xff] %v4965_v28  ;;  %622 = vmatpush.msra.mxu2 %v4952_v13  ;;  %642 = vmatpush.msra.mxu3 %v4957_v54  ;;  %v4983_v13 = vld [vmem:[#allocation6 + $0x168] sm:$0xff]  ;;  %v5303_v54 = vld [vmem:[#allocation4 + $0x58] sm:$0xff] }
  0x47   :  { %9094 = vst [vmem:[#allocation38_spill] sm:$0xff] %v4969_v63  ;;  %603 = vmatpush.msrb.mxu1 %v4959_v46  ;;  %584 = vmatpush.msrb.mxu0 %v4965_v28  ;;  %v4991_v46 = vld [vmem:[#allocation6 + $0x178] sm:$0xff]  ;;  %v4997_v28 = vld [vmem:[#allocation6 + $0x140] sm:$0xff] }
  0x48   :  { %9095 = vst [vmem:[#allocation39_spill] sm:$0xff] %v4971_v56  ;;  %623 = vmatpush.msra.mxu2 %v4963_v50  ;;  %643 = vmatpush.msra.mxu3 %v4969_v63  ;;  %v4999_v63 = vld [vmem:[#allocation6 + $0x148] sm:$0xff]  ;;  %v5025_v50 = vld [vmem:[#allocation6 + $0x118] sm:$0xff] }
  0x49   :  { %9096 = vst [vmem:[#allocation40_spill] sm:$0xff] %v4975_v7  ;;  %604 = vmatpush.msrb.mxu1 %v4971_v56  ;;  %585 = vmatpush.msrb.mxu0 %v4977_v10  ;;  %v5001_v56 = vld [vmem:[#allocation6 + $0x150] sm:$0xff] }
  0x4a   :  { %9097 = vst [vmem:[#allocation41_spill] sm:$0xff] %v4977_v10  ;;  %624 = vmatpush.msra.mxu2 %v4975_v7  ;;  %644 = vmatpush.msra.mxu3 %v4981_v11  ;;  %v5005_v10 = vld [vmem:[#allocation6 + $0x158] sm:$0xff]  ;;  %v5007_v7 = vld [vmem:[#allocation6 + $0x120] sm:$0xff] }
  0x4b   :  { %9098 = vst [vmem:[#allocation42_spill] sm:$0xff] %v4981_v11  ;;  %605 = vmatpush.msrb.mxu1 %v4983_v13  ;;  %586 = vmatpush.msrb.mxu0 %v4997_v28  ;;  %v5009_v11 = vld [vmem:[#allocation6 + $0x128] sm:$0xff] }
  0x4c   :  { %9099 = vst [vmem:[#allocation43_spill] sm:$0xff] %v4983_v13  ;;  %625 = vmatpush.msra.mxu2 %v4987_v12  ;;  %645 = vmatpush.msra.mxu3 %v4991_v46  ;;  %v5017_v13 = vld [vmem:[#allocation6 + $0x100] sm:$0xff] }
  0x4d   :  { %9100 = vst [vmem:[#allocation44_spill] sm:$0xff] %v4987_v12  ;;  %606 = vmatpush.msrb.mxu1 %v4999_v63  ;;  %v5015_v12 = vld [vmem:[#allocation6 + $0x138] sm:$0xff]  ;;  %587 = vmatpush.msrb.mxu0 %v5007_v7 }
  0x4e   :  { %9101 = vst [vmem:[#allocation45_spill] sm:$0xff] %v4991_v46  ;;  %626 = vmatpush.msra.mxu2 %v5001_v56  ;;  %646 = vmatpush.msra.mxu3 %v5005_v10  ;;  %v5013_v46 = vld [vmem:[#allocation6 + $0x130] sm:$0xff] }
  0x4f   :  { %9102 = vst [vmem:[#allocation46_spill] sm:$0xff] %v4997_v28  ;;  %607 = vmatpush.msrb.mxu1 %v5009_v11  ;;  %v5023_v28 = vld [vmem:[#allocation6 + $0x110] sm:$0xff]  ;;  %588 = vmatpush.msrb.mxu0 %v5017_v13 }
  0x50   :  { %9103 = vst [vmem:[#allocation47_spill] sm:$0xff] %v4999_v63  ;;  %v5021_v63 = vld [vmem:[#allocation6 + $0x108] sm:$0xff]  ;;  %627 = vmatpush.msra.mxu2 %v5013_v46  ;;  %647 = vmatpush.msra.mxu3 %v5015_v12 }
  0x51   :  { %9104 = vst [vmem:[#allocation48_spill] sm:$0xff] %v5001_v56  ;;  %v5031_v56 = vld [vmem:[#allocation6 + $0xe8] sm:$0xff]  ;;  %608 = vmatpush.msrb.mxu1 %v5021_v63 }
  0x52   :  { %9105 = vst [vmem:[#allocation49_spill] sm:$0xff] %v5005_v10  ;;  %v5029_v10 = vld [vmem:[#allocation6 + $0xe0] sm:$0xff]  ;;  %628 = vmatpush.msra.mxu2 %v5023_v28  ;;  %648 = vmatpush.msra.mxu3 %v5025_v50 }
  0x53   :  { %9106 = vst [vmem:[#allocation50_spill] sm:$0xff] %v5007_v7  ;;  %v5035_v7 = vld [vmem:[#allocation6 + $0xf0] sm:$0xff]  ;;  %589 = vmatpush.msrb.mxu0 %v5029_v10  ;;  %609 = vmatpush.msrb.mxu1 %v5031_v56 }
  0x54   :  { %9107 = vst [vmem:[#allocation51_spill] sm:$0xff] %v5009_v11  ;;  %v5037_v11 = vld [vmem:[#allocation6 + $0xf8] sm:$0xff]  ;;  %629 = vmatpush.msra.mxu2 %v5035_v7 }
  0x55   :  { %9108 = vst [vmem:[#allocation52_spill] sm:$0xff] %v5013_v46  ;;  %649 = vmatpush.msra.mxu3 %v5037_v11  ;;  %v5073_v46 = vld [vmem:[#allocation6 + $0x98] sm:$0xff] }
  0x56   :  { %9109 = vst [vmem:[#allocation53_spill] sm:$0xff] %v5015_v12  ;;  %v5045_v12 = vld [vmem:[#allocation6 + $0xc0] sm:$0xff] }
  0x57   :  { %9110 = vst [vmem:[#allocation54_spill] sm:$0xff] %v5017_v13  ;;  %v5047_v13 = vld [vmem:[#allocation6 + $0xc8] sm:$0xff]  ;;  %590 = vmatpush.msrb.mxu0 %v5045_v12 }
  0x58   :  { %9111 = vst [vmem:[#allocation55_spill] sm:$0xff] %v5021_v63  ;;  %v5049_v63 = vld [vmem:[#allocation6 + $0xd0] sm:$0xff]  ;;  %610 = vmatpush.msrb.mxu1 %v5047_v13 }
  0x59   :  { %9112 = vst [vmem:[#allocation56_spill] sm:$0xff] %v5023_v28  ;;  %v5053_v28 = vld [vmem:[#allocation6 + $0xd8] sm:$0xff]  ;;  %630 = vmatpush.msra.mxu2 %v5049_v63 }
  0x5a   :  { %9113 = vst [vmem:[#allocation57_spill] sm:$0xff] %v5025_v50  ;;  %v5055_v50 = vld [vmem:[#allocation6 + $0xa0] sm:$0xff]  ;;  %650 = vmatpush.msra.mxu3 %v5053_v28 }
  0x5b   :  { %9114 = vst [vmem:[#allocation58_spill] sm:$0xff] %v5029_v10  ;;  %v5057_v10 = vld [vmem:[#allocation6 + $0xa8] sm:$0xff]  ;;  %591 = vmatpush.msrb.mxu0 %v5055_v50 }
  0x5c   :  { %9115 = vst [vmem:[#allocation59_spill] sm:$0xff] %v5031_v56  ;;  %v5065_v56 = vld [vmem:[#allocation6 + $0x80] sm:$0xff]  ;;  %611 = vmatpush.msrb.mxu1 %v5057_v10 }
  0x5d   :  { %9116 = vst [vmem:[#allocation60_spill] sm:$0xff] %v5035_v7  ;;  %v5063_v7 = vld [vmem:[#allocation6 + $0xb8] sm:$0xff]  ;;  %592 = vmatpush.msrb.mxu0 %v5065_v56 }
  0x5e   :  { %9117 = vst [vmem:[#allocation61_spill] sm:$0xff] %v5037_v11  ;;  %v5061_v11 = vld [vmem:[#allocation6 + $0xb0] sm:$0xff]  ;;  %651 = vmatpush.msra.mxu3 %v5063_v7 }
  0x5f   :  { %9118 = vst [vmem:[#allocation62_spill] sm:$0xff] %v5045_v12  ;;  %v5071_v12 = vld [vmem:[#allocation6 + $0x90] sm:$0xff]  ;;  %631 = vmatpush.msra.mxu2 %v5061_v11 }
  0x60   :  { %9119 = vst [vmem:[#allocation63_spill] sm:$0xff] %v5047_v13  ;;  %v5069_v13 = vld [vmem:[#allocation6 + $0x88] sm:$0xff]  ;;  %652 = vmatpush.msra.mxu3 %v5073_v46 }
  0x61   :  { %9120 = vst [vmem:[#allocation64_spill] sm:$0xff] %v5049_v63  ;;  %v5079_v63 = vld [vmem:[#allocation6 + $0x68] sm:$0xff]  ;;  %612 = vmatpush.msrb.mxu1 %v5069_v13  ;;  %632 = vmatpush.msra.mxu2 %v5071_v12 }
  0x62   :  { %9121 = vst [vmem:[#allocation65_spill] sm:$0xff] %v5053_v28  ;;  %v5077_v28 = vld [vmem:[#allocation6 + $0x60] sm:$0xff] }
  0x63   :  { %9122 = vst [vmem:[#allocation66_spill] sm:$0xff] %v5055_v50  ;;  %v5083_v50 = vld [vmem:[#allocation6 + $0x70] sm:$0xff]  ;;  %593 = vmatpush.msrb.mxu0 %v5077_v28  ;;  %613 = vmatpush.msrb.mxu1 %v5079_v63 }
  0x64   :  { %9123 = vst [vmem:[#allocation67_spill] sm:$0xff] %v5057_v10  ;;  %v5085_v10 = vld [vmem:[#allocation6 + $0x78] sm:$0xff]  ;;  %633 = vmatpush.msra.mxu2 %v5083_v50 }
  0x65   :  { %9124 = vst [vmem:[#allocation68_spill] sm:$0xff] %v5061_v11  ;;  %653 = vmatpush.msra.mxu3 %v5085_v10  ;;  %v5278_v11 = vld [vmem:[#allocation4 + $0x98] sm:$0xff] }
  0x66   :  { %9125 = vst [vmem:[#allocation69_spill] sm:$0xff] %v5063_v7  ;;  %v5093_v7 = vld [vmem:[#allocation6 + $0x40] sm:$0xff] }
  0x67   :  { %9126 = vst [vmem:[#allocation70_spill] sm:$0xff] %v5065_v56  ;;  %v5095_v56 = vld [vmem:[#allocation6 + $0x48] sm:$0xff]  ;;  %594 = vmatpush.msrb.mxu0 %v5093_v7 }
  0x68   :  { %9127 = vst [vmem:[#allocation71_spill] sm:$0xff] %v5069_v13  ;;  %v5097_v13 = vld [vmem:[#allocation6 + $0x50] sm:$0xff]  ;;  %614 = vmatpush.msrb.mxu1 %v5095_v56 }
  0x69   :  { %9128 = vst [vmem:[#allocation72_spill] sm:$0xff] %v5071_v12  ;;  %v5101_v12 = vld [vmem:[#allocation6 + $0x58] sm:$0xff]  ;;  %634 = vmatpush.msra.mxu2 %v5097_v13 }
  0x6a   :  { %9129 = vst [vmem:[#allocation73_spill] sm:$0xff] %v5073_v46  ;;  %v5103_v46 = vld [vmem:[#allocation6 + $0x20] sm:$0xff]  ;;  %654 = vmatpush.msra.mxu3 %v5101_v12 }
  0x6b   :  { %9130 = vst [vmem:[#allocation74_spill] sm:$0xff] %v5077_v28  ;;  %v5105_v28 = vld [vmem:[#allocation6 + $0x28] sm:$0xff]  ;;  %595 = vmatpush.msrb.mxu0 %v5103_v46 }
  0x6c   :  { %9131 = vst [vmem:[#allocation75_spill] sm:$0xff] %v5079_v63  ;;  %615 = vmatpush.msrb.mxu1 %v5105_v28  ;;  %v5121_v63 = vld [vmem:[#allocation6 + $0x10] sm:$0xff] }
  0x6d   :  { %9132 = vst [vmem:[#allocation76_spill] sm:$0xff] %v5083_v50  ;;  %v5111_v50 = vld [vmem:[#allocation6 + $0x38] sm:$0xff] }
  0x6e   :  { %9133 = vst [vmem:[#allocation77_spill] sm:$0xff] %v5085_v10  ;;  %v5109_v10 = vld [vmem:[#allocation6 + $0x30] sm:$0xff]  ;;  %655 = vmatpush.msra.mxu3 %v5111_v50 }
  0x6f   :  { %9134 = vst [vmem:[#allocation78_spill] sm:$0xff] %v5093_v7  ;;  %635 = vmatpush.msra.mxu2 %v5109_v10  ;;  %v5119_v7 = vld [vmem:[#allocation6 + $0x8] sm:$0xff] }
  0x70   :  { %9135 = vst [vmem:[#allocation79_spill] sm:$0xff] %v5095_v56  ;;  %v5117_v56 = vld [vmem:[#allocation6] sm:$0xff]  ;;  %616 = vmatpush.msrb.mxu1 %v5119_v7 }
  0x71   :  { %9136 = vst [vmem:[#allocation80_spill] sm:$0xff] %v5097_v13  ;;  %596 = vmatpush.msrb.mxu0 %v5117_v56  ;;  %636 = vmatpush.msra.mxu2 %v5121_v63  ;;  %v5187_v13 = vld [vmem:[#allocation4 + $0x178] sm:$0xff] }
  0x72   :  { %9137 = vst [vmem:[#allocation81_spill] sm:$0xff] %v5101_v12  ;;  %v5125_v12 = vld [vmem:[#allocation6 + $0x18] sm:$0xff] }
  0x73   :  { %9138 = vst [vmem:[#allocation82_spill] sm:$0xff] %v5103_v46  ;;  %656 = vmatpush.msra.mxu3 %v5125_v12  ;;  %v5137_v46 = vld [vmem:[#allocation4 + $0x1f8] sm:$0xff] }
  0x74   :  { %9139 = vst [vmem:[#allocation83_spill] sm:$0xff] %v5105_v28  ;;  %v5129_v28 = vld [vmem:[#allocation4 + $0x1e0] sm:$0xff] }
  0x75   :  { %9140 = vst [vmem:[#allocation84_spill] sm:$0xff] %v5109_v10  ;;  %v5131_v10 = vld [vmem:[#allocation4 + $0x1e8] sm:$0xff]  ;;  %661 = vmatpush.msra.mxu0 %v5129_v28  ;;  %721 = vmatpush.msrb.mxu3 %v5137_v46 }
  0x76   :  { %9141 = vst [vmem:[#allocation85_spill] sm:$0xff] %v5111_v50  ;;  %v5133_v50 = vld [vmem:[#allocation4 + $0x1f0] sm:$0xff]  ;;  %681 = vmatpush.msra.mxu1 %v5131_v10 }
  0x77   :  { %9142 = vst [vmem:[#allocation86_spill] sm:$0xff] %v5117_v56  ;;  %701 = vmatpush.msrb.mxu2 %v5133_v50  ;;  %v5149_v56 = vld [vmem:[#allocation4 + $0x1d8] sm:$0xff] }
  0x78   :  { %9143 = vst [vmem:[#allocation87_spill] sm:$0xff] %v5119_v7  ;;  %v5141_v7 = vld [vmem:[#allocation4 + $0x1c0] sm:$0xff]  ;;  %722 = vmatpush.msrb.mxu3 %v5149_v56 }
  0x79   :  { %9144 = vst [vmem:[#allocation88_spill] sm:$0xff] %v5121_v63  ;;  %v5143_v63 = vld [vmem:[#allocation4 + $0x1c8] sm:$0xff]  ;;  %662 = vmatpush.msra.mxu0 %v5141_v7 }
  0x7a   :  { %9145 = vst [vmem:[#allocation89_spill] sm:$0xff] %v5125_v12  ;;  %v5145_v12 = vld [vmem:[#allocation4 + $0x1d0] sm:$0xff]  ;;  %682 = vmatpush.msra.mxu1 %v5143_v63 }
  0x7b   :  { %9146 = vst [vmem:[#allocation90_spill] sm:$0xff] %v5129_v28  ;;  %702 = vmatpush.msrb.mxu2 %v5145_v12  ;;  %v5161_v28 = vld [vmem:[#allocation4 + $0x1b8] sm:$0xff] }
  0x7c   :  { %9147 = vst [vmem:[#allocation91_spill] sm:$0xff] %v5131_v10  ;;  %v5153_v10 = vld [vmem:[#allocation4 + $0x1a0] sm:$0xff]  ;;  %723 = vmatpush.msrb.mxu3 %v5161_v28 }
  0x7d   :  { %9148 = vst [vmem:[#allocation92_spill] sm:$0xff] %v5133_v50  ;;  %v5155_v50 = vld [vmem:[#allocation4 + $0x1a8] sm:$0xff]  ;;  %663 = vmatpush.msra.mxu0 %v5153_v10 }
  0x7e   :  { %9149 = vst [vmem:[#allocation93_spill] sm:$0xff] %v5137_v46  ;;  %v5157_v46 = vld [vmem:[#allocation4 + $0x1b0] sm:$0xff]  ;;  %683 = vmatpush.msra.mxu1 %v5155_v50 }
  0x7f   :  { %9150 = vst [vmem:[#allocation94_spill] sm:$0xff] %v5141_v7  ;;  %703 = vmatpush.msrb.mxu2 %v5157_v46 }
  0x80   :  { %9151 = vst [vmem:[#allocation95_spill] sm:$0xff] %v5143_v63  ;;  %v5171_v63 = vld [vmem:[#allocation4 + $0x190] sm:$0xff] }
  0x81   :  { %9152 = vst [vmem:[#allocation96_spill] sm:$0xff] %v5145_v12  ;;  %v5167_v12 = vld [vmem:[#allocation4 + $0x180] sm:$0xff]  ;;  %704 = vmatpush.msrb.mxu2 %v5171_v63 }
  0x82   :  { %9153 = vst [vmem:[#allocation97_spill] sm:$0xff] %v5149_v56  ;;  %v5169_v56 = vld [vmem:[#allocation4 + $0x188] sm:$0xff]  ;;  %664 = vmatpush.msra.mxu0 %v5167_v12 }
  0x83   :  { %9154 = vst [vmem:[#allocation98_spill] sm:$0xff] %v5153_v10  ;;  %684 = vmatpush.msra.mxu1 %v5169_v56  ;;  %v5175_v10 = vld [vmem:[#allocation4 + $0x198] sm:$0xff] }
  0x84   :  { %9155 = vst [vmem:[#allocation99_spill] sm:$0xff] %v5155_v50  ;;  %724 = vmatpush.msrb.mxu3 %v5175_v10  ;;  %v5179_v50 = vld [vmem:[#allocation4 + $0x160] sm:$0xff] }
  0x85   :  { %9156 = vst [vmem:[#allocation100_spill] sm:$0xff] %v5157_v46  ;;  %v5181_v46 = vld [vmem:[#allocation4 + $0x168] sm:$0xff]  ;;  %665 = vmatpush.msra.mxu0 %v5179_v50 }
  0x86   :  { %9157 = vst [vmem:[#allocation101_spill] sm:$0xff] %v5161_v28  ;;  %v5183_v28 = vld [vmem:[#allocation4 + $0x170] sm:$0xff]  ;;  %685 = vmatpush.msra.mxu1 %v5181_v46  ;;  %725 = vmatpush.msrb.mxu3 %v5187_v13 }
  0x87   :  { %9158 = vst [vmem:[#allocation102_spill] sm:$0xff] %v5167_v12  ;;  %705 = vmatpush.msrb.mxu2 %v5183_v28  ;;  %v5199_v12 = vld [vmem:[#allocation4 + $0x158] sm:$0xff] }
  0x88   :  { %9159 = vst [vmem:[#allocation103_spill] sm:$0xff] %v5169_v56  ;;  %v5191_v56 = vld [vmem:[#allocation4 + $0x140] sm:$0xff]  ;;  %726 = vmatpush.msrb.mxu3 %v5199_v12 }
  0x89   :  { %9160 = vst [vmem:[#allocation104_spill] sm:$0xff] %v5171_v63  ;;  %v5193_v63 = vld [vmem:[#allocation4 + $0x148] sm:$0xff]  ;;  %666 = vmatpush.msra.mxu0 %v5191_v56 }
  0x8a   :  { %9161 = vst [vmem:[#allocation105_spill] sm:$0xff] %v5175_v10  ;;  %v5195_v10 = vld [vmem:[#allocation4 + $0x150] sm:$0xff]  ;;  %686 = vmatpush.msra.mxu1 %v5193_v63 }
  0x8b   :  { %9162 = vst [vmem:[#allocation106_spill] sm:$0xff] %v5179_v50  ;;  %706 = vmatpush.msrb.mxu2 %v5195_v10  ;;  %v5211_v50 = vld [vmem:[#allocation4 + $0x138] sm:$0xff] }
  0x8c   :  { %9163 = vst [vmem:[#allocation107_spill] sm:$0xff] %v5181_v46  ;;  %v5203_v46 = vld [vmem:[#allocation4 + $0x120] sm:$0xff]  ;;  %727 = vmatpush.msrb.mxu3 %v5211_v50 }
  0x8d   :  { %9164 = vst [vmem:[#allocation108_spill] sm:$0xff] %v5183_v28  ;;  %v5205_v28 = vld [vmem:[#allocation4 + $0x128] sm:$0xff]  ;;  %667 = vmatpush.msra.mxu0 %v5203_v46 }
  0x8e   :  { %9165 = vst [vmem:[#allocation109_spill] sm:$0xff] %v5187_v13  ;;  %v5207_v13 = vld [vmem:[#allocation4 + $0x130] sm:$0xff]  ;;  %687 = vmatpush.msra.mxu1 %v5205_v28 }
  0x8f   :  { %9166 = vst [vmem:[#allocation110_spill] sm:$0xff] %v5191_v56  ;;  %707 = vmatpush.msrb.mxu2 %v5207_v13  ;;  %v5223_v56 = vld [vmem:[#allocation4 + $0x118] sm:$0xff] }
  0x90   :  { %9167 = vst [vmem:[#allocation111_spill] sm:$0xff] %v5193_v63  ;;  %v5215_v63 = vld [vmem:[#allocation4 + $0x100] sm:$0xff]  ;;  %728 = vmatpush.msrb.mxu3 %v5223_v56 }
  0x91   :  { %9168 = vst [vmem:[#allocation112_spill] sm:$0xff] %v5195_v10  ;;  %v5217_v10 = vld [vmem:[#allocation4 + $0x108] sm:$0xff]  ;;  %668 = vmatpush.msra.mxu0 %v5215_v63 }
  0x92   :  { %9169 = vst [vmem:[#allocation113_spill] sm:$0xff] %v5199_v12  ;;  %v5219_v12 = vld [vmem:[#allocation4 + $0x110] sm:$0xff]  ;;  %688 = vmatpush.msra.mxu1 %v5217_v10 }
  0x93   :  { %9170 = vst [vmem:[#allocation114_spill] sm:$0xff] %v5203_v46  ;;  %708 = vmatpush.msrb.mxu2 %v5219_v12 }
  0x94   :  { %9171 = vst [vmem:[#allocation115_spill] sm:$0xff] %v5205_v28  ;;  %v5233_v28 = vld [vmem:[#allocation4 + $0xf0] sm:$0xff] }
  0x95   :  { %9172 = vst [vmem:[#allocation116_spill] sm:$0xff] %v5207_v13  ;;  %v5229_v13 = vld [vmem:[#allocation4 + $0xe0] sm:$0xff]  ;;  %709 = vmatpush.msrb.mxu2 %v5233_v28 }
  0x96   :  { %9173 = vst [vmem:[#allocation117_spill] sm:$0xff] %v5211_v50  ;;  %v5231_v50 = vld [vmem:[#allocation4 + $0xe8] sm:$0xff]  ;;  %669 = vmatpush.msra.mxu0 %v5229_v13 }
  0x97   :  { %9174 = vst [vmem:[#allocation118_spill] sm:$0xff] %v5215_v63  ;;  %689 = vmatpush.msra.mxu1 %v5231_v50  ;;  %v5237_v63 = vld [vmem:[#allocation4 + $0xf8] sm:$0xff] }
  0x98   :  { %9175 = vst [vmem:[#allocation119_spill] sm:$0xff] %v5217_v10  ;;  %729 = vmatpush.msrb.mxu3 %v5237_v63  ;;  %v5249_v10 = vld [vmem:[#allocation4 + $0xd8] sm:$0xff] }
  0x99   :  { %9176 = vst [vmem:[#allocation120_spill] sm:$0xff] %v5219_v12  ;;  %v5243_v12 = vld [vmem:[#allocation4 + $0xc8] sm:$0xff] }
  0x9a   :  { %v5163_v7 = vpop.f32.mrf.mxu1  ;;  %9177 = vst [vmem:[#allocation121_spill] sm:$0xff] %v5223_v56  ;;  %v5245_v56 = vld [vmem:[#allocation4 + $0xd0] sm:$0xff]  ;;  %690 = vmatpush.msra.mxu1 %v5243_v12  ;;  %730 = vmatpush.msrb.mxu3 %v5249_v10 }
  0x9b   :  { %9179 = vst [vmem:[#allocation123_spill] sm:$0xff] %v5229_v13  ;;  %710 = vmatpush.msrb.mxu2 %v5245_v56  ;;  %v5262_v13 = vld [vmem:[%s8412_s3] sm:$0xf] }
  0x9c   :  { %9180 = vst [vmem:[#allocation124_spill] sm:$0xff] %v5231_v50  ;;  %v5253_v50 = vld [vmem:[#allocation4 + $0xa0] sm:$0xff]  ;;  %v9206_v3 = vperm.slane %v5262_v13, 0 }
  0x9d   :  { %9181 = vst [vmem:[#allocation125_spill] sm:$0xff] %v5233_v28  ;;  %v5255_v28 = vld [vmem:[#allocation4 + $0xa8] sm:$0xff] }
  0x9e   :  { %9182 = vst [vmem:[#allocation126_spill] sm:$0xff] %v5237_v63  ;;  %v5257_v63 = vld [vmem:[#allocation4 + $0xb0] sm:$0xff]  ;;  %691 = vmatpush.msra.mxu1 %v5255_v28 }
  0x9f   :  { %9184 = vst [vmem:[#allocation128_spill] sm:$0xff] %v5243_v12  ;;  %v5266_v12 = vld [vmem:[#allocation4 + $0xb8] sm:$0xff]  ;;  %711 = vmatpush.msrb.mxu2 %v5257_v63 }
  0xa0   :  { %9185 = vst [vmem:[#allocation129_spill] sm:$0xff] %v5245_v56  ;;  %731 = vmatpush.msrb.mxu3 %v5266_v12  ;;  %v5272_v56 = vld [vmem:[#allocation4 + $0x88] sm:$0xff] }
  0xa1   :  { %9186 = vst [vmem:[#allocation130_spill] sm:$0xff] %v5249_v10  ;;  %v5270_v10 = vld [vmem:[#allocation4 + $0x80] sm:$0xff]  ;;  %692 = vmatpush.msra.mxu1 %v5272_v56 }
  0xa2   :  { %9187 = vst [vmem:[#allocation131_spill] sm:$0xff] %v5253_v50  ;;  %732 = vmatpush.msrb.mxu3 %v5278_v11 }
  0xa3   :  { %9188 = vst [vmem:[#allocation132_spill] sm:$0xff] %v5255_v28  ;;  %v5286_v28 = vld [vmem:[#allocation4 + $0x70] sm:$0xff] }
  0xa4   :  { %v5225_v46 = vpop.f32.mrf.mxu1  ;;  %9189 = vst [vmem:[#allocation133_spill] sm:$0xff] %v5257_v63  ;;  %v5282_v63 = vld [vmem:[#allocation4 + $0x60] sm:$0xff] }
  0xa5   :  { %9178 = vst [vmem:[#allocation122_spill] sm:$0xff] %v5225_v46  ;;  %v5241_v46 = vld [vmem:[#allocation4 + $0xc0] sm:$0xff] }
  0xa6   :  { %9183 = vst [vmem:[#allocation127_spill] sm:$0xff] %v5241_v46  ;;  %670 = vmatpush.msra.mxu0 %v5241_v46  ;;  %v5274_v46 = vld [vmem:[#allocation4 + $0x90] sm:$0xff] }
  0xa7   :  { %9190 = vst [vmem:[#allocation134_spill] sm:$0xff] %v5262_v13  ;;  %712 = vmatpush.msrb.mxu2 %v5274_v46 }
  0xa8   :  { %671 = vmatpush.msra.mxu0 %v5253_v50  ;;  %9191 = vst [vmem:[#allocation135_spill] sm:$0xff] %v5266_v12  ;;  %v5284_v12 = vld [vmem:[#allocation4 + $0x68] sm:$0xff] }
  0xa9   :  { %9192 = vst [vmem:[#allocation136_spill] sm:$0xff] %v5270_v10  ;;  %693 = vmatpush.msra.mxu1 %v5284_v12  ;;  %713 = vmatpush.msrb.mxu2 %v5286_v28 }
  0xaa   :  { %9193 = vst [vmem:[#allocation137_spill] sm:$0xff] %v5272_v56  ;;  %672 = vmatpush.msra.mxu0 %v5270_v10  ;;  %v5291_v56 = vld [vmem:[#allocation4 + $0x78] sm:$0xff]  ;;  %v5299_v10 = vld [vmem:[#allocation4 + $0x50] sm:$0xff] }
  0xab   :  { %9194 = vst [vmem:[#allocation138_spill] sm:$0xff] %v5274_v46  ;;  %733 = vmatpush.msrb.mxu3 %v5291_v56  ;;  %v5295_v46 = vld [vmem:[#allocation4 + $0x40] sm:$0xff]  ;;  %714 = vmatpush.msrb.mxu2 %v5299_v10 }
  0xac   :  { %9195 = vst [vmem:[#allocation139_spill] sm:$0xff] %v5278_v11  ;;  %673 = vmatpush.msra.mxu0 %v5282_v63  ;;  %v5297_v11 = vld [vmem:[#allocation4 + $0x48] sm:$0xff] }
  0xad   :  { %v183_v50 = vpop.f32.mrf.mxu1  ;;  %9196 = vst [vmem:[#allocation140_spill] sm:$0xff] %v5282_v63  ;;  %694 = vmatpush.msra.mxu1 %v5297_v11  ;;  %734 = vmatpush.msrb.mxu3 %v5303_v54 }
  0xae   :  { %9197 = vst [vmem:[#allocation141_spill] sm:$0xff] %v5284_v12  ;;  %674 = vmatpush.msra.mxu0 %v5295_v46  ;;  %v5313_v12 = vld [vmem:[#allocation4 + $0x30] sm:$0xff] }
  0xaf   :  { %9198 = vst [vmem:[#allocation142_spill] sm:$0xff] %v5286_v28  ;;  %v5309_v28 = vld [vmem:[#allocation4 + $0x20] sm:$0xff]  ;;  %715 = vmatpush.msrb.mxu2 %v5313_v12 }
  0xb0   :  { %9199 = vst [vmem:[#allocation143_spill] sm:$0xff] %v5291_v56  ;;  %v5311_v56 = vld [vmem:[#allocation4 + $0x28] sm:$0xff]  ;;  %675 = vmatpush.msra.mxu0 %v5309_v28 }
  0xb1   :  { %9200 = vst [vmem:[#allocation144_spill] sm:$0xff] %v5295_v46  ;;  %v5318_v46 = vadd.f32 %v5163_v7, %v9206_v3  ;;  %695 = vmatpush.msra.mxu1 %v5311_v56  ;;  %v5335_v7 = vld [vmem:[#allocation4 + $0x18] sm:$0xff]  ;;  %716 = vmatpush.msrb.mxu2 %v5330_v60 }
  0xb2   :  { %9201 = vst [vmem:[#allocation145_spill] sm:$0xff] %v5297_v11  ;;  %v5305_v63 = vpop.f32.mrf.mxu2  ;;  %v5322_v11 = vld [vmem:[#allocation4 + $0x38] sm:$0xff] }
  0xb3   :  { %9202 = vst [vmem:[#allocation146_spill] sm:$0xff] %v5299_v10  ;;  %735 = vmatpush.msrb.mxu3 %v5322_v11  ;;  %696 = vmatpush.msra.mxu1 %v5328_v2 }
  0xb4   :  { %9203 = vst [vmem:[#allocation147_spill] sm:$0xff] %v5303_v54  ;;  %v451_v10 = vpop.f32.mrf.mxu0  ;;  %v5326_v54 = vld [vmem:[#allocation4] sm:$0xff] }
  0xb5   :  { %9204 = vst [vmem:[#allocation148_spill] sm:$0xff] %v5311_v56  ;;  %v514_v3 = vadd.f32 %v451_v10, %v5318_v46  ;;  %676 = vmatpush.msra.mxu0 %v5326_v54  ;;  %736 = vmatpush.msrb.mxu3 %v5335_v7  ;;  %v8562_v10 = vperm.slane %v5262_v13, 1 }
  0xb6   :  { %9205 = vst [vmem:[#allocation149_spill] sm:$0xff] %v5313_v12  ;;  %v3621_v12 = vld [vmem:[%s8416_s7 + $0x2] sm:$0x3] }
  0xb7   :  { %9207 = vst [vmem:[#allocation150_spill] sm:$0xff] %v5318_v46  ;;  %v5342_v56 = vpop.f32.mrf.mxu1  ;;  %597 = vmatmul.f32.vlgmr.msrb.gmra.mxu0 %v3621_v12  ;;  %617 = vmatmul.f32.vlgmr.msrb.gmra.mxu1 %v3621_v12 }
  0xb8   :  { %9208 = vst [vmem:[#allocation151_spill] sm:$0xff] %v5322_v11  ;;  %v3623_v11 = vmul.f32 -1.442695, %v514_v3  ;;  %637 = vmatmul.f32.vlgmr.msra.gmra.mxu2 %v3621_v12  ;;  %657 = vmatmul.f32.vlgmr.msra.gmra.mxu3 %v3621_v12  ;;  %v229_v3 = vpop.f32.mrf.mxu3 }
  0xb9   :  { %9209 = vst [vmem:[#allocation152_spill] sm:$0xff] %v5342_v56  ;;  %817 = vmatpush.msrb.mxu0 %v4706_v0  ;;  %837 = vmatpush.msrb.mxu1 %v4740_v14  ;;  %v5359_v0 = vadd.f32 %v183_v50, %v8562_v10  ;;  %v8561_v14 = vperm.slane %v5262_v13, 2  ;;  %v9247_v50 = vld [vmem:[#allocation44_spill] sm:$0xff]  ;;  %v5831_v10 = vld [vmem:[#allocation2 + $0x68] sm:$0xff] }
  0xba   :  { %3682 = vpow2.f32 %v3623_v11  ;;  %857 = vmatpush.msra.mxu2 %v4731_v8  ;;  %877 = vmatpush.msra.mxu3 %v4746_v16 }
  0xbb   :  { %818 = vmatpush.msrb.mxu0 %v4708_v1  ;;  %838 = vmatpush.msrb.mxu1 %v4752_v18  ;;  %v5351_v56 = vpop.f32.mrf.mxu2  ;;  %9211 = vst [vmem:[#allocation154_spill] sm:$0xff] %v5359_v0 }
  0xbc   :  { %9210 = vst [vmem:[#allocation153_spill] sm:$0xff] %v5351_v56  ;;  %858 = vmatpush.msra.mxu2 %v4742_v15  ;;  %878 = vmatpush.msra.mxu3 %v4758_v20  ;;  %v5837_v56 = vld [vmem:[#allocation2 + $0x78] sm:$0xff] }
  0xbd   :  { %819 = vmatpush.msrb.mxu0 %v4717_v4  ;;  %839 = vmatpush.msrb.mxu1 %v4764_v22 }
  0xbe   :  { %859 = vmatpush.msra.mxu2 %v4754_v19  ;;  %879 = vmatpush.msra.mxu3 %v4770_v24 }
  0xbf   :  { %v471_v8 = vpop.f32.mrf.mxu1  ;;  %820 = vmatpush.msrb.mxu0 %v4720_v5  ;;  %840 = vmatpush.msrb.mxu1 %v4776_v26  ;;  %v5381_v5 = vadd.f32 %v5305_v63, %v8561_v14  ;;  %v5828_v14 = vld [vmem:[#allocation2 + $0x60] sm:$0xff] }
  0xc0   :  { %v3683_v1 = vpop.eup %3682  ;;  %v515_v4 = vadd.f32 %v471_v8, %v5359_v0  ;;  %860 = vmatpush.msra.mxu2 %v4766_v23  ;;  %880 = vmatpush.msra.mxu3 %v4787_v29  ;;  %v5387_v18 = vpop.f32.mrf.mxu3 }
  0xc1   :  { %v5366_v15 = vadd.f32 1.0, %v3683_v1  ;;  %821 = vmatpush.msrb.mxu0 %v4723_v6  ;;  %841 = vmatpush.msrb.mxu1 %v4793_v31  ;;  %9212 = vst [vmem:[#allocation155_spill] sm:$0xff] %v5387_v18  ;;  %v9213_v31 = vld [vmem:[#allocation15_spill] sm:$0xff]  ;;  %v5834_v18 = vld [vmem:[#allocation2 + $0x70] sm:$0xff] }
  0xc2   :  { %v3624_v16 = vmul.f32 -1.442695, %v515_v4  ;;  %861 = vmatpush.msra.mxu2 %v4778_v27  ;;  %881 = vmatpush.msra.mxu3 %v4799_v33 }
  0xc3   :  { %3684 = vrcp.f32 %v5366_v15  ;;  %822 = vmatpush.msrb.mxu0 %v4733_v9  ;;  %842 = vmatpush.msrb.mxu1 %v4806_v35  ;;  %v9215_v35 = vld [vmem:[#allocation12_spill] sm:$0xff]  ;;  %vm535_vm3 = vweird.f32 %v5366_v15 }
  0xc4   :  { %3686 = vpow2.f32 %v3624_v16  ;;  %862 = vmatpush.msra.mxu2 %v4797_v32  ;;  %882 = vmatpush.msra.mxu3 %v4812_v37  ;;  %v491_v6 = vpop.f32.mrf.mxu2  ;;  %v9214_v32 = vld [vmem:[#allocation17_spill] sm:$0xff] }
  0xc5   :  { %823 = vmatpush.msrb.mxu0 %v4748_v17  ;;  %843 = vmatpush.msrb.mxu1 %v4818_v39  ;;  %v516_v9 = vadd.f32 %v491_v6, %v5381_v5  ;;  %v9217_v39 = vld [vmem:[#allocation16_spill] sm:$0xff] }
  0xc6   :  { %863 = vmatpush.msra.mxu2 %v4810_v36  ;;  %883 = vmatpush.msra.mxu3 %v4824_v41  ;;  %v9216_v36 = vld [vmem:[#allocation18_spill] sm:$0xff]  ;;  %v541_v41 = vand.u32 2147483648, %v5366_v15 }
  0xc7   :  { %824 = vmatpush.msrb.mxu0 %v4760_v21  ;;  %844 = vmatpush.msrb.mxu1 %v4832_v43  ;;  %v3625_v20 = vmul.f32 -1.442695, %v516_v9  ;;  %v8560_v21 = vperm.slane %v5262_v13, 3  ;;  %v9220_v43 = vld [vmem:[#allocation22_spill] sm:$0xff]  ;;  %v5840_v13 = vld [vmem:[#allocation2 + $0x40] sm:$0xff] }
  0xc8   :  { %864 = vmatpush.msra.mxu2 %v4822_v40  ;;  %884 = vmatpush.msra.mxu3 %v4838_v45  ;;  %v511_v27 = vpop.f32.mrf.mxu3  ;;  %v9218_v40 = vld [vmem:[#allocation21_spill] sm:$0xff]  ;;  %v539_v45 = vand.u32 2147483647, %v5366_v15 }
  0xc9   :  { %v5394_v19 = vpop.eup %3684  ;;  %825 = vmatpush.msrb.mxu0 %v4772_v25  ;;  %845 = vmatpush.msrb.mxu1 %v4847_v47  ;;  %3688 = vpow2.f32 %v3625_v20  ;;  %v5418_v25 = vadd.f32 %v229_v3, %v8560_v21  ;;  %v9221_v47 = vld [vmem:[#allocation19_spill] sm:$0xff] }
  0xca   :  { %v531_v17 = vmul.f32 %v5394_v19, %v5366_v15  ;;  %v3687_v22 = vpop.eup %3686  ;;  %865 = vmatpush.msra.mxu2 %v4834_v44  ;;  %885 = vmatpush.msra.mxu3 %v4854_v49  ;;  %vm536_vm2 = vweird.f32 %v5394_v19  ;;  %vm540_vm7 = vcmp.eq.f32.partialorder %v539_v45, 8.507059e+37  ;;  %v431_v3 = vld [vmem:[%s8417_s8] sm:$0x3]  ;;  %v9243_v45 = vld [vmem:[#allocation40_spill] sm:$0xff] }
  0xcb   :  { %v5405_v23 = vadd.f32 1.0, %v3687_v22  ;;  %826 = vmatpush.msrb.mxu0 %v4791_v30  ;;  %846 = vmatpush.msrb.mxu1 %v4861_v51  ;;  %vm5445_vm4 = vmor %vm535_vm3, %vm536_vm2  ;;  %v9225_v51 = vld [vmem:[#allocation14_spill] sm:$0xff]  ;;  %v5825_v21 = vld [vmem:[#allocation2 + $0x98] sm:$0xff] }
  0xcc   :  { %v532_v24 = vsub.f32 1.0, %v531_v17  ;;  %866 = vmatpush.msra.mxu2 %v4849_v48  ;;  %886 = vmatpush.msra.mxu3 %v4867_v53  ;;  %v9222_v48 = vld [vmem:[#allocation25_spill] sm:$0xff] }
  0xcd   :  { %3690 = vrcp.f32 %v5405_v23  ;;  %827 = vmatpush.msrb.mxu0 %v4804_v34  ;;  %847 = vmatpush.msrb.mxu1 %v4873_v55  ;;  %v517_v34 = vadd.f32 %v511_v27, %v5418_v25  ;;  %v556_v49 = vand.u32 2147483648, %v5405_v23  ;;  %vm550_vm6 = vweird.f32 %v5405_v23 }
  0xce   :  { %867 = vmatpush.msra.mxu2 %v4863_v52  ;;  %887 = vmatpush.msra.mxu3 %v4882_v58  ;;  %v533_v29 = vmul.f32 %v5394_v19, %v532_v24  ;;  %v9226_v52 = vld [vmem:[#allocation26_spill] sm:$0xff]  ;;  %v9227_v58 = vld [vmem:[#allocation23_spill] sm:$0xff] }
  0xcf   :  { %828 = vmatpush.msrb.mxu0 %v4816_v38  ;;  %848 = vmatpush.msrb.mxu1 %v4886_v59  ;;  %v3689_v26 = vpop.eup %3688  ;;  %v9228_v59 = vld [vmem:[#allocation27_spill] sm:$0xff]  ;;  %v557_v12 = vor.u32 1.1754944e-38, %v556_v49 }
  0xd0   :  { %868 = vmatpush.msra.mxu2 %v4880_v57  ;;  %888 = vmatpush.msra.mxu3 %v4893_v61  ;;  %v529_v30 = vadd.f32 1.0, %v3689_v26  ;;  %v534_v38 = vadd.f32 %v5394_v19, %v533_v29  ;;  %v554_v57 = vand.u32 2147483647, %v5405_v23  ;;  %v9246_v49 = vld [vmem:[#allocation43_spill] sm:$0xff] }
  0xd1   :  { %829 = vmatpush.msrb.mxu0 %v4828_v42  ;;  %849 = vmatpush.msrb.mxu1 %v4895_v62  ;;  %v9219_v42 = vld [vmem:[#allocation13_spill] sm:$0xff]  ;;  %v542_v62 = vor.u32 1.1754944e-38, %v541_v41  ;;  %v9239_v41 = vld [vmem:[#allocation36_spill] sm:$0xff] }
  0xd2   :  { %869 = vmatpush.msra.mxu2 %v9213_v31  ;;  %889 = vmatpush.msra.mxu3 %v9214_v32  ;;  %3692 = vrcp.f32 %v529_v30  ;;  %v538_v55 = vsel %vm5445_vm4, %v5394_v19, %v534_v38  ;;  %vm555_vm9 = vcmp.eq.f32.partialorder %v554_v57, 8.507059e+37  ;;  %v571_v22 = vand.u32 2147483648, %v529_v30  ;;  %v9229_v32 = vld [vmem:[#allocation20_spill] sm:$0xff]  ;;  %v9236_v38 = vld [vmem:[#allocation34_spill] sm:$0xff]  ;;  %v9252_v57 = vld [vmem:[#allocation49_spill] sm:$0xff] }
  0xd3   :  { %v3691_v33 = vpop.eup %3690  ;;  %830 = vmatpush.msrb.mxu0 %v9215_v35  ;;  %850 = vmatpush.msrb.mxu1 %v9216_v36  ;;  %3694 = vtanh.f32 %v517_v34  ;;  %v543_v1 = vsel %vm540_vm7, %v542_v62, %v538_v55  ;;  %vm565_vm11 = vweird.f32 %v529_v30  ;;  %v9231_v34 = vld [vmem:[#allocation29_spill] sm:$0xff]  ;;  %v9232_v35 = vld [vmem:[#allocation30_spill] sm:$0xff]  ;;  %v9234_v36 = vld [vmem:[#allocation31_spill] sm:$0xff]  ;;  %9379 = vst [vmem:[#allocation34_spill] sm:$0xff] %v5834_v18 }
  0xd4   :  { %v546_v37 = vmul.f32 %v3691_v33, %v5405_v23  ;;  %870 = vmatpush.msra.mxu2 %v9217_v39  ;;  %890 = vmatpush.msra.mxu3 %v9218_v40  ;;  %vm551_vm5 = vweird.f32 %v3691_v33  ;;  %v569_v23 = vand.u32 2147483647, %v529_v30  ;;  %v572_v26 = vor.u32 1.1754944e-38, %v571_v22  ;;  %v9237_v39 = vld [vmem:[#allocation33_spill] sm:$0xff]  ;;  %v9238_v40 = vld [vmem:[#allocation35_spill] sm:$0xff]  ;;  %v9251_v55 = vld [vmem:[#allocation48_spill] sm:$0xff] }
  0xd5   :  { %831 = vmatpush.msrb.mxu0 %v9219_v42  ;;  %851 = vmatpush.msrb.mxu1 %v9220_v43  ;;  %vm552_vm8 = vmor %vm550_vm6, %vm551_vm5  ;;  %v9240_v42 = vld [vmem:[#allocation38_spill] sm:$0xff]  ;;  %v9241_v43 = vld [vmem:[#allocation37_spill] sm:$0xff]  ;;  %9377 = vst [vmem:[#allocation31_spill] sm:$0xff] %v5828_v14 }
  0xd6   :  { %v547_v44 = vsub.f32 1.0, %v546_v37  ;;  %871 = vmatpush.msra.mxu2 %v9221_v47  ;;  %891 = vmatpush.msra.mxu3 %v9222_v48  ;;  %vm570_vm13 = vcmp.eq.f32.partialorder %v569_v23, 8.507059e+37  ;;  %v9235_v37 = vld [vmem:[#allocation32_spill] sm:$0xff]  ;;  %v9244_v47 = vld [vmem:[#allocation42_spill] sm:$0xff]  ;;  %v9245_v48 = vld [vmem:[#allocation41_spill] sm:$0xff]  ;;  %9380 = vst [vmem:[#allocation33_spill] sm:$0xff] %v5837_v56 }
  0xd7   :  { %832 = vmatpush.msrb.mxu0 %v9225_v51  ;;  %852 = vmatpush.msrb.mxu1 %v9226_v52  ;;  %v9248_v51 = vld [vmem:[#allocation45_spill] sm:$0xff]  ;;  %v9249_v52 = vld [vmem:[#allocation46_spill] sm:$0xff]  ;;  %v9270_v22 = vld [vmem:[#allocation67_spill] sm:$0xff]  ;;  %9378 = vst [vmem:[#allocation32_spill] sm:$0xff] %v5831_v10 }
  0xd8   :  { %v548_v53 = vmul.f32 %v3691_v33, %v547_v44  ;;  %872 = vmatpush.msra.mxu2 %v9227_v58  ;;  %892 = vmatpush.msra.mxu3 %v9228_v59  ;;  %v3693_v61 = vpop.eup %3692  ;;  %v9242_v44 = vld [vmem:[#allocation39_spill] sm:$0xff]  ;;  %v9253_v58 = vld [vmem:[#allocation50_spill] sm:$0xff]  ;;  %v9256_v62 = vld [vmem:[#allocation53_spill] sm:$0xff]  ;;  %9381 = vst [vmem:[#allocation35_spill] sm:$0xff] %v5840_v13 }
  0xd9   :  { %v561_v63 = vmul.f32 %v3693_v61, %v529_v30  ;;  %v3695_v4 = vpop.eup %3694  ;;  %vm566_vm10 = vweird.f32 %v3693_v61  ;;  %v9233_v30 = vld [vmem:[#allocation24_spill] sm:$0xff]  ;;  %v9254_v59 = vld [vmem:[#allocation51_spill] sm:$0xff] }
  0xda   :  { %v549_v11 = vadd.f32 %v3691_v33, %v548_v53  ;;  %v577_v19 = vmul.f32 %v3695_v4, %v543_v1  ;;  %vm567_vm12 = vmor %vm565_vm11, %vm566_vm10  ;;  %v9250_v53 = vld [vmem:[#allocation47_spill] sm:$0xff]  ;;  %v9261_v1 = vld [vmem:[#allocation58_spill] sm:$0xff]  ;;  %9376 = vst [vmem:[#allocation24_spill] sm:$0xff] %v5825_v21 }
  0xdb   :  { %v562_v8 = vsub.f32 1.0, %v561_v63  ;;  %v9257_v63 = vld [vmem:[#allocation54_spill] sm:$0xff]  ;;  %v9264_v4 = vld [vmem:[#allocation61_spill] sm:$0xff]  ;;  %v9271_v23 = vld [vmem:[#allocation68_spill] sm:$0xff] }
  0xdc   :  { %v553_v15 = vsel %vm552_vm8, %v3691_v33, %v549_v11  ;;  %v9230_v33 = vld [vmem:[#allocation28_spill] sm:$0xff]  ;;  %v9258_v11 = vld [vmem:[#allocation55_spill] sm:$0xff] }
  0xdd   :  { %v558_v16 = vsel %vm555_vm9, %v557_v12, %v553_v15  ;;  %v563_v6 = vmul.f32 %v3693_v61, %v562_v8  ;;  %v9259_v12 = vld [vmem:[#allocation56_spill] sm:$0xff]  ;;  %v9262_v8 = vld [vmem:[#allocation59_spill] sm:$0xff] }
  0xde   :  { %v576_v9 = vmul.f32 %v558_v16, %v431_v3  ;;  %v9260_v3 = vld [vmem:[#allocation57_spill] sm:$0xff]  ;;  %v9263_v15 = vld [vmem:[#allocation60_spill] sm:$0xff]  ;;  %v9265_v16 = vld [vmem:[#allocation62_spill] sm:$0xff] }
  0xdf   :  { %v564_v17 = vadd.f32 %v3693_v61, %v563_v6  ;;  %v9266_v6 = vld [vmem:[#allocation63_spill] sm:$0xff] }
  0xe0   :  { %v5461_v20 = vadd.f32 %v577_v19, %v576_v9  ;;  %v9267_v9 = vld [vmem:[#allocation64_spill] sm:$0xff]  ;;  %v9268_v19 = vld [vmem:[#allocation65_spill] sm:$0xff] }
  0xe1   :  { %v568_v24 = vsel %vm567_vm12, %v3693_v61, %v564_v17  ;;  %v9255_v61 = vld [vmem:[#allocation52_spill] sm:$0xff]  ;;  %v9269_v17 = vld [vmem:[#allocation66_spill] sm:$0xff] }
  0xe2   :  { %3696 = vtanh.f32 %v5461_v20  ;;  %v573_v29 = vsel %vm570_vm13, %v572_v26, %v568_v24  ;;  %v9272_v24 = vld [vmem:[#allocation69_spill] sm:$0xff]  ;;  %v9273_v26 = vld [vmem:[#allocation70_spill] sm:$0xff] }
  0xe8   :  { %v3697_v27 = vpop.eup %3696 }
  0xe9   :  { %v580_v31 = vmul.f32 %v3697_v27, %v573_v29  ;;  %v9274_v27 = vld [vmem:[#allocation71_spill] sm:$0xff]  ;;  %v9275_v29 = vld [vmem:[#allocation72_spill] sm:$0xff] }
  0xeb   :  { %677 = vmatmul.f32.vlgmr.msra.gmra.mxu0 %v580_v31  ;;  %697 = vmatmul.f32.vlgmr.msra.gmra.mxu1 %v580_v31 }
  0xec   :  { %717 = vmatmul.f32.vlgmr.msrb.gmra.mxu2 %v580_v31  ;;  %737 = vmatmul.f32.vlgmr.msrb.gmra.mxu3 %v580_v31 }
  0xed   :  { %979 = vmatpush.msra.mxu0 %v9229_v32  ;;  %999 = vmatpush.msra.mxu1 %v9230_v33  ;;  %v9277_v32 = vld [vmem:[#allocation74_spill] sm:$0xff]  ;;  %v9278_v33 = vld [vmem:[#allocation75_spill] sm:$0xff] }
  0xee   :  { %1019 = vmatpush.msrb.mxu2 %v9231_v34  ;;  %1039 = vmatpush.msrb.mxu3 %v9232_v35  ;;  %v9279_v34 = vld [vmem:[#allocation76_spill] sm:$0xff]  ;;  %v9280_v35 = vld [vmem:[#allocation77_spill] sm:$0xff] }
  0xef   :  { %980 = vmatpush.msra.mxu0 %v9233_v30  ;;  %1000 = vmatpush.msra.mxu1 %v9234_v36  ;;  %v9281_v30 = vld [vmem:[#allocation78_spill] sm:$0xff]  ;;  %v9282_v36 = vld [vmem:[#allocation79_spill] sm:$0xff] }
  0xf0   :  { %1020 = vmatpush.msrb.mxu2 %v9235_v37  ;;  %1040 = vmatpush.msrb.mxu3 %v9236_v38  ;;  %v9283_v37 = vld [vmem:[#allocation80_spill] sm:$0xff]  ;;  %v9284_v38 = vld [vmem:[#allocation81_spill] sm:$0xff] }
  0xf1   :  { %981 = vmatpush.msra.mxu0 %v9237_v39  ;;  %1001 = vmatpush.msra.mxu1 %v9238_v40  ;;  %v9285_v39 = vld [vmem:[#allocation82_spill] sm:$0xff]  ;;  %v9286_v40 = vld [vmem:[#allocation83_spill] sm:$0xff] }
  0xf2   :  { %1021 = vmatpush.msrb.mxu2 %v9239_v41  ;;  %1041 = vmatpush.msrb.mxu3 %v9240_v42  ;;  %v9287_v41 = vld [vmem:[#allocation84_spill] sm:$0xff]  ;;  %v9288_v42 = vld [vmem:[#allocation85_spill] sm:$0xff] }
  0xf3   :  { %833 = vmatmul.f32.vlgmr.msrb.gmra.mxu0 %v580_v31  ;;  %853 = vmatmul.f32.vlgmr.msrb.gmra.mxu1 %v580_v31 }
  0xf4   :  { %873 = vmatmul.f32.vlgmr.msra.gmra.mxu2 %v580_v31  ;;  %893 = vmatmul.f32.vlgmr.msra.gmra.mxu3 %v580_v31  ;;  %v9276_v31 = vld [vmem:[#allocation73_spill] sm:$0xff] }
  0xf5   :  { %982 = vmatpush.msra.mxu0 %v9241_v43  ;;  %1002 = vmatpush.msra.mxu1 %v9242_v44  ;;  %v9289_v43 = vld [vmem:[#allocation86_spill] sm:$0xff]  ;;  %v9290_v44 = vld [vmem:[#allocation87_spill] sm:$0xff] }
  0xf6   :  { %1022 = vmatpush.msrb.mxu2 %v9243_v45  ;;  %1042 = vmatpush.msrb.mxu3 %v9244_v47  ;;  %v9291_v45 = vld [vmem:[#allocation88_spill] sm:$0xff]  ;;  %v9292_v47 = vld [vmem:[#allocation89_spill] sm:$0xff] }
  0xf7   :  { %983 = vmatpush.msra.mxu0 %v9245_v48  ;;  %1003 = vmatpush.msra.mxu1 %v9246_v49  ;;  %v9293_v48 = vld [vmem:[#allocation90_spill] sm:$0xff]  ;;  %v9294_v49 = vld [vmem:[#allocation91_spill] sm:$0xff] }
  0xf8   :  { %1023 = vmatpush.msrb.mxu2 %v9247_v50  ;;  %1043 = vmatpush.msrb.mxu3 %v9248_v51  ;;  %v9295_v50 = vld [vmem:[#allocation92_spill] sm:$0xff]  ;;  %v9296_v51 = vld [vmem:[#allocation93_spill] sm:$0xff] }
  0xf9   :  { %984 = vmatpush.msra.mxu0 %v9249_v52  ;;  %1004 = vmatpush.msra.mxu1 %v9250_v53  ;;  %v9297_v52 = vld [vmem:[#allocation94_spill] sm:$0xff]  ;;  %v9298_v53 = vld [vmem:[#allocation95_spill] sm:$0xff] }
  0xfa   :  { %1024 = vmatpush.msrb.mxu2 %v9251_v55  ;;  %1044 = vmatpush.msrb.mxu3 %v9252_v57  ;;  %v9299_v55 = vld [vmem:[#allocation96_spill] sm:$0xff]  ;;  %v9300_v57 = vld [vmem:[#allocation97_spill] sm:$0xff] }
  0xfb   :  { %985 = vmatpush.msra.mxu0 %v9253_v58  ;;  %1005 = vmatpush.msra.mxu1 %v9254_v59  ;;  %v9301_v58 = vld [vmem:[#allocation98_spill] sm:$0xff]  ;;  %v9302_v59 = vld [vmem:[#allocation99_spill] sm:$0xff] }
  0xfc   :  { %1025 = vmatpush.msrb.mxu2 %v9255_v61  ;;  %1045 = vmatpush.msrb.mxu3 %v9256_v62  ;;  %v9303_v61 = vld [vmem:[#allocation100_spill] sm:$0xff]  ;;  %v9304_v62 = vld [vmem:[#allocation101_spill] sm:$0xff] }
  0xfd   :  { %986 = vmatpush.msra.mxu0 %v9257_v63  ;;  %1006 = vmatpush.msra.mxu1 %v9258_v11  ;;  %v9305_v63 = vld [vmem:[#allocation102_spill] sm:$0xff]  ;;  %v9306_v11 = vld [vmem:[#allocation103_spill] sm:$0xff] }
  0xfe   :  { %1026 = vmatpush.msrb.mxu2 %v9259_v12  ;;  %1046 = vmatpush.msrb.mxu3 %v9260_v3  ;;  %v9307_v12 = vld [vmem:[#allocation104_spill] sm:$0xff]  ;;  %v9308_v3 = vld [vmem:[#allocation105_spill] sm:$0xff] }
  0xff   :  { %987 = vmatpush.msra.mxu0 %v9261_v1  ;;  %1007 = vmatpush.msra.mxu1 %v9262_v8  ;;  %v9309_v1 = vld [vmem:[#allocation106_spill] sm:$0xff]  ;;  %v9310_v8 = vld [vmem:[#allocation107_spill] sm:$0xff] }
 0x100   :  { %1027 = vmatpush.msrb.mxu2 %v9263_v15  ;;  %1047 = vmatpush.msrb.mxu3 %v9264_v4  ;;  %v9311_v15 = vld [vmem:[#allocation108_spill] sm:$0xff]  ;;  %v9312_v4 = vld [vmem:[#allocation109_spill] sm:$0xff] }
 0x101   :  { %988 = vmatpush.msra.mxu0 %v9265_v16  ;;  %1008 = vmatpush.msra.mxu1 %v9266_v6  ;;  %v9313_v16 = vld [vmem:[#allocation110_spill] sm:$0xff]  ;;  %v9314_v6 = vld [vmem:[#allocation111_spill] sm:$0xff] }
 0x102   :  { %1028 = vmatpush.msrb.mxu2 %v9267_v9  ;;  %1048 = vmatpush.msrb.mxu3 %v9268_v19  ;;  %v9315_v9 = vld [vmem:[#allocation112_spill] sm:$0xff]  ;;  %v9316_v19 = vld [vmem:[#allocation113_spill] sm:$0xff] }
 0x103   :  { %989 = vmatpush.msra.mxu0 %v9269_v17  ;;  %1009 = vmatpush.msra.mxu1 %v9270_v22  ;;  %v9317_v17 = vld [vmem:[#allocation114_spill] sm:$0xff]  ;;  %v9318_v22 = vld [vmem:[#allocation115_spill] sm:$0xff] }
 0x104   :  { %1029 = vmatpush.msrb.mxu2 %v9271_v23  ;;  %1049 = vmatpush.msrb.mxu3 %v9272_v24  ;;  %v9319_v23 = vld [vmem:[#allocation116_spill] sm:$0xff]  ;;  %v9320_v24 = vld [vmem:[#allocation117_spill] sm:$0xff] }
 0x105   :  { %990 = vmatpush.msra.mxu0 %v9273_v26  ;;  %1010 = vmatpush.msra.mxu1 %v9274_v27  ;;  %v9321_v26 = vld [vmem:[#allocation118_spill] sm:$0xff]  ;;  %v9322_v27 = vld [vmem:[#allocation119_spill] sm:$0xff] }
 0x106   :  { %1030 = vmatpush.msrb.mxu2 %v9275_v29  ;;  %1050 = vmatpush.msrb.mxu3 %v9276_v31  ;;  %v9323_v29 = vld [vmem:[#allocation120_spill] sm:$0xff]  ;;  %v9324_v31 = vld [vmem:[#allocation121_spill] sm:$0xff] }
 0x107   :  { %991 = vmatpush.msra.mxu0 %v9277_v32  ;;  %1011 = vmatpush.msra.mxu1 %v9278_v33  ;;  %v9325_v32 = vld [vmem:[#allocation123_spill] sm:$0xff]  ;;  %v9326_v33 = vld [vmem:[#allocation124_spill] sm:$0xff] }
 0x108   :  { %1031 = vmatpush.msrb.mxu2 %v9279_v34  ;;  %1051 = vmatpush.msrb.mxu3 %v9280_v35  ;;  %v9327_v34 = vld [vmem:[#allocation125_spill] sm:$0xff]  ;;  %v9328_v35 = vld [vmem:[#allocation126_spill] sm:$0xff] }
 0x109   :  { %992 = vmatpush.msra.mxu0 %v9281_v30  ;;  %1012 = vmatpush.msra.mxu1 %v9282_v36  ;;  %v9329_v30 = vld [vmem:[#allocation127_spill] sm:$0xff]  ;;  %v9330_v36 = vld [vmem:[#allocation128_spill] sm:$0xff] }
 0x10a   :  { %1032 = vmatpush.msrb.mxu2 %v9283_v37  ;;  %1052 = vmatpush.msrb.mxu3 %v9284_v38  ;;  %v9331_v37 = vld [vmem:[#allocation129_spill] sm:$0xff]  ;;  %v9332_v38 = vld [vmem:[#allocation130_spill] sm:$0xff] }
 0x10b   :  { %993 = vmatpush.msra.mxu0 %v9285_v39  ;;  %1013 = vmatpush.msra.mxu1 %v9286_v40  ;;  %v9333_v39 = vld [vmem:[#allocation131_spill] sm:$0xff]  ;;  %v9334_v40 = vld [vmem:[#allocation132_spill] sm:$0xff] }
 0x10c   :  { %1033 = vmatpush.msrb.mxu2 %v9287_v41  ;;  %1053 = vmatpush.msrb.mxu3 %v9288_v42  ;;  %v9335_v41 = vld [vmem:[#allocation133_spill] sm:$0xff]  ;;  %v9336_v42 = vld [vmem:[#allocation135_spill] sm:$0xff] }
 0x10d   :  { %994 = vmatpush.msra.mxu0 %v9289_v43  ;;  %1014 = vmatpush.msra.mxu1 %v9290_v44  ;;  %v9337_v43 = vld [vmem:[#allocation136_spill] sm:$0xff]  ;;  %v9338_v44 = vld [vmem:[#allocation137_spill] sm:$0xff] }
 0x10e   :  { %1034 = vmatpush.msrb.mxu2 %v9291_v45  ;;  %1054 = vmatpush.msrb.mxu3 %v9292_v47  ;;  %v9339_v45 = vld [vmem:[#allocation138_spill] sm:$0xff]  ;;  %v9340_v47 = vld [vmem:[#allocation139_spill] sm:$0xff] }
 0x10f   :  { %1062 = vmatpush.msrb.mxu0 %v9293_v48  ;;  %1082 = vmatpush.msrb.mxu1 %v9294_v49  ;;  %v9341_v48 = vld [vmem:[#allocation140_spill] sm:$0xff]  ;;  %v9342_v49 = vld [vmem:[#allocation141_spill] sm:$0xff] }
 0x110   :  { %1102 = vmatpush.msra.mxu2 %v9295_v50  ;;  %1122 = vmatpush.msra.mxu3 %v9296_v51  ;;  %v9343_v50 = vld [vmem:[#allocation142_spill] sm:$0xff]  ;;  %v9344_v51 = vld [vmem:[#allocation143_spill] sm:$0xff] }
 0x111   :  { %1063 = vmatpush.msrb.mxu0 %v9297_v52  ;;  %1083 = vmatpush.msrb.mxu1 %v9298_v53  ;;  %v9345_v52 = vld [vmem:[#allocation144_spill] sm:$0xff]  ;;  %v9346_v53 = vld [vmem:[#allocation145_spill] sm:$0xff] }
 0x112   :  { %1103 = vmatpush.msra.mxu2 %v9299_v55  ;;  %1123 = vmatpush.msra.mxu3 %v9300_v57  ;;  %v9347_v55 = vld [vmem:[#allocation146_spill] sm:$0xff]  ;;  %v9348_v57 = vld [vmem:[#allocation147_spill] sm:$0xff] }
 0x113   :  { %1064 = vmatpush.msrb.mxu0 %v9301_v58  ;;  %1084 = vmatpush.msrb.mxu1 %v9302_v59  ;;  %v9349_v58 = vld [vmem:[#allocation148_spill] sm:$0xff]  ;;  %v9350_v59 = vld [vmem:[#allocation149_spill] sm:$0xff] }
 0x114   :  { %1104 = vmatpush.msra.mxu2 %v9303_v61  ;;  %1124 = vmatpush.msra.mxu3 %v9304_v62  ;;  %v9351_v61 = vld [vmem:[#allocation151_spill] sm:$0xff] }
 0x115   :  { %1065 = vmatpush.msrb.mxu0 %v9305_v63  ;;  %1085 = vmatpush.msrb.mxu1 %v9306_v11 }
 0x116   :  { %1105 = vmatpush.msra.mxu2 %v9307_v12  ;;  %1125 = vmatpush.msra.mxu3 %v9308_v3 }
 0x117   :  { %1066 = vmatpush.msrb.mxu0 %v9309_v1  ;;  %1086 = vmatpush.msrb.mxu1 %v9310_v8 }
 0x118   :  { %1106 = vmatpush.msra.mxu2 %v9311_v15  ;;  %1126 = vmatpush.msra.mxu3 %v9312_v4 }
 0x119   :  { %1067 = vmatpush.msrb.mxu0 %v9313_v16  ;;  %1087 = vmatpush.msrb.mxu1 %v9314_v6 }
 0x11a   :  { %1107 = vmatpush.msra.mxu2 %v9315_v9  ;;  %1127 = vmatpush.msra.mxu3 %v9316_v19 }
 0x11b   :  { %1068 = vmatpush.msrb.mxu0 %v9317_v17  ;;  %1088 = vmatpush.msrb.mxu1 %v9318_v22 }
 0x11c   :  { %1108 = vmatpush.msra.mxu2 %v9319_v23  ;;  %1128 = vmatpush.msra.mxu3 %v9320_v24 }
 0x11d   :  { %1069 = vmatpush.msrb.mxu0 %v9321_v26  ;;  %1089 = vmatpush.msrb.mxu1 %v9322_v27 }
 0x11e   :  { %1109 = vmatpush.msra.mxu2 %v9323_v29  ;;  %1129 = vmatpush.msra.mxu3 %v9324_v31 }
 0x11f   :  { %1070 = vmatpush.msrb.mxu0 %v9325_v32  ;;  %1090 = vmatpush.msrb.mxu1 %v9326_v33 }
 0x120   :  { %1110 = vmatpush.msra.mxu2 %v9327_v34  ;;  %1130 = vmatpush.msra.mxu3 %v9328_v35 }
 0x121   :  { %1071 = vmatpush.msrb.mxu0 %v9329_v30  ;;  %1091 = vmatpush.msrb.mxu1 %v9330_v36 }
 0x122   :  { %1111 = vmatpush.msra.mxu2 %v9331_v37  ;;  %1131 = vmatpush.msra.mxu3 %v9332_v38 }
 0x123   :  { %1072 = vmatpush.msrb.mxu0 %v9333_v39  ;;  %1092 = vmatpush.msrb.mxu1 %v9334_v40 }
 0x124   :  { %1112 = vmatpush.msra.mxu2 %v9335_v41  ;;  %1132 = vmatpush.msra.mxu3 %v9336_v42 }
 0x125   :  { %1073 = vmatpush.msrb.mxu0 %v9337_v43  ;;  %1093 = vmatpush.msrb.mxu1 %v9338_v44 }
 0x126   :  { %1113 = vmatpush.msra.mxu2 %v9339_v45  ;;  %1133 = vmatpush.msra.mxu3 %v9340_v47 }
 0x127   :  { %1074 = vmatpush.msrb.mxu0 %v9341_v48  ;;  %1094 = vmatpush.msrb.mxu1 %v9342_v49 }
 0x128   :  { %1114 = vmatpush.msra.mxu2 %v9343_v50  ;;  %1134 = vmatpush.msra.mxu3 %v9344_v51 }
 0x129   :  { %1075 = vmatpush.msrb.mxu0 %v9345_v52  ;;  %1095 = vmatpush.msrb.mxu1 %v9346_v53 }
 0x12a   :  { %1115 = vmatpush.msra.mxu2 %v9347_v55  ;;  %1135 = vmatpush.msra.mxu3 %v9348_v57 }
 0x12b   :  { %1076 = vmatpush.msrb.mxu0 %v5309_v28  ;;  %1096 = vmatpush.msrb.mxu1 %v9349_v58  ;;  %v427_v28 = vld [vmem:[%s8415_s6] sm:$0xf] }
 0x12c   :  { %1116 = vmatpush.msra.mxu2 %v9350_v59  ;;  %1136 = vmatpush.msra.mxu3 %v9351_v61  ;;  %v5595_v12 = vperm.slane %v427_v28, 0  ;;  %v5597_v3 = vperm.slane %v427_v28, 1  ;;  %v5601_v6 = vperm.slane %v427_v28, 2  ;;  %v5606_v40 = vperm.slane %v427_v28, 3 }
 0x12d   :  { %1077 = vmatpush.msrb.mxu0 %v5326_v54  ;;  %1097 = vmatpush.msrb.mxu1 %v5328_v2 }
 0x12e   :  { %1117 = vmatpush.msra.mxu2 %v5330_v60  ;;  %1137 = vmatpush.msra.mxu3 %v5335_v7  ;;  %9352 = vst [vmem:[#allocation15_spill] sm:$0xff] %v5595_v12 }
 0x12f   :  { %9353 = vst [vmem:[#allocation17_spill] sm:$0xff] %v5597_v3 }
 0x130   :  { %9354 = vst [vmem:[#allocation12_spill] sm:$0xff] %v5601_v6 }
 0x131   :  { %9355 = vst [vmem:[#allocation18_spill] sm:$0xff] %v5606_v40 }
 0x134   :  { %v598_v62 = vpop.f32.mrf.mxu0  ;;  %v618_v63 = vpop.f32.mrf.mxu1 }
 0x13b   :  { %v638_v11 = vpop.f32.mrf.mxu2  ;;  %v658_v7 = vpop.f32.mrf.mxu3 }
 0x168   :  { %v678_v1 = vpop.f32.mrf.mxu0  ;;  %v698_v8 = vpop.f32.mrf.mxu1 }
 0x169   :  { %v679_v54 = vadd.f32 %v678_v1, %v598_v62  ;;  %v699_v15 = vadd.f32 %v698_v8, %v618_v63 }
 0x16b   :  { %v750_v2 = vadd.f32 %v5595_v12, %v679_v54  ;;  %v751_v60 = vadd.f32 %v5597_v3, %v699_v15 }
 0x16d   :  { %v3626_v4 = vmul.f32 -1.442695, %v750_v2  ;;  %v3627_v16 = vmul.f32 -1.442695, %v751_v60 }
 0x16f   :  { %3698 = vpow2.f32 %v3626_v4  ;;  %v718_v9 = vpop.f32.mrf.mxu2  ;;  %v738_v30 = vpop.f32.mrf.mxu3 }
 0x170   :  { %3700 = vpow2.f32 %v3627_v16  ;;  %v719_v19 = vadd.f32 %v718_v9, %v638_v11  ;;  %v834_v17 = vpop.f32.mrf.mxu0  ;;  %v854_v22 = vpop.f32.mrf.mxu1  ;;  %v739_v39 = vadd.f32 %v738_v30, %v658_v7 }
 0x171   :  { %v901_v23 = vrot.slane %v834_v17, 6  ;;  %v902_v24 = vrot.slane %v854_v22, 6  ;;  %v3622_v22 = vld [vmem:[%s8417_s8 + $0x2] sm:$0x3] }
 0x172   :  { %v752_v26 = vadd.f32 %v5601_v6, %v719_v19  ;;  %v753_v48 = vadd.f32 %v5606_v40, %v739_v39 }
 0x173   :  { %v909_v27 = vadd.f32 %v901_v23, %v5318_v46  ;;  %v910_v29 = vadd.f32 %v902_v24, %v5359_v0 }
 0x174   :  { %v3628_v31 = vmul.f32 -1.442695, %v752_v26 }
 0x175   :  { %v3699_v32 = vpop.eup %3698  ;;  %v3629_v33 = vmul.f32 -1.442695, %v909_v27  ;;  %v3630_v36 = vmul.f32 -1.442695, %v910_v29 }
 0x176   :  { %v3701_v34 = vpop.eup %3700  ;;  %v763_v35 = vadd.f32 1.0, %v3699_v32  ;;  %3702 = vpow2.f32 %v3628_v31 }
 0x177   :  { %v764_v37 = vadd.f32 1.0, %v3701_v34  ;;  %3704 = vpow2.f32 %v3629_v33  ;;  %v874_v38 = vpop.f32.mrf.mxu2  ;;  %v894_v58 = vpop.f32.mrf.mxu3 }
 0x178   :  { %3706 = vrcp.f32 %v763_v35  ;;  %v903_v41 = vrot.slane %v874_v38, 6  ;;  %v775_v57 = vand.u32 2147483647, %v763_v35  ;;  %v777_v61 = vand.u32 2147483648, %v763_v35 }
 0x179   :  { %3708 = vrcp.f32 %v764_v37  ;;  %v792_v28 = vand.u32 2147483648, %v764_v37  ;;  %v790_v11 = vand.u32 2147483647, %v764_v37  ;;  %v904_v8 = vrot.slane %v894_v58, 6 }
 0x17a   :  { %3710 = vpow2.f32 %v3630_v36  ;;  %v911_v43 = vadd.f32 %v903_v41, %v5381_v5  ;;  %vm771_vm0 = vweird.f32 %v763_v35  ;;  %vm786_vm1 = vweird.f32 %v764_v37 }
 0x17b   :  { %vm5621_vm2 = vcmp.eq.f32.partialorder %v775_v57, 8.507059e+37  ;;  %v778_v7 = vor.u32 1.1754944e-38, %v777_v61  ;;  %v793_v16 = vor.u32 1.1754944e-38, %v792_v28  ;;  %vm791_vm4 = vcmp.eq.f32.partialorder %v790_v11, 8.507059e+37  ;;  %v5750_v11 = vld [vmem:[#allocation2 + $0x150] sm:$0xff] }
 0x17c   :  { %v3703_v42 = vpop.eup %3702  ;;  %v3631_v50 = vmul.f32 -1.442695, %v911_v43  ;;  %v912_v26 = vadd.f32 %v904_v8, %v5418_v25 }
 0x17d   :  { %v3705_v44 = vpop.eup %3704  ;;  %v5609_v45 = vadd.f32 1.0, %v3703_v42 }
 0x17e   :  { %v3707_v47 = vpop.eup %3706  ;;  %v5612_v49 = vadd.f32 1.0, %v3705_v44 }
 0x17f   :  { %v3709_v51 = vpop.eup %3708  ;;  %v767_v52 = vmul.f32 %v3707_v47, %v763_v35  ;;  %3712 = vrcp.f32 %v5609_v45  ;;  %vm772_vm14 = vweird.f32 %v3707_v47  ;;  %vm801_vm12 = vweird.f32 %v5609_v45 }
 0x180   :  { %v3711_v53 = vpop.eup %3710  ;;  %v782_v55 = vmul.f32 %v3709_v51, %v764_v37  ;;  %3714 = vrcp.f32 %v5612_v49  ;;  %vm787_vm15 = vweird.f32 %v3709_v51  ;;  %vm773_vm3 = vmor %vm771_vm0, %vm772_vm14  ;;  %v936_v27 = vand.u32 2147483648, %v5612_v49 }
 0x181   :  { %v768_v59 = vsub.f32 1.0, %v767_v52  ;;  %v5616_v62 = vadd.f32 1.0, %v3711_v53  ;;  %3716 = vpow2.f32 %v3631_v50  ;;  %vm788_vm5 = vmor %vm786_vm1, %vm787_vm15  ;;  %vm930_vm6 = vweird.f32 %v5612_v49 }
 0x182   :  { %v783_v63 = vsub.f32 1.0, %v782_v55  ;;  %3718 = vtanh.f32 %v753_v48  ;;  %v934_v41 = vand.u32 2147483647, %v5612_v49  ;;  %v937_v48 = vor.u32 1.1754944e-38, %v936_v27  ;;  %v5675_v27 = vld [vmem:[#allocation2 + $0x1e8] sm:$0xff] }
 0x183   :  { %v769_v1 = vmul.f32 %v3707_v47, %v768_v59  ;;  %3720 = vrcp.f32 %v5616_v62  ;;  %v951_v42 = vand.u32 2147483648, %v5616_v62  ;;  %v949_v52 = vand.u32 2147483647, %v5616_v62 }
 0x184   :  { %v784_v54 = vmul.f32 %v3709_v51, %v783_v63  ;;  %v807_v53 = vand.u32 2147483648, %v5609_v45  ;;  %vm935_vm11 = vcmp.eq.f32.partialorder %v934_v41, 8.507059e+37  ;;  %v805_v59 = vand.u32 2147483647, %v5609_v45 }
 0x185   :  { %v5619_v15 = vpop.eup %3712  ;;  %v770_v2 = vadd.f32 %v3707_v47, %v769_v1  ;;  %vm945_vm13 = vweird.f32 %v5616_v62  ;;  %v972_v1 = vrot.slane %v5461_v20, 6  ;;  %v952_v8 = vor.u32 1.1754944e-38, %v951_v42 }
 0x186   :  { %v3715_v4 = vpop.eup %3714  ;;  %v797_v9 = vmul.f32 %v5619_v15, %v5609_v45  ;;  %v785_v19 = vadd.f32 %v3709_v51, %v784_v54  ;;  %vm802_vm8 = vweird.f32 %v5619_v15  ;;  %vm950_vm0 = vcmp.eq.f32.partialorder %v949_v52, 8.507059e+37  ;;  %v5720_v52 = vld [vmem:[#allocation2 + $0x190] sm:$0xff] }
 0x187   :  { %v3717_v17 = vpop.eup %3716  ;;  %v774_v23 = vsel %vm773_vm3, %v3707_v47, %v770_v2  ;;  %v926_v24 = vmul.f32 %v3715_v4, %v5612_v49  ;;  %vm931_vm7 = vweird.f32 %v3715_v4  ;;  %vm5657_vm14 = vmor %vm801_vm12, %vm802_vm8  ;;  %v808_v60 = vor.u32 1.1754944e-38, %v807_v53  ;;  %v5723_v53 = vld [vmem:[#allocation2 + $0x198] sm:$0xff] }
 0x188   :  { %v3719_v29 = vpop.eup %3718  ;;  %v798_v31 = vsub.f32 1.0, %v797_v9  ;;  %v779_v32 = vsel %vm5621_vm2, %v778_v7, %v774_v23  ;;  %v789_v33 = vsel %vm788_vm5, %v3709_v51, %v785_v19  ;;  %v5635_v34 = vadd.f32 1.0, %v3717_v17  ;;  %vm932_vm10 = vmor %vm930_vm6, %vm931_vm7 }
 0x189   :  { %v3721_v35 = vpop.eup %3720  ;;  %v794_v30 = vsel %vm791_vm4, %v793_v16, %v789_v33  ;;  %v813_v36 = vmul.f32 %v3719_v29, %v779_v32  ;;  %v927_v37 = vsub.f32 1.0, %v926_v24  ;;  %vm806_vm1 = vcmp.eq.f32.partialorder %v805_v59, 8.507059e+37  ;;  %v5685_v32 = vld [vmem:[#allocation2 + $0x1f8] sm:$0xff]  ;;  %v5734_v59 = vld [vmem:[#allocation2 + $0x170] sm:$0xff]  ;;  %v5807_v29 = vld [vmem:[#allocation2 + $0xa8] sm:$0xff] }
 0x18a   :  { %v812_v38 = vmul.f32 %v3622_v22, %v794_v30  ;;  %v941_v39 = vmul.f32 %v3721_v35, %v5616_v62  ;;  %3722 = vrcp.f32 %v5635_v34  ;;  %v799_v50 = vmul.f32 %v5619_v15, %v798_v31  ;;  %v5682_v31 = vld [vmem:[#allocation2 + $0x1f0] sm:$0xff]  ;;  %9370 = vst [vmem:[#allocation23_spill] sm:$0xff] %v5807_v29 }
 0x18b   :  { %v928_v43 = vmul.f32 %v3715_v4, %v927_v37  ;;  %3724 = vtanh.f32 %v912_v26  ;;  %vm946_vm9 = vweird.f32 %v3721_v35  ;;  %vm960_vm3 = vweird.f32 %v5635_v34  ;;  %v5672_v26 = vld [vmem:[#allocation2 + $0x1e0] sm:$0xff]  ;;  %v5699_v37 = vld [vmem:[#allocation2 + $0x1d8] sm:$0xff] }
 0x18c   :  { %v5642_v44 = vadd.f32 %v813_v36, %v812_v38  ;;  %v942_v47 = vsub.f32 1.0, %v941_v39  ;;  %v800_v57 = vadd.f32 %v5619_v15, %v799_v50  ;;  %vm947_vm15 = vmor %vm945_vm13, %vm946_vm9  ;;  %v964_v24 = vand.u32 2147483647, %v5635_v34  ;;  %v5696_v36 = vld [vmem:[#allocation2 + $0x1d0] sm:$0xff]  ;;  %v5702_v38 = vld [vmem:[#allocation2 + $0x1a0] sm:$0xff] }
 0x18d   :  { %v929_v51 = vadd.f32 %v3715_v4, %v928_v43  ;;  %v5705_v39 = vld [vmem:[#allocation2 + $0x1a8] sm:$0xff]  ;;  %v5708_v43 = vld [vmem:[#allocation2 + $0x1b0] sm:$0xff]  ;;  %v5714_v50 = vld [vmem:[#allocation2 + $0x180] sm:$0xff] }
 0x18e   :  { %3726 = vtanh.f32 %v5642_v44  ;;  %v943_v55 = vmul.f32 %v3721_v35, %v942_v47  ;;  %v804_v45 = vsel %vm5657_vm14, %v5619_v15, %v800_v57  ;;  %v966_v15 = vand.u32 2147483648, %v5635_v34  ;;  %v5711_v47 = vld [vmem:[#allocation2 + $0x1b8] sm:$0xff]  ;;  %v5728_v57 = vld [vmem:[#allocation2 + $0x160] sm:$0xff] }
 0x18f   :  { %v933_v58 = vsel %vm932_vm10, %v3715_v4, %v929_v51  ;;  %v809_v19 = vsel %vm806_vm1, %v808_v60, %v804_v45  ;;  %vm965_vm5 = vcmp.eq.f32.partialorder %v964_v24, 8.507059e+37  ;;  %v5717_v51 = vld [vmem:[#allocation2 + $0x188] sm:$0xff]  ;;  %v5765_v45 = vld [vmem:[#allocation2 + $0x138] sm:$0xff]  ;;  %v5774_v60 = vld [vmem:[#allocation2 + $0x110] sm:$0xff] }
 0x190   :  { %v3723_v61 = vpop.eup %3722  ;;  %v938_v63 = vsel %vm935_vm11, %v937_v48, %v933_v58  ;;  %v944_v28 = vadd.f32 %v3721_v35, %v943_v55  ;;  %v967_v30 = vor.u32 1.1754944e-38, %v966_v15  ;;  %v5731_v58 = vld [vmem:[#allocation2 + $0x168] sm:$0xff]  ;;  %v5801_v15 = vld [vmem:[#allocation2 + $0xd8] sm:$0xff]  ;;  %v5804_v24 = vld [vmem:[#allocation2 + $0xa0] sm:$0xff] }
 0x191   :  { %v3725_v49 = vpop.eup %3724  ;;  %v956_v54 = vmul.f32 %v3723_v61, %v5635_v34  ;;  %vm961_vm2 = vweird.f32 %v3723_v61  ;;  %v5690_v34 = vld [vmem:[#allocation2 + $0x1c0] sm:$0xff]  ;;  %9368 = vst [vmem:[#allocation14_spill] sm:$0xff] %v5801_v15 }
 0x192   :  { %v948_v62 = vsel %vm947_vm15, %v3721_v35, %v944_v28  ;;  %v975_v2 = vmul.f32 %v3725_v49, %v938_v63  ;;  %vm5678_vm4 = vmor %vm960_vm3, %vm961_vm2  ;;  %v5693_v35 = vld [vmem:[#allocation2 + $0x1c8] sm:$0xff]  ;;  %v5744_v63 = vld [vmem:[#allocation2 + $0x140] sm:$0xff]  ;;  %9369 = vst [vmem:[#allocation26_spill] sm:$0xff] %v5804_v24 }
 0x193   :  { %v957_v7 = vsub.f32 1.0, %v956_v54  ;;  %v953_v4 = vsel %vm950_vm0, %v952_v8, %v948_v62  ;;  %v5747_v28 = vld [vmem:[#allocation2 + $0x148] sm:$0xff]  ;;  %v5753_v49 = vld [vmem:[#allocation2 + $0x158] sm:$0xff]  ;;  %v5762_v54 = vld [vmem:[#allocation2 + $0x130] sm:$0xff] }
 0x194   :  { %v3727_v16 = vpop.eup %3726  ;;  %v974_v9 = vmul.f32 %v972_v1, %v953_v4  ;;  %v5756_v1 = vld [vmem:[#allocation2 + $0x120] sm:$0xff]  ;;  %v5759_v8 = vld [vmem:[#allocation2 + $0x128] sm:$0xff] }
 0x195   :  { %v958_v17 = vmul.f32 %v3723_v61, %v957_v7  ;;  %v816_v20 = vmul.f32 %v3727_v16, %v809_v19  ;;  %v5768_v62 = vld [vmem:[#allocation2 + $0x100] sm:$0xff]  ;;  %v5777_v7 = vld [vmem:[#allocation2 + $0x118] sm:$0xff]  ;;  %v5783_v16 = vld [vmem:[#allocation2 + $0xe8] sm:$0xff] }
 0x196   :  { %v5666_v22 = vadd.f32 %v975_v2, %v974_v9  ;;  %v5771_v2 = vld [vmem:[#allocation2 + $0x108] sm:$0xff]  ;;  %v5780_v4 = vld [vmem:[#allocation2 + $0xe0] sm:$0xff]  ;;  %9362 = vst [vmem:[#allocation16_spill] sm:$0xff] %v5783_v16  ;;  %v5786_v9 = vld [vmem:[#allocation2 + $0xf0] sm:$0xff] }
 0x197   :  { %v959_v23 = vadd.f32 %v3723_v61, %v958_v17  ;;  %995 = vmatmul.f32.vlgmr.msra.gmra.mxu0 %v816_v20  ;;  %1015 = vmatmul.f32.vlgmr.msra.gmra.mxu1 %v816_v20  ;;  %9363 = vst [vmem:[#allocation21_spill] sm:$0xff] %v5786_v9  ;;  %v5789_v19 = vld [vmem:[#allocation2 + $0xf8] sm:$0xff]  ;;  %v5792_v17 = vld [vmem:[#allocation2 + $0xc0] sm:$0xff] }
 0x198   :  { %3728 = vtanh.f32 %v5666_v22  ;;  %1035 = vmatmul.f32.vlgmr.msrb.gmra.mxu2 %v816_v20  ;;  %1055 = vmatmul.f32.vlgmr.msrb.gmra.mxu3 %v816_v20  ;;  %9364 = vst [vmem:[#allocation13_spill] sm:$0xff] %v5789_v19  ;;  %v5795_v20 = vld [vmem:[#allocation2 + $0xc8] sm:$0xff] }
 0x199   :  { %1209 = vmatpush.msra.mxu0 %v5672_v26  ;;  %1229 = vmatpush.msra.mxu1 %v5675_v27  ;;  %v963_v33 = vsel %vm5678_vm4, %v3723_v61, %v959_v23  ;;  %v5737_v61 = vld [vmem:[#allocation2 + $0x178] sm:$0xff]  ;;  %9365 = vst [vmem:[#allocation22_spill] sm:$0xff] %v5792_v17  ;;  %v5798_v23 = vld [vmem:[#allocation2 + $0xd0] sm:$0xff] }
 0x19a   :  { %1249 = vmatpush.msrb.mxu2 %v5682_v31  ;;  %1269 = vmatpush.msrb.mxu3 %v5685_v32  ;;  %v968_v42 = vsel %vm965_vm5, %v967_v30, %v963_v33  ;;  %9366 = vst [vmem:[#allocation19_spill] sm:$0xff] %v5795_v20  ;;  %v5810_v33 = vld [vmem:[#allocation2 + $0xb0] sm:$0xff]  ;;  %v5813_v30 = vld [vmem:[#allocation2 + $0xb8] sm:$0xff] }
 0x19b   :  { %1210 = vmatpush.msra.mxu0 %v5690_v34  ;;  %1230 = vmatpush.msra.mxu1 %v5693_v35  ;;  %9367 = vst [vmem:[#allocation25_spill] sm:$0xff] %v5798_v23 }
 0x19c   :  { %1250 = vmatpush.msrb.mxu2 %v5696_v36  ;;  %1270 = vmatpush.msrb.mxu3 %v5699_v37  ;;  %9371 = vst [vmem:[#allocation27_spill] sm:$0xff] %v5810_v33 }
 0x19d   :  { %1211 = vmatpush.msra.mxu0 %v5702_v38  ;;  %1231 = vmatpush.msra.mxu1 %v5705_v39  ;;  %9372 = vst [vmem:[#allocation20_spill] sm:$0xff] %v5813_v30 }
 0x19e   :  { %v3729_v41 = vpop.eup %3728  ;;  %1251 = vmatpush.msrb.mxu2 %v5708_v43  ;;  %1271 = vmatpush.msrb.mxu3 %v5711_v47 }
 0x19f   :  { %v978_v48 = vmul.f32 %v3729_v41, %v968_v42  ;;  %1212 = vmatpush.msra.mxu0 %v5714_v50  ;;  %1232 = vmatpush.msra.mxu1 %v5717_v51  ;;  %v5816_v41 = vld [vmem:[#allocation2 + $0x80] sm:$0xff]  ;;  %v5819_v42 = vld [vmem:[#allocation2 + $0x88] sm:$0xff] }
 0x1a0   :  { %1252 = vmatpush.msrb.mxu2 %v5720_v52  ;;  %1272 = vmatpush.msrb.mxu3 %v5723_v53  ;;  %9373 = vst [vmem:[#allocation28_spill] sm:$0xff] %v5816_v41 }
 0x1a1   :  { %v5726_v55 = vrot.slane %v978_v48, 2  ;;  %1213 = vmatpush.msra.mxu0 %v5728_v57  ;;  %1233 = vmatpush.msra.mxu1 %v5731_v58  ;;  %9374 = vst [vmem:[#allocation29_spill] sm:$0xff] %v5819_v42  ;;  %v5822_v48 = vld [vmem:[#allocation2 + $0x90] sm:$0xff] }
 0x1a2   :  { %1253 = vmatpush.msrb.mxu2 %v5734_v59  ;;  %1273 = vmatpush.msrb.mxu3 %v5737_v61  ;;  %9375 = vst [vmem:[#allocation30_spill] sm:$0xff] %v5822_v48 }
 0x1a3   :  { %1078 = vmatmul.f32.vlgmr.msrb.gmra.mxu0 %v5726_v55  ;;  %1098 = vmatmul.f32.vlgmr.msrb.gmra.mxu1 %v5726_v55 }
 0x1a4   :  { %1118 = vmatmul.f32.vlgmr.msra.gmra.mxu2 %v5726_v55  ;;  %1138 = vmatmul.f32.vlgmr.msra.gmra.mxu3 %v5726_v55 }
 0x1a5   :  { %1214 = vmatpush.msra.mxu0 %v5744_v63  ;;  %1234 = vmatpush.msra.mxu1 %v5747_v28 }
 0x1a6   :  { %1254 = vmatpush.msrb.mxu2 %v5750_v11  ;;  %1274 = vmatpush.msrb.mxu3 %v5753_v49 }
 0x1a7   :  { %1215 = vmatpush.msra.mxu0 %v5756_v1  ;;  %1235 = vmatpush.msra.mxu1 %v5759_v8 }
 0x1a8   :  { %1255 = vmatpush.msrb.mxu2 %v5762_v54  ;;  %1275 = vmatpush.msrb.mxu3 %v5765_v45 }
 0x1a9   :  { %1216 = vmatpush.msra.mxu0 %v5768_v62  ;;  %1236 = vmatpush.msra.mxu1 %v5771_v2 }
 0x1aa   :  { %1256 = vmatpush.msrb.mxu2 %v5774_v60  ;;  %1276 = vmatpush.msrb.mxu3 %v5777_v7 }
 0x1ab   :  { %1217 = vmatpush.msra.mxu0 %v5780_v4  ;;  %1237 = vmatpush.msra.mxu1 %v5783_v16 }
 0x1ac   :  { %1257 = vmatpush.msrb.mxu2 %v5786_v9  ;;  %1277 = vmatpush.msrb.mxu3 %v5789_v19 }
 0x1ad   :  { %1218 = vmatpush.msra.mxu0 %v5792_v17  ;;  %1238 = vmatpush.msra.mxu1 %v5795_v20 }
 0x1ae   :  { %1258 = vmatpush.msrb.mxu2 %v5798_v23  ;;  %1278 = vmatpush.msrb.mxu3 %v5801_v15 }
 0x1af   :  { %1219 = vmatpush.msra.mxu0 %v5804_v24  ;;  %1239 = vmatpush.msra.mxu1 %v5807_v29 }
 0x1b0   :  { %1259 = vmatpush.msrb.mxu2 %v5810_v33  ;;  %1279 = vmatpush.msrb.mxu3 %v5813_v30 }
 0x1b1   :  { %1220 = vmatpush.msra.mxu0 %v5816_v41  ;;  %1240 = vmatpush.msra.mxu1 %v5819_v42 }
 0x1b2   :  { %1260 = vmatpush.msrb.mxu2 %v5822_v48  ;;  %1280 = vmatpush.msrb.mxu3 %v5825_v21  ;;  %v5843_v21 = vld [vmem:[#allocation2 + $0x48] sm:$0xff] }
 0x1b3   :  { %1221 = vmatpush.msra.mxu0 %v5828_v14  ;;  %1241 = vmatpush.msra.mxu1 %v5831_v10  ;;  %9382 = vst [vmem:[#allocation36_spill] sm:$0xff] %v5843_v21  ;;  %v5846_v14 = vld [vmem:[#allocation2 + $0x50] sm:$0xff]  ;;  %v5849_v10 = vld [vmem:[#allocation2 + $0x58] sm:$0xff] }
 0x1b4   :  { %1261 = vmatpush.msrb.mxu2 %v5834_v18  ;;  %1281 = vmatpush.msrb.mxu3 %v5837_v56  ;;  %9383 = vst [vmem:[#allocation38_spill] sm:$0xff] %v5846_v14  ;;  %v5852_v18 = vld [vmem:[#allocation2 + $0x20] sm:$0xff]  ;;  %v5855_v56 = vld [vmem:[#allocation2 + $0x28] sm:$0xff] }
 0x1b5   :  { %1222 = vmatpush.msra.mxu0 %v5840_v13  ;;  %1242 = vmatpush.msra.mxu1 %v5843_v21  ;;  %9384 = vst [vmem:[#allocation37_spill] sm:$0xff] %v5849_v10  ;;  %v5858_v13 = vld [vmem:[#allocation2 + $0x30] sm:$0xff]  ;;  %v5861_v21 = vld [vmem:[#allocation2 + $0x38] sm:$0xff] }
 0x1b6   :  { %1262 = vmatpush.msrb.mxu2 %v5846_v14  ;;  %1282 = vmatpush.msrb.mxu3 %v5849_v10  ;;  %9385 = vst [vmem:[#allocation39_spill] sm:$0xff] %v5852_v18  ;;  %v5864_v14 = vld [vmem:[#allocation2] sm:$0xff]  ;;  %v5867_v10 = vld [vmem:[#allocation2 + $0x8] sm:$0xff] }
 0x1b7   :  { %1223 = vmatpush.msra.mxu0 %v5852_v18  ;;  %9386 = vst [vmem:[#allocation40_spill] sm:$0xff] %v5855_v56  ;;  %1243 = vmatpush.msra.mxu1 %v5855_v56  ;;  %v5870_v18 = vld [vmem:[#allocation2 + $0x10] sm:$0xff]  ;;  %v5873_v56 = vld [vmem:[#allocation2 + $0x18] sm:$0xff] }
 0x1b8   :  { %9387 = vst [vmem:[#allocation42_spill] sm:$0xff] %v5858_v13  ;;  %1263 = vmatpush.msrb.mxu2 %v5858_v13  ;;  %1283 = vmatpush.msrb.mxu3 %v5861_v21 }
 0x1b9   :  { %9388 = vst [vmem:[#allocation41_spill] sm:$0xff] %v5861_v21  ;;  %1224 = vmatpush.msra.mxu0 %v5864_v14  ;;  %1244 = vmatpush.msra.mxu1 %v5867_v10  ;;  %v5892_v21 = vld [vmem:[#allocation6 + $0x1c0] sm:$0xff] }
 0x1ba   :  { %9389 = vst [vmem:[#allocation43_spill] sm:$0xff] %v5864_v14  ;;  %1264 = vmatpush.msrb.mxu2 %v5870_v18  ;;  %1284 = vmatpush.msrb.mxu3 %v5873_v56  ;;  %v5880_v14 = vld [vmem:[#allocation6 + $0x1e0] sm:$0xff] }
 0x1bb   :  { %9390 = vst [vmem:[#allocation44_spill] sm:$0xff] %v5867_v10  ;;  %1225 = vmatmul.f32.vlgmr.msra.gmra.mxu0 %v5726_v55  ;;  %1245 = vmatmul.f32.vlgmr.msra.gmra.mxu1 %v5726_v55  ;;  %v5883_v10 = vld [vmem:[#allocation6 + $0x1e8] sm:$0xff] }
 0x1bc   :  { %9391 = vst [vmem:[#allocation45_spill] sm:$0xff] %v5870_v18  ;;  %1265 = vmatmul.f32.vlgmr.msrb.gmra.mxu2 %v5726_v55  ;;  %1285 = vmatmul.f32.vlgmr.msrb.gmra.mxu3 %v5726_v55  ;;  %v5886_v18 = vld [vmem:[#allocation6 + $0x1f0] sm:$0xff]  ;;  %v5895_v55 = vld [vmem:[#allocation6 + $0x1c8] sm:$0xff] }
 0x1bd   :  { %9392 = vst [vmem:[#allocation46_spill] sm:$0xff] %v5873_v56  ;;  %1371 = vmatpush.msrb.mxu0 %v5880_v14  ;;  %1391 = vmatpush.msrb.mxu1 %v5883_v10  ;;  %v5889_v56 = vld [vmem:[#allocation6 + $0x1f8] sm:$0xff] }
 0x1be   :  { %9393 = vst [vmem:[#allocation47_spill] sm:$0xff] %v5880_v14  ;;  %1411 = vmatpush.msra.mxu2 %v5886_v18  ;;  %1431 = vmatpush.msra.mxu3 %v5889_v56  ;;  %v5898_v14 = vld [vmem:[#allocation6 + $0x1d0] sm:$0xff] }
 0x1bf   :  { %9394 = vst [vmem:[#allocation48_spill] sm:$0xff] %v5883_v10  ;;  %1372 = vmatpush.msrb.mxu0 %v5892_v21  ;;  %1392 = vmatpush.msrb.mxu1 %v5895_v55  ;;  %v5901_v10 = vld [vmem:[#allocation6 + $0x1d8] sm:$0xff] }
 0x1c0   :  { %9395 = vst [vmem:[#allocation49_spill] sm:$0xff] %v5886_v18  ;;  %1412 = vmatpush.msra.mxu2 %v5898_v14  ;;  %1432 = vmatpush.msra.mxu3 %v5901_v10  ;;  %v5904_v18 = vld [vmem:[#allocation6 + $0x1a0] sm:$0xff] }
 0x1c1   :  { %9396 = vst [vmem:[#allocation50_spill] sm:$0xff] %v5889_v56  ;;  %1373 = vmatpush.msrb.mxu0 %v5904_v18  ;;  %v5907_v56 = vld [vmem:[#allocation6 + $0x1a8] sm:$0xff] }
 0x1c2   :  { %9397 = vst [vmem:[#allocation51_spill] sm:$0xff] %v5892_v21  ;;  %1393 = vmatpush.msrb.mxu1 %v5907_v56  ;;  %v5910_v21 = vld [vmem:[#allocation6 + $0x1b0] sm:$0xff] }
 0x1c3   :  { %9398 = vst [vmem:[#allocation52_spill] sm:$0xff] %v5895_v55  ;;  %1413 = vmatpush.msra.mxu2 %v5910_v21  ;;  %v5913_v55 = vld [vmem:[#allocation6 + $0x1b8] sm:$0xff] }
 0x1c4   :  { %9399 = vst [vmem:[#allocation53_spill] sm:$0xff] %v5898_v14  ;;  %1433 = vmatpush.msra.mxu3 %v5913_v55  ;;  %v5916_v14 = vld [vmem:[#allocation6 + $0x180] sm:$0xff] }
 0x1c5   :  { %9400 = vst [vmem:[#allocation54_spill] sm:$0xff] %v5901_v10  ;;  %1374 = vmatpush.msrb.mxu0 %v5916_v14  ;;  %v5919_v10 = vld [vmem:[#allocation6 + $0x188] sm:$0xff] }
 0x1c6   :  { %9401 = vst [vmem:[#allocation55_spill] sm:$0xff] %v5904_v18  ;;  %1394 = vmatpush.msrb.mxu1 %v5919_v10  ;;  %v5922_v18 = vld [vmem:[#allocation6 + $0x190] sm:$0xff] }
 0x1c7   :  { %9402 = vst [vmem:[#allocation56_spill] sm:$0xff] %v5907_v56  ;;  %1414 = vmatpush.msra.mxu2 %v5922_v18  ;;  %v5925_v56 = vld [vmem:[#allocation6 + $0x198] sm:$0xff] }
 0x1c8   :  { %9403 = vst [vmem:[#allocation57_spill] sm:$0xff] %v5910_v21  ;;  %1434 = vmatpush.msra.mxu3 %v5925_v56  ;;  %v5928_v21 = vld [vmem:[#allocation6 + $0x160] sm:$0xff] }
 0x1c9   :  { %9404 = vst [vmem:[#allocation58_spill] sm:$0xff] %v5913_v55  ;;  %1375 = vmatpush.msrb.mxu0 %v5928_v21  ;;  %v5931_v55 = vld [vmem:[#allocation6 + $0x168] sm:$0xff] }
 0x1ca   :  { %9405 = vst [vmem:[#allocation59_spill] sm:$0xff] %v5916_v14  ;;  %1395 = vmatpush.msrb.mxu1 %v5931_v55  ;;  %v5934_v14 = vld [vmem:[#allocation6 + $0x170] sm:$0xff] }
 0x1cb   :  { %9406 = vst [vmem:[#allocation60_spill] sm:$0xff] %v5919_v10  ;;  %1415 = vmatpush.msra.mxu2 %v5934_v14  ;;  %v5937_v10 = vld [vmem:[#allocation6 + $0x178] sm:$0xff] }
 0x1cc   :  { %9407 = vst [vmem:[#allocation61_spill] sm:$0xff] %v5922_v18  ;;  %1435 = vmatpush.msra.mxu3 %v5937_v10  ;;  %v5940_v18 = vld [vmem:[#allocation6 + $0x140] sm:$0xff] }
 0x1cd   :  { %9408 = vst [vmem:[#allocation62_spill] sm:$0xff] %v5925_v56  ;;  %1376 = vmatpush.msrb.mxu0 %v5940_v18  ;;  %v5943_v56 = vld [vmem:[#allocation6 + $0x148] sm:$0xff] }
 0x1ce   :  { %9409 = vst [vmem:[#allocation63_spill] sm:$0xff] %v5928_v21  ;;  %1396 = vmatpush.msrb.mxu1 %v5943_v56  ;;  %v5946_v21 = vld [vmem:[#allocation6 + $0x150] sm:$0xff] }
 0x1cf   :  { %9410 = vst [vmem:[#allocation64_spill] sm:$0xff] %v5931_v55  ;;  %1416 = vmatpush.msra.mxu2 %v5946_v21  ;;  %v5949_v55 = vld [vmem:[#allocation6 + $0x158] sm:$0xff] }
 0x1d0   :  { %9411 = vst [vmem:[#allocation65_spill] sm:$0xff] %v5934_v14  ;;  %1436 = vmatpush.msra.mxu3 %v5949_v55  ;;  %v5952_v14 = vld [vmem:[#allocation6 + $0x120] sm:$0xff] }
 0x1d1   :  { %9412 = vst [vmem:[#allocation66_spill] sm:$0xff] %v5937_v10  ;;  %1377 = vmatpush.msrb.mxu0 %v5952_v14  ;;  %v5955_v10 = vld [vmem:[#allocation6 + $0x128] sm:$0xff] }
 0x1d2   :  { %9413 = vst [vmem:[#allocation67_spill] sm:$0xff] %v5940_v18  ;;  %1397 = vmatpush.msrb.mxu1 %v5955_v10  ;;  %v5958_v18 = vld [vmem:[#allocation6 + $0x130] sm:$0xff] }
 0x1d3   :  { %9414 = vst [vmem:[#allocation68_spill] sm:$0xff] %v5943_v56  ;;  %1417 = vmatpush.msra.mxu2 %v5958_v18  ;;  %v5961_v56 = vld [vmem:[#allocation6 + $0x138] sm:$0xff] }
 0x1d4   :  { %9415 = vst [vmem:[#allocation69_spill] sm:$0xff] %v5946_v21  ;;  %1437 = vmatpush.msra.mxu3 %v5961_v56  ;;  %v5964_v21 = vld [vmem:[#allocation6 + $0x100] sm:$0xff] }
 0x1d5   :  { %9416 = vst [vmem:[#allocation70_spill] sm:$0xff] %v5949_v55  ;;  %1378 = vmatpush.msrb.mxu0 %v5964_v21  ;;  %v5967_v55 = vld [vmem:[#allocation6 + $0x108] sm:$0xff] }
 0x1d6   :  { %9417 = vst [vmem:[#allocation71_spill] sm:$0xff] %v5952_v14  ;;  %1398 = vmatpush.msrb.mxu1 %v5967_v55  ;;  %v5970_v14 = vld [vmem:[#allocation6 + $0x110] sm:$0xff] }
 0x1d7   :  { %9418 = vst [vmem:[#allocation72_spill] sm:$0xff] %v5955_v10  ;;  %1418 = vmatpush.msra.mxu2 %v5970_v14  ;;  %v5973_v10 = vld [vmem:[#allocation6 + $0x118] sm:$0xff] }
 0x1d8   :  { %9419 = vst [vmem:[#allocation73_spill] sm:$0xff] %v5958_v18  ;;  %1438 = vmatpush.msra.mxu3 %v5973_v10  ;;  %v5976_v18 = vld [vmem:[#allocation6 + $0xe0] sm:$0xff] }
 0x1d9   :  { %9420 = vst [vmem:[#allocation74_spill] sm:$0xff] %v5961_v56  ;;  %1379 = vmatpush.msrb.mxu0 %v5976_v18  ;;  %v5979_v56 = vld [vmem:[#allocation6 + $0xe8] sm:$0xff] }
 0x1da   :  { %9421 = vst [vmem:[#allocation75_spill] sm:$0xff] %v5964_v21  ;;  %1399 = vmatpush.msrb.mxu1 %v5979_v56  ;;  %v5982_v21 = vld [vmem:[#allocation6 + $0xf0] sm:$0xff] }
 0x1db   :  { %9422 = vst [vmem:[#allocation76_spill] sm:$0xff] %v5967_v55  ;;  %1419 = vmatpush.msra.mxu2 %v5982_v21  ;;  %v5985_v55 = vld [vmem:[#allocation6 + $0xf8] sm:$0xff] }
 0x1dc   :  { %9423 = vst [vmem:[#allocation77_spill] sm:$0xff] %v5970_v14  ;;  %1439 = vmatpush.msra.mxu3 %v5985_v55  ;;  %v5988_v14 = vld [vmem:[#allocation6 + $0xc0] sm:$0xff] }
 0x1dd   :  { %9424 = vst [vmem:[#allocation78_spill] sm:$0xff] %v5973_v10  ;;  %1380 = vmatpush.msrb.mxu0 %v5988_v14  ;;  %v5991_v10 = vld [vmem:[#allocation6 + $0xc8] sm:$0xff] }
 0x1de   :  { %9425 = vst [vmem:[#allocation79_spill] sm:$0xff] %v5976_v18  ;;  %1400 = vmatpush.msrb.mxu1 %v5991_v10  ;;  %v5994_v18 = vld [vmem:[#allocation6 + $0xd0] sm:$0xff] }
 0x1df   :  { %9426 = vst [vmem:[#allocation80_spill] sm:$0xff] %v5979_v56  ;;  %1420 = vmatpush.msra.mxu2 %v5994_v18  ;;  %v5997_v56 = vld [vmem:[#allocation6 + $0xd8] sm:$0xff] }
 0x1e0   :  { %9427 = vst [vmem:[#allocation81_spill] sm:$0xff] %v5982_v21  ;;  %1440 = vmatpush.msra.mxu3 %v5997_v56  ;;  %v6000_v21 = vld [vmem:[#allocation6 + $0xa0] sm:$0xff] }
 0x1e1   :  { %9428 = vst [vmem:[#allocation82_spill] sm:$0xff] %v5985_v55  ;;  %1381 = vmatpush.msrb.mxu0 %v6000_v21  ;;  %v6003_v55 = vld [vmem:[#allocation6 + $0xa8] sm:$0xff] }
 0x1e2   :  { %9429 = vst [vmem:[#allocation83_spill] sm:$0xff] %v5988_v14  ;;  %1401 = vmatpush.msrb.mxu1 %v6003_v55  ;;  %v6006_v14 = vld [vmem:[#allocation6 + $0xb0] sm:$0xff] }
 0x1e3   :  { %9430 = vst [vmem:[#allocation84_spill] sm:$0xff] %v5991_v10  ;;  %1421 = vmatpush.msra.mxu2 %v6006_v14  ;;  %v6009_v10 = vld [vmem:[#allocation6 + $0xb8] sm:$0xff] }
 0x1e4   :  { %9431 = vst [vmem:[#allocation85_spill] sm:$0xff] %v5994_v18  ;;  %1441 = vmatpush.msra.mxu3 %v6009_v10  ;;  %v6012_v18 = vld [vmem:[#allocation6 + $0x80] sm:$0xff] }
 0x1e5   :  { %9432 = vst [vmem:[#allocation86_spill] sm:$0xff] %v5997_v56  ;;  %1382 = vmatpush.msrb.mxu0 %v6012_v18  ;;  %v6015_v56 = vld [vmem:[#allocation6 + $0x88] sm:$0xff] }
 0x1e6   :  { %9433 = vst [vmem:[#allocation87_spill] sm:$0xff] %v6000_v21  ;;  %1402 = vmatpush.msrb.mxu1 %v6015_v56  ;;  %v6018_v21 = vld [vmem:[#allocation6 + $0x90] sm:$0xff] }
 0x1e7   :  { %9434 = vst [vmem:[#allocation88_spill] sm:$0xff] %v6003_v55  ;;  %1422 = vmatpush.msra.mxu2 %v6018_v21  ;;  %v6021_v55 = vld [vmem:[#allocation6 + $0x98] sm:$0xff] }
 0x1e8   :  { %9435 = vst [vmem:[#allocation89_spill] sm:$0xff] %v6006_v14  ;;  %1442 = vmatpush.msra.mxu3 %v6021_v55  ;;  %v6024_v14 = vld [vmem:[#allocation6 + $0x60] sm:$0xff] }
 0x1e9   :  { %9436 = vst [vmem:[#allocation90_spill] sm:$0xff] %v6009_v10  ;;  %1383 = vmatpush.msrb.mxu0 %v6024_v14  ;;  %v6027_v10 = vld [vmem:[#allocation6 + $0x68] sm:$0xff] }
 0x1ea   :  { %9437 = vst [vmem:[#allocation91_spill] sm:$0xff] %v6012_v18  ;;  %1403 = vmatpush.msrb.mxu1 %v6027_v10  ;;  %v6030_v18 = vld [vmem:[#allocation6 + $0x70] sm:$0xff] }
 0x1eb   :  { %9438 = vst [vmem:[#allocation92_spill] sm:$0xff] %v6015_v56  ;;  %1423 = vmatpush.msra.mxu2 %v6030_v18  ;;  %v6033_v56 = vld [vmem:[#allocation6 + $0x78] sm:$0xff] }
 0x1ec   :  { %9439 = vst [vmem:[#allocation93_spill] sm:$0xff] %v6018_v21  ;;  %1443 = vmatpush.msra.mxu3 %v6033_v56  ;;  %v6036_v21 = vld [vmem:[#allocation6 + $0x40] sm:$0xff] }
 0x1ed   :  { %9440 = vst [vmem:[#allocation94_spill] sm:$0xff] %v6021_v55  ;;  %1384 = vmatpush.msrb.mxu0 %v6036_v21  ;;  %v6039_v55 = vld [vmem:[#allocation6 + $0x48] sm:$0xff] }
 0x1ee   :  { %9441 = vst [vmem:[#allocation95_spill] sm:$0xff] %v6024_v14  ;;  %1404 = vmatpush.msrb.mxu1 %v6039_v55  ;;  %v6042_v14 = vld [vmem:[#allocation6 + $0x50] sm:$0xff] }
 0x1ef   :  { %9442 = vst [vmem:[#allocation96_spill] sm:$0xff] %v6027_v10  ;;  %1424 = vmatpush.msra.mxu2 %v6042_v14  ;;  %v6045_v10 = vld [vmem:[#allocation6 + $0x58] sm:$0xff] }
 0x1f0   :  { %9443 = vst [vmem:[#allocation97_spill] sm:$0xff] %v6030_v18  ;;  %1444 = vmatpush.msra.mxu3 %v6045_v10  ;;  %v6048_v18 = vld [vmem:[#allocation6 + $0x20] sm:$0xff] }
 0x1f1   :  { %9444 = vst [vmem:[#allocation98_spill] sm:$0xff] %v6033_v56  ;;  %1385 = vmatpush.msrb.mxu0 %v6048_v18  ;;  %v6051_v56 = vld [vmem:[#allocation6 + $0x28] sm:$0xff] }
 0x1f2   :  { %9445 = vst [vmem:[#allocation99_spill] sm:$0xff] %v6036_v21  ;;  %1405 = vmatpush.msrb.mxu1 %v6051_v56  ;;  %v6054_v21 = vld [vmem:[#allocation6 + $0x30] sm:$0xff] }
 0x1f3   :  { %9446 = vst [vmem:[#allocation100_spill] sm:$0xff] %v6039_v55  ;;  %1425 = vmatpush.msra.mxu2 %v6054_v21  ;;  %v6057_v55 = vld [vmem:[#allocation6 + $0x38] sm:$0xff] }
 0x1f4   :  { %9447 = vst [vmem:[#allocation101_spill] sm:$0xff] %v6042_v14  ;;  %1445 = vmatpush.msra.mxu3 %v6057_v55  ;;  %v6060_v14 = vld [vmem:[#allocation6] sm:$0xff] }
 0x1f5   :  { %9448 = vst [vmem:[#allocation102_spill] sm:$0xff] %v6045_v10  ;;  %1386 = vmatpush.msrb.mxu0 %v6060_v14  ;;  %v6063_v10 = vld [vmem:[#allocation6 + $0x8] sm:$0xff] }
 0x1f6   :  { %9449 = vst [vmem:[#allocation103_spill] sm:$0xff] %v6048_v18  ;;  %1406 = vmatpush.msrb.mxu1 %v6063_v10  ;;  %v6066_v18 = vld [vmem:[#allocation6 + $0x10] sm:$0xff] }
 0x1f7   :  { %9450 = vst [vmem:[#allocation104_spill] sm:$0xff] %v6051_v56  ;;  %1426 = vmatpush.msra.mxu2 %v6066_v18  ;;  %v6069_v56 = vld [vmem:[#allocation6 + $0x18] sm:$0xff] }
 0x1f8   :  { %9451 = vst [vmem:[#allocation105_spill] sm:$0xff] %v6054_v21  ;;  %1446 = vmatpush.msra.mxu3 %v6069_v56  ;;  %v6072_v21 = vld [vmem:[#allocation4 + $0x1e0] sm:$0xff] }
 0x1f9   :  { %9452 = vst [vmem:[#allocation106_spill] sm:$0xff] %v6057_v55  ;;  %1454 = vmatpush.msra.mxu0 %v6072_v21  ;;  %v6075_v55 = vld [vmem:[#allocation4 + $0x1e8] sm:$0xff] }
 0x1fa   :  { %9453 = vst [vmem:[#allocation107_spill] sm:$0xff] %v6060_v14  ;;  %1474 = vmatpush.msra.mxu1 %v6075_v55  ;;  %v6078_v14 = vld [vmem:[#allocation4 + $0x1f0] sm:$0xff] }
 0x1fb   :  { %9454 = vst [vmem:[#allocation108_spill] sm:$0xff] %v6063_v10  ;;  %1494 = vmatpush.msrb.mxu2 %v6078_v14  ;;  %v6081_v10 = vld [vmem:[#allocation4 + $0x1f8] sm:$0xff] }
 0x1fc   :  { %9455 = vst [vmem:[#allocation109_spill] sm:$0xff] %v6066_v18  ;;  %1514 = vmatpush.msrb.mxu3 %v6081_v10  ;;  %v6084_v18 = vld [vmem:[#allocation4 + $0x1c0] sm:$0xff] }
 0x1fd   :  { %9456 = vst [vmem:[#allocation110_spill] sm:$0xff] %v6069_v56  ;;  %1455 = vmatpush.msra.mxu0 %v6084_v18  ;;  %v6087_v56 = vld [vmem:[#allocation4 + $0x1c8] sm:$0xff] }
 0x1fe   :  { %9457 = vst [vmem:[#allocation111_spill] sm:$0xff] %v6072_v21  ;;  %1475 = vmatpush.msra.mxu1 %v6087_v56  ;;  %v6090_v21 = vld [vmem:[#allocation4 + $0x1d0] sm:$0xff] }
 0x1ff   :  { %9458 = vst [vmem:[#allocation112_spill] sm:$0xff] %v6075_v55  ;;  %1495 = vmatpush.msrb.mxu2 %v6090_v21  ;;  %v6093_v55 = vld [vmem:[#allocation4 + $0x1d8] sm:$0xff] }
 0x200   :  { %9459 = vst [vmem:[#allocation113_spill] sm:$0xff] %v6078_v14  ;;  %1515 = vmatpush.msrb.mxu3 %v6093_v55  ;;  %v6096_v14 = vld [vmem:[#allocation4 + $0x1a0] sm:$0xff] }
 0x201   :  { %9460 = vst [vmem:[#allocation114_spill] sm:$0xff] %v6081_v10  ;;  %1456 = vmatpush.msra.mxu0 %v6096_v14  ;;  %v6099_v10 = vld [vmem:[#allocation4 + $0x1a8] sm:$0xff] }
 0x202   :  { %9461 = vst [vmem:[#allocation115_spill] sm:$0xff] %v6084_v18  ;;  %1476 = vmatpush.msra.mxu1 %v6099_v10  ;;  %v6102_v18 = vld [vmem:[#allocation4 + $0x1b0] sm:$0xff] }
 0x203   :  { %9462 = vst [vmem:[#allocation116_spill] sm:$0xff] %v6087_v56  ;;  %1496 = vmatpush.msrb.mxu2 %v6102_v18  ;;  %v6105_v56 = vld [vmem:[#allocation4 + $0x1b8] sm:$0xff] }
 0x204   :  { %9463 = vst [vmem:[#allocation117_spill] sm:$0xff] %v6090_v21  ;;  %1516 = vmatpush.msrb.mxu3 %v6105_v56  ;;  %v6108_v21 = vld [vmem:[#allocation4 + $0x180] sm:$0xff] }
 0x205   :  { %9464 = vst [vmem:[#allocation118_spill] sm:$0xff] %v6093_v55  ;;  %1457 = vmatpush.msra.mxu0 %v6108_v21  ;;  %v6111_v55 = vld [vmem:[#allocation4 + $0x188] sm:$0xff] }
 0x206   :  { %9465 = vst [vmem:[#allocation119_spill] sm:$0xff] %v6096_v14  ;;  %1477 = vmatpush.msra.mxu1 %v6111_v55  ;;  %v6114_v14 = vld [vmem:[#allocation4 + $0x190] sm:$0xff] }
 0x207   :  { %9466 = vst [vmem:[#allocation120_spill] sm:$0xff] %v6099_v10  ;;  %1497 = vmatpush.msrb.mxu2 %v6114_v14  ;;  %v6117_v10 = vld [vmem:[#allocation4 + $0x198] sm:$0xff] }
 0x208   :  { %9467 = vst [vmem:[#allocation121_spill] sm:$0xff] %v6102_v18  ;;  %1517 = vmatpush.msrb.mxu3 %v6117_v10  ;;  %v6120_v18 = vld [vmem:[#allocation4 + $0x160] sm:$0xff] }
 0x209   :  { %9468 = vst [vmem:[#allocation123_spill] sm:$0xff] %v6105_v56  ;;  %1458 = vmatpush.msra.mxu0 %v6120_v18  ;;  %v6123_v56 = vld [vmem:[#allocation4 + $0x168] sm:$0xff] }
 0x20a   :  { %9469 = vst [vmem:[#allocation124_spill] sm:$0xff] %v6108_v21  ;;  %1478 = vmatpush.msra.mxu1 %v6123_v56  ;;  %v6126_v21 = vld [vmem:[#allocation4 + $0x170] sm:$0xff] }
 0x20b   :  { %9470 = vst [vmem:[#allocation125_spill] sm:$0xff] %v6111_v55  ;;  %1498 = vmatpush.msrb.mxu2 %v6126_v21  ;;  %v6129_v55 = vld [vmem:[#allocation4 + $0x178] sm:$0xff] }
 0x20c   :  { %9471 = vst [vmem:[#allocation126_spill] sm:$0xff] %v6114_v14  ;;  %1518 = vmatpush.msrb.mxu3 %v6129_v55  ;;  %v6132_v14 = vld [vmem:[#allocation4 + $0x140] sm:$0xff] }
 0x20d   :  { %9472 = vst [vmem:[#allocation127_spill] sm:$0xff] %v6117_v10  ;;  %1459 = vmatpush.msra.mxu0 %v6132_v14  ;;  %v6135_v10 = vld [vmem:[#allocation4 + $0x148] sm:$0xff] }
 0x20e   :  { %9473 = vst [vmem:[#allocation128_spill] sm:$0xff] %v6120_v18  ;;  %1479 = vmatpush.msra.mxu1 %v6135_v10  ;;  %v6138_v18 = vld [vmem:[#allocation4 + $0x150] sm:$0xff] }
 0x20f   :  { %9474 = vst [vmem:[#allocation129_spill] sm:$0xff] %v6123_v56  ;;  %1499 = vmatpush.msrb.mxu2 %v6138_v18  ;;  %v6141_v56 = vld [vmem:[#allocation4 + $0x158] sm:$0xff] }
 0x210   :  { %9475 = vst [vmem:[#allocation130_spill] sm:$0xff] %v6126_v21  ;;  %1519 = vmatpush.msrb.mxu3 %v6141_v56  ;;  %v6144_v21 = vld [vmem:[#allocation4 + $0x120] sm:$0xff] }
 0x211   :  { %9476 = vst [vmem:[#allocation131_spill] sm:$0xff] %v6129_v55  ;;  %1460 = vmatpush.msra.mxu0 %v6144_v21  ;;  %v6147_v55 = vld [vmem:[#allocation4 + $0x128] sm:$0xff] }
 0x212   :  { %9477 = vst [vmem:[#allocation132_spill] sm:$0xff] %v6132_v14  ;;  %1480 = vmatpush.msra.mxu1 %v6147_v55  ;;  %v6150_v14 = vld [vmem:[#allocation4 + $0x130] sm:$0xff] }
 0x213   :  { %9478 = vst [vmem:[#allocation133_spill] sm:$0xff] %v6135_v10  ;;  %1500 = vmatpush.msrb.mxu2 %v6150_v14  ;;  %v6153_v10 = vld [vmem:[#allocation4 + $0x138] sm:$0xff] }
 0x214   :  { %9479 = vst [vmem:[#allocation135_spill] sm:$0xff] %v6138_v18  ;;  %1520 = vmatpush.msrb.mxu3 %v6153_v10  ;;  %v6156_v18 = vld [vmem:[#allocation4 + $0x100] sm:$0xff]  ;;  %v1016_v13 = vpop.f32.mrf.mxu1 }
 0x215   :  { %9480 = vst [vmem:[#allocation136_spill] sm:$0xff] %v6141_v56  ;;  %1461 = vmatpush.msra.mxu0 %v6156_v18  ;;  %v6159_v56 = vld [vmem:[#allocation4 + $0x108] sm:$0xff] }
 0x216   :  { %9481 = vst [vmem:[#allocation137_spill] sm:$0xff] %v6144_v21  ;;  %1481 = vmatpush.msra.mxu1 %v6159_v56  ;;  %v6162_v21 = vld [vmem:[#allocation4 + $0x110] sm:$0xff] }
 0x217   :  { %9482 = vst [vmem:[#allocation138_spill] sm:$0xff] %v6147_v55  ;;  %1501 = vmatpush.msrb.mxu2 %v6162_v21  ;;  %v6165_v55 = vld [vmem:[#allocation4 + $0x118] sm:$0xff] }
 0x218   :  { %9483 = vst [vmem:[#allocation139_spill] sm:$0xff] %v6150_v14  ;;  %1521 = vmatpush.msrb.mxu3 %v6165_v55  ;;  %v6168_v14 = vld [vmem:[#allocation4 + $0xe0] sm:$0xff] }
 0x219   :  { %9484 = vst [vmem:[#allocation140_spill] sm:$0xff] %v6153_v10  ;;  %1462 = vmatpush.msra.mxu0 %v6168_v14  ;;  %v6171_v10 = vld [vmem:[#allocation4 + $0xe8] sm:$0xff] }
 0x21a   :  { %9485 = vst [vmem:[#allocation141_spill] sm:$0xff] %v6156_v18  ;;  %1482 = vmatpush.msra.mxu1 %v6171_v10  ;;  %v6174_v18 = vld [vmem:[#allocation4 + $0xf0] sm:$0xff] }
 0x21b   :  { %9486 = vst [vmem:[#allocation142_spill] sm:$0xff] %v6159_v56  ;;  %1502 = vmatpush.msrb.mxu2 %v6174_v18  ;;  %v6177_v56 = vld [vmem:[#allocation4 + $0xf8] sm:$0xff]  ;;  %v1036_v48 = vpop.f32.mrf.mxu2 }
 0x21c   :  { %9487 = vst [vmem:[#allocation143_spill] sm:$0xff] %v6162_v21  ;;  %1522 = vmatpush.msrb.mxu3 %v6177_v56  ;;  %v6180_v21 = vld [vmem:[#allocation4 + $0xc0] sm:$0xff] }
 0x21d   :  { %9488 = vst [vmem:[#allocation144_spill] sm:$0xff] %v6165_v55  ;;  %1463 = vmatpush.msra.mxu0 %v6180_v21  ;;  %v6183_v55 = vld [vmem:[#allocation4 + $0xc8] sm:$0xff] }
 0x21e   :  { %9489 = vst [vmem:[#allocation145_spill] sm:$0xff] %v6168_v14  ;;  %1483 = vmatpush.msra.mxu1 %v6183_v55  ;;  %v6186_v14 = vld [vmem:[#allocation4 + $0xd0] sm:$0xff] }
 0x21f   :  { %9490 = vst [vmem:[#allocation146_spill] sm:$0xff] %v6171_v10  ;;  %1503 = vmatpush.msrb.mxu2 %v6186_v14  ;;  %v6189_v10 = vld [vmem:[#allocation4 + $0xd8] sm:$0xff] }
 0x220   :  { %9491 = vst [vmem:[#allocation147_spill] sm:$0xff] %v6174_v18  ;;  %1523 = vmatpush.msrb.mxu3 %v6189_v10  ;;  %v6192_v18 = vld [vmem:[#allocation4 + $0xa0] sm:$0xff]  ;;  %v1099_v42 = vpop.f32.mrf.mxu1 }
 0x221   :  { %9492 = vst [vmem:[#allocation148_spill] sm:$0xff] %v6177_v56  ;;  %1464 = vmatpush.msra.mxu0 %v6192_v18  ;;  %v6195_v56 = vld [vmem:[#allocation4 + $0xa8] sm:$0xff]  ;;  %v1100_v30 = vadd.f32 %v1099_v42, %v1016_v13 }
 0x222   :  { %9493 = vst [vmem:[#allocation149_spill] sm:$0xff] %v6180_v21  ;;  %1484 = vmatpush.msra.mxu1 %v6195_v56  ;;  %v6198_v21 = vld [vmem:[#allocation4 + $0xb0] sm:$0xff] }
 0x223   :  { %9494 = vst [vmem:[#allocation151_spill] sm:$0xff] %v6183_v55  ;;  %1504 = vmatpush.msrb.mxu2 %v6198_v21  ;;  %v6201_v55 = vld [vmem:[#allocation4 + $0xb8] sm:$0xff]  ;;  %v1143_v33 = vadd.f32 %v1100_v30, %v5597_v3 }
 0x224   :  { %9495 = vst [vmem:[#allocation156_spill] sm:$0xff] %v6186_v14  ;;  %1524 = vmatpush.msrb.mxu3 %v6201_v55  ;;  %v6204_v14 = vld [vmem:[#allocation4 + $0x80] sm:$0xff] }
 0x225   :  { %9496 = vst [vmem:[#allocation157_spill] sm:$0xff] %v6189_v10  ;;  %1465 = vmatpush.msra.mxu0 %v6204_v14  ;;  %v6207_v10 = vld [vmem:[#allocation4 + $0x88] sm:$0xff]  ;;  %v3633_v24 = vmul.f32 -1.442695, %v1143_v33 }
 0x226   :  { %9497 = vst [vmem:[#allocation158_spill] sm:$0xff] %v6192_v18  ;;  %1485 = vmatpush.msra.mxu1 %v6207_v10  ;;  %v6210_v18 = vld [vmem:[#allocation4 + $0x90] sm:$0xff] }
 0x227   :  { %9498 = vst [vmem:[#allocation159_spill] sm:$0xff] %v6195_v56  ;;  %1505 = vmatpush.msrb.mxu2 %v6210_v18  ;;  %v6213_v56 = vld [vmem:[#allocation4 + $0x98] sm:$0xff] }
 0x228   :  { %9499 = vst [vmem:[#allocation160_spill] sm:$0xff] %v6198_v21  ;;  %1525 = vmatpush.msrb.mxu3 %v6213_v56  ;;  %v6216_v21 = vld [vmem:[#allocation4 + $0x60] sm:$0xff] }
 0x229   :  { %9500 = vst [vmem:[#allocation161_spill] sm:$0xff] %v6201_v55  ;;  %1466 = vmatpush.msra.mxu0 %v6216_v21  ;;  %v6219_v55 = vld [vmem:[#allocation4 + $0x68] sm:$0xff] }
 0x22a   :  { %9501 = vst [vmem:[#allocation162_spill] sm:$0xff] %v6204_v14  ;;  %1486 = vmatpush.msra.mxu1 %v6219_v55  ;;  %v6222_v14 = vld [vmem:[#allocation4 + $0x70] sm:$0xff] }
 0x22b   :  { %9502 = vst [vmem:[#allocation163_spill] sm:$0xff] %v6207_v10  ;;  %1506 = vmatpush.msrb.mxu2 %v6222_v14  ;;  %v6225_v10 = vld [vmem:[#allocation4 + $0x78] sm:$0xff] }
 0x22c   :  { %9503 = vst [vmem:[#allocation164_spill] sm:$0xff] %v6210_v18  ;;  %1526 = vmatpush.msrb.mxu3 %v6225_v10  ;;  %v6228_v18 = vld [vmem:[#allocation4 + $0x40] sm:$0xff] }
 0x22d   :  { %9504 = vst [vmem:[#allocation165_spill] sm:$0xff] %v6213_v56  ;;  %1467 = vmatpush.msra.mxu0 %v6228_v18  ;;  %v6231_v56 = vld [vmem:[#allocation4 + $0x48] sm:$0xff] }
 0x22e   :  { %9505 = vst [vmem:[#allocation166_spill] sm:$0xff] %v6216_v21  ;;  %1487 = vmatpush.msra.mxu1 %v6231_v56  ;;  %v6234_v21 = vld [vmem:[#allocation4 + $0x50] sm:$0xff] }
 0x22f   :  { %9506 = vst [vmem:[#allocation167_spill] sm:$0xff] %v6219_v55  ;;  %1507 = vmatpush.msrb.mxu2 %v6234_v21  ;;  %v6237_v55 = vld [vmem:[#allocation4 + $0x58] sm:$0xff] }
 0x230   :  { %9507 = vst [vmem:[#allocation168_spill] sm:$0xff] %v6222_v14  ;;  %1527 = vmatpush.msrb.mxu3 %v6237_v55  ;;  %v6240_v14 = vld [vmem:[#allocation4 + $0x20] sm:$0xff] }
 0x231   :  { %9508 = vst [vmem:[#allocation169_spill] sm:$0xff] %v6225_v10  ;;  %1468 = vmatpush.msra.mxu0 %v6240_v14  ;;  %v6243_v10 = vld [vmem:[#allocation4 + $0x28] sm:$0xff] }
 0x232   :  { %9509 = vst [vmem:[#allocation170_spill] sm:$0xff] %v6228_v18  ;;  %1488 = vmatpush.msra.mxu1 %v6243_v10  ;;  %v6246_v18 = vld [vmem:[#allocation4 + $0x30] sm:$0xff] }
 0x233   :  { %9510 = vst [vmem:[#allocation171_spill] sm:$0xff] %v6231_v56  ;;  %1508 = vmatpush.msrb.mxu2 %v6246_v18  ;;  %v6249_v56 = vld [vmem:[#allocation4 + $0x38] sm:$0xff] }
 0x234   :  { %9511 = vst [vmem:[#allocation172_spill] sm:$0xff] %v6234_v21  ;;  %1528 = vmatpush.msrb.mxu3 %v6249_v56  ;;  %v6252_v21 = vld [vmem:[#allocation4] sm:$0xff] }
 0x235   :  { %9512 = vst [vmem:[#allocation173_spill] sm:$0xff] %v6237_v55  ;;  %1469 = vmatpush.msra.mxu0 %v6252_v21  ;;  %v6255_v55 = vld [vmem:[#allocation4 + $0x8] sm:$0xff] }
 0x236   :  { %9513 = vst [vmem:[#allocation174_spill] sm:$0xff] %v6240_v14  ;;  %1489 = vmatpush.msra.mxu1 %v6255_v55  ;;  %v6258_v14 = vld [vmem:[#allocation4 + $0x10] sm:$0xff] }
 0x237   :  { %9514 = vst [vmem:[#allocation175_spill] sm:$0xff] %v6243_v10  ;;  %1509 = vmatpush.msrb.mxu2 %v6258_v14  ;;  %v6261_v10 = vld [vmem:[#allocation4 + $0x18] sm:$0xff] }
 0x238   :  { %9515 = vst [vmem:[#allocation176_spill] sm:$0xff] %v6246_v18  ;;  %1529 = vmatpush.msrb.mxu3 %v6261_v10  ;;  %v996_v18 = vpop.f32.mrf.mxu0  ;;  %v1246_v30 = vpop.f32.mrf.mxu1 }
 0x239   :  { %9516 = vst [vmem:[#allocation177_spill] sm:$0xff] %v6249_v56 }
 0x23a   :  { %9517 = vst [vmem:[#allocation178_spill] sm:$0xff] %v6252_v21 }
 0x23b   :  { %9518 = vst [vmem:[#allocation179_spill] sm:$0xff] %v6255_v55  ;;  %v1056_v55 = vpop.f32.mrf.mxu3 }
 0x23c   :  { %9519 = vst [vmem:[#allocation180_spill] sm:$0xff] %v6258_v14  ;;  %v1119_v14 = vpop.f32.mrf.mxu2 }
 0x23d   :  { %9520 = vst [vmem:[#allocation181_spill] sm:$0xff] %v6261_v10  ;;  %v1120_v15 = vadd.f32 %v1119_v14, %v1036_v48 }
 0x23f   :  { %v1144_v10 = vadd.f32 %v1120_v15, %v5601_v6 }
 0x240   :  { %v1079_v56 = vpop.f32.mrf.mxu0 }
 0x241   :  { %v1080_v41 = vadd.f32 %v1079_v56, %v996_v18  ;;  %v3634_v23 = vmul.f32 -1.442695, %v1144_v10 }
 0x243   :  { %v1142_v21 = vadd.f32 %v1080_v41, %v5595_v12  ;;  %v1139_v17 = vpop.f32.mrf.mxu3  ;;  %v1294_v41 = vrot.slane %v1246_v30, 4 }
 0x244   :  { %v1140_v56 = vadd.f32 %v1139_v17, %v1056_v55 }
 0x245   :  { %v3632_v29 = vmul.f32 -1.442695, %v1142_v21 }
 0x246   :  { %v1145_v21 = vadd.f32 %v1140_v56, %v5606_v40  ;;  %v1302_v40 = vadd.f32 %v1294_v41, %v5359_v0  ;;  %v1266_v41 = vpop.f32.mrf.mxu2 }
 0x247   :  { %3730 = vpow2.f32 %v3632_v29 }
 0x248   :  { %3732 = vpow2.f32 %v3633_v24  ;;  %v1226_v15 = vpop.f32.mrf.mxu0  ;;  %v3636_v12 = vmul.f32 -1.442695, %v1302_v40  ;;  %v1295_v40 = vrot.slane %v1266_v41, 4 }
 0x249   :  { %3734 = vpow2.f32 %v3634_v23 }
 0x24d   :  { %v3731_v20 = vpop.eup %3730 }
 0x24e   :  { %v3733_v19 = vpop.eup %3732  ;;  %v1155_v9 = vadd.f32 1.0, %v3731_v20 }
 0x24f   :  { %v1156_v13 = vadd.f32 1.0, %v3733_v19  ;;  %v3735_v18 = vpop.eup %3734  ;;  %v1293_v19 = vrot.slane %v1226_v15, 4 }
 0x250   :  { %3736 = vrcp.f32 %v1155_v9  ;;  %v6268_v33 = vadd.f32 1.0, %v3735_v18  ;;  %v1167_v23 = vand.u32 2147483647, %v1155_v9  ;;  %v1169_v48 = vand.u32 2147483648, %v1155_v9 }
 0x251   :  { %3738 = vrcp.f32 %v1156_v13  ;;  %v1184_v42 = vand.u32 2147483648, %v1156_v13  ;;  %v1182_v55 = vand.u32 2147483647, %v1156_v13  ;;  %v1301_v18 = vadd.f32 %v1293_v19, %v5318_v46 }
 0x252   :  { %3740 = vrcp.f32 %v6268_v33  ;;  %vm1163_vm8 = vweird.f32 %v1155_v9  ;;  %vm1178_vm9 = vweird.f32 %v1156_v13  ;;  %vm1168_vm11 = vcmp.eq.f32.partialorder %v1167_v23, 8.507059e+37 }
 0x253   :  { %3742 = vtanh.f32 %v1145_v21  ;;  %v1170_v30 = vor.u32 1.1754944e-38, %v1169_v48  ;;  %v1185_v16 = vor.u32 1.1754944e-38, %v1184_v42  ;;  %vm1183_vm13 = vcmp.eq.f32.partialorder %v1182_v55, 8.507059e+37 }
 0x254   :  { %v1303_v23 = vadd.f32 %v1295_v40, %v5381_v5  ;;  %vm1193_vm15 = vweird.f32 %v6268_v33 }
 0x256   :  { %v3737_v29 = vpop.eup %3736  ;;  %v3637_v42 = vmul.f32 -1.442695, %v1303_v23 }
 0x257   :  { %v3739_v24 = vpop.eup %3738  ;;  %v1159_v14 = vmul.f32 %v3737_v29, %v1155_v9  ;;  %vm1164_vm6 = vweird.f32 %v3737_v29 }
 0x258   :  { %v1174_v10 = vmul.f32 %v3739_v24, %v1156_v13  ;;  %vm1179_vm7 = vweird.f32 %v3739_v24  ;;  %v3741_v21 = vpop.eup %3740  ;;  %vm1165_vm10 = vmor %vm1163_vm8, %vm1164_vm6 }
 0x259   :  { %v1160_v20 = vsub.f32 1.0, %v1159_v14  ;;  %v3635_v14 = vmul.f32 -1.442695, %v1301_v18  ;;  %v3743_v15 = vpop.eup %3742  ;;  %vm1180_vm12 = vmor %vm1178_vm9, %vm1179_vm7  ;;  %vm1194_vm14 = vweird.f32 %v3741_v21 }
 0x25a   :  { %v1175_v17 = vsub.f32 1.0, %v1174_v10  ;;  %v1189_v10 = vmul.f32 %v3741_v21, %v6268_v33  ;;  %vm1195_vm0 = vmor %vm1193_vm15, %vm1194_vm14 }
 0x25b   :  { %v1161_v56 = vmul.f32 %v3737_v29, %v1160_v20  ;;  %3744 = vpow2.f32 %v3635_v14 }
 0x25c   :  { %v1176_v6 = vmul.f32 %v3739_v24, %v1175_v17  ;;  %v1190_v17 = vsub.f32 1.0, %v1189_v10  ;;  %3746 = vpow2.f32 %v3636_v12 }
 0x25d   :  { %v1162_v3 = vadd.f32 %v3737_v29, %v1161_v56 }
 0x25e   :  { %v1177_v20 = vadd.f32 %v3739_v24, %v1176_v6  ;;  %v1191_v46 = vmul.f32 %v3741_v21, %v1190_v17 }
 0x25f   :  { %v1166_v19 = vsel %vm1165_vm10, %v3737_v29, %v1162_v3 }
 0x260   :  { %v1171_v9 = vsel %vm1168_vm11, %v1170_v30, %v1166_v19  ;;  %v1181_v0 = vsel %vm1180_vm12, %v3739_v24, %v1177_v20  ;;  %v1192_v3 = vadd.f32 %v3741_v21, %v1191_v46 }
 0x261   :  { %v1186_v13 = vsel %vm1183_vm13, %v1185_v16, %v1181_v0  ;;  %v1205_v56 = vmul.f32 %v3743_v15, %v1171_v9  ;;  %v3745_v6 = vpop.eup %3744  ;;  %v1199_v0 = vand.u32 2147483648, %v6268_v33  ;;  %v1197_v16 = vand.u32 2147483647, %v6268_v33 }
 0x262   :  { %v1204_v18 = vmul.f32 %v1186_v13, %v5642_v44  ;;  %v3747_v29 = vpop.eup %3746  ;;  %v6279_v55 = vadd.f32 1.0, %v3745_v6  ;;  %v1286_v44 = vpop.f32.mrf.mxu3  ;;  %v1196_v46 = vsel %vm1195_vm0, %v3741_v21, %v1192_v3  ;;  %v1364_v3 = vrot.slane %v5666_v22, 6 }
 0x263   :  { %v6282_v12 = vadd.f32 1.0, %v3747_v29  ;;  %v1296_v24 = vrot.slane %v1286_v44, 4  ;;  %v1200_v14 = vor.u32 1.1754944e-38, %v1199_v0  ;;  %vm1198_vm1 = vcmp.eq.f32.partialorder %v1197_v16, 8.507059e+37  ;;  %v9534_v44 = vld [vmem:[#allocation28_spill] sm:$0xff]  ;;  %v9535_v16 = vld [vmem:[#allocation29_spill] sm:$0xff] }
 0x264   :  { %v6276_v48 = vadd.f32 %v1205_v56, %v1204_v18  ;;  %v1328_v40 = vand.u32 2147483648, %v6279_v55  ;;  %v1326_v6 = vand.u32 2147483647, %v6279_v55  ;;  %vm1322_vm4 = vweird.f32 %v6279_v55 }
 0x265   :  { %v1201_v10 = vsel %vm1198_vm1, %v1200_v14, %v1196_v46  ;;  %v1304_v17 = vadd.f32 %v1296_v24, %v5418_v25  ;;  %v1343_v18 = vand.u32 2147483648, %v6282_v12  ;;  %vm1337_vm5 = vweird.f32 %v6282_v12  ;;  %v9536_v46 = vld [vmem:[#allocation30_spill] sm:$0xff]  ;;  %v9537_v24 = vld [vmem:[#allocation24_spill] sm:$0xff]  ;;  %v9538_v14 = vld [vmem:[#allocation31_spill] sm:$0xff] }
 0x266   :  { %3748 = vtanh.f32 %v6276_v48  ;;  %vm1327_vm8 = vcmp.eq.f32.partialorder %v1326_v6, 8.507059e+37  ;;  %v9554_v6 = vld [vmem:[#allocation47_spill] sm:$0xff] }
 0x267   :  { %3750 = vpow2.f32 %v3637_v42 }
 0x268   :  { %3752 = vrcp.f32 %v6279_v55 }
 0x269   :  { %3754 = vrcp.f32 %v6282_v12 }
 0x26c   :  { %v3749_v15 = vpop.eup %3748 }
 0x26d   :  { %v3751_v30 = vpop.eup %3750  ;;  %v1208_v20 = vmul.f32 %v3749_v15, %v1201_v10  ;;  %v9539_v15 = vld [vmem:[#allocation32_spill] sm:$0xff]  ;;  %v9540_v10 = vld [vmem:[#allocation34_spill] sm:$0xff] }
 0x26e   :  { %v3753_v19 = vpop.eup %3752  ;;  %v6288_v41 = vadd.f32 1.0, %v3751_v30  ;;  %v9541_v30 = vld [vmem:[#allocation33_spill] sm:$0xff] }
 0x26f   :  { %v3755_v9 = vpop.eup %3754  ;;  %v1318_v33 = vmul.f32 %v3753_v19, %v6279_v55  ;;  %1387 = vmatmul.f32.vlgmr.msrb.gmra.mxu0 %v1208_v20  ;;  %1407 = vmatmul.f32.vlgmr.msrb.gmra.mxu1 %v1208_v20  ;;  %vm1323_vm2 = vweird.f32 %v3753_v19 }
 0x270   :  { %v1333_v13 = vmul.f32 %v3755_v9, %v6282_v12  ;;  %3756 = vrcp.f32 %v6288_v41  ;;  %1427 = vmatmul.f32.vlgmr.msra.gmra.mxu2 %v1208_v20  ;;  %1447 = vmatmul.f32.vlgmr.msra.gmra.mxu3 %v1208_v20  ;;  %vm1338_vm3 = vweird.f32 %v3755_v9  ;;  %vm1324_vm6 = vmor %vm1322_vm4, %vm1323_vm2  ;;  %vm1352_vm11 = vweird.f32 %v6288_v41  ;;  %v9542_v20 = vld [vmem:[#allocation35_spill] sm:$0xff] }
 0x271   :  { %v1319_v21 = vsub.f32 1.0, %v1318_v33  ;;  %1601 = vmatpush.msrb.mxu0 %v5672_v26  ;;  %1621 = vmatpush.msrb.mxu1 %v5675_v27  ;;  %3758 = vtanh.f32 %v1304_v17  ;;  %v1341_v27 = vand.u32 2147483647, %v6282_v12  ;;  %vm6314_vm7 = vmor %vm1337_vm5, %vm1338_vm3  ;;  %v9545_v17 = vld [vmem:[#allocation37_spill] sm:$0xff]  ;;  %v9547_v33 = vld [vmem:[#allocation40_spill] sm:$0xff] }
 0x272   :  { %v1334_v56 = vsub.f32 1.0, %v1333_v13  ;;  %1641 = vmatpush.msra.mxu2 %v5682_v31  ;;  %1661 = vmatpush.msra.mxu3 %v5685_v32  ;;  %v9548_v13 = vld [vmem:[#allocation42_spill] sm:$0xff] }
 0x273   :  { %v1320_v23 = vmul.f32 %v3753_v19, %v1319_v21  ;;  %1602 = vmatpush.msrb.mxu0 %v5690_v34  ;;  %1622 = vmatpush.msrb.mxu1 %v5693_v35  ;;  %v1329_v34 = vor.u32 1.1754944e-38, %v1328_v40  ;;  %vm1342_vm9 = vcmp.eq.f32.partialorder %v1341_v27, 8.507059e+37  ;;  %v9549_v21 = vld [vmem:[#allocation41_spill] sm:$0xff]  ;;  %v9551_v40 = vld [vmem:[#allocation44_spill] sm:$0xff] }
 0x274   :  { %v1335_v26 = vmul.f32 %v3755_v9, %v1334_v56  ;;  %1642 = vmatpush.msra.mxu2 %v5696_v36  ;;  %1662 = vmatpush.msra.mxu3 %v5699_v37  ;;  %v1344_v37 = vor.u32 1.1754944e-38, %v1343_v18  ;;  %v9550_v56 = vld [vmem:[#allocation43_spill] sm:$0xff]  ;;  %v9552_v18 = vld [vmem:[#allocation45_spill] sm:$0xff]  ;;  %v9561_v36 = vld [vmem:[#allocation54_spill] sm:$0xff] }
 0x275   :  { %v1321_v31 = vadd.f32 %v3753_v19, %v1320_v23  ;;  %1603 = vmatpush.msrb.mxu0 %v5702_v38  ;;  %1623 = vmatpush.msrb.mxu1 %v5705_v39  ;;  %v9553_v23 = vld [vmem:[#allocation46_spill] sm:$0xff]  ;;  %v9556_v27 = vld [vmem:[#allocation49_spill] sm:$0xff] }
 0x276   :  { %v3757_v32 = vpop.eup %3756  ;;  %v1336_v35 = vadd.f32 %v3755_v9, %v1335_v26  ;;  %1643 = vmatpush.msra.mxu2 %v5708_v43  ;;  %1663 = vmatpush.msra.mxu3 %v5711_v47  ;;  %v9555_v26 = vld [vmem:[#allocation48_spill] sm:$0xff] }
 0x277   :  { %v1348_v38 = vmul.f32 %v3757_v32, %v6288_v41  ;;  %v1325_v39 = vsel %vm1324_vm6, %v3753_v19, %v1321_v31  ;;  %1604 = vmatpush.msrb.mxu0 %v5714_v50  ;;  %1624 = vmatpush.msrb.mxu1 %v5717_v51  ;;  %v3759_v42 = vpop.eup %3758  ;;  %vm1353_vm10 = vweird.f32 %v3757_v32  ;;  %v9543_v19 = vld [vmem:[#allocation36_spill] sm:$0xff]  ;;  %v9557_v31 = vld [vmem:[#allocation50_spill] sm:$0xff] }
 0x278   :  { %v1330_v43 = vsel %vm1327_vm8, %v1329_v34, %v1325_v39  ;;  %v1340_v47 = vsel %vm6314_vm7, %v3755_v9, %v1336_v35  ;;  %1644 = vmatpush.msra.mxu2 %v5720_v52  ;;  %1664 = vmatpush.msra.mxu3 %v5723_v53  ;;  %v1358_v53 = vand.u32 2147483648, %v6288_v41  ;;  %vm1354_vm12 = vmor %vm1352_vm11, %vm1353_vm10  ;;  %v9546_v9 = vld [vmem:[#allocation39_spill] sm:$0xff]  ;;  %v9559_v34 = vld [vmem:[#allocation52_spill] sm:$0xff] }
 0x279   :  { %v1349_v29 = vsub.f32 1.0, %v1348_v38  ;;  %v1345_v55 = vsel %vm1342_vm9, %v1344_v37, %v1340_v47  ;;  %v1367_v0 = vmul.f32 %v3759_v42, %v1330_v43  ;;  %1605 = vmatpush.msrb.mxu0 %v5728_v57  ;;  %1625 = vmatpush.msrb.mxu1 %v5731_v58  ;;  %v1356_v57 = vand.u32 2147483647, %v6288_v41  ;;  %v9544_v41 = vld [vmem:[#allocation38_spill] sm:$0xff]  ;;  %v9560_v35 = vld [vmem:[#allocation53_spill] sm:$0xff]  ;;  %v9562_v37 = vld [vmem:[#allocation55_spill] sm:$0xff] }
 0x27a   :  { %v1366_v50 = vmul.f32 %v1364_v3, %v1345_v55  ;;  %1645 = vmatpush.msra.mxu2 %v5734_v59  ;;  %1665 = vmatpush.msra.mxu3 %v5737_v61  ;;  %v9523_v59 = vld [vmem:[#allocation16_spill] sm:$0xff]  ;;  %v1359_v61 = vor.u32 1.1754944e-38, %v1358_v53  ;;  %v9564_v39 = vld [vmem:[#allocation57_spill] sm:$0xff]  ;;  %v9565_v42 = vld [vmem:[#allocation58_spill] sm:$0xff] }
 0x27b   :  { %v1350_v22 = vmul.f32 %v3757_v32, %v1349_v29  ;;  %1606 = vmatpush.msrb.mxu0 %v5744_v63  ;;  %1626 = vmatpush.msrb.mxu1 %v5747_v28  ;;  %v9524_v63 = vld [vmem:[#allocation21_spill] sm:$0xff]  ;;  %vm1357_vm13 = vcmp.eq.f32.partialorder %v1356_v57, 8.507059e+37  ;;  %v9563_v38 = vld [vmem:[#allocation56_spill] sm:$0xff]  ;;  %v9566_v3 = vld [vmem:[#allocation59_spill] sm:$0xff] }
 0x27c   :  { %v6332_v51 = vadd.f32 %v1367_v0, %v1366_v50  ;;  %1646 = vmatpush.msra.mxu2 %v5750_v11  ;;  %1666 = vmatpush.msra.mxu3 %v5753_v49  ;;  %v9525_v28 = vld [vmem:[#allocation13_spill] sm:$0xff]  ;;  %v9526_v11 = vld [vmem:[#allocation22_spill] sm:$0xff]  ;;  %v9527_v49 = vld [vmem:[#allocation19_spill] sm:$0xff] }
 0x27d   :  { %v1351_v52 = vadd.f32 %v3757_v32, %v1350_v22  ;;  %1607 = vmatpush.msrb.mxu0 %v5756_v1  ;;  %1627 = vmatpush.msrb.mxu1 %v5759_v8  ;;  %v9567_v43 = vld [vmem:[#allocation60_spill] sm:$0xff]  ;;  %v9568_v47 = vld [vmem:[#allocation61_spill] sm:$0xff]  ;;  %v9569_v29 = vld [vmem:[#allocation62_spill] sm:$0xff] }
 0x27e   :  { %3760 = vtanh.f32 %v6332_v51  ;;  %1647 = vmatpush.msra.mxu2 %v5762_v54  ;;  %1667 = vmatpush.msra.mxu3 %v5765_v45  ;;  %v9528_v54 = vld [vmem:[#allocation25_spill] sm:$0xff]  ;;  %v9529_v45 = vld [vmem:[#allocation14_spill] sm:$0xff]  ;;  %v9570_v55 = vld [vmem:[#allocation63_spill] sm:$0xff] }
 0x27f   :  { %1608 = vmatpush.msrb.mxu0 %v5768_v62  ;;  %1628 = vmatpush.msrb.mxu1 %v5771_v2  ;;  %v1355_v58 = vsel %vm1354_vm12, %v3757_v32, %v1351_v52  ;;  %v9530_v2 = vld [vmem:[#allocation26_spill] sm:$0xff]  ;;  %v9558_v32 = vld [vmem:[#allocation51_spill] sm:$0xff]  ;;  %v9571_v0 = vld [vmem:[#allocation64_spill] sm:$0xff] }
 0x280   :  { %1648 = vmatpush.msra.mxu2 %v5774_v60  ;;  %1668 = vmatpush.msra.mxu3 %v5777_v7  ;;  %v1360_v8 = vsel %vm1357_vm13, %v1359_v61, %v1355_v58  ;;  %v9531_v60 = vld [vmem:[#allocation23_spill] sm:$0xff]  ;;  %v9572_v50 = vld [vmem:[#allocation65_spill] sm:$0xff]  ;;  %v9573_v22 = vld [vmem:[#allocation66_spill] sm:$0xff] }
 0x281   :  { %1609 = vmatpush.msrb.mxu0 %v5780_v4  ;;  %1629 = vmatpush.msrb.mxu1 %v9523_v59  ;;  %v9532_v7 = vld [vmem:[#allocation27_spill] sm:$0xff]  ;;  %v9533_v4 = vld [vmem:[#allocation20_spill] sm:$0xff]  ;;  %v9576_v57 = vld [vmem:[#allocation69_spill] sm:$0xff] }
 0x282   :  { %1649 = vmatpush.msra.mxu2 %v9524_v63  ;;  %1669 = vmatpush.msra.mxu3 %v9525_v28  ;;  %v9574_v52 = vld [vmem:[#allocation67_spill] sm:$0xff]  ;;  %v9575_v53 = vld [vmem:[#allocation68_spill] sm:$0xff]  ;;  %v9577_v58 = vld [vmem:[#allocation70_spill] sm:$0xff] }
 0x283   :  { %1610 = vmatpush.msrb.mxu0 %v9526_v11  ;;  %1630 = vmatpush.msrb.mxu1 %v9527_v49  ;;  %v9578_v59 = vld [vmem:[#allocation71_spill] sm:$0xff]  ;;  %v9579_v61 = vld [vmem:[#allocation72_spill] sm:$0xff]  ;;  %v9580_v63 = vld [vmem:[#allocation73_spill] sm:$0xff] }
 0x284   :  { %v3761_v1 = vpop.eup %3760  ;;  %1650 = vmatpush.msra.mxu2 %v9528_v54  ;;  %1670 = vmatpush.msra.mxu3 %v9529_v45  ;;  %v9581_v28 = vld [vmem:[#allocation74_spill] sm:$0xff]  ;;  %v9582_v11 = vld [vmem:[#allocation75_spill] sm:$0xff]  ;;  %v9583_v49 = vld [vmem:[#allocation76_spill] sm:$0xff] }
 0x285   :  { %v1370_v62 = vmul.f32 %v3761_v1, %v1360_v8  ;;  %1611 = vmatpush.msrb.mxu0 %v9530_v2  ;;  %1631 = vmatpush.msrb.mxu1 %v9531_v60  ;;  %v9584_v1 = vld [vmem:[#allocation77_spill] sm:$0xff]  ;;  %v9585_v8 = vld [vmem:[#allocation78_spill] sm:$0xff]  ;;  %v9586_v54 = vld [vmem:[#allocation79_spill] sm:$0xff] }
 0x286   :  { %1651 = vmatpush.msra.mxu2 %v9532_v7  ;;  %1671 = vmatpush.msra.mxu3 %v9533_v4  ;;  %v9587_v45 = vld [vmem:[#allocation80_spill] sm:$0xff]  ;;  %v9589_v2 = vld [vmem:[#allocation82_spill] sm:$0xff]  ;;  %v9590_v60 = vld [vmem:[#allocation83_spill] sm:$0xff] }
 0x287   :  { %v1452_v12 = vrot.slane %v1370_v62, 4  ;;  %1612 = vmatpush.msrb.mxu0 %v9534_v44  ;;  %1632 = vmatpush.msrb.mxu1 %v9535_v16  ;;  %v9588_v62 = vld [vmem:[#allocation81_spill] sm:$0xff]  ;;  %v9591_v7 = vld [vmem:[#allocation84_spill] sm:$0xff]  ;;  %v9594_v44 = vld [vmem:[#allocation87_spill] sm:$0xff] }
 0x288   :  { %1652 = vmatpush.msra.mxu2 %v9536_v46  ;;  %1672 = vmatpush.msra.mxu3 %v9537_v24  ;;  %v9592_v4 = vld [vmem:[#allocation85_spill] sm:$0xff]  ;;  %v9595_v16 = vld [vmem:[#allocation88_spill] sm:$0xff]  ;;  %v9597_v24 = vld [vmem:[#allocation90_spill] sm:$0xff] }
 0x289   :  { %1470 = vmatmul.f32.vlgmr.msra.gmra.mxu0 %v1452_v12  ;;  %1490 = vmatmul.f32.vlgmr.msra.gmra.mxu1 %v1452_v12  ;;  %v9596_v46 = vld [vmem:[#allocation89_spill] sm:$0xff] }
 0x28a   :  { %1510 = vmatmul.f32.vlgmr.msrb.gmra.mxu2 %v1452_v12  ;;  %1530 = vmatmul.f32.vlgmr.msrb.gmra.mxu3 %v1452_v12 }
 0x28b   :  { %1613 = vmatpush.msrb.mxu0 %v9538_v14  ;;  %1633 = vmatpush.msrb.mxu1 %v9539_v15  ;;  %v9598_v14 = vld [vmem:[#allocation91_spill] sm:$0xff]  ;;  %v9599_v15 = vld [vmem:[#allocation92_spill] sm:$0xff] }
 0x28c   :  { %1653 = vmatpush.msra.mxu2 %v9540_v10  ;;  %1673 = vmatpush.msra.mxu3 %v9541_v30  ;;  %v9600_v10 = vld [vmem:[#allocation93_spill] sm:$0xff]  ;;  %v9601_v30 = vld [vmem:[#allocation94_spill] sm:$0xff] }
 0x28d   :  { %1614 = vmatpush.msrb.mxu0 %v9542_v20  ;;  %1634 = vmatpush.msrb.mxu1 %v9543_v19  ;;  %v9602_v20 = vld [vmem:[#allocation95_spill] sm:$0xff]  ;;  %v9603_v19 = vld [vmem:[#allocation96_spill] sm:$0xff] }
 0x28e   :  { %1654 = vmatpush.msra.mxu2 %v9544_v41  ;;  %1674 = vmatpush.msra.mxu3 %v9545_v17  ;;  %v9604_v41 = vld [vmem:[#allocation97_spill] sm:$0xff]  ;;  %v9605_v17 = vld [vmem:[#allocation98_spill] sm:$0xff] }
 0x28f   :  { %1615 = vmatpush.msrb.mxu0 %v9546_v9  ;;  %1635 = vmatpush.msrb.mxu1 %v9547_v33  ;;  %v9606_v9 = vld [vmem:[#allocation99_spill] sm:$0xff]  ;;  %v9607_v33 = vld [vmem:[#allocation100_spill] sm:$0xff] }
 0x290   :  { %1655 = vmatpush.msra.mxu2 %v9548_v13  ;;  %1675 = vmatpush.msra.mxu3 %v9549_v21  ;;  %v9608_v13 = vld [vmem:[#allocation101_spill] sm:$0xff]  ;;  %v9609_v21 = vld [vmem:[#allocation102_spill] sm:$0xff] }
 0x291   :  { %1616 = vmatpush.msrb.mxu0 %v9550_v56  ;;  %1636 = vmatpush.msrb.mxu1 %v9551_v40  ;;  %v9610_v56 = vld [vmem:[#allocation103_spill] sm:$0xff]  ;;  %v9611_v40 = vld [vmem:[#allocation104_spill] sm:$0xff] }
 0x292   :  { %1656 = vmatpush.msra.mxu2 %v9552_v18  ;;  %1676 = vmatpush.msra.mxu3 %v9553_v23  ;;  %v9612_v18 = vld [vmem:[#allocation105_spill] sm:$0xff]  ;;  %v9613_v23 = vld [vmem:[#allocation106_spill] sm:$0xff] }
 0x293   :  { %1617 = vmatmul.f32.vlgmr.msrb.gmra.mxu0 %v1452_v12  ;;  %1637 = vmatmul.f32.vlgmr.msrb.gmra.mxu1 %v1452_v12 }
 0x294   :  { %1657 = vmatmul.f32.vlgmr.msra.gmra.mxu2 %v1452_v12  ;;  %1677 = vmatmul.f32.vlgmr.msra.gmra.mxu3 %v1452_v12  ;;  %v9593_v12 = vld [vmem:[#allocation86_spill] sm:$0xff] }
 0x295   :  { %1763 = vmatpush.msra.mxu0 %v9554_v6  ;;  %1783 = vmatpush.msra.mxu1 %v9555_v26  ;;  %v9614_v6 = vld [vmem:[#allocation107_spill] sm:$0xff]  ;;  %v9615_v26 = vld [vmem:[#allocation108_spill] sm:$0xff] }
 0x296   :  { %1803 = vmatpush.msrb.mxu2 %v9556_v27  ;;  %1823 = vmatpush.msrb.mxu3 %v9557_v31  ;;  %v9616_v27 = vld [vmem:[#allocation109_spill] sm:$0xff]  ;;  %v9617_v31 = vld [vmem:[#allocation110_spill] sm:$0xff] }
 0x297   :  { %1764 = vmatpush.msra.mxu0 %v9558_v32  ;;  %1784 = vmatpush.msra.mxu1 %v9559_v34  ;;  %v9618_v32 = vld [vmem:[#allocation111_spill] sm:$0xff]  ;;  %v9619_v34 = vld [vmem:[#allocation112_spill] sm:$0xff] }
 0x298   :  { %1804 = vmatpush.msrb.mxu2 %v9560_v35  ;;  %1824 = vmatpush.msrb.mxu3 %v9561_v36  ;;  %v9620_v35 = vld [vmem:[#allocation113_spill] sm:$0xff]  ;;  %v9621_v36 = vld [vmem:[#allocation114_spill] sm:$0xff] }
 0x299   :  { %1765 = vmatpush.msra.mxu0 %v9562_v37  ;;  %1785 = vmatpush.msra.mxu1 %v9563_v38  ;;  %v9622_v37 = vld [vmem:[#allocation115_spill] sm:$0xff]  ;;  %v9623_v38 = vld [vmem:[#allocation116_spill] sm:$0xff] }
 0x29a   :  { %1805 = vmatpush.msrb.mxu2 %v9564_v39  ;;  %1825 = vmatpush.msrb.mxu3 %v9565_v42  ;;  %v9624_v39 = vld [vmem:[#allocation117_spill] sm:$0xff]  ;;  %v9625_v42 = vld [vmem:[#allocation118_spill] sm:$0xff] }
 0x29b   :  { %1766 = vmatpush.msra.mxu0 %v9566_v3  ;;  %1786 = vmatpush.msra.mxu1 %v9567_v43  ;;  %v9626_v3 = vld [vmem:[#allocation119_spill] sm:$0xff]  ;;  %v9627_v43 = vld [vmem:[#allocation120_spill] sm:$0xff] }
 0x29c   :  { %1806 = vmatpush.msrb.mxu2 %v9568_v47  ;;  %1826 = vmatpush.msrb.mxu3 %v9569_v29  ;;  %v9628_v47 = vld [vmem:[#allocation121_spill] sm:$0xff]  ;;  %v9629_v29 = vld [vmem:[#allocation123_spill] sm:$0xff] }
 0x29d   :  { %1767 = vmatpush.msra.mxu0 %v9570_v55  ;;  %1787 = vmatpush.msra.mxu1 %v9571_v0  ;;  %v9630_v55 = vld [vmem:[#allocation124_spill] sm:$0xff]  ;;  %v9631_v0 = vld [vmem:[#allocation125_spill] sm:$0xff] }
 0x29e   :  { %1807 = vmatpush.msrb.mxu2 %v9572_v50  ;;  %1827 = vmatpush.msrb.mxu3 %v9573_v22  ;;  %v9632_v50 = vld [vmem:[#allocation126_spill] sm:$0xff]  ;;  %v9633_v22 = vld [vmem:[#allocation127_spill] sm:$0xff] }
 0x29f   :  { %1768 = vmatpush.msra.mxu0 %v9574_v52  ;;  %1788 = vmatpush.msra.mxu1 %v9575_v53  ;;  %v9634_v52 = vld [vmem:[#allocation128_spill] sm:$0xff]  ;;  %v9635_v53 = vld [vmem:[#allocation129_spill] sm:$0xff] }
 0x2a0   :  { %1808 = vmatpush.msrb.mxu2 %v9576_v57  ;;  %1828 = vmatpush.msrb.mxu3 %v9577_v58  ;;  %v9636_v57 = vld [vmem:[#allocation130_spill] sm:$0xff]  ;;  %v9637_v58 = vld [vmem:[#allocation131_spill] sm:$0xff] }
 0x2a1   :  { %1769 = vmatpush.msra.mxu0 %v9578_v59  ;;  %1789 = vmatpush.msra.mxu1 %v9579_v61  ;;  %v9638_v59 = vld [vmem:[#allocation132_spill] sm:$0xff]  ;;  %v9639_v61 = vld [vmem:[#allocation133_spill] sm:$0xff] }
 0x2a2   :  { %1809 = vmatpush.msrb.mxu2 %v9580_v63  ;;  %1829 = vmatpush.msrb.mxu3 %v9581_v28  ;;  %v9640_v63 = vld [vmem:[#allocation135_spill] sm:$0xff]  ;;  %v9641_v28 = vld [vmem:[#allocation136_spill] sm:$0xff] }
 0x2a3   :  { %1770 = vmatpush.msra.mxu0 %v9582_v11  ;;  %1790 = vmatpush.msra.mxu1 %v9583_v49  ;;  %v9642_v11 = vld [vmem:[#allocation137_spill] sm:$0xff]  ;;  %v9643_v49 = vld [vmem:[#allocation138_spill] sm:$0xff] }
 0x2a4   :  { %1810 = vmatpush.msrb.mxu2 %v9584_v1  ;;  %1830 = vmatpush.msrb.mxu3 %v9585_v8  ;;  %v9644_v1 = vld [vmem:[#allocation139_spill] sm:$0xff]  ;;  %v9645_v8 = vld [vmem:[#allocation140_spill] sm:$0xff] }
 0x2a5   :  { %1771 = vmatpush.msra.mxu0 %v9586_v54  ;;  %1791 = vmatpush.msra.mxu1 %v9587_v45  ;;  %v9646_v54 = vld [vmem:[#allocation141_spill] sm:$0xff]  ;;  %v9647_v45 = vld [vmem:[#allocation142_spill] sm:$0xff] }
 0x2a6   :  { %1811 = vmatpush.msrb.mxu2 %v9588_v62  ;;  %1831 = vmatpush.msrb.mxu3 %v9589_v2  ;;  %v9648_v62 = vld [vmem:[#allocation143_spill] sm:$0xff]  ;;  %v9649_v2 = vld [vmem:[#allocation144_spill] sm:$0xff] }
 0x2a7   :  { %1772 = vmatpush.msra.mxu0 %v9590_v60  ;;  %1792 = vmatpush.msra.mxu1 %v9591_v7  ;;  %v9650_v60 = vld [vmem:[#allocation145_spill] sm:$0xff]  ;;  %v9651_v7 = vld [vmem:[#allocation146_spill] sm:$0xff] }
 0x2a8   :  { %1812 = vmatpush.msrb.mxu2 %v9592_v4  ;;  %1832 = vmatpush.msrb.mxu3 %v9593_v12  ;;  %v9652_v4 = vld [vmem:[#allocation147_spill] sm:$0xff]  ;;  %v9653_v12 = vld [vmem:[#allocation148_spill] sm:$0xff] }
 0x2a9   :  { %1773 = vmatpush.msra.mxu0 %v9594_v44  ;;  %1793 = vmatpush.msra.mxu1 %v9595_v16  ;;  %v9654_v44 = vld [vmem:[#allocation149_spill] sm:$0xff]  ;;  %v9655_v16 = vld [vmem:[#allocation151_spill] sm:$0xff] }
 0x2aa   :  { %1813 = vmatpush.msrb.mxu2 %v9596_v46  ;;  %1833 = vmatpush.msrb.mxu3 %v9597_v24  ;;  %v9656_v46 = vld [vmem:[#allocation156_spill] sm:$0xff]  ;;  %v9657_v24 = vld [vmem:[#allocation157_spill] sm:$0xff] }
 0x2ab   :  { %1774 = vmatpush.msra.mxu0 %v9598_v14  ;;  %1794 = vmatpush.msra.mxu1 %v9599_v15  ;;  %v9658_v14 = vld [vmem:[#allocation158_spill] sm:$0xff]  ;;  %v9659_v15 = vld [vmem:[#allocation159_spill] sm:$0xff] }
 0x2ac   :  { %1814 = vmatpush.msrb.mxu2 %v9600_v10  ;;  %1834 = vmatpush.msrb.mxu3 %v9601_v30  ;;  %v9660_v10 = vld [vmem:[#allocation160_spill] sm:$0xff]  ;;  %v9661_v30 = vld [vmem:[#allocation161_spill] sm:$0xff] }
 0x2ad   :  { %1775 = vmatpush.msra.mxu0 %v9602_v20  ;;  %1795 = vmatpush.msra.mxu1 %v9603_v19  ;;  %v9662_v20 = vld [vmem:[#allocation162_spill] sm:$0xff]  ;;  %v9663_v19 = vld [vmem:[#allocation163_spill] sm:$0xff] }
 0x2ae   :  { %1815 = vmatpush.msrb.mxu2 %v9604_v41  ;;  %1835 = vmatpush.msrb.mxu3 %v9605_v17  ;;  %v9664_v41 = vld [vmem:[#allocation164_spill] sm:$0xff]  ;;  %v9665_v17 = vld [vmem:[#allocation165_spill] sm:$0xff] }
 0x2af   :  { %1776 = vmatpush.msra.mxu0 %v9606_v9  ;;  %1796 = vmatpush.msra.mxu1 %v9607_v33  ;;  %v9666_v9 = vld [vmem:[#allocation166_spill] sm:$0xff]  ;;  %v9667_v33 = vld [vmem:[#allocation167_spill] sm:$0xff] }
 0x2b0   :  { %1816 = vmatpush.msrb.mxu2 %v9608_v13  ;;  %1836 = vmatpush.msrb.mxu3 %v9609_v21  ;;  %v9668_v13 = vld [vmem:[#allocation168_spill] sm:$0xff]  ;;  %v9669_v21 = vld [vmem:[#allocation169_spill] sm:$0xff] }
 0x2b1   :  { %1777 = vmatpush.msra.mxu0 %v9610_v56  ;;  %1797 = vmatpush.msra.mxu1 %v9611_v40  ;;  %v9670_v56 = vld [vmem:[#allocation170_spill] sm:$0xff]  ;;  %v9671_v40 = vld [vmem:[#allocation171_spill] sm:$0xff] }
 0x2b2   :  { %1817 = vmatpush.msrb.mxu2 %v9612_v18  ;;  %1837 = vmatpush.msrb.mxu3 %v9613_v23  ;;  %v9672_v18 = vld [vmem:[#allocation172_spill] sm:$0xff]  ;;  %v9673_v23 = vld [vmem:[#allocation173_spill] sm:$0xff] }
 0x2b3   :  { %1778 = vmatpush.msra.mxu0 %v9614_v6  ;;  %1798 = vmatpush.msra.mxu1 %v9615_v26  ;;  %v9674_v6 = vld [vmem:[#allocation174_spill] sm:$0xff]  ;;  %v9675_v26 = vld [vmem:[#allocation175_spill] sm:$0xff] }
 0x2b4   :  { %1818 = vmatpush.msrb.mxu2 %v9616_v27  ;;  %1838 = vmatpush.msrb.mxu3 %v9617_v31  ;;  %v9676_v27 = vld [vmem:[#allocation176_spill] sm:$0xff]  ;;  %v9677_v31 = vld [vmem:[#allocation177_spill] sm:$0xff] }
 0x2b5   :  { %1846 = vmatpush.msrb.mxu0 %v9618_v32  ;;  %1866 = vmatpush.msrb.mxu1 %v9619_v34  ;;  %v9678_v32 = vld [vmem:[#allocation178_spill] sm:$0xff]  ;;  %v9679_v34 = vld [vmem:[#allocation179_spill] sm:$0xff] }
 0x2b6   :  { %1886 = vmatpush.msra.mxu2 %v9620_v35  ;;  %1906 = vmatpush.msra.mxu3 %v9621_v36  ;;  %v9680_v35 = vld [vmem:[#allocation180_spill] sm:$0xff]  ;;  %v9681_v36 = vld [vmem:[#allocation181_spill] sm:$0xff] }
 0x2b7   :  { %1847 = vmatpush.msrb.mxu0 %v9622_v37  ;;  %1867 = vmatpush.msrb.mxu1 %v9623_v38 }
 0x2b8   :  { %1887 = vmatpush.msra.mxu2 %v9624_v39  ;;  %1907 = vmatpush.msra.mxu3 %v9625_v42 }
 0x2b9   :  { %1848 = vmatpush.msrb.mxu0 %v9626_v3  ;;  %1868 = vmatpush.msrb.mxu1 %v9627_v43 }
 0x2ba   :  { %1888 = vmatpush.msra.mxu2 %v9628_v47  ;;  %1908 = vmatpush.msra.mxu3 %v9629_v29  ;;  %v9682_v29 = vld [vmem:[#allocation15_spill] sm:$0xff] }
 0x2bb   :  { %1849 = vmatpush.msrb.mxu0 %v9630_v55  ;;  %1869 = vmatpush.msrb.mxu1 %v9631_v0  ;;  %v9683_v0 = vld [vmem:[#allocation17_spill] sm:$0xff] }
 0x2bc   :  { %1889 = vmatpush.msra.mxu2 %v9632_v50  ;;  %1909 = vmatpush.msra.mxu3 %v9633_v22 }
 0x2bd   :  { %1850 = vmatpush.msrb.mxu0 %v9634_v52  ;;  %1870 = vmatpush.msrb.mxu1 %v9635_v53 }
 0x2be   :  { %1890 = vmatpush.msra.mxu2 %v9636_v57  ;;  %1910 = vmatpush.msra.mxu3 %v9637_v58 }
 0x2bf   :  { %1851 = vmatpush.msrb.mxu0 %v9638_v59  ;;  %1871 = vmatpush.msrb.mxu1 %v9639_v61  ;;  %v9684_v59 = vld [vmem:[#allocation12_spill] sm:$0xff] }
 0x2c0   :  { %1891 = vmatpush.msra.mxu2 %v9640_v63  ;;  %1911 = vmatpush.msra.mxu3 %v9641_v28 }
 0x2c1   :  { %1852 = vmatpush.msrb.mxu0 %v9642_v11  ;;  %1872 = vmatpush.msrb.mxu1 %v9643_v49 }
 0x2c2   :  { %1892 = vmatpush.msra.mxu2 %v9644_v1  ;;  %1912 = vmatpush.msra.mxu3 %v9645_v8 }
 0x2c3   :  { %1853 = vmatpush.msrb.mxu0 %v9646_v54  ;;  %1873 = vmatpush.msrb.mxu1 %v9647_v45  ;;  %v9685_v54 = vld [vmem:[#allocation150_spill] sm:$0xff] }
 0x2c4   :  { %1893 = vmatpush.msra.mxu2 %v9648_v62  ;;  %1913 = vmatpush.msra.mxu3 %v9649_v2  ;;  %v9686_v62 = vld [vmem:[#allocation154_spill] sm:$0xff] }
 0x2c5   :  { %1854 = vmatpush.msrb.mxu0 %v9650_v60  ;;  %1874 = vmatpush.msrb.mxu1 %v9651_v7 }
 0x2c6   :  { %1894 = vmatpush.msra.mxu2 %v9652_v4  ;;  %1914 = vmatpush.msra.mxu3 %v9653_v12 }
 0x2c7   :  { %1855 = vmatpush.msrb.mxu0 %v9654_v44  ;;  %1875 = vmatpush.msrb.mxu1 %v9655_v16 }
 0x2c8   :  { %1895 = vmatpush.msra.mxu2 %v9656_v46  ;;  %1915 = vmatpush.msra.mxu3 %v9657_v24 }
 0x2c9   :  { %1856 = vmatpush.msrb.mxu0 %v9658_v14  ;;  %1876 = vmatpush.msrb.mxu1 %v9659_v15 }
 0x2ca   :  { %1896 = vmatpush.msra.mxu2 %v9660_v10  ;;  %1916 = vmatpush.msra.mxu3 %v9661_v30 }
 0x2cb   :  { %1857 = vmatpush.msrb.mxu0 %v9662_v20  ;;  %1877 = vmatpush.msrb.mxu1 %v9663_v19  ;;  %v9687_v20 = vld [vmem:[#allocation18_spill] sm:$0xff] }
 0x2cc   :  { %1897 = vmatpush.msra.mxu2 %v9664_v41  ;;  %1917 = vmatpush.msra.mxu3 %v9665_v17 }
 0x2cd   :  { %1858 = vmatpush.msrb.mxu0 %v9666_v9  ;;  %1878 = vmatpush.msrb.mxu1 %v9667_v33 }
 0x2ce   :  { %1898 = vmatpush.msra.mxu2 %v9668_v13  ;;  %1918 = vmatpush.msra.mxu3 %v9669_v21 }
 0x2cf   :  { %1859 = vmatpush.msrb.mxu0 %v9670_v56  ;;  %1879 = vmatpush.msrb.mxu1 %v9671_v40 }
 0x2d0   :  { %1899 = vmatpush.msra.mxu2 %v9672_v18  ;;  %1919 = vmatpush.msra.mxu3 %v9673_v23 }
 0x2d1   :  { %1860 = vmatpush.msrb.mxu0 %v9674_v6  ;;  %1880 = vmatpush.msrb.mxu1 %v9675_v26 }
 0x2d2   :  { %1900 = vmatpush.msra.mxu2 %v9676_v27  ;;  %1920 = vmatpush.msra.mxu3 %v9677_v31 }
 0x2d3   :  { %1861 = vmatpush.msrb.mxu0 %v9678_v32  ;;  %1881 = vmatpush.msrb.mxu1 %v9679_v34 }
 0x2d4   :  { %1901 = vmatpush.msra.mxu2 %v9680_v35  ;;  %1921 = vmatpush.msra.mxu3 %v9681_v36 }
 0x2ec   :  { %v1388_v37 = vpop.f32.mrf.mxu0  ;;  %v1408_v38 = vpop.f32.mrf.mxu1 }
 0x2f3   :  { %v1428_v39 = vpop.f32.mrf.mxu2  ;;  %v1448_v53 = vpop.f32.mrf.mxu3 }
 0x306   :  { %v1471_v42 = vpop.f32.mrf.mxu0  ;;  %v1491_v3 = vpop.f32.mrf.mxu1 }
 0x307   :  { %v1472_v43 = vadd.f32 %v1471_v42, %v1388_v37  ;;  %v1492_v47 = vadd.f32 %v1491_v3, %v1408_v38 }
 0x309   :  { %v1534_v55 = vadd.f32 %v1472_v43, %v9682_v29  ;;  %v1535_v50 = vadd.f32 %v1492_v47, %v9683_v0 }
 0x30b   :  { %v3638_v22 = vmul.f32 -1.442695, %v1534_v55  ;;  %v3639_v52 = vmul.f32 -1.442695, %v1535_v50 }
 0x30d   :  { %3762 = vpow2.f32 %v3638_v22  ;;  %v1511_v57 = vpop.f32.mrf.mxu2  ;;  %v1531_v4 = vpop.f32.mrf.mxu3 }
 0x30e   :  { %3764 = vpow2.f32 %v3639_v52  ;;  %v1512_v58 = vadd.f32 %v1511_v57, %v1428_v39  ;;  %v1532_v46 = vadd.f32 %v1531_v4, %v1448_v53 }
 0x310   :  { %v1536_v61 = vadd.f32 %v1512_v58, %v9684_v59  ;;  %v1618_v63 = vpop.f32.mrf.mxu0  ;;  %v1638_v28 = vpop.f32.mrf.mxu1  ;;  %v1537_v19 = vadd.f32 %v1532_v46, %v9687_v20 }
 0x311   :  { %v1685_v11 = vrot.slane %v1618_v63, 2  ;;  %v1686_v49 = vrot.slane %v1638_v28, 2 }
 0x312   :  { %v3640_v1 = vmul.f32 -1.442695, %v1536_v61 }
 0x313   :  { %v3763_v8 = vpop.eup %3762  ;;  %v1693_v45 = vadd.f32 %v1685_v11, %v9685_v54  ;;  %v1694_v2 = vadd.f32 %v1686_v49, %v9686_v62  ;;  %v1756_v49 = vrot.slane %v6332_v51, 6 }
 0x314   :  { %v3765_v60 = vpop.eup %3764  ;;  %v1547_v7 = vadd.f32 1.0, %v3763_v8  ;;  %3766 = vpow2.f32 %v3640_v1 }
 0x315   :  { %v1548_v12 = vadd.f32 1.0, %v3765_v60  ;;  %v3641_v44 = vmul.f32 -1.442695, %v1693_v45  ;;  %v3642_v16 = vmul.f32 -1.442695, %v1694_v2 }
 0x316   :  { %3768 = vrcp.f32 %v1547_v7  ;;  %v1559_v23 = vand.u32 2147483647, %v1547_v7  ;;  %v1561_v27 = vand.u32 2147483648, %v1547_v7  ;;  %vm1555_vm1 = vweird.f32 %v1547_v7 }
 0x317   :  { %3770 = vrcp.f32 %v1548_v12  ;;  %v1658_v24 = vpop.f32.mrf.mxu2  ;;  %v1678_v56 = vpop.f32.mrf.mxu3  ;;  %v1576_v26 = vand.u32 2147483648, %v1548_v12  ;;  %v1574_v36 = vand.u32 2147483647, %v1548_v12  ;;  %vm1570_vm0 = vweird.f32 %v1548_v12 }
 0x318   :  { %3772 = vpow2.f32 %v3641_v44  ;;  %v1687_v14 = vrot.slane %v1658_v24, 2  ;;  %v1688_v34 = vrot.slane %v1678_v56, 2  ;;  %vm1560_vm3 = vcmp.eq.f32.partialorder %v1559_v23, 8.507059e+37 }
 0x319   :  { %3774 = vpow2.f32 %v3642_v16  ;;  %v1562_v3 = vor.u32 1.1754944e-38, %v1561_v27  ;;  %v1577_v55 = vor.u32 1.1754944e-38, %v1576_v26  ;;  %vm1575_vm5 = vcmp.eq.f32.partialorder %v1574_v36, 8.507059e+37  ;;  %v6571_v36 = vld [vmem:[#allocation2 + $0x1e0] sm:$0xff] }
 0x31a   :  { %v3767_v15 = vpop.eup %3766  ;;  %v1695_v10 = vadd.f32 %v1687_v14, %v5381_v5  ;;  %v1696_v52 = vadd.f32 %v1688_v34, %v5418_v25 }
 0x31b   :  { %v6514_v30 = vadd.f32 1.0, %v3767_v15 }
 0x31c   :  { %v3769_v41 = vpop.eup %3768  ;;  %v3643_v17 = vmul.f32 -1.442695, %v1695_v10  ;;  %v6678_v10 = vld [vmem:[#allocation2 + $0x110] sm:$0xff] }
 0x31d   :  { %v3771_v9 = vpop.eup %3770  ;;  %v1551_v33 = vmul.f32 %v3769_v41, %v1547_v7  ;;  %3776 = vrcp.f32 %v6514_v30  ;;  %vm1556_vm14 = vweird.f32 %v3769_v41  ;;  %vm1585_vm6 = vweird.f32 %v6514_v30 }
 0x31e   :  { %v3773_v13 = vpop.eup %3772  ;;  %v1566_v21 = vmul.f32 %v3771_v9, %v1548_v12  ;;  %3778 = vpow2.f32 %v3643_v17  ;;  %vm1571_vm15 = vweird.f32 %v3771_v9  ;;  %vm1557_vm2 = vmor %vm1555_vm1, %vm1556_vm14  ;;  %v1591_v60 = vand.u32 2147483648, %v6514_v30 }
 0x31f   :  { %v3775_v40 = vpop.eup %3774  ;;  %v1552_v18 = vsub.f32 1.0, %v1551_v33  ;;  %3780 = vtanh.f32 %v1537_v19  ;;  %v6518_v6 = vadd.f32 1.0, %v3773_v13  ;;  %vm1572_vm4 = vmor %vm1570_vm0, %vm1571_vm15  ;;  %v1589_v24 = vand.u32 2147483647, %v6514_v30 }
 0x320   :  { %v1567_v5 = vsub.f32 1.0, %v1566_v21  ;;  %v6520_v31 = vadd.f32 1.0, %v3775_v40  ;;  %v1592_v56 = vor.u32 1.1754944e-38, %v1591_v60  ;;  %v6638_v60 = vld [vmem:[#allocation2 + $0x170] sm:$0xff] }
 0x321   :  { %v1553_v32 = vmul.f32 %v3769_v41, %v1552_v18  ;;  %3782 = vrcp.f32 %v6518_v6  ;;  %v1718_v2 = vand.u32 2147483647, %v6518_v6  ;;  %v1720_v51 = vand.u32 2147483648, %v6518_v6 }
 0x322   :  { %v1568_v35 = vmul.f32 %v3771_v9, %v1567_v5  ;;  %3784 = vrcp.f32 %v6520_v31  ;;  %v1735_v4 = vand.u32 2147483648, %v6520_v31  ;;  %v1733_v46 = vand.u32 2147483647, %v6520_v31 }
 0x323   :  { %v6524_v37 = vpop.eup %3776  ;;  %v1554_v38 = vadd.f32 %v3769_v41, %v1553_v32  ;;  %vm1729_vm10 = vweird.f32 %v6520_v31  ;;  %vm1714_vm11 = vweird.f32 %v6518_v6  ;;  %vm1719_vm14 = vcmp.eq.f32.partialorder %v1718_v2, 8.507059e+37 }
 0x324   :  { %v3779_v39 = vpop.eup %3778  ;;  %v1581_v42 = vmul.f32 %v6524_v37, %v6514_v30  ;;  %v1569_v43 = vadd.f32 %v3771_v9, %v1568_v35  ;;  %vm1586_vm7 = vweird.f32 %v6524_v37  ;;  %v1736_v33 = vor.u32 1.1754944e-38, %v1735_v4  ;;  %v6654_v4 = vld [vmem:[#allocation2 + $0x150] sm:$0xff] }
 0x325   :  { %v3781_v47 = vpop.eup %3780  ;;  %v1558_v50 = vsel %vm1557_vm2, %v3769_v41, %v1554_v38  ;;  %v6528_v22 = vadd.f32 1.0, %v3779_v39  ;;  %vm6557_vm12 = vmor %vm1585_vm6, %vm1586_vm7  ;;  %v1721_v41 = vor.u32 1.1754944e-38, %v1720_v51  ;;  %vm1734_vm0 = vcmp.eq.f32.partialorder %v1733_v46, 8.507059e+37  ;;  %v6579_v39 = vld [vmem:[#allocation2 + $0x1f0] sm:$0xff]  ;;  %v6644_v51 = vld [vmem:[#allocation2 + $0x140] sm:$0xff] }
 0x326   :  { %v1582_v53 = vsub.f32 1.0, %v1581_v42  ;;  %v1563_v57 = vsel %vm1560_vm3, %v1562_v3, %v1558_v50  ;;  %v1573_v58 = vsel %vm1572_vm4, %v3771_v9, %v1569_v43  ;;  %vm1590_vm1 = vcmp.eq.f32.partialorder %v1589_v24, 8.507059e+37  ;;  %v6582_v42 = vld [vmem:[#allocation2 + $0x1f8] sm:$0xff]  ;;  %v6591_v43 = vld [vmem:[#allocation2 + $0x1c0] sm:$0xff]  ;;  %v6600_v50 = vld [vmem:[#allocation2 + $0x1d0] sm:$0xff] }
 0x327   :  { %v3783_v61 = vpop.eup %3782  ;;  %v1578_v63 = vsel %vm1575_vm5, %v1577_v55, %v1573_v58  ;;  %v1597_v28 = vmul.f32 %v3781_v47, %v1563_v57  ;;  %3786 = vrcp.f32 %v6528_v22  ;;  %v1750_v35 = vand.u32 2147483648, %v6528_v22  ;;  %v6594_v47 = vld [vmem:[#allocation2 + $0x1c8] sm:$0xff]  ;;  %v6612_v58 = vld [vmem:[#allocation2 + $0x1b0] sm:$0xff]  ;;  %v6669_v24 = vld [vmem:[#allocation2 + $0x138] sm:$0xff] }
 0x328   :  { %v3785_v11 = vpop.eup %3784  ;;  %v1596_v1 = vmul.f32 %v1578_v63, %v6276_v48  ;;  %v1710_v8 = vmul.f32 %v3783_v61, %v6518_v6  ;;  %3788 = vtanh.f32 %v1696_v52  ;;  %v1583_v25 = vmul.f32 %v6524_v37, %v1582_v53  ;;  %v6606_v53 = vld [vmem:[#allocation2 + $0x1a0] sm:$0xff]  ;;  %v6609_v57 = vld [vmem:[#allocation2 + $0x1a8] sm:$0xff]  ;;  %v6666_v46 = vld [vmem:[#allocation2 + $0x130] sm:$0xff] }
 0x329   :  { %v1725_v54 = vmul.f32 %v3785_v11, %v6520_v31  ;;  %vm1715_vm8 = vweird.f32 %v3783_v61  ;;  %vm1730_vm9 = vweird.f32 %v3785_v11  ;;  %vm1744_vm3 = vweird.f32 %v6528_v22  ;;  %v6741_v3 = vld [vmem:[#allocation2 + $0x78] sm:$0xff] }
 0x32a   :  { %v6538_v45 = vadd.f32 %v1597_v28, %v1596_v1  ;;  %v1711_v62 = vsub.f32 1.0, %v1710_v8  ;;  %v1584_v48 = vadd.f32 %v6524_v37, %v1583_v25  ;;  %vm1716_vm13 = vmor %vm1714_vm11, %vm1715_vm8  ;;  %v1748_v38 = vand.u32 2147483647, %v6528_v22  ;;  %v6624_v8 = vld [vmem:[#allocation2 + $0x190] sm:$0xff]  ;;  %v6630_v25 = vld [vmem:[#allocation2 + $0x160] sm:$0xff]  ;;  %9711 = vst [vmem:[#allocation35_spill] sm:$0xff] %v6741_v3 }
 0x32b   :  { %v1726_v7 = vsub.f32 1.0, %v1725_v54  ;;  %vm1731_vm15 = vmor %vm1729_vm10, %vm1730_vm9  ;;  %v1751_v52 = vor.u32 1.1754944e-38, %v1750_v35  ;;  %v6627_v54 = vld [vmem:[#allocation2 + $0x198] sm:$0xff]  ;;  %v6735_v35 = vld [vmem:[#allocation2 + $0x68] sm:$0xff] }
 0x32c   :  { %3790 = vtanh.f32 %v6538_v45  ;;  %v1712_v12 = vmul.f32 %v3783_v61, %v1711_v62  ;;  %v1588_v9 = vsel %vm6557_vm12, %v6524_v37, %v1584_v48  ;;  %v6574_v37 = vld [vmem:[#allocation2 + $0x1e8] sm:$0xff]  ;;  %vm1749_vm5 = vcmp.eq.f32.partialorder %v1748_v38, 8.507059e+37  ;;  %9709 = vst [vmem:[#allocation34_spill] sm:$0xff] %v6735_v35  ;;  %v6738_v38 = vld [vmem:[#allocation2 + $0x70] sm:$0xff] }
 0x32d   :  { %v6547_v44 = vpop.eup %3786  ;;  %v1727_v16 = vmul.f32 %v3785_v11, %v1726_v7  ;;  %v1593_v26 = vsel %vm1590_vm1, %v1592_v56, %v1588_v9  ;;  %v6633_v62 = vld [vmem:[#allocation2 + $0x168] sm:$0xff]  ;;  %v6641_v7 = vld [vmem:[#allocation2 + $0x178] sm:$0xff]  ;;  %v6690_v9 = vld [vmem:[#allocation2 + $0xf0] sm:$0xff]  ;;  %9710 = vst [vmem:[#allocation33_spill] sm:$0xff] %v6738_v38 }
 0x32e   :  { %v1740_v14 = vmul.f32 %v6547_v44, %v6528_v22  ;;  %v1713_v15 = vadd.f32 %v3783_v61, %v1712_v12  ;;  %v3789_v19 = vpop.eup %3788  ;;  %vm1745_vm2 = vweird.f32 %v6547_v44  ;;  %v6603_v22 = vld [vmem:[#allocation2 + $0x1d8] sm:$0xff]  ;;  %v6647_v48 = vld [vmem:[#allocation2 + $0x148] sm:$0xff]  ;;  %9694 = vst [vmem:[#allocation13_spill] sm:$0xff] %v6690_v9  ;;  %v6702_v56 = vld [vmem:[#allocation2 + $0xd0] sm:$0xff] }
 0x32f   :  { %v1728_v17 = vadd.f32 %v3785_v11, %v1727_v16  ;;  %vm6587_vm4 = vmor %vm1744_vm3, %vm1745_vm2  ;;  %v6657_v12 = vld [vmem:[#allocation2 + $0x158] sm:$0xff]  ;;  %v6663_v16 = vld [vmem:[#allocation2 + $0x128] sm:$0xff]  ;;  %9698 = vst [vmem:[#allocation14_spill] sm:$0xff] %v6702_v56 }
 0x330   :  { %v1741_v13 = vsub.f32 1.0, %v1740_v14  ;;  %v1717_v21 = vsel %vm1716_vm13, %v3783_v61, %v1713_v15  ;;  %v6615_v61 = vld [vmem:[#allocation2 + $0x1b8] sm:$0xff]  ;;  %v6672_v14 = vld [vmem:[#allocation2 + $0x100] sm:$0xff]  ;;  %v6675_v15 = vld [vmem:[#allocation2 + $0x108] sm:$0xff] }
 0x331   :  { %v1722_v40 = vsel %vm1719_vm14, %v1721_v41, %v1717_v21  ;;  %v1732_v30 = vsel %vm1731_vm15, %v3785_v11, %v1728_v17  ;;  %v6618_v11 = vld [vmem:[#allocation2 + $0x180] sm:$0xff]  ;;  %v6687_v17 = vld [vmem:[#allocation2 + $0xe8] sm:$0xff] }
 0x332   :  { %v3791_v18 = vpop.eup %3790  ;;  %v1742_v23 = vmul.f32 %v6547_v44, %v1741_v13  ;;  %v1737_v6 = vsel %vm1734_vm0, %v1736_v33, %v1732_v30  ;;  %v1759_v5 = vmul.f32 %v3789_v19, %v1722_v40  ;;  %v6681_v19 = vld [vmem:[#allocation2 + $0x118] sm:$0xff]  ;;  %v6684_v41 = vld [vmem:[#allocation2 + $0xe0] sm:$0xff]  ;;  %9693 = vst [vmem:[#allocation21_spill] sm:$0xff] %v6687_v17  ;;  %v6699_v21 = vld [vmem:[#allocation2 + $0xc8] sm:$0xff] }
 0x333   :  { %v1758_v27 = vmul.f32 %v1756_v49, %v1737_v6  ;;  %v1600_v31 = vmul.f32 %v3791_v18, %v1593_v26  ;;  %v6621_v49 = vld [vmem:[#allocation2 + $0x188] sm:$0xff]  ;;  %9692 = vst [vmem:[#allocation16_spill] sm:$0xff] %v6684_v41  ;;  %v6693_v33 = vld [vmem:[#allocation2 + $0xf8] sm:$0xff]  ;;  %v6696_v13 = vld [vmem:[#allocation2 + $0xc0] sm:$0xff] }
 0x334   :  { %v1743_v34 = vadd.f32 %v6547_v44, %v1742_v23  ;;  %9695 = vst [vmem:[#allocation22_spill] sm:$0xff] %v6693_v33  ;;  %v6705_v40 = vld [vmem:[#allocation2 + $0xd8] sm:$0xff]  ;;  %v6708_v30 = vld [vmem:[#allocation2 + $0xa0] sm:$0xff]  ;;  %v6711_v18 = vld [vmem:[#allocation2 + $0xa8] sm:$0xff] }
 0x335   :  { %v6565_v32 = vadd.f32 %v1759_v5, %v1758_v27  ;;  %1779 = vmatmul.f32.vlgmr.msra.gmra.mxu0 %v1600_v31  ;;  %1799 = vmatmul.f32.vlgmr.msra.gmra.mxu1 %v1600_v31  ;;  %9696 = vst [vmem:[#allocation19_spill] sm:$0xff] %v6696_v13  ;;  %v6714_v23 = vld [vmem:[#allocation2 + $0xb0] sm:$0xff]  ;;  %v6717_v6 = vld [vmem:[#allocation2 + $0xb8] sm:$0xff]  ;;  %v6720_v5 = vld [vmem:[#allocation2 + $0x80] sm:$0xff] }
 0x336   :  { %1819 = vmatmul.f32.vlgmr.msrb.gmra.mxu2 %v1600_v31  ;;  %1839 = vmatmul.f32.vlgmr.msrb.gmra.mxu3 %v1600_v31  ;;  %v1747_v55 = vsel %vm6587_vm4, %v6547_v44, %v1743_v34  ;;  %v6660_v44 = vld [vmem:[#allocation2 + $0x120] sm:$0xff]  ;;  %9697 = vst [vmem:[#allocation25_spill] sm:$0xff] %v6699_v21  ;;  %v6723_v26 = vld [vmem:[#allocation2 + $0x88] sm:$0xff]  ;;  %v6726_v27 = vld [vmem:[#allocation2 + $0x90] sm:$0xff] }
 0x337   :  { %3792 = vtanh.f32 %v6565_v32  ;;  %1993 = vmatpush.msra.mxu0 %v6571_v36  ;;  %2013 = vmatpush.msra.mxu1 %v6574_v37  ;;  %v1752_v28 = vsel %vm1749_vm5, %v1751_v52, %v1747_v55  ;;  %9699 = vst [vmem:[#allocation26_spill] sm:$0xff] %v6705_v40  ;;  %v6729_v31 = vld [vmem:[#allocation2 + $0x98] sm:$0xff]  ;;  %v6732_v34 = vld [vmem:[#allocation2 + $0x60] sm:$0xff]  ;;  %v6747_v52 = vld [vmem:[#allocation2 + $0x48] sm:$0xff] }
 0x338   :  { %2033 = vmatpush.msrb.mxu2 %v6579_v39  ;;  %2053 = vmatpush.msrb.mxu3 %v6582_v42  ;;  %9700 = vst [vmem:[#allocation23_spill] sm:$0xff] %v6708_v30  ;;  %v6744_v55 = vld [vmem:[#allocation2 + $0x40] sm:$0xff] }
 0x339   :  { %1994 = vmatpush.msra.mxu0 %v6591_v43  ;;  %2014 = vmatpush.msra.mxu1 %v6594_v47  ;;  %9701 = vst [vmem:[#allocation27_spill] sm:$0xff] %v6711_v18 }
 0x33a   :  { %2034 = vmatpush.msrb.mxu2 %v6600_v50  ;;  %2054 = vmatpush.msrb.mxu3 %v6603_v22  ;;  %9702 = vst [vmem:[#allocation20_spill] sm:$0xff] %v6714_v23 }
 0x33b   :  { %1995 = vmatpush.msra.mxu0 %v6606_v53  ;;  %2015 = vmatpush.msra.mxu1 %v6609_v57  ;;  %9703 = vst [vmem:[#allocation28_spill] sm:$0xff] %v6717_v6 }
 0x33c   :  { %2035 = vmatpush.msrb.mxu2 %v6612_v58  ;;  %2055 = vmatpush.msrb.mxu3 %v6615_v61  ;;  %9704 = vst [vmem:[#allocation29_spill] sm:$0xff] %v6720_v5 }
 0x33d   :  { %v3793_v63 = vpop.eup %3792  ;;  %1996 = vmatpush.msra.mxu0 %v6618_v11  ;;  %2016 = vmatpush.msra.mxu1 %v6621_v49  ;;  %9705 = vst [vmem:[#allocation30_spill] sm:$0xff] %v6723_v26 }
 0x33e   :  { %v1762_v1 = vmul.f32 %v3793_v63, %v1752_v28  ;;  %2036 = vmatpush.msrb.mxu2 %v6624_v8  ;;  %2056 = vmatpush.msrb.mxu3 %v6627_v54  ;;  %9706 = vst [vmem:[#allocation24_spill] sm:$0xff] %v6726_v27  ;;  %v6750_v63 = vld [vmem:[#allocation2 + $0x50] sm:$0xff]  ;;  %v6753_v28 = vld [vmem:[#allocation2 + $0x58] sm:$0xff] }
 0x33f   :  { %1997 = vmatpush.msra.mxu0 %v6630_v25  ;;  %2017 = vmatpush.msra.mxu1 %v6633_v62  ;;  %9707 = vst [vmem:[#allocation31_spill] sm:$0xff] %v6729_v31 }
 0x340   :  { %v6636_v2 = vrot.slane %v1762_v1, 6  ;;  %2037 = vmatpush.msrb.mxu2 %v6638_v60  ;;  %2057 = vmatpush.msrb.mxu3 %v6641_v7  ;;  %9708 = vst [vmem:[#allocation32_spill] sm:$0xff] %v6732_v34  ;;  %v6756_v1 = vld [vmem:[#allocation2 + $0x20] sm:$0xff] }
 0x341   :  { %1998 = vmatpush.msra.mxu0 %v6644_v51  ;;  %2018 = vmatpush.msra.mxu1 %v6647_v48  ;;  %9712 = vst [vmem:[#allocation36_spill] sm:$0xff] %v6744_v55 }
 0x342   :  { %1862 = vmatmul.f32.vlgmr.msrb.gmra.mxu0 %v6636_v2  ;;  %1882 = vmatmul.f32.vlgmr.msrb.gmra.mxu1 %v6636_v2  ;;  %9713 = vst [vmem:[#allocation38_spill] sm:$0xff] %v6747_v52 }
 0x343   :  { %1902 = vmatmul.f32.vlgmr.msra.gmra.mxu2 %v6636_v2  ;;  %1922 = vmatmul.f32.vlgmr.msra.gmra.mxu3 %v6636_v2  ;;  %9714 = vst [vmem:[#allocation37_spill] sm:$0xff] %v6750_v63 }
 0x344   :  { %2038 = vmatpush.msrb.mxu2 %v6654_v4  ;;  %2058 = vmatpush.msrb.mxu3 %v6657_v12  ;;  %9715 = vst [vmem:[#allocation39_spill] sm:$0xff] %v6753_v28 }
 0x345   :  { %1999 = vmatpush.msra.mxu0 %v6660_v44  ;;  %2019 = vmatpush.msra.mxu1 %v6663_v16  ;;  %9716 = vst [vmem:[#allocation40_spill] sm:$0xff] %v6756_v1 }
 0x346   :  { %2039 = vmatpush.msrb.mxu2 %v6666_v46  ;;  %2059 = vmatpush.msrb.mxu3 %v6669_v24 }
 0x347   :  { %2000 = vmatpush.msra.mxu0 %v6672_v14  ;;  %2020 = vmatpush.msra.mxu1 %v6675_v15 }
 0x348   :  { %2040 = vmatpush.msrb.mxu2 %v6678_v10  ;;  %2060 = vmatpush.msrb.mxu3 %v6681_v19 }
 0x349   :  { %2001 = vmatpush.msra.mxu0 %v6684_v41  ;;  %2021 = vmatpush.msra.mxu1 %v6687_v17 }
 0x34a   :  { %2041 = vmatpush.msrb.mxu2 %v6690_v9  ;;  %2061 = vmatpush.msrb.mxu3 %v6693_v33 }
 0x34b   :  { %2002 = vmatpush.msra.mxu0 %v6696_v13  ;;  %2022 = vmatpush.msra.mxu1 %v6699_v21 }
 0x34c   :  { %2042 = vmatpush.msrb.mxu2 %v6702_v56  ;;  %2062 = vmatpush.msrb.mxu3 %v6705_v40 }
 0x34d   :  { %2003 = vmatpush.msra.mxu0 %v6708_v30  ;;  %2023 = vmatpush.msra.mxu1 %v6711_v18 }
 0x34e   :  { %2043 = vmatpush.msrb.mxu2 %v6714_v23  ;;  %2063 = vmatpush.msrb.mxu3 %v6717_v6 }
 0x34f   :  { %2004 = vmatpush.msra.mxu0 %v6720_v5  ;;  %2024 = vmatpush.msra.mxu1 %v6723_v26 }
 0x350   :  { %2044 = vmatpush.msrb.mxu2 %v6726_v27  ;;  %2064 = vmatpush.msrb.mxu3 %v6729_v31 }
 0x351   :  { %2005 = vmatpush.msra.mxu0 %v6732_v34  ;;  %2025 = vmatpush.msra.mxu1 %v6735_v35 }
 0x352   :  { %2045 = vmatpush.msrb.mxu2 %v6738_v38  ;;  %2065 = vmatpush.msrb.mxu3 %v6741_v3  ;;  %v6759_v3 = vld [vmem:[#allocation2 + $0x28] sm:$0xff] }
 0x353   :  { %2006 = vmatpush.msra.mxu0 %v6744_v55  ;;  %2026 = vmatpush.msra.mxu1 %v6747_v52  ;;  %9717 = vst [vmem:[#allocation42_spill] sm:$0xff] %v6759_v3  ;;  %v6762_v55 = vld [vmem:[#allocation2 + $0x30] sm:$0xff]  ;;  %v6765_v52 = vld [vmem:[#allocation2 + $0x38] sm:$0xff] }
 0x354   :  { %2046 = vmatpush.msrb.mxu2 %v6750_v63  ;;  %2066 = vmatpush.msrb.mxu3 %v6753_v28  ;;  %9718 = vst [vmem:[#allocation41_spill] sm:$0xff] %v6762_v55  ;;  %v6768_v63 = vld [vmem:[#allocation2] sm:$0xff]  ;;  %v6771_v28 = vld [vmem:[#allocation2 + $0x8] sm:$0xff] }
 0x355   :  { %2007 = vmatpush.msra.mxu0 %v6756_v1  ;;  %2027 = vmatpush.msra.mxu1 %v6759_v3  ;;  %9719 = vst [vmem:[#allocation43_spill] sm:$0xff] %v6765_v52  ;;  %v6774_v1 = vld [vmem:[#allocation2 + $0x10] sm:$0xff]  ;;  %v6777_v3 = vld [vmem:[#allocation2 + $0x18] sm:$0xff] }
 0x356   :  { %2047 = vmatpush.msrb.mxu2 %v6762_v55  ;;  %2067 = vmatpush.msrb.mxu3 %v6765_v52  ;;  %9720 = vst [vmem:[#allocation44_spill] sm:$0xff] %v6768_v63  ;;  %v6796_v52 = vld [vmem:[#allocation6 + $0x1c0] sm:$0xff] }
 0x357   :  { %2008 = vmatpush.msra.mxu0 %v6768_v63  ;;  %9721 = vst [vmem:[#allocation45_spill] sm:$0xff] %v6771_v28  ;;  %2028 = vmatpush.msra.mxu1 %v6771_v28  ;;  %v6784_v63 = vld [vmem:[#allocation6 + $0x1e0] sm:$0xff]  ;;  %v6787_v28 = vld [vmem:[#allocation6 + $0x1e8] sm:$0xff] }
 0x358   :  { %9722 = vst [vmem:[#allocation46_spill] sm:$0xff] %v6774_v1  ;;  %2048 = vmatpush.msrb.mxu2 %v6774_v1  ;;  %2068 = vmatpush.msrb.mxu3 %v6777_v3  ;;  %v6790_v1 = vld [vmem:[#allocation6 + $0x1f0] sm:$0xff] }
 0x359   :  { %9723 = vst [vmem:[#allocation47_spill] sm:$0xff] %v6777_v3  ;;  %2009 = vmatmul.f32.vlgmr.msra.gmra.mxu0 %v6636_v2  ;;  %2029 = vmatmul.f32.vlgmr.msra.gmra.mxu1 %v6636_v2  ;;  %v6793_v3 = vld [vmem:[#allocation6 + $0x1f8] sm:$0xff] }
 0x35a   :  { %2049 = vmatmul.f32.vlgmr.msrb.gmra.mxu2 %v6636_v2  ;;  %2069 = vmatmul.f32.vlgmr.msrb.gmra.mxu3 %v6636_v2  ;;  %9724 = vst [vmem:[#allocation48_spill] sm:$0xff] %v6784_v63  ;;  %v6799_v2 = vld [vmem:[#allocation6 + $0x1c8] sm:$0xff] }
 0x35b   :  { %2143 = vmatpush.msrb.mxu0 %v6784_v63  ;;  %9725 = vst [vmem:[#allocation49_spill] sm:$0xff] %v6787_v28  ;;  %2163 = vmatpush.msrb.mxu1 %v6787_v28  ;;  %v6802_v63 = vld [vmem:[#allocation6 + $0x1d0] sm:$0xff]  ;;  %v6805_v28 = vld [vmem:[#allocation6 + $0x1d8] sm:$0xff] }
 0x35c   :  { %9726 = vst [vmem:[#allocation50_spill] sm:$0xff] %v6790_v1  ;;  %2183 = vmatpush.msra.mxu2 %v6790_v1  ;;  %2203 = vmatpush.msra.mxu3 %v6793_v3  ;;  %v6808_v1 = vld [vmem:[#allocation6 + $0x1a0] sm:$0xff] }
 0x35d   :  { %9727 = vst [vmem:[#allocation51_spill] sm:$0xff] %v6793_v3  ;;  %2144 = vmatpush.msrb.mxu0 %v6796_v52  ;;  %2164 = vmatpush.msrb.mxu1 %v6799_v2  ;;  %v6811_v3 = vld [vmem:[#allocation6 + $0x1a8] sm:$0xff] }
 0x35e   :  { %9728 = vst [vmem:[#allocation52_spill] sm:$0xff] %v6796_v52  ;;  %2184 = vmatpush.msra.mxu2 %v6802_v63  ;;  %2204 = vmatpush.msra.mxu3 %v6805_v28  ;;  %v6814_v52 = vld [vmem:[#allocation6 + $0x1b0] sm:$0xff] }
 0x35f   :  { %9729 = vst [vmem:[#allocation53_spill] sm:$0xff] %v6799_v2  ;;  %2145 = vmatpush.msrb.mxu0 %v6808_v1  ;;  %2165 = vmatpush.msrb.mxu1 %v6811_v3  ;;  %v6817_v2 = vld [vmem:[#allocation6 + $0x1b8] sm:$0xff] }
 0x360   :  { %9730 = vst [vmem:[#allocation54_spill] sm:$0xff] %v6802_v63  ;;  %2185 = vmatpush.msra.mxu2 %v6814_v52  ;;  %2205 = vmatpush.msra.mxu3 %v6817_v2  ;;  %v6820_v63 = vld [vmem:[#allocation6 + $0x180] sm:$0xff] }
 0x361   :  { %9731 = vst [vmem:[#allocation55_spill] sm:$0xff] %v6805_v28  ;;  %2146 = vmatpush.msrb.mxu0 %v6820_v63  ;;  %v6823_v28 = vld [vmem:[#allocation6 + $0x188] sm:$0xff] }
 0x362   :  { %9732 = vst [vmem:[#allocation56_spill] sm:$0xff] %v6808_v1  ;;  %2166 = vmatpush.msrb.mxu1 %v6823_v28  ;;  %v6826_v1 = vld [vmem:[#allocation6 + $0x190] sm:$0xff] }
 0x363   :  { %9733 = vst [vmem:[#allocation57_spill] sm:$0xff] %v6811_v3  ;;  %2186 = vmatpush.msra.mxu2 %v6826_v1  ;;  %v6829_v3 = vld [vmem:[#allocation6 + $0x198] sm:$0xff] }
 0x364   :  { %9734 = vst [vmem:[#allocation58_spill] sm:$0xff] %v6814_v52  ;;  %2206 = vmatpush.msra.mxu3 %v6829_v3  ;;  %v6832_v52 = vld [vmem:[#allocation6 + $0x160] sm:$0xff] }
 0x365   :  { %9735 = vst [vmem:[#allocation59_spill] sm:$0xff] %v6817_v2  ;;  %2147 = vmatpush.msrb.mxu0 %v6832_v52  ;;  %v6835_v2 = vld [vmem:[#allocation6 + $0x168] sm:$0xff] }
 0x366   :  { %9736 = vst [vmem:[#allocation60_spill] sm:$0xff] %v6820_v63  ;;  %2167 = vmatpush.msrb.mxu1 %v6835_v2  ;;  %v6838_v63 = vld [vmem:[#allocation6 + $0x170] sm:$0xff] }
 0x367   :  { %9737 = vst [vmem:[#allocation61_spill] sm:$0xff] %v6823_v28  ;;  %2187 = vmatpush.msra.mxu2 %v6838_v63  ;;  %v6841_v28 = vld [vmem:[#allocation6 + $0x178] sm:$0xff] }
 0x368   :  { %9738 = vst [vmem:[#allocation62_spill] sm:$0xff] %v6826_v1  ;;  %2207 = vmatpush.msra.mxu3 %v6841_v28  ;;  %v6844_v1 = vld [vmem:[#allocation6 + $0x140] sm:$0xff] }
 0x369   :  { %9739 = vst [vmem:[#allocation63_spill] sm:$0xff] %v6829_v3  ;;  %2148 = vmatpush.msrb.mxu0 %v6844_v1  ;;  %v6847_v3 = vld [vmem:[#allocation6 + $0x148] sm:$0xff] }
 0x36a   :  { %9740 = vst [vmem:[#allocation64_spill] sm:$0xff] %v6832_v52  ;;  %2168 = vmatpush.msrb.mxu1 %v6847_v3  ;;  %v6850_v52 = vld [vmem:[#allocation6 + $0x150] sm:$0xff] }
 0x36b   :  { %9741 = vst [vmem:[#allocation65_spill] sm:$0xff] %v6835_v2  ;;  %2188 = vmatpush.msra.mxu2 %v6850_v52  ;;  %v6853_v2 = vld [vmem:[#allocation6 + $0x158] sm:$0xff] }
 0x36c   :  { %9742 = vst [vmem:[#allocation66_spill] sm:$0xff] %v6838_v63  ;;  %2208 = vmatpush.msra.mxu3 %v6853_v2  ;;  %v6856_v63 = vld [vmem:[#allocation6 + $0x120] sm:$0xff] }
 0x36d   :  { %9743 = vst [vmem:[#allocation67_spill] sm:$0xff] %v6841_v28  ;;  %2149 = vmatpush.msrb.mxu0 %v6856_v63  ;;  %v6859_v28 = vld [vmem:[#allocation6 + $0x128] sm:$0xff] }
 0x36e   :  { %9744 = vst [vmem:[#allocation68_spill] sm:$0xff] %v6844_v1  ;;  %2169 = vmatpush.msrb.mxu1 %v6859_v28  ;;  %v6862_v1 = vld [vmem:[#allocation6 + $0x130] sm:$0xff] }
 0x36f   :  { %9745 = vst [vmem:[#allocation69_spill] sm:$0xff] %v6847_v3  ;;  %2189 = vmatpush.msra.mxu2 %v6862_v1  ;;  %v6865_v3 = vld [vmem:[#allocation6 + $0x138] sm:$0xff] }
 0x370   :  { %9746 = vst [vmem:[#allocation70_spill] sm:$0xff] %v6850_v52  ;;  %2209 = vmatpush.msra.mxu3 %v6865_v3  ;;  %v6868_v52 = vld [vmem:[#allocation6 + $0x100] sm:$0xff] }
 0x371   :  { %9747 = vst [vmem:[#allocation71_spill] sm:$0xff] %v6853_v2  ;;  %2150 = vmatpush.msrb.mxu0 %v6868_v52  ;;  %v6871_v2 = vld [vmem:[#allocation6 + $0x108] sm:$0xff] }
 0x372   :  { %9748 = vst [vmem:[#allocation72_spill] sm:$0xff] %v6856_v63  ;;  %2170 = vmatpush.msrb.mxu1 %v6871_v2  ;;  %v6874_v63 = vld [vmem:[#allocation6 + $0x110] sm:$0xff] }
 0x373   :  { %9749 = vst [vmem:[#allocation73_spill] sm:$0xff] %v6859_v28  ;;  %2190 = vmatpush.msra.mxu2 %v6874_v63  ;;  %v6877_v28 = vld [vmem:[#allocation6 + $0x118] sm:$0xff] }
 0x374   :  { %9750 = vst [vmem:[#allocation74_spill] sm:$0xff] %v6862_v1  ;;  %2210 = vmatpush.msra.mxu3 %v6877_v28  ;;  %v6880_v1 = vld [vmem:[#allocation6 + $0xe0] sm:$0xff] }
 0x375   :  { %9751 = vst [vmem:[#allocation75_spill] sm:$0xff] %v6865_v3  ;;  %2151 = vmatpush.msrb.mxu0 %v6880_v1  ;;  %v6883_v3 = vld [vmem:[#allocation6 + $0xe8] sm:$0xff] }
 0x376   :  { %9752 = vst [vmem:[#allocation76_spill] sm:$0xff] %v6868_v52  ;;  %2171 = vmatpush.msrb.mxu1 %v6883_v3  ;;  %v6886_v52 = vld [vmem:[#allocation6 + $0xf0] sm:$0xff] }
 0x377   :  { %9753 = vst [vmem:[#allocation77_spill] sm:$0xff] %v6871_v2  ;;  %2191 = vmatpush.msra.mxu2 %v6886_v52  ;;  %v6889_v2 = vld [vmem:[#allocation6 + $0xf8] sm:$0xff] }
 0x378   :  { %9754 = vst [vmem:[#allocation78_spill] sm:$0xff] %v6874_v63  ;;  %2211 = vmatpush.msra.mxu3 %v6889_v2  ;;  %v6892_v63 = vld [vmem:[#allocation6 + $0xc0] sm:$0xff] }
 0x379   :  { %9755 = vst [vmem:[#allocation79_spill] sm:$0xff] %v6877_v28  ;;  %2152 = vmatpush.msrb.mxu0 %v6892_v63  ;;  %v6895_v28 = vld [vmem:[#allocation6 + $0xc8] sm:$0xff] }
 0x37a   :  { %9756 = vst [vmem:[#allocation80_spill] sm:$0xff] %v6880_v1  ;;  %2172 = vmatpush.msrb.mxu1 %v6895_v28  ;;  %v6898_v1 = vld [vmem:[#allocation6 + $0xd0] sm:$0xff] }
 0x37b   :  { %9757 = vst [vmem:[#allocation81_spill] sm:$0xff] %v6883_v3  ;;  %2192 = vmatpush.msra.mxu2 %v6898_v1  ;;  %v6901_v3 = vld [vmem:[#allocation6 + $0xd8] sm:$0xff] }
 0x37c   :  { %9758 = vst [vmem:[#allocation82_spill] sm:$0xff] %v6886_v52  ;;  %2212 = vmatpush.msra.mxu3 %v6901_v3  ;;  %v6904_v52 = vld [vmem:[#allocation6 + $0xa0] sm:$0xff] }
 0x37d   :  { %9759 = vst [vmem:[#allocation83_spill] sm:$0xff] %v6889_v2  ;;  %2153 = vmatpush.msrb.mxu0 %v6904_v52  ;;  %v6907_v2 = vld [vmem:[#allocation6 + $0xa8] sm:$0xff] }
 0x37e   :  { %9760 = vst [vmem:[#allocation84_spill] sm:$0xff] %v6892_v63  ;;  %2173 = vmatpush.msrb.mxu1 %v6907_v2  ;;  %v6910_v63 = vld [vmem:[#allocation6 + $0xb0] sm:$0xff] }
 0x37f   :  { %9761 = vst [vmem:[#allocation85_spill] sm:$0xff] %v6895_v28  ;;  %2193 = vmatpush.msra.mxu2 %v6910_v63  ;;  %v6913_v28 = vld [vmem:[#allocation6 + $0xb8] sm:$0xff] }
 0x380   :  { %9762 = vst [vmem:[#allocation86_spill] sm:$0xff] %v6898_v1  ;;  %2213 = vmatpush.msra.mxu3 %v6913_v28  ;;  %v6916_v1 = vld [vmem:[#allocation6 + $0x80] sm:$0xff] }
 0x381   :  { %9763 = vst [vmem:[#allocation87_spill] sm:$0xff] %v6901_v3  ;;  %2154 = vmatpush.msrb.mxu0 %v6916_v1  ;;  %v6919_v3 = vld [vmem:[#allocation6 + $0x88] sm:$0xff] }
 0x382   :  { %9764 = vst [vmem:[#allocation88_spill] sm:$0xff] %v6904_v52  ;;  %2174 = vmatpush.msrb.mxu1 %v6919_v3  ;;  %v6922_v52 = vld [vmem:[#allocation6 + $0x90] sm:$0xff] }
 0x383   :  { %9765 = vst [vmem:[#allocation89_spill] sm:$0xff] %v6907_v2  ;;  %2194 = vmatpush.msra.mxu2 %v6922_v52  ;;  %v6925_v2 = vld [vmem:[#allocation6 + $0x98] sm:$0xff] }
 0x384   :  { %9766 = vst [vmem:[#allocation90_spill] sm:$0xff] %v6910_v63  ;;  %2214 = vmatpush.msra.mxu3 %v6925_v2  ;;  %v6928_v63 = vld [vmem:[#allocation6 + $0x60] sm:$0xff] }
 0x385   :  { %9767 = vst [vmem:[#allocation91_spill] sm:$0xff] %v6913_v28  ;;  %2155 = vmatpush.msrb.mxu0 %v6928_v63  ;;  %v6931_v28 = vld [vmem:[#allocation6 + $0x68] sm:$0xff] }
 0x386   :  { %9768 = vst [vmem:[#allocation92_spill] sm:$0xff] %v6916_v1  ;;  %2175 = vmatpush.msrb.mxu1 %v6931_v28  ;;  %v6934_v1 = vld [vmem:[#allocation6 + $0x70] sm:$0xff] }
 0x387   :  { %9769 = vst [vmem:[#allocation93_spill] sm:$0xff] %v6919_v3  ;;  %2195 = vmatpush.msra.mxu2 %v6934_v1  ;;  %v6937_v3 = vld [vmem:[#allocation6 + $0x78] sm:$0xff] }
 0x388   :  { %9770 = vst [vmem:[#allocation94_spill] sm:$0xff] %v6922_v52  ;;  %2215 = vmatpush.msra.mxu3 %v6937_v3  ;;  %v6940_v52 = vld [vmem:[#allocation6 + $0x40] sm:$0xff] }
 0x389   :  { %9771 = vst [vmem:[#allocation95_spill] sm:$0xff] %v6925_v2  ;;  %2156 = vmatpush.msrb.mxu0 %v6940_v52  ;;  %v6943_v2 = vld [vmem:[#allocation6 + $0x48] sm:$0xff] }
 0x38a   :  { %9772 = vst [vmem:[#allocation96_spill] sm:$0xff] %v6928_v63  ;;  %2176 = vmatpush.msrb.mxu1 %v6943_v2  ;;  %v6946_v63 = vld [vmem:[#allocation6 + $0x50] sm:$0xff] }
 0x38b   :  { %9773 = vst [vmem:[#allocation97_spill] sm:$0xff] %v6931_v28  ;;  %2196 = vmatpush.msra.mxu2 %v6946_v63  ;;  %v6949_v28 = vld [vmem:[#allocation6 + $0x58] sm:$0xff] }
 0x38c   :  { %9774 = vst [vmem:[#allocation98_spill] sm:$0xff] %v6934_v1  ;;  %2216 = vmatpush.msra.mxu3 %v6949_v28  ;;  %v6952_v1 = vld [vmem:[#allocation6 + $0x20] sm:$0xff] }
 0x38d   :  { %9775 = vst [vmem:[#allocation99_spill] sm:$0xff] %v6937_v3  ;;  %2157 = vmatpush.msrb.mxu0 %v6952_v1  ;;  %v6955_v3 = vld [vmem:[#allocation6 + $0x28] sm:$0xff] }
 0x38e   :  { %9776 = vst [vmem:[#allocation100_spill] sm:$0xff] %v6940_v52  ;;  %2177 = vmatpush.msrb.mxu1 %v6955_v3  ;;  %v6958_v52 = vld [vmem:[#allocation6 + $0x30] sm:$0xff] }
 0x38f   :  { %9777 = vst [vmem:[#allocation101_spill] sm:$0xff] %v6943_v2  ;;  %2197 = vmatpush.msra.mxu2 %v6958_v52  ;;  %v6961_v2 = vld [vmem:[#allocation6 + $0x38] sm:$0xff] }
 0x390   :  { %9778 = vst [vmem:[#allocation102_spill] sm:$0xff] %v6946_v63  ;;  %2217 = vmatpush.msra.mxu3 %v6961_v2  ;;  %v6964_v63 = vld [vmem:[#allocation6] sm:$0xff] }
 0x391   :  { %9779 = vst [vmem:[#allocation103_spill] sm:$0xff] %v6949_v28  ;;  %2158 = vmatpush.msrb.mxu0 %v6964_v63  ;;  %v6967_v28 = vld [vmem:[#allocation6 + $0x8] sm:$0xff] }
 0x392   :  { %9780 = vst [vmem:[#allocation104_spill] sm:$0xff] %v6952_v1  ;;  %2178 = vmatpush.msrb.mxu1 %v6967_v28  ;;  %v6970_v1 = vld [vmem:[#allocation6 + $0x10] sm:$0xff] }
 0x393   :  { %9781 = vst [vmem:[#allocation105_spill] sm:$0xff] %v6955_v3  ;;  %2198 = vmatpush.msra.mxu2 %v6970_v1  ;;  %v6973_v3 = vld [vmem:[#allocation6 + $0x18] sm:$0xff] }
 0x394   :  { %9782 = vst [vmem:[#allocation106_spill] sm:$0xff] %v6958_v52  ;;  %2218 = vmatpush.msra.mxu3 %v6973_v3  ;;  %v6976_v52 = vld [vmem:[#allocation4 + $0x1e0] sm:$0xff] }
 0x395   :  { %9783 = vst [vmem:[#allocation107_spill] sm:$0xff] %v6961_v2  ;;  %2223 = vmatpush.msra.mxu0 %v6976_v52  ;;  %v6979_v2 = vld [vmem:[#allocation4 + $0x1e8] sm:$0xff] }
 0x396   :  { %9784 = vst [vmem:[#allocation108_spill] sm:$0xff] %v6964_v63  ;;  %2243 = vmatpush.msra.mxu1 %v6979_v2  ;;  %v6982_v63 = vld [vmem:[#allocation4 + $0x1f0] sm:$0xff] }
 0x397   :  { %9785 = vst [vmem:[#allocation109_spill] sm:$0xff] %v6967_v28  ;;  %2263 = vmatpush.msrb.mxu2 %v6982_v63  ;;  %v6985_v28 = vld [vmem:[#allocation4 + $0x1f8] sm:$0xff] }
 0x398   :  { %9786 = vst [vmem:[#allocation110_spill] sm:$0xff] %v6970_v1  ;;  %2283 = vmatpush.msrb.mxu3 %v6985_v28  ;;  %v6988_v1 = vld [vmem:[#allocation4 + $0x1c0] sm:$0xff] }
 0x399   :  { %9787 = vst [vmem:[#allocation111_spill] sm:$0xff] %v6973_v3  ;;  %2224 = vmatpush.msra.mxu0 %v6988_v1  ;;  %v6991_v3 = vld [vmem:[#allocation4 + $0x1c8] sm:$0xff] }
 0x39a   :  { %9788 = vst [vmem:[#allocation112_spill] sm:$0xff] %v6976_v52  ;;  %2244 = vmatpush.msra.mxu1 %v6991_v3  ;;  %v6994_v52 = vld [vmem:[#allocation4 + $0x1d0] sm:$0xff] }
 0x39b   :  { %9789 = vst [vmem:[#allocation113_spill] sm:$0xff] %v6979_v2  ;;  %2264 = vmatpush.msrb.mxu2 %v6994_v52  ;;  %v6997_v2 = vld [vmem:[#allocation4 + $0x1d8] sm:$0xff] }
 0x39c   :  { %9790 = vst [vmem:[#allocation114_spill] sm:$0xff] %v6982_v63  ;;  %2284 = vmatpush.msrb.mxu3 %v6997_v2  ;;  %v7000_v63 = vld [vmem:[#allocation4 + $0x1a0] sm:$0xff] }
 0x39d   :  { %9791 = vst [vmem:[#allocation115_spill] sm:$0xff] %v6985_v28  ;;  %2225 = vmatpush.msra.mxu0 %v7000_v63  ;;  %v7003_v28 = vld [vmem:[#allocation4 + $0x1a8] sm:$0xff] }
 0x39e   :  { %9792 = vst [vmem:[#allocation116_spill] sm:$0xff] %v6988_v1  ;;  %2245 = vmatpush.msra.mxu1 %v7003_v28  ;;  %v7006_v1 = vld [vmem:[#allocation4 + $0x1b0] sm:$0xff] }
 0x39f   :  { %9793 = vst [vmem:[#allocation117_spill] sm:$0xff] %v6991_v3  ;;  %2265 = vmatpush.msrb.mxu2 %v7006_v1  ;;  %v7009_v3 = vld [vmem:[#allocation4 + $0x1b8] sm:$0xff] }
 0x3a0   :  { %9794 = vst [vmem:[#allocation118_spill] sm:$0xff] %v6994_v52  ;;  %2285 = vmatpush.msrb.mxu3 %v7009_v3  ;;  %v7012_v52 = vld [vmem:[#allocation4 + $0x180] sm:$0xff] }
 0x3a1   :  { %9795 = vst [vmem:[#allocation119_spill] sm:$0xff] %v6997_v2  ;;  %2226 = vmatpush.msra.mxu0 %v7012_v52  ;;  %v7015_v2 = vld [vmem:[#allocation4 + $0x188] sm:$0xff] }
 0x3a2   :  { %9796 = vst [vmem:[#allocation120_spill] sm:$0xff] %v7000_v63  ;;  %2246 = vmatpush.msra.mxu1 %v7015_v2  ;;  %v7018_v63 = vld [vmem:[#allocation4 + $0x190] sm:$0xff] }
 0x3a3   :  { %9797 = vst [vmem:[#allocation121_spill] sm:$0xff] %v7003_v28  ;;  %2266 = vmatpush.msrb.mxu2 %v7018_v63  ;;  %v7021_v28 = vld [vmem:[#allocation4 + $0x198] sm:$0xff] }
 0x3a4   :  { %9798 = vst [vmem:[#allocation123_spill] sm:$0xff] %v7006_v1  ;;  %2286 = vmatpush.msrb.mxu3 %v7021_v28  ;;  %v7024_v1 = vld [vmem:[#allocation4 + $0x160] sm:$0xff] }
 0x3a5   :  { %9799 = vst [vmem:[#allocation124_spill] sm:$0xff] %v7009_v3  ;;  %2227 = vmatpush.msra.mxu0 %v7024_v1  ;;  %v7027_v3 = vld [vmem:[#allocation4 + $0x168] sm:$0xff] }
 0x3a6   :  { %9800 = vst [vmem:[#allocation125_spill] sm:$0xff] %v7012_v52  ;;  %2247 = vmatpush.msra.mxu1 %v7027_v3  ;;  %v7030_v52 = vld [vmem:[#allocation4 + $0x170] sm:$0xff] }
 0x3a7   :  { %9801 = vst [vmem:[#allocation126_spill] sm:$0xff] %v7015_v2  ;;  %2267 = vmatpush.msrb.mxu2 %v7030_v52  ;;  %v7033_v2 = vld [vmem:[#allocation4 + $0x178] sm:$0xff] }
 0x3a8   :  { %9802 = vst [vmem:[#allocation127_spill] sm:$0xff] %v7018_v63  ;;  %2287 = vmatpush.msrb.mxu3 %v7033_v2  ;;  %v7036_v63 = vld [vmem:[#allocation4 + $0x140] sm:$0xff] }
 0x3a9   :  { %9803 = vst [vmem:[#allocation128_spill] sm:$0xff] %v7021_v28  ;;  %2228 = vmatpush.msra.mxu0 %v7036_v63  ;;  %v7039_v28 = vld [vmem:[#allocation4 + $0x148] sm:$0xff] }
 0x3aa   :  { %9804 = vst [vmem:[#allocation129_spill] sm:$0xff] %v7024_v1  ;;  %2248 = vmatpush.msra.mxu1 %v7039_v28  ;;  %v7042_v1 = vld [vmem:[#allocation4 + $0x150] sm:$0xff] }
 0x3ab   :  { %9805 = vst [vmem:[#allocation130_spill] sm:$0xff] %v7027_v3  ;;  %2268 = vmatpush.msrb.mxu2 %v7042_v1  ;;  %v7045_v3 = vld [vmem:[#allocation4 + $0x158] sm:$0xff] }
 0x3ac   :  { %9806 = vst [vmem:[#allocation131_spill] sm:$0xff] %v7030_v52  ;;  %2288 = vmatpush.msrb.mxu3 %v7045_v3  ;;  %v7048_v52 = vld [vmem:[#allocation4 + $0x120] sm:$0xff] }
 0x3ad   :  { %9807 = vst [vmem:[#allocation132_spill] sm:$0xff] %v7033_v2  ;;  %2229 = vmatpush.msra.mxu0 %v7048_v52  ;;  %v7051_v2 = vld [vmem:[#allocation4 + $0x128] sm:$0xff] }
 0x3ae   :  { %9808 = vst [vmem:[#allocation133_spill] sm:$0xff] %v7036_v63  ;;  %2249 = vmatpush.msra.mxu1 %v7051_v2  ;;  %v7054_v63 = vld [vmem:[#allocation4 + $0x130] sm:$0xff] }
 0x3af   :  { %9809 = vst [vmem:[#allocation135_spill] sm:$0xff] %v7039_v28  ;;  %2269 = vmatpush.msrb.mxu2 %v7054_v63  ;;  %v7057_v28 = vld [vmem:[#allocation4 + $0x138] sm:$0xff] }
 0x3b0   :  { %9810 = vst [vmem:[#allocation136_spill] sm:$0xff] %v7042_v1  ;;  %2289 = vmatpush.msrb.mxu3 %v7057_v28  ;;  %v7060_v1 = vld [vmem:[#allocation4 + $0x100] sm:$0xff] }
 0x3b1   :  { %9811 = vst [vmem:[#allocation137_spill] sm:$0xff] %v7045_v3  ;;  %2230 = vmatpush.msra.mxu0 %v7060_v1  ;;  %v7063_v3 = vld [vmem:[#allocation4 + $0x108] sm:$0xff] }
 0x3b2   :  { %9812 = vst [vmem:[#allocation138_spill] sm:$0xff] %v7048_v52  ;;  %2250 = vmatpush.msra.mxu1 %v7063_v3  ;;  %v7066_v52 = vld [vmem:[#allocation4 + $0x110] sm:$0xff]  ;;  %v1800_v55 = vpop.f32.mrf.mxu1 }
 0x3b3   :  { %9813 = vst [vmem:[#allocation139_spill] sm:$0xff] %v7051_v2  ;;  %2270 = vmatpush.msrb.mxu2 %v7066_v52  ;;  %v7069_v2 = vld [vmem:[#allocation4 + $0x118] sm:$0xff] }
 0x3b4   :  { %9814 = vst [vmem:[#allocation140_spill] sm:$0xff] %v7054_v63  ;;  %2290 = vmatpush.msrb.mxu3 %v7069_v2  ;;  %v7072_v63 = vld [vmem:[#allocation4 + $0xe0] sm:$0xff] }
 0x3b5   :  { %9815 = vst [vmem:[#allocation141_spill] sm:$0xff] %v7057_v28  ;;  %2231 = vmatpush.msra.mxu0 %v7072_v63  ;;  %v7075_v28 = vld [vmem:[#allocation4 + $0xe8] sm:$0xff] }
 0x3b6   :  { %9816 = vst [vmem:[#allocation142_spill] sm:$0xff] %v7060_v1  ;;  %2251 = vmatpush.msra.mxu1 %v7075_v28  ;;  %v7078_v1 = vld [vmem:[#allocation4 + $0xf0] sm:$0xff] }
 0x3b7   :  { %9817 = vst [vmem:[#allocation143_spill] sm:$0xff] %v7063_v3  ;;  %2271 = vmatpush.msrb.mxu2 %v7078_v1  ;;  %v7081_v3 = vld [vmem:[#allocation4 + $0xf8] sm:$0xff] }
 0x3b8   :  { %9818 = vst [vmem:[#allocation144_spill] sm:$0xff] %v7066_v52  ;;  %2291 = vmatpush.msrb.mxu3 %v7081_v3  ;;  %v7084_v52 = vld [vmem:[#allocation4 + $0xc0] sm:$0xff] }
 0x3b9   :  { %9819 = vst [vmem:[#allocation145_spill] sm:$0xff] %v7069_v2  ;;  %2232 = vmatpush.msra.mxu0 %v7084_v52  ;;  %v7087_v2 = vld [vmem:[#allocation4 + $0xc8] sm:$0xff]  ;;  %v1820_v38 = vpop.f32.mrf.mxu2  ;;  %v1840_v5 = vpop.f32.mrf.mxu3 }
 0x3ba   :  { %9820 = vst [vmem:[#allocation146_spill] sm:$0xff] %v7072_v63  ;;  %2252 = vmatpush.msra.mxu1 %v7087_v2  ;;  %v7090_v63 = vld [vmem:[#allocation4 + $0xd0] sm:$0xff] }
 0x3bb   :  { %9821 = vst [vmem:[#allocation147_spill] sm:$0xff] %v7075_v28  ;;  %2272 = vmatpush.msrb.mxu2 %v7090_v63  ;;  %v7093_v28 = vld [vmem:[#allocation4 + $0xd8] sm:$0xff] }
 0x3bc   :  { %9822 = vst [vmem:[#allocation148_spill] sm:$0xff] %v7078_v1  ;;  %2292 = vmatpush.msrb.mxu3 %v7093_v28  ;;  %v7096_v1 = vld [vmem:[#allocation4 + $0xa0] sm:$0xff] }
 0x3bd   :  { %9823 = vst [vmem:[#allocation149_spill] sm:$0xff] %v7081_v3  ;;  %2233 = vmatpush.msra.mxu0 %v7096_v1  ;;  %v7099_v3 = vld [vmem:[#allocation4 + $0xa8] sm:$0xff] }
 0x3be   :  { %9824 = vst [vmem:[#allocation151_spill] sm:$0xff] %v7084_v52  ;;  %2253 = vmatpush.msra.mxu1 %v7099_v3  ;;  %v7102_v52 = vld [vmem:[#allocation4 + $0xb0] sm:$0xff] }
 0x3bf   :  { %9825 = vst [vmem:[#allocation156_spill] sm:$0xff] %v7087_v2  ;;  %2273 = vmatpush.msrb.mxu2 %v7102_v52  ;;  %v7105_v2 = vld [vmem:[#allocation4 + $0xb8] sm:$0xff]  ;;  %v1883_v35 = vpop.f32.mrf.mxu1 }
 0x3c0   :  { %9826 = vst [vmem:[#allocation157_spill] sm:$0xff] %v7090_v63  ;;  %2293 = vmatpush.msrb.mxu3 %v7105_v2  ;;  %v7108_v63 = vld [vmem:[#allocation4 + $0x80] sm:$0xff]  ;;  %v1884_v31 = vadd.f32 %v1883_v35, %v1800_v55 }
 0x3c1   :  { %9827 = vst [vmem:[#allocation158_spill] sm:$0xff] %v7093_v28  ;;  %2234 = vmatpush.msra.mxu0 %v7108_v63  ;;  %v7111_v28 = vld [vmem:[#allocation4 + $0x88] sm:$0xff] }
 0x3c2   :  { %9828 = vst [vmem:[#allocation159_spill] sm:$0xff] %v7096_v1  ;;  %2254 = vmatpush.msra.mxu1 %v7111_v28  ;;  %v7114_v1 = vld [vmem:[#allocation4 + $0x90] sm:$0xff]  ;;  %v1927_v27 = vadd.f32 %v1884_v31, %v9683_v0 }
 0x3c3   :  { %9829 = vst [vmem:[#allocation160_spill] sm:$0xff] %v7099_v3  ;;  %2274 = vmatpush.msrb.mxu2 %v7114_v1  ;;  %v7117_v3 = vld [vmem:[#allocation4 + $0x98] sm:$0xff] }
 0x3c4   :  { %9830 = vst [vmem:[#allocation161_spill] sm:$0xff] %v7102_v52  ;;  %2294 = vmatpush.msrb.mxu3 %v7117_v3  ;;  %v7120_v52 = vld [vmem:[#allocation4 + $0x60] sm:$0xff]  ;;  %v3645_v26 = vmul.f32 -1.442695, %v1927_v27 }
 0x3c5   :  { %9831 = vst [vmem:[#allocation162_spill] sm:$0xff] %v7105_v2  ;;  %2235 = vmatpush.msra.mxu0 %v7120_v52  ;;  %v7123_v2 = vld [vmem:[#allocation4 + $0x68] sm:$0xff] }
 0x3c6   :  { %9832 = vst [vmem:[#allocation163_spill] sm:$0xff] %v7108_v63  ;;  %2255 = vmatpush.msra.mxu1 %v7123_v2  ;;  %v7126_v63 = vld [vmem:[#allocation4 + $0x70] sm:$0xff] }
 0x3c7   :  { %9833 = vst [vmem:[#allocation164_spill] sm:$0xff] %v7111_v28  ;;  %2275 = vmatpush.msrb.mxu2 %v7126_v63  ;;  %v7129_v28 = vld [vmem:[#allocation4 + $0x78] sm:$0xff] }
 0x3c8   :  { %9834 = vst [vmem:[#allocation165_spill] sm:$0xff] %v7114_v1  ;;  %2295 = vmatpush.msrb.mxu3 %v7129_v28  ;;  %v7132_v1 = vld [vmem:[#allocation4 + $0x40] sm:$0xff] }
 0x3c9   :  { %9835 = vst [vmem:[#allocation166_spill] sm:$0xff] %v7117_v3  ;;  %2236 = vmatpush.msra.mxu0 %v7132_v1  ;;  %v7135_v3 = vld [vmem:[#allocation4 + $0x48] sm:$0xff] }
 0x3ca   :  { %9836 = vst [vmem:[#allocation167_spill] sm:$0xff] %v7120_v52  ;;  %2256 = vmatpush.msra.mxu1 %v7135_v3  ;;  %v7138_v52 = vld [vmem:[#allocation4 + $0x50] sm:$0xff] }
 0x3cb   :  { %9837 = vst [vmem:[#allocation168_spill] sm:$0xff] %v7123_v2  ;;  %2276 = vmatpush.msrb.mxu2 %v7138_v52  ;;  %v7141_v2 = vld [vmem:[#allocation4 + $0x58] sm:$0xff] }
 0x3cc   :  { %9838 = vst [vmem:[#allocation169_spill] sm:$0xff] %v7126_v63  ;;  %2296 = vmatpush.msrb.mxu3 %v7141_v2  ;;  %v7144_v63 = vld [vmem:[#allocation4 + $0x20] sm:$0xff] }
 0x3cd   :  { %9839 = vst [vmem:[#allocation170_spill] sm:$0xff] %v7129_v28  ;;  %2237 = vmatpush.msra.mxu0 %v7144_v63  ;;  %v7147_v28 = vld [vmem:[#allocation4 + $0x28] sm:$0xff] }
 0x3ce   :  { %9840 = vst [vmem:[#allocation171_spill] sm:$0xff] %v7132_v1  ;;  %2257 = vmatpush.msra.mxu1 %v7147_v28  ;;  %v7150_v1 = vld [vmem:[#allocation4 + $0x30] sm:$0xff] }
 0x3cf   :  { %9841 = vst [vmem:[#allocation172_spill] sm:$0xff] %v7135_v3  ;;  %2277 = vmatpush.msrb.mxu2 %v7150_v1  ;;  %v7153_v3 = vld [vmem:[#allocation4 + $0x38] sm:$0xff] }
 0x3d0   :  { %9842 = vst [vmem:[#allocation173_spill] sm:$0xff] %v7138_v52  ;;  %2297 = vmatpush.msrb.mxu3 %v7153_v3  ;;  %v7156_v52 = vld [vmem:[#allocation4] sm:$0xff] }
 0x3d1   :  { %9843 = vst [vmem:[#allocation174_spill] sm:$0xff] %v7141_v2  ;;  %2238 = vmatpush.msra.mxu0 %v7156_v52  ;;  %v7159_v2 = vld [vmem:[#allocation4 + $0x8] sm:$0xff] }
 0x3d2   :  { %9844 = vst [vmem:[#allocation175_spill] sm:$0xff] %v7144_v63  ;;  %2258 = vmatpush.msra.mxu1 %v7159_v2  ;;  %v7162_v63 = vld [vmem:[#allocation4 + $0x10] sm:$0xff] }
 0x3d3   :  { %9845 = vst [vmem:[#allocation176_spill] sm:$0xff] %v7147_v28  ;;  %2278 = vmatpush.msrb.mxu2 %v7162_v63  ;;  %v7165_v28 = vld [vmem:[#allocation4 + $0x18] sm:$0xff] }
 0x3d4   :  { %9846 = vst [vmem:[#allocation177_spill] sm:$0xff] %v7150_v1  ;;  %2298 = vmatpush.msrb.mxu3 %v7165_v28  ;;  %v1780_v1 = vpop.f32.mrf.mxu0 }
 0x3d5   :  { %9847 = vst [vmem:[#allocation178_spill] sm:$0xff] %v7153_v3 }
 0x3d6   :  { %9848 = vst [vmem:[#allocation179_spill] sm:$0xff] %v7156_v52 }
 0x3d7   :  { %9849 = vst [vmem:[#allocation180_spill] sm:$0xff] %v7159_v2 }
 0x3d8   :  { %9850 = vst [vmem:[#allocation181_spill] sm:$0xff] %v7162_v63  ;;  %v1903_v63 = vpop.f32.mrf.mxu2 }
 0x3d9   :  { %9851 = vst [vmem:[#allocation150_spill] sm:$0xff] %v7165_v28  ;;  %v1904_v6 = vadd.f32 %v1903_v63, %v1820_v38  ;;  %v9854_v63 = vld [vmem:[#allocation122_spill] sm:$0xff] }
 0x3db   :  { %v1928_v28 = vadd.f32 %v1904_v6, %v9684_v59 }
 0x3dc   :  { %v1863_v3 = vpop.f32.mrf.mxu0 }
 0x3dd   :  { %v1864_v34 = vadd.f32 %v1863_v3, %v1780_v1  ;;  %v3646_v23 = vmul.f32 -1.442695, %v1928_v28  ;;  %v1923_v3 = vpop.f32.mrf.mxu3 }
 0x3df   :  { %v1926_v52 = vadd.f32 %v1864_v34, %v9682_v29  ;;  %v1924_v34 = vadd.f32 %v1923_v3, %v1840_v5 }
 0x3e1   :  { %v3644_v2 = vmul.f32 -1.442695, %v1926_v52  ;;  %v1929_v27 = vadd.f32 %v1924_v34, %v9687_v20 }
 0x3e3   :  { %3794 = vpow2.f32 %v3644_v2  ;;  %v2030_v2 = vpop.f32.mrf.mxu1 }
 0x3e4   :  { %3796 = vpow2.f32 %v3645_v26  ;;  %v9852_v26 = vld [vmem:[#allocation134_spill] sm:$0xff]  ;;  %v2010_v5 = vpop.f32.mrf.mxu0 }
 0x3e5   :  { %3798 = vpow2.f32 %v3646_v23  ;;  %v9853_v38 = vperm.slane %v9852_v26, 0  ;;  %v9856_v28 = vperm.slane %v9852_v26, 1  ;;  %v9859_v33 = vperm.slane %v9852_v26, 2 }
 0x3e7   :  { %v7177_v6 = vadd.f32 %v9854_v63, %v9853_v38 }
 0x3e9   :  { %v3795_v18 = vpop.eup %3794  ;;  %9855 = vst [vmem:[#allocation154_spill] sm:$0xff] %v7177_v6  ;;  %v2073_v34 = vadd.f32 %v2010_v5, %v7177_v6  ;;  %v9860_v5 = vld [vmem:[#allocation153_spill] sm:$0xff] }
 0x3ea   :  { %v3797_v30 = vpop.eup %3796  ;;  %v1939_v40 = vadd.f32 1.0, %v3795_v18  ;;  %v9857_v18 = vld [vmem:[#allocation152_spill] sm:$0xff]  ;;  %v7190_v6 = vadd.f32 %v9860_v5, %v9859_v33 }
 0x3eb   :  { %v1940_v35 = vadd.f32 1.0, %v3797_v30  ;;  %v3799_v31 = vpop.eup %3798  ;;  %v7182_v23 = vadd.f32 %v9857_v18, %v9856_v28  ;;  %v3647_v59 = vmul.f32 -1.442695, %v2073_v34 }
 0x3ec   :  { %3800 = vrcp.f32 %v1939_v40  ;;  %v7171_v55 = vadd.f32 1.0, %v3799_v31  ;;  %v1953_v63 = vand.u32 2147483648, %v1939_v40  ;;  %v1951_v18 = vand.u32 2147483647, %v1939_v40  ;;  %9861 = vst [vmem:[#allocation122_spill] sm:$0xff] %v7190_v6 }
 0x3ed   :  { %3802 = vrcp.f32 %v1940_v35  ;;  %9858 = vst [vmem:[#allocation134_spill] sm:$0xff] %v7182_v23  ;;  %v2074_v31 = vadd.f32 %v2030_v2, %v7182_v23  ;;  %v1968_v29 = vand.u32 2147483648, %v1940_v35  ;;  %v1966_v21 = vand.u32 2147483647, %v1940_v35 }
 0x3ee   :  { %3804 = vrcp.f32 %v7171_v55  ;;  %vm1947_vm8 = vweird.f32 %v1939_v40  ;;  %vm1962_vm9 = vweird.f32 %v1940_v35  ;;  %vm1952_vm12 = vcmp.eq.f32.partialorder %v1951_v18, 8.507059e+37 }
 0x3ef   :  { %3806 = vtanh.f32 %v1929_v27  ;;  %v3648_v0 = vmul.f32 -1.442695, %v2074_v31  ;;  %vm1967_vm13 = vcmp.eq.f32.partialorder %v1966_v21, 8.507059e+37  ;;  %v1983_v21 = vand.u32 2147483648, %v7171_v55 }
 0x3f0   :  { %3808 = vpow2.f32 %v3647_v59  ;;  %v1969_v59 = vor.u32 1.1754944e-38, %v1968_v29  ;;  %vm1977_vm15 = vweird.f32 %v7171_v55  ;;  %v9862_v18 = vperm.slane %v9852_v26, 3 }
 0x3f1   :  { %3810 = vpow2.f32 %v3648_v0 }
 0x3f2   :  { %v3801_v52 = vpop.eup %3800 }
 0x3f3   :  { %v3803_v30 = vpop.eup %3802  ;;  %v1943_v1 = vmul.f32 %v3801_v52, %v1939_v40  ;;  %vm1948_vm6 = vweird.f32 %v3801_v52 }
 0x3f4   :  { %v1958_v3 = vmul.f32 %v3803_v30, %v1940_v35  ;;  %vm1963_vm7 = vweird.f32 %v3803_v30  ;;  %v3805_v13 = vpop.eup %3804  ;;  %vm1949_vm10 = vmor %vm1947_vm8, %vm1948_vm6 }
 0x3f5   :  { %v1944_v20 = vsub.f32 1.0, %v1943_v1  ;;  %v1973_v27 = vmul.f32 %v3805_v13, %v7171_v55  ;;  %v3807_v34 = vpop.eup %3806  ;;  %vm1964_vm11 = vmor %vm1962_vm9, %vm1963_vm7  ;;  %vm1978_vm14 = vweird.f32 %v3805_v13 }
 0x3f6   :  { %v1959_v38 = vsub.f32 1.0, %v1958_v3  ;;  %v2050_v3 = vpop.f32.mrf.mxu2  ;;  %v3809_v23 = vpop.eup %3808  ;;  %vm1979_vm0 = vmor %vm1977_vm15, %vm1978_vm14 }
 0x3f7   :  { %v1945_v28 = vmul.f32 %v3801_v52, %v1944_v20  ;;  %v1954_v20 = vor.u32 1.1754944e-38, %v1953_v63  ;;  %v1974_v33 = vsub.f32 1.0, %v1973_v27  ;;  %v3811_v9 = vpop.eup %3810  ;;  %v2086_v17 = vadd.f32 1.0, %v3809_v23 }
 0x3f8   :  { %v1960_v56 = vmul.f32 %v3803_v30, %v1959_v38  ;;  %v2075_v38 = vadd.f32 %v2050_v3, %v7190_v6  ;;  %v7198_v29 = vadd.f32 1.0, %v3811_v9  ;;  %v9863_v9 = vld [vmem:[#allocation155_spill] sm:$0xff] }
 0x3f9   :  { %v1946_v1 = vadd.f32 %v3801_v52, %v1945_v28  ;;  %vm2094_vm3 = vweird.f32 %v2086_v17 }
 0x3fa   :  { %v1961_v2 = vadd.f32 %v3803_v30, %v1960_v56  ;;  %v3649_v35 = vmul.f32 -1.442695, %v2075_v38  ;;  %v1975_v56 = vmul.f32 %v3805_v13, %v1974_v33  ;;  %vm2109_vm6 = vweird.f32 %v7198_v29 }
 0x3fb   :  { %v1950_v31 = vsel %vm1949_vm10, %v3801_v52, %v1946_v1  ;;  %v7208_v1 = vadd.f32 %v9863_v9, %v9862_v18  ;;  %v9880_v9 = vld [vmem:[#allocation32_spill] sm:$0xff] }
 0x3fc   :  { %v1955_v5 = vsel %vm1952_vm12, %v1954_v20, %v1950_v31  ;;  %v1965_v28 = vsel %vm1964_vm11, %v3803_v30, %v1961_v2  ;;  %3812 = vpow2.f32 %v3649_v35  ;;  %v1976_v52 = vadd.f32 %v3805_v13, %v1975_v56  ;;  %v2070_v30 = vpop.f32.mrf.mxu3 }
 0x3fd   :  { %v1970_v0 = vsel %vm1967_vm13, %v1969_v59, %v1965_v28  ;;  %v1989_v40 = vmul.f32 %v3807_v34, %v1955_v5  ;;  %3814 = vrcp.f32 %v2086_v17  ;;  %v1984_v2 = vor.u32 1.1754944e-38, %v1983_v21 }
 0x3fe   :  { %v1988_v63 = vmul.f32 %v1970_v0, %v6538_v45  ;;  %v1981_v45 = vand.u32 2147483647, %v7171_v55  ;;  %v1980_v27 = vsel %vm1979_vm0, %v3805_v13, %v1976_v52  ;;  %v2076_v34 = vadd.f32 %v2070_v30, %v7208_v1 }
 0x3ff   :  { %v2100_v28 = vand.u32 2147483648, %v2086_v17  ;;  %v2115_v35 = vand.u32 2147483648, %v7198_v29  ;;  %v2113_v21 = vand.u32 2147483647, %v7198_v29 }
 0x400   :  { %v7196_v41 = vadd.f32 %v1989_v40, %v1988_v63  ;;  %vm1982_vm1 = vcmp.eq.f32.partialorder %v1981_v45, 8.507059e+37  ;;  %v2098_v40 = vand.u32 2147483647, %v2086_v17 }
 0x401   :  { %v1985_v55 = vsel %vm1982_vm1, %v1984_v2, %v1980_v27  ;;  %vm2114_vm9 = vcmp.eq.f32.partialorder %v2113_v21, 8.507059e+37  ;;  %v9881_v27 = vld [vmem:[#allocation34_spill] sm:$0xff]  ;;  %v9883_v2 = vld [vmem:[#allocation35_spill] sm:$0xff]  ;;  %v9901_v21 = vld [vmem:[#allocation53_spill] sm:$0xff] }
 0x402   :  { %3816 = vtanh.f32 %v7196_v41  ;;  %v3813_v23 = vpop.eup %3812  ;;  %vm2099_vm7 = vcmp.eq.f32.partialorder %v2098_v40, 8.507059e+37  ;;  %v9896_v40 = vld [vmem:[#allocation48_spill] sm:$0xff] }
 0x403   :  { %3818 = vrcp.f32 %v7198_v29  ;;  %v7210_v20 = vadd.f32 1.0, %v3813_v23  ;;  %v3815_v3 = vpop.eup %3814 }
 0x404   :  { %v2090_v31 = vmul.f32 %v3815_v3, %v2086_v17  ;;  %vm2095_vm2 = vweird.f32 %v3815_v3  ;;  %v2101_v17 = vor.u32 1.1754944e-38, %v2100_v28  ;;  %v9893_v28 = vld [vmem:[#allocation45_spill] sm:$0xff] }
 0x405   :  { %3820 = vrcp.f32 %v7210_v20  ;;  %vm2096_vm5 = vmor %vm2094_vm3, %vm2095_vm2  ;;  %vm2124_vm11 = vweird.f32 %v7210_v20 }
 0x406   :  { %v2091_v5 = vsub.f32 1.0, %v2090_v31  ;;  %3822 = vtanh.f32 %v2076_v34  ;;  %v9885_v34 = vld [vmem:[#allocation38_spill] sm:$0xff]  ;;  %v9887_v31 = vld [vmem:[#allocation39_spill] sm:$0xff] }
 0x408   :  { %v3817_v59 = vpop.eup %3816  ;;  %v2092_v0 = vmul.f32 %v3815_v3, %v2091_v5  ;;  %v9891_v5 = vld [vmem:[#allocation43_spill] sm:$0xff] }
 0x409   :  { %v3819_v38 = vpop.eup %3818  ;;  %v1992_v33 = vmul.f32 %v3817_v59, %v1985_v55  ;;  %v9886_v59 = vld [vmem:[#allocation37_spill] sm:$0xff]  ;;  %v9888_v55 = vld [vmem:[#allocation40_spill] sm:$0xff] }
 0x40a   :  { %v2105_v26 = vmul.f32 %v3819_v38, %v7198_v29  ;;  %vm2110_vm4 = vweird.f32 %v3819_v38  ;;  %v2093_v52 = vadd.f32 %v3815_v3, %v2092_v0  ;;  %v9895_v0 = vld [vmem:[#allocation47_spill] sm:$0xff] }
 0x40b   :  { %2159 = vmatmul.f32.vlgmr.msrb.gmra.mxu0 %v1992_v33  ;;  %2179 = vmatmul.f32.vlgmr.msrb.gmra.mxu1 %v1992_v33  ;;  %v7218_v63 = vpop.eup %3820  ;;  %vm2111_vm8 = vmor %vm2109_vm6, %vm2110_vm4 }
 0x40c   :  { %v2106_v13 = vsub.f32 1.0, %v2105_v26  ;;  %2199 = vmatmul.f32.vlgmr.msra.gmra.mxu2 %v1992_v33  ;;  %2219 = vmatmul.f32.vlgmr.msra.gmra.mxu3 %v1992_v33  ;;  %v2120_v45 = vmul.f32 %v7218_v63, %v7210_v20  ;;  %vm2125_vm10 = vweird.f32 %v7218_v63  ;;  %v9890_v33 = vld [vmem:[#allocation41_spill] sm:$0xff]  ;;  %v9892_v26 = vld [vmem:[#allocation44_spill] sm:$0xff] }
 0x40d   :  { %2370 = vmatpush.msrb.mxu0 %v6571_v36  ;;  %2390 = vmatpush.msrb.mxu1 %v6574_v37  ;;  %v2097_v36 = vsel %vm2096_vm5, %v3815_v3, %v2093_v52  ;;  %vm2126_vm12 = vmor %vm2124_vm11, %vm2125_vm10  ;;  %v9884_v3 = vld [vmem:[#allocation36_spill] sm:$0xff] }
 0x40e   :  { %v2107_v56 = vmul.f32 %v3819_v38, %v2106_v13  ;;  %2410 = vmatpush.msra.mxu2 %v6579_v39  ;;  %2430 = vmatpush.msra.mxu3 %v6582_v42  ;;  %v3823_v39 = vpop.eup %3822  ;;  %v2116_v42 = vor.u32 1.1754944e-38, %v2115_v35  ;;  %v2121_v30 = vsub.f32 1.0, %v2120_v45  ;;  %v2102_v23 = vsel %vm2099_vm7, %v2101_v17, %v2097_v36  ;;  %v9894_v13 = vld [vmem:[#allocation46_spill] sm:$0xff]  ;;  %v9897_v35 = vld [vmem:[#allocation49_spill] sm:$0xff]  ;;  %v9900_v52 = vld [vmem:[#allocation52_spill] sm:$0xff] }
 0x40f   :  { %2371 = vmatpush.msrb.mxu0 %v6591_v43  ;;  %2391 = vmatpush.msrb.mxu1 %v6594_v47  ;;  %v2136_v47 = vrot.slane %v6565_v32, 6  ;;  %v2139_v29 = vmul.f32 %v3823_v39, %v2102_v23  ;;  %v9902_v45 = vld [vmem:[#allocation54_spill] sm:$0xff]  ;;  %v9903_v17 = vld [vmem:[#allocation55_spill] sm:$0xff]  ;;  %v9904_v36 = vld [vmem:[#allocation56_spill] sm:$0xff] }
 0x410   :  { %v2108_v37 = vadd.f32 %v3819_v38, %v2107_v56  ;;  %2411 = vmatpush.msra.mxu2 %v6600_v50  ;;  %2431 = vmatpush.msra.mxu3 %v6603_v22  ;;  %v2122_v50 = vmul.f32 %v7218_v63, %v2121_v30  ;;  %v9899_v56 = vld [vmem:[#allocation51_spill] sm:$0xff]  ;;  %v9906_v39 = vld [vmem:[#allocation58_spill] sm:$0xff]  ;;  %v9908_v30 = vld [vmem:[#allocation60_spill] sm:$0xff] }
 0x411   :  { %2372 = vmatpush.msrb.mxu0 %v6606_v53  ;;  %2392 = vmatpush.msrb.mxu1 %v6609_v57  ;;  %v2130_v57 = vand.u32 2147483648, %v7210_v20  ;;  %v9909_v23 = vld [vmem:[#allocation61_spill] sm:$0xff] }
 0x412   :  { %v2112_v43 = vsel %vm2111_vm8, %v3819_v38, %v2108_v37  ;;  %2412 = vmatpush.msra.mxu2 %v6612_v58  ;;  %2432 = vmatpush.msra.mxu3 %v6615_v61  ;;  %v2123_v53 = vadd.f32 %v7218_v63, %v2122_v50  ;;  %v2128_v58 = vand.u32 2147483647, %v7210_v20  ;;  %v9882_v20 = vld [vmem:[#allocation33_spill] sm:$0xff]  ;;  %v9889_v38 = vld [vmem:[#allocation42_spill] sm:$0xff] }
 0x413   :  { %v2117_v22 = vsel %vm2114_vm9, %v2116_v42, %v2112_v43  ;;  %2373 = vmatpush.msrb.mxu0 %v6618_v11  ;;  %2393 = vmatpush.msrb.mxu1 %v6621_v49  ;;  %v2131_v11 = vor.u32 1.1754944e-38, %v2130_v57  ;;  %v9864_v49 = vld [vmem:[#allocation16_spill] sm:$0xff]  ;;  %v9905_v37 = vld [vmem:[#allocation57_spill] sm:$0xff]  ;;  %v9907_v42 = vld [vmem:[#allocation59_spill] sm:$0xff] }
 0x414   :  { %v2138_v18 = vmul.f32 %v2136_v47, %v2117_v22  ;;  %2413 = vmatpush.msra.mxu2 %v6624_v8  ;;  %2433 = vmatpush.msra.mxu3 %v6627_v54  ;;  %v2127_v61 = vsel %vm2126_vm12, %v7218_v63, %v2123_v53  ;;  %vm2129_vm13 = vcmp.eq.f32.partialorder %v2128_v58, 8.507059e+37  ;;  %v9865_v8 = vld [vmem:[#allocation21_spill] sm:$0xff]  ;;  %v9898_v63 = vld [vmem:[#allocation50_spill] sm:$0xff]  ;;  %v9911_v47 = vld [vmem:[#allocation63_spill] sm:$0xff] }
 0x415   :  { %2374 = vmatpush.msrb.mxu0 %v6630_v25  ;;  %2394 = vmatpush.msrb.mxu1 %v6633_v62  ;;  %v2132_v25 = vsel %vm2129_vm13, %v2131_v11, %v2127_v61  ;;  %v9866_v62 = vld [vmem:[#allocation13_spill] sm:$0xff]  ;;  %v9910_v43 = vld [vmem:[#allocation62_spill] sm:$0xff]  ;;  %v9916_v53 = vld [vmem:[#allocation68_spill] sm:$0xff] }
 0x416   :  { %v7244_v32 = vadd.f32 %v2139_v29, %v2138_v18  ;;  %2414 = vmatpush.msra.mxu2 %v6638_v60  ;;  %2434 = vmatpush.msra.mxu3 %v6641_v7  ;;  %v9867_v60 = vld [vmem:[#allocation22_spill] sm:$0xff]  ;;  %v9912_v29 = vld [vmem:[#allocation64_spill] sm:$0xff]  ;;  %v9913_v50 = vld [vmem:[#allocation65_spill] sm:$0xff] }
 0x417   :  { %2375 = vmatpush.msrb.mxu0 %v6644_v51  ;;  %2395 = vmatpush.msrb.mxu1 %v6647_v48  ;;  %v9868_v51 = vld [vmem:[#allocation19_spill] sm:$0xff]  ;;  %v9869_v48 = vld [vmem:[#allocation25_spill] sm:$0xff]  ;;  %v9914_v22 = vld [vmem:[#allocation66_spill] sm:$0xff] }
 0x418   :  { %3824 = vtanh.f32 %v7244_v32  ;;  %2415 = vmatpush.msra.mxu2 %v6654_v4  ;;  %2435 = vmatpush.msra.mxu3 %v6657_v12  ;;  %v9870_v4 = vld [vmem:[#allocation14_spill] sm:$0xff]  ;;  %v9915_v18 = vld [vmem:[#allocation67_spill] sm:$0xff]  ;;  %v9917_v57 = vld [vmem:[#allocation69_spill] sm:$0xff] }
 0x419   :  { %2376 = vmatpush.msrb.mxu0 %v6660_v44  ;;  %2396 = vmatpush.msrb.mxu1 %v6663_v16  ;;  %v9871_v12 = vld [vmem:[#allocation26_spill] sm:$0xff]  ;;  %v9872_v44 = vld [vmem:[#allocation23_spill] sm:$0xff]  ;;  %v9920_v11 = vld [vmem:[#allocation72_spill] sm:$0xff] }
 0x41a   :  { %2416 = vmatpush.msra.mxu2 %v6666_v46  ;;  %2436 = vmatpush.msra.mxu3 %v6669_v24  ;;  %v9873_v16 = vld [vmem:[#allocation27_spill] sm:$0xff]  ;;  %v9874_v46 = vld [vmem:[#allocation20_spill] sm:$0xff]  ;;  %v9918_v58 = vld [vmem:[#allocation70_spill] sm:$0xff] }
 0x41b   :  { %2377 = vmatpush.msrb.mxu0 %v6672_v14  ;;  %2397 = vmatpush.msrb.mxu1 %v6675_v15  ;;  %v9875_v24 = vld [vmem:[#allocation28_spill] sm:$0xff]  ;;  %v9876_v14 = vld [vmem:[#allocation29_spill] sm:$0xff]  ;;  %v9877_v15 = vld [vmem:[#allocation30_spill] sm:$0xff] }
 0x41c   :  { %2417 = vmatpush.msra.mxu2 %v6678_v10  ;;  %2437 = vmatpush.msra.mxu3 %v6681_v19  ;;  %v9878_v10 = vld [vmem:[#allocation24_spill] sm:$0xff]  ;;  %v9879_v19 = vld [vmem:[#allocation31_spill] sm:$0xff] }
 0x41d   :  { %2378 = vmatpush.msrb.mxu0 %v9864_v49  ;;  %2398 = vmatpush.msrb.mxu1 %v9865_v8  ;;  %v9919_v61 = vld [vmem:[#allocation71_spill] sm:$0xff]  ;;  %v9921_v49 = vld [vmem:[#allocation73_spill] sm:$0xff]  ;;  %v9922_v8 = vld [vmem:[#allocation74_spill] sm:$0xff] }
 0x41e   :  { %v3825_v54 = vpop.eup %3824  ;;  %2418 = vmatpush.msra.mxu2 %v9866_v62  ;;  %2438 = vmatpush.msra.mxu3 %v9867_v60  ;;  %v9925_v62 = vld [vmem:[#allocation77_spill] sm:$0xff]  ;;  %v9926_v60 = vld [vmem:[#allocation78_spill] sm:$0xff] }
 0x41f   :  { %v2142_v7 = vmul.f32 %v3825_v54, %v2132_v25  ;;  %2379 = vmatpush.msrb.mxu0 %v9868_v51  ;;  %2399 = vmatpush.msrb.mxu1 %v9869_v48  ;;  %v9923_v54 = vld [vmem:[#allocation75_spill] sm:$0xff]  ;;  %v9924_v25 = vld [vmem:[#allocation76_spill] sm:$0xff]  ;;  %v9929_v48 = vld [vmem:[#allocation81_spill] sm:$0xff] }
 0x420   :  { %2419 = vmatpush.msra.mxu2 %v9870_v4  ;;  %2439 = vmatpush.msra.mxu3 %v9871_v12  ;;  %v9928_v51 = vld [vmem:[#allocation80_spill] sm:$0xff]  ;;  %v9930_v4 = vld [vmem:[#allocation82_spill] sm:$0xff]  ;;  %v9931_v12 = vld [vmem:[#allocation83_spill] sm:$0xff] }
 0x421   :  { %2239 = vmatmul.f32.vlgmr.msra.gmra.mxu0 %v2142_v7  ;;  %2259 = vmatmul.f32.vlgmr.msra.gmra.mxu1 %v2142_v7 }
 0x422   :  { %2279 = vmatmul.f32.vlgmr.msrb.gmra.mxu2 %v2142_v7  ;;  %2299 = vmatmul.f32.vlgmr.msrb.gmra.mxu3 %v2142_v7 }
 0x423   :  { %2380 = vmatpush.msrb.mxu0 %v9872_v44  ;;  %2400 = vmatpush.msrb.mxu1 %v9873_v16  ;;  %v9932_v44 = vld [vmem:[#allocation84_spill] sm:$0xff]  ;;  %v9933_v16 = vld [vmem:[#allocation85_spill] sm:$0xff] }
 0x424   :  { %2420 = vmatpush.msra.mxu2 %v9874_v46  ;;  %2440 = vmatpush.msra.mxu3 %v9875_v24  ;;  %v9934_v46 = vld [vmem:[#allocation86_spill] sm:$0xff]  ;;  %v9935_v24 = vld [vmem:[#allocation87_spill] sm:$0xff] }
 0x425   :  { %2381 = vmatpush.msrb.mxu0 %v9876_v14  ;;  %2401 = vmatpush.msrb.mxu1 %v9877_v15  ;;  %v9936_v14 = vld [vmem:[#allocation88_spill] sm:$0xff]  ;;  %v9937_v15 = vld [vmem:[#allocation89_spill] sm:$0xff] }
 0x426   :  { %2421 = vmatpush.msra.mxu2 %v9878_v10  ;;  %2441 = vmatpush.msra.mxu3 %v9879_v19  ;;  %v9938_v10 = vld [vmem:[#allocation90_spill] sm:$0xff]  ;;  %v9939_v19 = vld [vmem:[#allocation91_spill] sm:$0xff] }
 0x427   :  { %2382 = vmatpush.msrb.mxu0 %v9880_v9  ;;  %2402 = vmatpush.msrb.mxu1 %v9881_v27  ;;  %v9940_v9 = vld [vmem:[#allocation92_spill] sm:$0xff]  ;;  %v9941_v27 = vld [vmem:[#allocation93_spill] sm:$0xff] }
 0x428   :  { %2422 = vmatpush.msra.mxu2 %v9882_v20  ;;  %2442 = vmatpush.msra.mxu3 %v9883_v2  ;;  %v9942_v20 = vld [vmem:[#allocation94_spill] sm:$0xff]  ;;  %v9943_v2 = vld [vmem:[#allocation95_spill] sm:$0xff] }
 0x429   :  { %2383 = vmatpush.msrb.mxu0 %v9884_v3  ;;  %2403 = vmatpush.msrb.mxu1 %v9885_v34  ;;  %v9944_v3 = vld [vmem:[#allocation96_spill] sm:$0xff]  ;;  %v9945_v34 = vld [vmem:[#allocation97_spill] sm:$0xff] }
 0x42a   :  { %2423 = vmatpush.msra.mxu2 %v9886_v59  ;;  %2443 = vmatpush.msra.mxu3 %v9887_v31  ;;  %v9946_v59 = vld [vmem:[#allocation98_spill] sm:$0xff]  ;;  %v9947_v31 = vld [vmem:[#allocation99_spill] sm:$0xff] }
 0x42b   :  { %2384 = vmatpush.msrb.mxu0 %v9888_v55  ;;  %2404 = vmatpush.msrb.mxu1 %v9889_v38  ;;  %v9948_v55 = vld [vmem:[#allocation100_spill] sm:$0xff]  ;;  %v9949_v38 = vld [vmem:[#allocation101_spill] sm:$0xff] }
 0x42c   :  { %2424 = vmatpush.msra.mxu2 %v9890_v33  ;;  %2444 = vmatpush.msra.mxu3 %v9891_v5  ;;  %v9950_v33 = vld [vmem:[#allocation102_spill] sm:$0xff]  ;;  %v9951_v5 = vld [vmem:[#allocation103_spill] sm:$0xff] }
 0x42d   :  { %2385 = vmatpush.msrb.mxu0 %v9892_v26  ;;  %2405 = vmatpush.msrb.mxu1 %v9893_v28  ;;  %v9952_v26 = vld [vmem:[#allocation104_spill] sm:$0xff]  ;;  %v9953_v28 = vld [vmem:[#allocation105_spill] sm:$0xff] }
 0x42e   :  { %2425 = vmatpush.msra.mxu2 %v9894_v13  ;;  %2445 = vmatpush.msra.mxu3 %v9895_v0  ;;  %v9954_v13 = vld [vmem:[#allocation106_spill] sm:$0xff]  ;;  %v9955_v0 = vld [vmem:[#allocation107_spill] sm:$0xff] }
 0x42f   :  { %2386 = vmatmul.f32.vlgmr.msrb.gmra.mxu0 %v2142_v7  ;;  %2406 = vmatmul.f32.vlgmr.msrb.gmra.mxu1 %v2142_v7 }
 0x430   :  { %2426 = vmatmul.f32.vlgmr.msra.gmra.mxu2 %v2142_v7  ;;  %2446 = vmatmul.f32.vlgmr.msra.gmra.mxu3 %v2142_v7  ;;  %v9927_v7 = vld [vmem:[#allocation79_spill] sm:$0xff] }
 0x431   :  { %2532 = vmatpush.msra.mxu0 %v9896_v40  ;;  %2552 = vmatpush.msra.mxu1 %v9897_v35  ;;  %v9956_v40 = vld [vmem:[#allocation108_spill] sm:$0xff]  ;;  %v9957_v35 = vld [vmem:[#allocation109_spill] sm:$0xff] }
 0x432   :  { %2572 = vmatpush.msrb.mxu2 %v9898_v63  ;;  %2592 = vmatpush.msrb.mxu3 %v9899_v56  ;;  %v9958_v63 = vld [vmem:[#allocation110_spill] sm:$0xff]  ;;  %v9959_v56 = vld [vmem:[#allocation111_spill] sm:$0xff] }
 0x433   :  { %2533 = vmatpush.msra.mxu0 %v9900_v52  ;;  %2553 = vmatpush.msra.mxu1 %v9901_v21  ;;  %v9960_v52 = vld [vmem:[#allocation112_spill] sm:$0xff]  ;;  %v9961_v21 = vld [vmem:[#allocation113_spill] sm:$0xff] }
 0x434   :  { %2573 = vmatpush.msrb.mxu2 %v9902_v45  ;;  %2593 = vmatpush.msrb.mxu3 %v9903_v17  ;;  %v9962_v45 = vld [vmem:[#allocation114_spill] sm:$0xff]  ;;  %v9963_v17 = vld [vmem:[#allocation115_spill] sm:$0xff] }
 0x435   :  { %2534 = vmatpush.msra.mxu0 %v9904_v36  ;;  %2554 = vmatpush.msra.mxu1 %v9905_v37  ;;  %v9964_v36 = vld [vmem:[#allocation116_spill] sm:$0xff]  ;;  %v9965_v37 = vld [vmem:[#allocation117_spill] sm:$0xff] }
 0x436   :  { %2574 = vmatpush.msrb.mxu2 %v9906_v39  ;;  %2594 = vmatpush.msrb.mxu3 %v9907_v42  ;;  %v9966_v39 = vld [vmem:[#allocation118_spill] sm:$0xff]  ;;  %v9967_v42 = vld [vmem:[#allocation119_spill] sm:$0xff] }
 0x437   :  { %2535 = vmatpush.msra.mxu0 %v9908_v30  ;;  %2555 = vmatpush.msra.mxu1 %v9909_v23  ;;  %v9968_v30 = vld [vmem:[#allocation120_spill] sm:$0xff]  ;;  %v9969_v23 = vld [vmem:[#allocation121_spill] sm:$0xff] }
 0x438   :  { %2575 = vmatpush.msrb.mxu2 %v9910_v43  ;;  %2595 = vmatpush.msrb.mxu3 %v9911_v47  ;;  %v9970_v43 = vld [vmem:[#allocation123_spill] sm:$0xff]  ;;  %v9971_v47 = vld [vmem:[#allocation124_spill] sm:$0xff] }
 0x439   :  { %2536 = vmatpush.msra.mxu0 %v9912_v29  ;;  %2556 = vmatpush.msra.mxu1 %v9913_v50  ;;  %v9972_v29 = vld [vmem:[#allocation125_spill] sm:$0xff]  ;;  %v9973_v50 = vld [vmem:[#allocation126_spill] sm:$0xff] }
 0x43a   :  { %2576 = vmatpush.msrb.mxu2 %v9914_v22  ;;  %2596 = vmatpush.msrb.mxu3 %v9915_v18  ;;  %v9974_v22 = vld [vmem:[#allocation127_spill] sm:$0xff]  ;;  %v9975_v18 = vld [vmem:[#allocation128_spill] sm:$0xff] }
 0x43b   :  { %2537 = vmatpush.msra.mxu0 %v9916_v53  ;;  %2557 = vmatpush.msra.mxu1 %v9917_v57  ;;  %v9976_v53 = vld [vmem:[#allocation129_spill] sm:$0xff]  ;;  %v9977_v57 = vld [vmem:[#allocation130_spill] sm:$0xff] }
 0x43c   :  { %2577 = vmatpush.msrb.mxu2 %v9918_v58  ;;  %2597 = vmatpush.msrb.mxu3 %v9919_v61  ;;  %v9978_v58 = vld [vmem:[#allocation131_spill] sm:$0xff]  ;;  %v9979_v61 = vld [vmem:[#allocation132_spill] sm:$0xff] }
 0x43d   :  { %2538 = vmatpush.msra.mxu0 %v9920_v11  ;;  %2558 = vmatpush.msra.mxu1 %v9921_v49  ;;  %v9980_v11 = vld [vmem:[#allocation133_spill] sm:$0xff]  ;;  %v9981_v49 = vld [vmem:[#allocation135_spill] sm:$0xff] }
 0x43e   :  { %2578 = vmatpush.msrb.mxu2 %v9922_v8  ;;  %2598 = vmatpush.msrb.mxu3 %v9923_v54  ;;  %v9982_v8 = vld [vmem:[#allocation136_spill] sm:$0xff]  ;;  %v9983_v54 = vld [vmem:[#allocation137_spill] sm:$0xff] }
 0x43f   :  { %2539 = vmatpush.msra.mxu0 %v9924_v25  ;;  %2559 = vmatpush.msra.mxu1 %v9925_v62  ;;  %v9984_v25 = vld [vmem:[#allocation138_spill] sm:$0xff]  ;;  %v9985_v62 = vld [vmem:[#allocation139_spill] sm:$0xff] }
 0x440   :  { %2579 = vmatpush.msrb.mxu2 %v9926_v60  ;;  %2599 = vmatpush.msrb.mxu3 %v9927_v7  ;;  %v9986_v60 = vld [vmem:[#allocation140_spill] sm:$0xff]  ;;  %v9987_v7 = vld [vmem:[#allocation141_spill] sm:$0xff] }
 0x441   :  { %2540 = vmatpush.msra.mxu0 %v9928_v51  ;;  %2560 = vmatpush.msra.mxu1 %v9929_v48  ;;  %v9988_v51 = vld [vmem:[#allocation142_spill] sm:$0xff]  ;;  %v9989_v48 = vld [vmem:[#allocation143_spill] sm:$0xff] }
 0x442   :  { %2580 = vmatpush.msrb.mxu2 %v9930_v4  ;;  %2600 = vmatpush.msrb.mxu3 %v9931_v12  ;;  %v9990_v4 = vld [vmem:[#allocation144_spill] sm:$0xff]  ;;  %v9991_v12 = vld [vmem:[#allocation145_spill] sm:$0xff] }
 0x443   :  { %2541 = vmatpush.msra.mxu0 %v9932_v44  ;;  %2561 = vmatpush.msra.mxu1 %v9933_v16  ;;  %v9992_v44 = vld [vmem:[#allocation146_spill] sm:$0xff]  ;;  %v9993_v16 = vld [vmem:[#allocation147_spill] sm:$0xff] }
 0x444   :  { %2581 = vmatpush.msrb.mxu2 %v9934_v46  ;;  %2601 = vmatpush.msrb.mxu3 %v9935_v24  ;;  %v9994_v46 = vld [vmem:[#allocation148_spill] sm:$0xff]  ;;  %v9995_v24 = vld [vmem:[#allocation149_spill] sm:$0xff] }
 0x445   :  { %2542 = vmatpush.msra.mxu0 %v9936_v14  ;;  %2562 = vmatpush.msra.mxu1 %v9937_v15  ;;  %v9996_v14 = vld [vmem:[#allocation151_spill] sm:$0xff]  ;;  %v9997_v15 = vld [vmem:[#allocation156_spill] sm:$0xff] }
 0x446   :  { %2582 = vmatpush.msrb.mxu2 %v9938_v10  ;;  %2602 = vmatpush.msrb.mxu3 %v9939_v19  ;;  %v9998_v10 = vld [vmem:[#allocation157_spill] sm:$0xff]  ;;  %v9999_v19 = vld [vmem:[#allocation158_spill] sm:$0xff] }
 0x447   :  { %2543 = vmatpush.msra.mxu0 %v9940_v9  ;;  %2563 = vmatpush.msra.mxu1 %v9941_v27  ;;  %v10000_v9 = vld [vmem:[#allocation159_spill] sm:$0xff]  ;;  %v10001_v27 = vld [vmem:[#allocation160_spill] sm:$0xff] }
 0x448   :  { %2583 = vmatpush.msrb.mxu2 %v9942_v20  ;;  %2603 = vmatpush.msrb.mxu3 %v9943_v2  ;;  %v10002_v20 = vld [vmem:[#allocation161_spill] sm:$0xff]  ;;  %v10003_v2 = vld [vmem:[#allocation162_spill] sm:$0xff] }
 0x449   :  { %2544 = vmatpush.msra.mxu0 %v9944_v3  ;;  %2564 = vmatpush.msra.mxu1 %v9945_v34  ;;  %v10004_v3 = vld [vmem:[#allocation163_spill] sm:$0xff]  ;;  %v10005_v34 = vld [vmem:[#allocation164_spill] sm:$0xff] }
 0x44a   :  { %2584 = vmatpush.msrb.mxu2 %v9946_v59  ;;  %2604 = vmatpush.msrb.mxu3 %v9947_v31  ;;  %v10006_v59 = vld [vmem:[#allocation165_spill] sm:$0xff]  ;;  %v10007_v31 = vld [vmem:[#allocation166_spill] sm:$0xff] }
 0x44b   :  { %2545 = vmatpush.msra.mxu0 %v9948_v55  ;;  %2565 = vmatpush.msra.mxu1 %v9949_v38  ;;  %v10008_v55 = vld [vmem:[#allocation167_spill] sm:$0xff]  ;;  %v10009_v38 = vld [vmem:[#allocation168_spill] sm:$0xff] }
 0x44c   :  { %2585 = vmatpush.msrb.mxu2 %v9950_v33  ;;  %2605 = vmatpush.msrb.mxu3 %v9951_v5  ;;  %v10010_v33 = vld [vmem:[#allocation169_spill] sm:$0xff]  ;;  %v10011_v5 = vld [vmem:[#allocation170_spill] sm:$0xff] }
 0x44d   :  { %2546 = vmatpush.msra.mxu0 %v9952_v26  ;;  %2566 = vmatpush.msra.mxu1 %v9953_v28  ;;  %v10012_v26 = vld [vmem:[#allocation171_spill] sm:$0xff]  ;;  %v10013_v28 = vld [vmem:[#allocation172_spill] sm:$0xff] }
 0x44e   :  { %2586 = vmatpush.msrb.mxu2 %v9954_v13  ;;  %2606 = vmatpush.msrb.mxu3 %v9955_v0  ;;  %v10014_v13 = vld [vmem:[#allocation173_spill] sm:$0xff]  ;;  %v10015_v0 = vld [vmem:[#allocation174_spill] sm:$0xff] }
 0x44f   :  { %2547 = vmatpush.msra.mxu0 %v9956_v40  ;;  %2567 = vmatpush.msra.mxu1 %v9957_v35  ;;  %v10016_v40 = vld [vmem:[#allocation175_spill] sm:$0xff]  ;;  %v10017_v35 = vld [vmem:[#allocation176_spill] sm:$0xff] }
 0x450   :  { %2587 = vmatpush.msrb.mxu2 %v9958_v63  ;;  %2607 = vmatpush.msrb.mxu3 %v9959_v56  ;;  %v10018_v63 = vld [vmem:[#allocation177_spill] sm:$0xff]  ;;  %v10019_v56 = vld [vmem:[#allocation178_spill] sm:$0xff] }
 0x451   :  { %2615 = vmatpush.msrb.mxu0 %v9960_v52  ;;  %2635 = vmatpush.msrb.mxu1 %v9961_v21  ;;  %v10020_v52 = vld [vmem:[#allocation179_spill] sm:$0xff]  ;;  %v10021_v21 = vld [vmem:[#allocation180_spill] sm:$0xff] }
 0x452   :  { %2655 = vmatpush.msra.mxu2 %v9962_v45  ;;  %2675 = vmatpush.msra.mxu3 %v9963_v17  ;;  %v10022_v45 = vld [vmem:[#allocation181_spill] sm:$0xff]  ;;  %v10023_v17 = vld [vmem:[#allocation150_spill] sm:$0xff] }
 0x453   :  { %2616 = vmatpush.msrb.mxu0 %v9964_v36  ;;  %2636 = vmatpush.msrb.mxu1 %v9965_v37 }
 0x454   :  { %2656 = vmatpush.msra.mxu2 %v9966_v39  ;;  %2676 = vmatpush.msra.mxu3 %v9967_v42 }
 0x455   :  { %2617 = vmatpush.msrb.mxu0 %v9968_v30  ;;  %2637 = vmatpush.msrb.mxu1 %v9969_v23 }
 0x456   :  { %2657 = vmatpush.msra.mxu2 %v9970_v43  ;;  %2677 = vmatpush.msra.mxu3 %v9971_v47  ;;  %v10024_v47 = vld [vmem:[#allocation15_spill] sm:$0xff] }
 0x457   :  { %2618 = vmatpush.msrb.mxu0 %v9972_v29  ;;  %2638 = vmatpush.msrb.mxu1 %v9973_v50  ;;  %v10025_v50 = vld [vmem:[#allocation17_spill] sm:$0xff] }
 0x458   :  { %2658 = vmatpush.msra.mxu2 %v9974_v22  ;;  %2678 = vmatpush.msra.mxu3 %v9975_v18 }
 0x459   :  { %2619 = vmatpush.msrb.mxu0 %v9976_v53  ;;  %2639 = vmatpush.msrb.mxu1 %v9977_v57 }
 0x45a   :  { %2659 = vmatpush.msra.mxu2 %v9978_v58  ;;  %2679 = vmatpush.msra.mxu3 %v9979_v61 }
 0x45b   :  { %2620 = vmatpush.msrb.mxu0 %v9980_v11  ;;  %2640 = vmatpush.msrb.mxu1 %v9981_v49  ;;  %v10026_v11 = vld [vmem:[#allocation12_spill] sm:$0xff] }
 0x45c   :  { %2660 = vmatpush.msra.mxu2 %v9982_v8  ;;  %2680 = vmatpush.msra.mxu3 %v9983_v54 }
 0x45d   :  { %2621 = vmatpush.msrb.mxu0 %v9984_v25  ;;  %2641 = vmatpush.msrb.mxu1 %v9985_v62 }
 0x45e   :  { %2661 = vmatpush.msra.mxu2 %v9986_v60  ;;  %2681 = vmatpush.msra.mxu3 %v9987_v7 }
 0x45f   :  { %2622 = vmatpush.msrb.mxu0 %v9988_v51  ;;  %2642 = vmatpush.msrb.mxu1 %v9989_v48 }
 0x460   :  { %2662 = vmatpush.msra.mxu2 %v9990_v4  ;;  %2682 = vmatpush.msra.mxu3 %v9991_v12 }
 0x461   :  { %2623 = vmatpush.msrb.mxu0 %v9992_v44  ;;  %2643 = vmatpush.msrb.mxu1 %v9993_v16  ;;  %v10027_v16 = vld [vmem:[#allocation154_spill] sm:$0xff] }
 0x462   :  { %2663 = vmatpush.msra.mxu2 %v9994_v46  ;;  %2683 = vmatpush.msra.mxu3 %v9995_v24  ;;  %v10028_v24 = vld [vmem:[#allocation134_spill] sm:$0xff] }
 0x463   :  { %2624 = vmatpush.msrb.mxu0 %v9996_v14  ;;  %2644 = vmatpush.msrb.mxu1 %v9997_v15 }
 0x464   :  { %2664 = vmatpush.msra.mxu2 %v9998_v10  ;;  %2684 = vmatpush.msra.mxu3 %v9999_v19 }
 0x465   :  { %2625 = vmatpush.msrb.mxu0 %v10000_v9  ;;  %2645 = vmatpush.msrb.mxu1 %v10001_v27  ;;  %v10029_v27 = vld [vmem:[#allocation18_spill] sm:$0xff] }
 0x466   :  { %2665 = vmatpush.msra.mxu2 %v10002_v20  ;;  %2685 = vmatpush.msra.mxu3 %v10003_v2 }
 0x467   :  { %2626 = vmatpush.msrb.mxu0 %v10004_v3  ;;  %2646 = vmatpush.msrb.mxu1 %v10005_v34 }
 0x468   :  { %2666 = vmatpush.msra.mxu2 %v10006_v59  ;;  %2686 = vmatpush.msra.mxu3 %v10007_v31 }
 0x469   :  { %2627 = vmatpush.msrb.mxu0 %v10008_v55  ;;  %2647 = vmatpush.msrb.mxu1 %v10009_v38 }
 0x46a   :  { %2667 = vmatpush.msra.mxu2 %v10010_v33  ;;  %2687 = vmatpush.msra.mxu3 %v10011_v5 }
 0x46b   :  { %2628 = vmatpush.msrb.mxu0 %v10012_v26  ;;  %2648 = vmatpush.msrb.mxu1 %v10013_v28 }
 0x46c   :  { %2668 = vmatpush.msra.mxu2 %v10014_v13  ;;  %2688 = vmatpush.msra.mxu3 %v10015_v0 }
 0x46d   :  { %2629 = vmatpush.msrb.mxu0 %v10016_v40  ;;  %2649 = vmatpush.msrb.mxu1 %v10017_v35 }
 0x46e   :  { %2669 = vmatpush.msra.mxu2 %v10018_v63  ;;  %2689 = vmatpush.msra.mxu3 %v10019_v56 }
 0x46f   :  { %2630 = vmatpush.msrb.mxu0 %v10020_v52  ;;  %2650 = vmatpush.msrb.mxu1 %v10021_v21 }
 0x470   :  { %2670 = vmatpush.msra.mxu2 %v10022_v45  ;;  %2690 = vmatpush.msra.mxu3 %v10023_v17 }
 0x488   :  { %v2160_v36 = vpop.f32.mrf.mxu0  ;;  %v2180_v37 = vpop.f32.mrf.mxu1 }
 0x48f   :  { %v2200_v39 = vpop.f32.mrf.mxu2  ;;  %v2220_v18 = vpop.f32.mrf.mxu3 }
 0x49e   :  { %v2240_v42 = vpop.f32.mrf.mxu0  ;;  %v2260_v30 = vpop.f32.mrf.mxu1 }
 0x49f   :  { %v2241_v23 = vadd.f32 %v2240_v42, %v2160_v36  ;;  %v2261_v43 = vadd.f32 %v2260_v30, %v2180_v37 }
 0x4a1   :  { %v2303_v29 = vadd.f32 %v2241_v23, %v10024_v47  ;;  %v2304_v22 = vadd.f32 %v2261_v43, %v10025_v50 }
 0x4a3   :  { %v3650_v53 = vmul.f32 -1.442695, %v2303_v29  ;;  %v3651_v57 = vmul.f32 -1.442695, %v2304_v22 }
 0x4a5   :  { %3826 = vpow2.f32 %v3650_v53  ;;  %v2280_v58 = vpop.f32.mrf.mxu2  ;;  %v2300_v25 = vpop.f32.mrf.mxu3 }
 0x4a6   :  { %3828 = vpow2.f32 %v3651_v57  ;;  %v2281_v61 = vadd.f32 %v2280_v58, %v2200_v39  ;;  %v2301_v44 = vadd.f32 %v2300_v25, %v2220_v18 }
 0x4a8   :  { %v2305_v49 = vadd.f32 %v2281_v61, %v10026_v11  ;;  %v2306_v20 = vadd.f32 %v2301_v44, %v10029_v27 }
 0x4aa   :  { %v3652_v8 = vmul.f32 -1.442695, %v2305_v49 }
 0x4ab   :  { %v3827_v54 = vpop.eup %3826 }
 0x4ac   :  { %v3829_v62 = vpop.eup %3828  ;;  %v2316_v60 = vadd.f32 1.0, %v3827_v54  ;;  %3830 = vpow2.f32 %v3652_v8  ;;  %v2387_v7 = vpop.f32.mrf.mxu0 }
 0x4ad   :  { %v2407_v51 = vpop.f32.mrf.mxu1  ;;  %v2317_v48 = vadd.f32 1.0, %v3829_v62  ;;  %v2454_v4 = vrot.slane %v2387_v7, 6 }
 0x4ae   :  { %v2455_v12 = vrot.slane %v2407_v51, 6  ;;  %3832 = vrcp.f32 %v2316_v60  ;;  %v2328_v5 = vand.u32 2147483647, %v2316_v60  ;;  %v2330_v13 = vand.u32 2147483648, %v2316_v60 }
 0x4af   :  { %3834 = vrcp.f32 %v2317_v48  ;;  %v2462_v46 = vadd.f32 %v2454_v4, %v10027_v16  ;;  %v2345_v28 = vand.u32 2147483648, %v2317_v48  ;;  %v2343_v35 = vand.u32 2147483647, %v2317_v48 }
 0x4b0   :  { %v2463_v14 = vadd.f32 %v2455_v12, %v10028_v24  ;;  %vm2324_vm0 = vweird.f32 %v2316_v60  ;;  %vm2339_vm1 = vweird.f32 %v2317_v48  ;;  %vm7439_vm2 = vcmp.eq.f32.partialorder %v2328_v5, 8.507059e+37 }
 0x4b1   :  { %v3653_v10 = vmul.f32 -1.442695, %v2462_v46  ;;  %v2346_v39 = vor.u32 1.1754944e-38, %v2345_v28  ;;  %v2331_v30 = vor.u32 1.1754944e-38, %v2330_v13  ;;  %vm2344_vm5 = vcmp.eq.f32.partialorder %v2343_v35, 8.507059e+37 }
 0x4b2   :  { %v3831_v15 = vpop.eup %3830  ;;  %v3654_v19 = vmul.f32 -1.442695, %v2463_v14 }
 0x4b3   :  { %v7432_v9 = vadd.f32 1.0, %v3831_v15  ;;  %v2427_v2 = vpop.f32.mrf.mxu2  ;;  %3836 = vpow2.f32 %v3653_v10  ;;  %v2447_v36 = vpop.f32.mrf.mxu3  ;;  %v7565_v15 = vld [vmem:[#allocation2 + $0x178] sm:$0xff] }
 0x4b4   :  { %v3833_v3 = vpop.eup %3832  ;;  %v2456_v34 = vrot.slane %v2427_v2, 6  ;;  %v2457_v58 = vrot.slane %v2447_v36, 6 }
 0x4b5   :  { %v3835_v59 = vpop.eup %3834  ;;  %v2320_v31 = vmul.f32 %v3833_v3, %v2316_v60  ;;  %3838 = vrcp.f32 %v7432_v9  ;;  %vm2325_vm14 = vweird.f32 %v3833_v3  ;;  %v2360_v4 = vand.u32 2147483648, %v7432_v9 }
 0x4b6   :  { %v2335_v55 = vmul.f32 %v3835_v59, %v2317_v48  ;;  %3840 = vpow2.f32 %v3654_v19  ;;  %v2464_v38 = vadd.f32 %v2456_v34, %v7190_v6  ;;  %vm2340_vm15 = vweird.f32 %v3835_v59  ;;  %vm2326_vm3 = vmor %vm2324_vm0, %vm2325_vm14 }
 0x4b7   :  { %v2321_v33 = vsub.f32 1.0, %v2320_v31  ;;  %3842 = vtanh.f32 %v2306_v20  ;;  %vm2341_vm4 = vmor %vm2339_vm1, %vm2340_vm15  ;;  %v2465_v7 = vadd.f32 %v2457_v58, %v7208_v1  ;;  %v2358_v48 = vand.u32 2147483647, %v7432_v9  ;;  %v7519_v58 = vld [vmem:[#allocation2 + $0x1a0] sm:$0xff] }
 0x4b8   :  { %v2336_v26 = vsub.f32 1.0, %v2335_v55  ;;  %v3655_v0 = vmul.f32 -1.442695, %v2464_v38  ;;  %vm2354_vm7 = vweird.f32 %v7432_v9  ;;  %v2361_v20 = vor.u32 1.1754944e-38, %v2360_v4  ;;  %v7547_v4 = vld [vmem:[#allocation2 + $0x190] sm:$0xff] }
 0x4b9   :  { %v2322_v40 = vmul.f32 %v3833_v3, %v2321_v33  ;;  %v3837_v63 = vpop.eup %3836  ;;  %vm2359_vm9 = vcmp.eq.f32.partialorder %v2358_v48, 8.507059e+37  ;;  %v7655_v48 = vld [vmem:[#allocation2 + $0x98] sm:$0xff] }
 0x4ba   :  { %v2337_v56 = vmul.f32 %v3835_v59, %v2336_v26  ;;  %3844 = vpow2.f32 %v3655_v0  ;;  %v7443_v17 = vadd.f32 1.0, %v3837_v63  ;;  %10050 = vst [vmem:[#allocation28_spill] sm:$0xff] %v7655_v48 }
 0x4bb   :  { %v7437_v52 = vpop.eup %3838  ;;  %v2323_v21 = vadd.f32 %v3833_v3, %v2322_v40 }
 0x4bc   :  { %v3841_v37 = vpop.eup %3840  ;;  %v2350_v42 = vmul.f32 %v7437_v52, %v7432_v9  ;;  %v2338_v23 = vadd.f32 %v3835_v59, %v2337_v56  ;;  %3846 = vrcp.f32 %v7443_v17  ;;  %vm2355_vm6 = vweird.f32 %v7437_v52 }
 0x4bd   :  { %v3843_v43 = vpop.eup %3842  ;;  %v2327_v29 = vsel %vm2326_vm3, %v3833_v3, %v2323_v21  ;;  %v7450_v22 = vadd.f32 1.0, %v3841_v37  ;;  %vm7471_vm8 = vmor %vm2354_vm7, %vm2355_vm6  ;;  %v2489_v10 = vand.u32 2147483648, %v7443_v17  ;;  %v2487_v9 = vand.u32 2147483647, %v7443_v17 }
 0x4be   :  { %v2351_v18 = vsub.f32 1.0, %v2350_v42  ;;  %v2332_v53 = vsel %vm7439_vm2, %v2331_v30, %v2327_v29  ;;  %v2342_v57 = vsel %vm2341_vm4, %v3835_v59, %v2338_v23  ;;  %vm2483_vm12 = vweird.f32 %v7443_v17  ;;  %v7494_v42 = vld [vmem:[#allocation2 + $0x1e8] sm:$0xff]  ;;  %v7497_v23 = vld [vmem:[#allocation2 + $0x1f0] sm:$0xff] }
 0x4bf   :  { %v2347_v61 = vsel %vm2344_vm5, %v2346_v39, %v2342_v57  ;;  %v2366_v49 = vmul.f32 %v3843_v43, %v2332_v53  ;;  %3848 = vrcp.f32 %v7450_v22  ;;  %v2504_v59 = vand.u32 2147483648, %v7450_v22  ;;  %v7491_v39 = vld [vmem:[#allocation2 + $0x1e0] sm:$0xff]  ;;  %v7506_v29 = vld [vmem:[#allocation2 + $0x1c8] sm:$0xff]  ;;  %v7514_v53 = vld [vmem:[#allocation2 + $0x1d8] sm:$0xff] }
 0x4c0   :  { %v3845_v8 = vpop.eup %3844  ;;  %v2365_v54 = vmul.f32 %v2347_v61, %v7196_v41  ;;  %v2352_v62 = vmul.f32 %v7437_v52, %v2351_v18  ;;  %v2502_v31 = vand.u32 2147483647, %v7450_v22  ;;  %vm2498_vm13 = vweird.f32 %v7450_v22  ;;  %v7503_v43 = vld [vmem:[#allocation2 + $0x1c0] sm:$0xff]  ;;  %v7511_v18 = vld [vmem:[#allocation2 + $0x1d0] sm:$0xff]  ;;  %v7522_v61 = vld [vmem:[#allocation2 + $0x1a8] sm:$0xff] }
 0x4c1   :  { %v7456_v25 = vadd.f32 1.0, %v3845_v8  ;;  %v2490_v28 = vor.u32 1.1754944e-38, %v2489_v10  ;;  %vm2488_vm15 = vcmp.eq.f32.partialorder %v2487_v9, 8.507059e+37  ;;  %v2505_v56 = vor.u32 1.1754944e-38, %v2504_v59  ;;  %v7527_v8 = vld [vmem:[#allocation2 + $0x1b0] sm:$0xff]  ;;  %v7568_v10 = vld [vmem:[#allocation2 + $0x140] sm:$0xff] }
 0x4c2   :  { %v7459_v60 = vadd.f32 %v2366_v49, %v2365_v54  ;;  %v3847_v51 = vpop.eup %3846  ;;  %v2353_v44 = vadd.f32 %v7437_v52, %v2352_v62  ;;  %v2525_v21 = vrot.slane %v7244_v32, 6  ;;  %vm2503_vm1 = vcmp.eq.f32.partialorder %v2502_v31, 8.507059e+37  ;;  %v7500_v32 = vld [vmem:[#allocation2 + $0x1f8] sm:$0xff]  ;;  %v7580_v59 = vld [vmem:[#allocation2 + $0x120] sm:$0xff]  ;;  %v7583_v31 = vld [vmem:[#allocation2 + $0x128] sm:$0xff] }
 0x4c3   :  { %3850 = vrcp.f32 %v7456_v25  ;;  %v2479_v41 = vmul.f32 %v3847_v51, %v7443_v17  ;;  %vm2484_vm10 = vweird.f32 %v3847_v51  ;;  %v2519_v49 = vand.u32 2147483648, %v7456_v25  ;;  %v7530_v54 = vld [vmem:[#allocation2 + $0x1b8] sm:$0xff] }
 0x4c4   :  { %3852 = vtanh.f32 %v7459_v60  ;;  %v2357_v19 = vsel %vm7471_vm8, %v7437_v52, %v2353_v44  ;;  %vm2485_vm14 = vmor %vm2483_vm12, %vm2484_vm10  ;;  %vm2513_vm3 = vweird.f32 %v7456_v25  ;;  %v2517_v62 = vand.u32 2147483647, %v7456_v25  ;;  %v7559_v44 = vld [vmem:[#allocation2 + $0x168] sm:$0xff]  ;;  %v7577_v9 = vld [vmem:[#allocation2 + $0x158] sm:$0xff] }
 0x4c5   :  { %v3849_v12 = vpop.eup %3848  ;;  %v2480_v46 = vsub.f32 1.0, %v2479_v41  ;;  %3854 = vtanh.f32 %v2465_v7  ;;  %v2362_v26 = vsel %vm2359_vm9, %v2361_v20, %v2357_v19  ;;  %v7535_v7 = vld [vmem:[#allocation2 + $0x180] sm:$0xff]  ;;  %v7550_v41 = vld [vmem:[#allocation2 + $0x198] sm:$0xff]  ;;  %v7571_v19 = vld [vmem:[#allocation2 + $0x148] sm:$0xff] }
 0x4c6   :  { %v2494_v14 = vmul.f32 %v3849_v12, %v7450_v22  ;;  %vm2499_vm11 = vweird.f32 %v3849_v12  ;;  %vm2518_vm5 = vcmp.eq.f32.partialorder %v2517_v62, 8.507059e+37  ;;  %v7652_v62 = vld [vmem:[#allocation2 + $0x90] sm:$0xff] }
 0x4c7   :  { %v2481_v3 = vmul.f32 %v3847_v51, %v2480_v46  ;;  %vm2500_vm0 = vmor %vm2498_vm13, %vm2499_vm11  ;;  %v2520_v46 = vor.u32 1.1754944e-38, %v2519_v49  ;;  %v7649_v49 = vld [vmem:[#allocation2 + $0x88] sm:$0xff]  ;;  %10049 = vst [vmem:[#allocation20_spill] sm:$0xff] %v7652_v62 }
 0x4c8   :  { %v2495_v2 = vsub.f32 1.0, %v2494_v14  ;;  %v7562_v14 = vld [vmem:[#allocation2 + $0x170] sm:$0xff]  ;;  %10048 = vst [vmem:[#allocation27_spill] sm:$0xff] %v7649_v49 }
 0x4c9   :  { %v7480_v34 = vpop.eup %3850  ;;  %v2482_v5 = vadd.f32 %v3847_v51, %v2481_v3  ;;  %v7574_v3 = vld [vmem:[#allocation2 + $0x150] sm:$0xff] }
 0x4ca   :  { %v3853_v55 = vpop.eup %3852  ;;  %v2496_v38 = vmul.f32 %v3849_v12, %v2495_v2  ;;  %v2509_v33 = vmul.f32 %v7480_v34, %v7456_v25  ;;  %vm2514_vm2 = vweird.f32 %v7480_v34 }
 0x4cb   :  { %v2369_v13 = vmul.f32 %v3853_v55, %v2362_v26  ;;  %v3855_v0 = vpop.eup %3854  ;;  %v2486_v35 = vsel %vm2485_vm14, %v3847_v51, %v2482_v5  ;;  %v7538_v51 = vld [vmem:[#allocation2 + $0x188] sm:$0xff]  ;;  %vm7543_vm4 = vmor %vm2513_vm3, %vm2514_vm2  ;;  %v7586_v55 = vld [vmem:[#allocation2 + $0x130] sm:$0xff] }
 0x4cc   :  { %v2510_v40 = vsub.f32 1.0, %v2509_v33  ;;  %v2497_v63 = vadd.f32 %v3849_v12, %v2496_v38  ;;  %v2491_v52 = vsel %vm2488_vm15, %v2490_v28, %v2486_v35  ;;  %v7589_v38 = vld [vmem:[#allocation2 + $0x138] sm:$0xff]  ;;  %v7594_v5 = vld [vmem:[#allocation2 + $0x100] sm:$0xff]  ;;  %v7597_v26 = vld [vmem:[#allocation2 + $0x108] sm:$0xff] }
 0x4cd   :  { %2548 = vmatmul.f32.vlgmr.msra.gmra.mxu0 %v2369_v13  ;;  %2568 = vmatmul.f32.vlgmr.msra.gmra.mxu1 %v2369_v13  ;;  %v2528_v17 = vmul.f32 %v3855_v0, %v2491_v52  ;;  %v7600_v28 = vld [vmem:[#allocation2 + $0x110] sm:$0xff]  ;;  %v7610_v0 = vld [vmem:[#allocation2 + $0xe0] sm:$0xff]  ;;  %v7625_v52 = vld [vmem:[#allocation2 + $0xc8] sm:$0xff] }
 0x4ce   :  { %v2501_v45 = vsel %vm2500_vm0, %v3849_v12, %v2497_v63  ;;  %2588 = vmatmul.f32.vlgmr.msrb.gmra.mxu2 %v2369_v13  ;;  %2608 = vmatmul.f32.vlgmr.msrb.gmra.mxu3 %v2369_v13  ;;  %v2511_v36 = vmul.f32 %v7480_v34, %v2510_v40  ;;  %v7556_v12 = vld [vmem:[#allocation2 + $0x160] sm:$0xff]  ;;  %v7603_v13 = vld [vmem:[#allocation2 + $0x118] sm:$0xff]  ;;  %v7613_v40 = vld [vmem:[#allocation2 + $0xe8] sm:$0xff]  ;;  %10040 = vst [vmem:[#allocation21_spill] sm:$0xff] %v7625_v52 }
 0x4cf   :  { %v2506_v37 = vsel %vm2503_vm1, %v2505_v56, %v2501_v45  ;;  %2762 = vmatpush.msra.mxu0 %v7491_v39  ;;  %2782 = vmatpush.msra.mxu1 %v7494_v42  ;;  %10036 = vst [vmem:[#allocation152_spill] sm:$0xff] %v7613_v40  ;;  %v7616_v35 = vld [vmem:[#allocation2 + $0xf0] sm:$0xff]  ;;  %v7619_v63 = vld [vmem:[#allocation2 + $0xf8] sm:$0xff]  ;;  %v7622_v56 = vld [vmem:[#allocation2 + $0xc0] sm:$0xff] }
 0x4d0   :  { %v2527_v30 = vmul.f32 %v2525_v21, %v2506_v37  ;;  %2802 = vmatpush.msrb.mxu2 %v7497_v23  ;;  %2822 = vmatpush.msrb.mxu3 %v7500_v32  ;;  %v2512_v57 = vadd.f32 %v7480_v34, %v2511_v36  ;;  %10037 = vst [vmem:[#allocation153_spill] sm:$0xff] %v7616_v35  ;;  %v7628_v21 = vld [vmem:[#allocation2 + $0xd0] sm:$0xff]  ;;  %v7631_v45 = vld [vmem:[#allocation2 + $0xd8] sm:$0xff]  ;;  %v7637_v36 = vld [vmem:[#allocation2 + $0xa8] sm:$0xff] }
 0x4d1   :  { %2763 = vmatpush.msra.mxu0 %v7503_v43  ;;  %2783 = vmatpush.msra.mxu1 %v7506_v29  ;;  %10038 = vst [vmem:[#allocation155_spill] sm:$0xff] %v7619_v63  ;;  %v7640_v37 = vld [vmem:[#allocation2 + $0xb0] sm:$0xff] }
 0x4d2   :  { %v7509_v22 = vadd.f32 %v2528_v17, %v2527_v30  ;;  %2803 = vmatpush.msrb.mxu2 %v7511_v18  ;;  %2823 = vmatpush.msrb.mxu3 %v7514_v53  ;;  %v2516_v25 = vsel %vm7543_vm4, %v7480_v34, %v2512_v57  ;;  %10039 = vst [vmem:[#allocation16_spill] sm:$0xff] %v7622_v56  ;;  %v7634_v17 = vld [vmem:[#allocation2 + $0xa0] sm:$0xff]  ;;  %v7643_v30 = vld [vmem:[#allocation2 + $0xb8] sm:$0xff] }
 0x4d3   :  { %2764 = vmatpush.msra.mxu0 %v7519_v58  ;;  %2784 = vmatpush.msra.mxu1 %v7522_v61  ;;  %v2521_v2 = vsel %vm2518_vm5, %v2520_v46, %v2516_v25  ;;  %10041 = vst [vmem:[#allocation13_spill] sm:$0xff] %v7628_v21  ;;  %v7646_v57 = vld [vmem:[#allocation2 + $0x80] sm:$0xff]  ;;  %v7661_v46 = vld [vmem:[#allocation2 + $0x68] sm:$0xff] }
 0x4d4   :  { %3856 = vtanh.f32 %v7509_v22  ;;  %2804 = vmatpush.msrb.mxu2 %v7527_v8  ;;  %2824 = vmatpush.msrb.mxu3 %v7530_v54  ;;  %10042 = vst [vmem:[#allocation22_spill] sm:$0xff] %v7631_v45  ;;  %v7658_v25 = vld [vmem:[#allocation2 + $0x60] sm:$0xff] }
 0x4d5   :  { %2765 = vmatpush.msra.mxu0 %v7535_v7  ;;  %2785 = vmatpush.msra.mxu1 %v7538_v51  ;;  %10043 = vst [vmem:[#allocation19_spill] sm:$0xff] %v7634_v17 }
 0x4d6   :  { %2805 = vmatpush.msrb.mxu2 %v7547_v4  ;;  %2825 = vmatpush.msrb.mxu3 %v7550_v41  ;;  %10044 = vst [vmem:[#allocation25_spill] sm:$0xff] %v7637_v36 }
 0x4d7   :  { %2766 = vmatpush.msra.mxu0 %v7556_v12  ;;  %2786 = vmatpush.msra.mxu1 %v7559_v44  ;;  %10045 = vst [vmem:[#allocation14_spill] sm:$0xff] %v7640_v37 }
 0x4d8   :  { %2806 = vmatpush.msrb.mxu2 %v7562_v14  ;;  %2826 = vmatpush.msrb.mxu3 %v7565_v15  ;;  %10046 = vst [vmem:[#allocation26_spill] sm:$0xff] %v7643_v30 }
 0x4d9   :  { %2767 = vmatpush.msra.mxu0 %v7568_v10  ;;  %2787 = vmatpush.msra.mxu1 %v7571_v19  ;;  %10047 = vst [vmem:[#allocation23_spill] sm:$0xff] %v7646_v57 }
 0x4da   :  { %v3857_v20 = vpop.eup %3856  ;;  %2807 = vmatpush.msrb.mxu2 %v7574_v3  ;;  %2827 = vmatpush.msrb.mxu3 %v7577_v9  ;;  %10051 = vst [vmem:[#allocation29_spill] sm:$0xff] %v7658_v25 }
 0x4db   :  { %v2531_v34 = vmul.f32 %v3857_v20, %v2521_v2  ;;  %2768 = vmatpush.msra.mxu0 %v7580_v59  ;;  %2788 = vmatpush.msra.mxu1 %v7583_v31  ;;  %10052 = vst [vmem:[#allocation30_spill] sm:$0xff] %v7661_v46  ;;  %v7664_v20 = vld [vmem:[#allocation2 + $0x70] sm:$0xff]  ;;  %v7667_v2 = vld [vmem:[#allocation2 + $0x78] sm:$0xff] }
 0x4dc   :  { %2808 = vmatpush.msrb.mxu2 %v7586_v55  ;;  %2828 = vmatpush.msrb.mxu3 %v7589_v38  ;;  %10053 = vst [vmem:[#allocation24_spill] sm:$0xff] %v7664_v20 }
 0x4dd   :  { %v7592_v33 = vrot.slane %v2531_v34, 2  ;;  %2769 = vmatpush.msra.mxu0 %v7594_v5  ;;  %2789 = vmatpush.msra.mxu1 %v7597_v26  ;;  %10054 = vst [vmem:[#allocation31_spill] sm:$0xff] %v7667_v2  ;;  %v7670_v34 = vld [vmem:[#allocation2 + $0x40] sm:$0xff] }
 0x4de   :  { %2809 = vmatpush.msrb.mxu2 %v7600_v28  ;;  %2829 = vmatpush.msrb.mxu3 %v7603_v13  ;;  %10055 = vst [vmem:[#allocation32_spill] sm:$0xff] %v7670_v34 }
 0x4df   :  { %2631 = vmatmul.f32.vlgmr.msrb.gmra.mxu0 %v7592_v33  ;;  %2651 = vmatmul.f32.vlgmr.msrb.gmra.mxu1 %v7592_v33 }
 0x4e0   :  { %2671 = vmatmul.f32.vlgmr.msra.gmra.mxu2 %v7592_v33  ;;  %2691 = vmatmul.f32.vlgmr.msra.gmra.mxu3 %v7592_v33 }
 0x4e1   :  { %2770 = vmatpush.msra.mxu0 %v7610_v0  ;;  %2790 = vmatpush.msra.mxu1 %v7613_v40 }
 0x4e2   :  { %2810 = vmatpush.msrb.mxu2 %v7616_v35  ;;  %2830 = vmatpush.msrb.mxu3 %v7619_v63 }
 0x4e3   :  { %2771 = vmatpush.msra.mxu0 %v7622_v56  ;;  %2791 = vmatpush.msra.mxu1 %v7625_v52 }
 0x4e4   :  { %2811 = vmatpush.msrb.mxu2 %v7628_v21  ;;  %2831 = vmatpush.msrb.mxu3 %v7631_v45 }
 0x4e5   :  { %2772 = vmatpush.msra.mxu0 %v7634_v17  ;;  %2792 = vmatpush.msra.mxu1 %v7637_v36 }
 0x4e6   :  { %2812 = vmatpush.msrb.mxu2 %v7640_v37  ;;  %2832 = vmatpush.msrb.mxu3 %v7643_v30 }
 0x4e7   :  { %2773 = vmatpush.msra.mxu0 %v7646_v57  ;;  %2793 = vmatpush.msra.mxu1 %v7649_v49 }
 0x4e8   :  { %2813 = vmatpush.msrb.mxu2 %v7652_v62  ;;  %2833 = vmatpush.msrb.mxu3 %v7655_v48  ;;  %v7673_v48 = vld [vmem:[#allocation2 + $0x48] sm:$0xff] }
 0x4e9   :  { %2774 = vmatpush.msra.mxu0 %v7658_v25  ;;  %2794 = vmatpush.msra.mxu1 %v7661_v46  ;;  %10056 = vst [vmem:[#allocation34_spill] sm:$0xff] %v7673_v48  ;;  %v7676_v25 = vld [vmem:[#allocation2 + $0x50] sm:$0xff]  ;;  %v7679_v46 = vld [vmem:[#allocation2 + $0x58] sm:$0xff] }
 0x4ea   :  { %2814 = vmatpush.msrb.mxu2 %v7664_v20  ;;  %2834 = vmatpush.msrb.mxu3 %v7667_v2  ;;  %10057 = vst [vmem:[#allocation33_spill] sm:$0xff] %v7676_v25  ;;  %v7682_v20 = vld [vmem:[#allocation2 + $0x20] sm:$0xff]  ;;  %v7685_v2 = vld [vmem:[#allocation2 + $0x28] sm:$0xff] }
 0x4eb   :  { %2775 = vmatpush.msra.mxu0 %v7670_v34  ;;  %2795 = vmatpush.msra.mxu1 %v7673_v48  ;;  %10058 = vst [vmem:[#allocation35_spill] sm:$0xff] %v7679_v46  ;;  %v7688_v34 = vld [vmem:[#allocation2 + $0x30] sm:$0xff]  ;;  %v7691_v48 = vld [vmem:[#allocation2 + $0x38] sm:$0xff] }
 0x4ec   :  { %2815 = vmatpush.msrb.mxu2 %v7676_v25  ;;  %2835 = vmatpush.msrb.mxu3 %v7679_v46  ;;  %10059 = vst [vmem:[#allocation36_spill] sm:$0xff] %v7682_v20  ;;  %v7694_v25 = vld [vmem:[#allocation2] sm:$0xff]  ;;  %v7697_v46 = vld [vmem:[#allocation2 + $0x8] sm:$0xff] }
 0x4ed   :  { %2776 = vmatpush.msra.mxu0 %v7682_v20  ;;  %10060 = vst [vmem:[#allocation38_spill] sm:$0xff] %v7685_v2  ;;  %2796 = vmatpush.msra.mxu1 %v7685_v2  ;;  %v7700_v20 = vld [vmem:[#allocation2 + $0x10] sm:$0xff]  ;;  %v7703_v2 = vld [vmem:[#allocation2 + $0x18] sm:$0xff] }
 0x4ee   :  { %10061 = vst [vmem:[#allocation37_spill] sm:$0xff] %v7688_v34  ;;  %2816 = vmatpush.msrb.mxu2 %v7688_v34  ;;  %2836 = vmatpush.msrb.mxu3 %v7691_v48 }
 0x4ef   :  { %10062 = vst [vmem:[#allocation39_spill] sm:$0xff] %v7691_v48  ;;  %2777 = vmatpush.msra.mxu0 %v7694_v25  ;;  %2797 = vmatpush.msra.mxu1 %v7697_v46  ;;  %v7722_v48 = vld [vmem:[#allocation6 + $0x1c0] sm:$0xff] }
 0x4f0   :  { %10063 = vst [vmem:[#allocation40_spill] sm:$0xff] %v7694_v25  ;;  %2817 = vmatpush.msrb.mxu2 %v7700_v20  ;;  %2837 = vmatpush.msrb.mxu3 %v7703_v2  ;;  %v7710_v25 = vld [vmem:[#allocation6 + $0x1e0] sm:$0xff] }
 0x4f1   :  { %10064 = vst [vmem:[#allocation42_spill] sm:$0xff] %v7697_v46  ;;  %2778 = vmatmul.f32.vlgmr.msra.gmra.mxu0 %v7592_v33  ;;  %2798 = vmatmul.f32.vlgmr.msra.gmra.mxu1 %v7592_v33  ;;  %v7713_v46 = vld [vmem:[#allocation6 + $0x1e8] sm:$0xff] }
 0x4f2   :  { %10065 = vst [vmem:[#allocation41_spill] sm:$0xff] %v7700_v20  ;;  %2818 = vmatmul.f32.vlgmr.msrb.gmra.mxu2 %v7592_v33  ;;  %2838 = vmatmul.f32.vlgmr.msrb.gmra.mxu3 %v7592_v33  ;;  %v7716_v20 = vld [vmem:[#allocation6 + $0x1f0] sm:$0xff]  ;;  %v7725_v33 = vld [vmem:[#allocation6 + $0x1c8] sm:$0xff] }
 0x4f3   :  { %10066 = vst [vmem:[#allocation43_spill] sm:$0xff] %v7703_v2  ;;  %2924 = vmatpush.msrb.mxu0 %v7710_v25  ;;  %2944 = vmatpush.msrb.mxu1 %v7713_v46  ;;  %v7719_v2 = vld [vmem:[#allocation6 + $0x1f8] sm:$0xff] }
 0x4f4   :  { %10067 = vst [vmem:[#allocation44_spill] sm:$0xff] %v7710_v25  ;;  %2964 = vmatpush.msra.mxu2 %v7716_v20  ;;  %2984 = vmatpush.msra.mxu3 %v7719_v2  ;;  %v7728_v25 = vld [vmem:[#allocation6 + $0x1d0] sm:$0xff] }
 0x4f5   :  { %10068 = vst [vmem:[#allocation45_spill] sm:$0xff] %v7713_v46  ;;  %2925 = vmatpush.msrb.mxu0 %v7722_v48  ;;  %2945 = vmatpush.msrb.mxu1 %v7725_v33  ;;  %v7731_v46 = vld [vmem:[#allocation6 + $0x1d8] sm:$0xff] }
 0x4f6   :  { %10069 = vst [vmem:[#allocation46_spill] sm:$0xff] %v7716_v20  ;;  %2965 = vmatpush.msra.mxu2 %v7728_v25  ;;  %2985 = vmatpush.msra.mxu3 %v7731_v46  ;;  %v7734_v20 = vld [vmem:[#allocation6 + $0x1a0] sm:$0xff] }
 0x4f7   :  { %10070 = vst [vmem:[#allocation47_spill] sm:$0xff] %v7719_v2  ;;  %2926 = vmatpush.msrb.mxu0 %v7734_v20  ;;  %v7737_v2 = vld [vmem:[#allocation6 + $0x1a8] sm:$0xff] }
 0x4f8   :  { %10071 = vst [vmem:[#allocation48_spill] sm:$0xff] %v7722_v48  ;;  %2946 = vmatpush.msrb.mxu1 %v7737_v2  ;;  %v7740_v48 = vld [vmem:[#allocation6 + $0x1b0] sm:$0xff] }
 0x4f9   :  { %10072 = vst [vmem:[#allocation49_spill] sm:$0xff] %v7725_v33  ;;  %2966 = vmatpush.msra.mxu2 %v7740_v48  ;;  %v7743_v33 = vld [vmem:[#allocation6 + $0x1b8] sm:$0xff] }
 0x4fa   :  { %10073 = vst [vmem:[#allocation50_spill] sm:$0xff] %v7728_v25  ;;  %2986 = vmatpush.msra.mxu3 %v7743_v33  ;;  %v7746_v25 = vld [vmem:[#allocation6 + $0x180] sm:$0xff] }
 0x4fb   :  { %10074 = vst [vmem:[#allocation51_spill] sm:$0xff] %v7731_v46  ;;  %2927 = vmatpush.msrb.mxu0 %v7746_v25  ;;  %v7749_v46 = vld [vmem:[#allocation6 + $0x188] sm:$0xff] }
 0x4fc   :  { %10075 = vst [vmem:[#allocation52_spill] sm:$0xff] %v7734_v20  ;;  %2947 = vmatpush.msrb.mxu1 %v7749_v46  ;;  %v7752_v20 = vld [vmem:[#allocation6 + $0x190] sm:$0xff] }
 0x4fd   :  { %10076 = vst [vmem:[#allocation53_spill] sm:$0xff] %v7737_v2  ;;  %2967 = vmatpush.msra.mxu2 %v7752_v20  ;;  %v7755_v2 = vld [vmem:[#allocation6 + $0x198] sm:$0xff] }
 0x4fe   :  { %10077 = vst [vmem:[#allocation54_spill] sm:$0xff] %v7740_v48  ;;  %2987 = vmatpush.msra.mxu3 %v7755_v2  ;;  %v7758_v48 = vld [vmem:[#allocation6 + $0x160] sm:$0xff] }
 0x4ff   :  { %10078 = vst [vmem:[#allocation55_spill] sm:$0xff] %v7743_v33  ;;  %2928 = vmatpush.msrb.mxu0 %v7758_v48  ;;  %v7761_v33 = vld [vmem:[#allocation6 + $0x168] sm:$0xff] }
 0x500   :  { %10079 = vst [vmem:[#allocation56_spill] sm:$0xff] %v7746_v25  ;;  %2948 = vmatpush.msrb.mxu1 %v7761_v33  ;;  %v7764_v25 = vld [vmem:[#allocation6 + $0x170] sm:$0xff] }
 0x501   :  { %10080 = vst [vmem:[#allocation57_spill] sm:$0xff] %v7749_v46  ;;  %2968 = vmatpush.msra.mxu2 %v7764_v25  ;;  %v7767_v46 = vld [vmem:[#allocation6 + $0x178] sm:$0xff] }
 0x502   :  { %10081 = vst [vmem:[#allocation58_spill] sm:$0xff] %v7752_v20  ;;  %2988 = vmatpush.msra.mxu3 %v7767_v46  ;;  %v7770_v20 = vld [vmem:[#allocation6 + $0x140] sm:$0xff] }
 0x503   :  { %10082 = vst [vmem:[#allocation59_spill] sm:$0xff] %v7755_v2  ;;  %2929 = vmatpush.msrb.mxu0 %v7770_v20  ;;  %v7773_v2 = vld [vmem:[#allocation6 + $0x148] sm:$0xff] }
 0x504   :  { %10083 = vst [vmem:[#allocation60_spill] sm:$0xff] %v7758_v48  ;;  %2949 = vmatpush.msrb.mxu1 %v7773_v2  ;;  %v7776_v48 = vld [vmem:[#allocation6 + $0x150] sm:$0xff] }
 0x505   :  { %10084 = vst [vmem:[#allocation61_spill] sm:$0xff] %v7761_v33  ;;  %2969 = vmatpush.msra.mxu2 %v7776_v48  ;;  %v7779_v33 = vld [vmem:[#allocation6 + $0x158] sm:$0xff] }
 0x506   :  { %10085 = vst [vmem:[#allocation62_spill] sm:$0xff] %v7764_v25  ;;  %2989 = vmatpush.msra.mxu3 %v7779_v33  ;;  %v7782_v25 = vld [vmem:[#allocation6 + $0x120] sm:$0xff] }
 0x507   :  { %10086 = vst [vmem:[#allocation63_spill] sm:$0xff] %v7767_v46  ;;  %2930 = vmatpush.msrb.mxu0 %v7782_v25  ;;  %v7785_v46 = vld [vmem:[#allocation6 + $0x128] sm:$0xff] }
 0x508   :  { %10087 = vst [vmem:[#allocation64_spill] sm:$0xff] %v7770_v20  ;;  %2950 = vmatpush.msrb.mxu1 %v7785_v46  ;;  %v7788_v20 = vld [vmem:[#allocation6 + $0x130] sm:$0xff] }
 0x509   :  { %10088 = vst [vmem:[#allocation65_spill] sm:$0xff] %v7773_v2  ;;  %2970 = vmatpush.msra.mxu2 %v7788_v20  ;;  %v7791_v2 = vld [vmem:[#allocation6 + $0x138] sm:$0xff] }
 0x50a   :  { %10089 = vst [vmem:[#allocation66_spill] sm:$0xff] %v7776_v48  ;;  %2990 = vmatpush.msra.mxu3 %v7791_v2  ;;  %v7794_v48 = vld [vmem:[#allocation6 + $0x100] sm:$0xff] }
 0x50b   :  { %10090 = vst [vmem:[#allocation67_spill] sm:$0xff] %v7779_v33  ;;  %2931 = vmatpush.msrb.mxu0 %v7794_v48  ;;  %v7797_v33 = vld [vmem:[#allocation6 + $0x108] sm:$0xff] }
 0x50c   :  { %10091 = vst [vmem:[#allocation68_spill] sm:$0xff] %v7782_v25  ;;  %2951 = vmatpush.msrb.mxu1 %v7797_v33  ;;  %v7800_v25 = vld [vmem:[#allocation6 + $0x110] sm:$0xff] }
 0x50d   :  { %10092 = vst [vmem:[#allocation69_spill] sm:$0xff] %v7785_v46  ;;  %2971 = vmatpush.msra.mxu2 %v7800_v25  ;;  %v7803_v46 = vld [vmem:[#allocation6 + $0x118] sm:$0xff] }
 0x50e   :  { %10093 = vst [vmem:[#allocation70_spill] sm:$0xff] %v7788_v20  ;;  %2991 = vmatpush.msra.mxu3 %v7803_v46  ;;  %v7806_v20 = vld [vmem:[#allocation6 + $0xe0] sm:$0xff] }
 0x50f   :  { %10094 = vst [vmem:[#allocation71_spill] sm:$0xff] %v7791_v2  ;;  %2932 = vmatpush.msrb.mxu0 %v7806_v20  ;;  %v7809_v2 = vld [vmem:[#allocation6 + $0xe8] sm:$0xff] }
 0x510   :  { %10095 = vst [vmem:[#allocation72_spill] sm:$0xff] %v7794_v48  ;;  %2952 = vmatpush.msrb.mxu1 %v7809_v2  ;;  %v7812_v48 = vld [vmem:[#allocation6 + $0xf0] sm:$0xff] }
 0x511   :  { %10096 = vst [vmem:[#allocation73_spill] sm:$0xff] %v7797_v33  ;;  %2972 = vmatpush.msra.mxu2 %v7812_v48  ;;  %v7815_v33 = vld [vmem:[#allocation6 + $0xf8] sm:$0xff] }
 0x512   :  { %10097 = vst [vmem:[#allocation74_spill] sm:$0xff] %v7800_v25  ;;  %2992 = vmatpush.msra.mxu3 %v7815_v33  ;;  %v7818_v25 = vld [vmem:[#allocation6 + $0xc0] sm:$0xff] }
 0x513   :  { %10098 = vst [vmem:[#allocation75_spill] sm:$0xff] %v7803_v46  ;;  %2933 = vmatpush.msrb.mxu0 %v7818_v25  ;;  %v7821_v46 = vld [vmem:[#allocation6 + $0xc8] sm:$0xff] }
 0x514   :  { %10099 = vst [vmem:[#allocation76_spill] sm:$0xff] %v7806_v20  ;;  %2953 = vmatpush.msrb.mxu1 %v7821_v46  ;;  %v7824_v20 = vld [vmem:[#allocation6 + $0xd0] sm:$0xff] }
 0x515   :  { %10100 = vst [vmem:[#allocation77_spill] sm:$0xff] %v7809_v2  ;;  %2973 = vmatpush.msra.mxu2 %v7824_v20  ;;  %v7827_v2 = vld [vmem:[#allocation6 + $0xd8] sm:$0xff] }
 0x516   :  { %10101 = vst [vmem:[#allocation78_spill] sm:$0xff] %v7812_v48  ;;  %2993 = vmatpush.msra.mxu3 %v7827_v2  ;;  %v7830_v48 = vld [vmem:[#allocation6 + $0xa0] sm:$0xff] }
 0x517   :  { %10102 = vst [vmem:[#allocation79_spill] sm:$0xff] %v7815_v33  ;;  %2934 = vmatpush.msrb.mxu0 %v7830_v48  ;;  %v7833_v33 = vld [vmem:[#allocation6 + $0xa8] sm:$0xff] }
 0x518   :  { %10103 = vst [vmem:[#allocation80_spill] sm:$0xff] %v7818_v25  ;;  %2954 = vmatpush.msrb.mxu1 %v7833_v33  ;;  %v7836_v25 = vld [vmem:[#allocation6 + $0xb0] sm:$0xff] }
 0x519   :  { %10104 = vst [vmem:[#allocation81_spill] sm:$0xff] %v7821_v46  ;;  %2974 = vmatpush.msra.mxu2 %v7836_v25  ;;  %v7839_v46 = vld [vmem:[#allocation6 + $0xb8] sm:$0xff] }
 0x51a   :  { %10105 = vst [vmem:[#allocation82_spill] sm:$0xff] %v7824_v20  ;;  %2994 = vmatpush.msra.mxu3 %v7839_v46  ;;  %v7842_v20 = vld [vmem:[#allocation6 + $0x80] sm:$0xff] }
 0x51b   :  { %10106 = vst [vmem:[#allocation83_spill] sm:$0xff] %v7827_v2  ;;  %2935 = vmatpush.msrb.mxu0 %v7842_v20  ;;  %v7845_v2 = vld [vmem:[#allocation6 + $0x88] sm:$0xff] }
 0x51c   :  { %10107 = vst [vmem:[#allocation84_spill] sm:$0xff] %v7830_v48  ;;  %2955 = vmatpush.msrb.mxu1 %v7845_v2  ;;  %v7848_v48 = vld [vmem:[#allocation6 + $0x90] sm:$0xff] }
 0x51d   :  { %10108 = vst [vmem:[#allocation85_spill] sm:$0xff] %v7833_v33  ;;  %2975 = vmatpush.msra.mxu2 %v7848_v48  ;;  %v7851_v33 = vld [vmem:[#allocation6 + $0x98] sm:$0xff] }
 0x51e   :  { %10109 = vst [vmem:[#allocation86_spill] sm:$0xff] %v7836_v25  ;;  %2995 = vmatpush.msra.mxu3 %v7851_v33  ;;  %v7854_v25 = vld [vmem:[#allocation6 + $0x60] sm:$0xff] }
 0x51f   :  { %10110 = vst [vmem:[#allocation87_spill] sm:$0xff] %v7839_v46  ;;  %2936 = vmatpush.msrb.mxu0 %v7854_v25  ;;  %v7857_v46 = vld [vmem:[#allocation6 + $0x68] sm:$0xff] }
 0x520   :  { %10111 = vst [vmem:[#allocation88_spill] sm:$0xff] %v7842_v20  ;;  %2956 = vmatpush.msrb.mxu1 %v7857_v46  ;;  %v7860_v20 = vld [vmem:[#allocation6 + $0x70] sm:$0xff] }
 0x521   :  { %10112 = vst [vmem:[#allocation89_spill] sm:$0xff] %v7845_v2  ;;  %2976 = vmatpush.msra.mxu2 %v7860_v20  ;;  %v7863_v2 = vld [vmem:[#allocation6 + $0x78] sm:$0xff] }
 0x522   :  { %10113 = vst [vmem:[#allocation90_spill] sm:$0xff] %v7848_v48  ;;  %2996 = vmatpush.msra.mxu3 %v7863_v2  ;;  %v7866_v48 = vld [vmem:[#allocation6 + $0x40] sm:$0xff] }
 0x523   :  { %10114 = vst [vmem:[#allocation91_spill] sm:$0xff] %v7851_v33  ;;  %2937 = vmatpush.msrb.mxu0 %v7866_v48  ;;  %v7869_v33 = vld [vmem:[#allocation6 + $0x48] sm:$0xff] }
 0x524   :  { %10115 = vst [vmem:[#allocation92_spill] sm:$0xff] %v7854_v25  ;;  %2957 = vmatpush.msrb.mxu1 %v7869_v33  ;;  %v7872_v25 = vld [vmem:[#allocation6 + $0x50] sm:$0xff] }
 0x525   :  { %10116 = vst [vmem:[#allocation93_spill] sm:$0xff] %v7857_v46  ;;  %2977 = vmatpush.msra.mxu2 %v7872_v25  ;;  %v7875_v46 = vld [vmem:[#allocation6 + $0x58] sm:$0xff] }
 0x526   :  { %10117 = vst [vmem:[#allocation94_spill] sm:$0xff] %v7860_v20  ;;  %2997 = vmatpush.msra.mxu3 %v7875_v46  ;;  %v7878_v20 = vld [vmem:[#allocation6 + $0x20] sm:$0xff] }
 0x527   :  { %10118 = vst [vmem:[#allocation95_spill] sm:$0xff] %v7863_v2  ;;  %2938 = vmatpush.msrb.mxu0 %v7878_v20  ;;  %v7881_v2 = vld [vmem:[#allocation6 + $0x28] sm:$0xff] }
 0x528   :  { %10119 = vst [vmem:[#allocation96_spill] sm:$0xff] %v7866_v48  ;;  %2958 = vmatpush.msrb.mxu1 %v7881_v2  ;;  %v7884_v48 = vld [vmem:[#allocation6 + $0x30] sm:$0xff] }
 0x529   :  { %10120 = vst [vmem:[#allocation97_spill] sm:$0xff] %v7869_v33  ;;  %2978 = vmatpush.msra.mxu2 %v7884_v48  ;;  %v7887_v33 = vld [vmem:[#allocation6 + $0x38] sm:$0xff] }
 0x52a   :  { %10121 = vst [vmem:[#allocation98_spill] sm:$0xff] %v7872_v25  ;;  %2998 = vmatpush.msra.mxu3 %v7887_v33  ;;  %v7890_v25 = vld [vmem:[#allocation6] sm:$0xff] }
 0x52b   :  { %10122 = vst [vmem:[#allocation99_spill] sm:$0xff] %v7875_v46  ;;  %2939 = vmatpush.msrb.mxu0 %v7890_v25  ;;  %v7893_v46 = vld [vmem:[#allocation6 + $0x8] sm:$0xff] }
 0x52c   :  { %10123 = vst [vmem:[#allocation100_spill] sm:$0xff] %v7878_v20  ;;  %2959 = vmatpush.msrb.mxu1 %v7893_v46  ;;  %v7896_v20 = vld [vmem:[#allocation6 + $0x10] sm:$0xff] }
 0x52d   :  { %10124 = vst [vmem:[#allocation101_spill] sm:$0xff] %v7881_v2  ;;  %2979 = vmatpush.msra.mxu2 %v7896_v20  ;;  %v7899_v2 = vld [vmem:[#allocation6 + $0x18] sm:$0xff] }
 0x52e   :  { %10125 = vst [vmem:[#allocation102_spill] sm:$0xff] %v7884_v48  ;;  %2999 = vmatpush.msra.mxu3 %v7899_v2  ;;  %v7902_v48 = vld [vmem:[#allocation4 + $0x1e0] sm:$0xff] }
 0x52f   :  { %10126 = vst [vmem:[#allocation103_spill] sm:$0xff] %v7887_v33  ;;  %3007 = vmatpush.msra.mxu0 %v7902_v48  ;;  %v7905_v33 = vld [vmem:[#allocation4 + $0x1e8] sm:$0xff] }
 0x530   :  { %10127 = vst [vmem:[#allocation104_spill] sm:$0xff] %v7890_v25  ;;  %3027 = vmatpush.msra.mxu1 %v7905_v33  ;;  %v7908_v25 = vld [vmem:[#allocation4 + $0x1f0] sm:$0xff] }
 0x531   :  { %10128 = vst [vmem:[#allocation105_spill] sm:$0xff] %v7893_v46  ;;  %3047 = vmatpush.msrb.mxu2 %v7908_v25  ;;  %v7911_v46 = vld [vmem:[#allocation4 + $0x1f8] sm:$0xff] }
 0x532   :  { %10129 = vst [vmem:[#allocation106_spill] sm:$0xff] %v7896_v20  ;;  %3067 = vmatpush.msrb.mxu3 %v7911_v46  ;;  %v7914_v20 = vld [vmem:[#allocation4 + $0x1c0] sm:$0xff] }
 0x533   :  { %10130 = vst [vmem:[#allocation107_spill] sm:$0xff] %v7899_v2  ;;  %3008 = vmatpush.msra.mxu0 %v7914_v20  ;;  %v7917_v2 = vld [vmem:[#allocation4 + $0x1c8] sm:$0xff] }
 0x534   :  { %10131 = vst [vmem:[#allocation108_spill] sm:$0xff] %v7902_v48  ;;  %3028 = vmatpush.msra.mxu1 %v7917_v2  ;;  %v7920_v48 = vld [vmem:[#allocation4 + $0x1d0] sm:$0xff] }
 0x535   :  { %10132 = vst [vmem:[#allocation109_spill] sm:$0xff] %v7905_v33  ;;  %3048 = vmatpush.msrb.mxu2 %v7920_v48  ;;  %v7923_v33 = vld [vmem:[#allocation4 + $0x1d8] sm:$0xff] }
 0x536   :  { %10133 = vst [vmem:[#allocation110_spill] sm:$0xff] %v7908_v25  ;;  %3068 = vmatpush.msrb.mxu3 %v7923_v33  ;;  %v7926_v25 = vld [vmem:[#allocation4 + $0x1a0] sm:$0xff] }
 0x537   :  { %10134 = vst [vmem:[#allocation111_spill] sm:$0xff] %v7911_v46  ;;  %3009 = vmatpush.msra.mxu0 %v7926_v25  ;;  %v7929_v46 = vld [vmem:[#allocation4 + $0x1a8] sm:$0xff] }
 0x538   :  { %10135 = vst [vmem:[#allocation112_spill] sm:$0xff] %v7914_v20  ;;  %3029 = vmatpush.msra.mxu1 %v7929_v46  ;;  %v7932_v20 = vld [vmem:[#allocation4 + $0x1b0] sm:$0xff] }
 0x539   :  { %10136 = vst [vmem:[#allocation113_spill] sm:$0xff] %v7917_v2  ;;  %3049 = vmatpush.msrb.mxu2 %v7932_v20  ;;  %v7935_v2 = vld [vmem:[#allocation4 + $0x1b8] sm:$0xff] }
 0x53a   :  { %10137 = vst [vmem:[#allocation114_spill] sm:$0xff] %v7920_v48  ;;  %3069 = vmatpush.msrb.mxu3 %v7935_v2  ;;  %v7938_v48 = vld [vmem:[#allocation4 + $0x180] sm:$0xff] }
 0x53b   :  { %10138 = vst [vmem:[#allocation115_spill] sm:$0xff] %v7923_v33  ;;  %3010 = vmatpush.msra.mxu0 %v7938_v48  ;;  %v7941_v33 = vld [vmem:[#allocation4 + $0x188] sm:$0xff] }
 0x53c   :  { %10139 = vst [vmem:[#allocation116_spill] sm:$0xff] %v7926_v25  ;;  %3030 = vmatpush.msra.mxu1 %v7941_v33  ;;  %v7944_v25 = vld [vmem:[#allocation4 + $0x190] sm:$0xff] }
 0x53d   :  { %10140 = vst [vmem:[#allocation117_spill] sm:$0xff] %v7929_v46  ;;  %3050 = vmatpush.msrb.mxu2 %v7944_v25  ;;  %v7947_v46 = vld [vmem:[#allocation4 + $0x198] sm:$0xff] }
 0x53e   :  { %10141 = vst [vmem:[#allocation118_spill] sm:$0xff] %v7932_v20  ;;  %3070 = vmatpush.msrb.mxu3 %v7947_v46  ;;  %v7950_v20 = vld [vmem:[#allocation4 + $0x160] sm:$0xff] }
 0x53f   :  { %10142 = vst [vmem:[#allocation119_spill] sm:$0xff] %v7935_v2  ;;  %3011 = vmatpush.msra.mxu0 %v7950_v20  ;;  %v7953_v2 = vld [vmem:[#allocation4 + $0x168] sm:$0xff] }
 0x540   :  { %10143 = vst [vmem:[#allocation120_spill] sm:$0xff] %v7938_v48  ;;  %3031 = vmatpush.msra.mxu1 %v7953_v2  ;;  %v7956_v48 = vld [vmem:[#allocation4 + $0x170] sm:$0xff] }
 0x541   :  { %10144 = vst [vmem:[#allocation121_spill] sm:$0xff] %v7941_v33  ;;  %3051 = vmatpush.msrb.mxu2 %v7956_v48  ;;  %v7959_v33 = vld [vmem:[#allocation4 + $0x178] sm:$0xff] }
 0x542   :  { %10145 = vst [vmem:[#allocation123_spill] sm:$0xff] %v7944_v25  ;;  %3071 = vmatpush.msrb.mxu3 %v7959_v33  ;;  %v7962_v25 = vld [vmem:[#allocation4 + $0x140] sm:$0xff] }
 0x543   :  { %10146 = vst [vmem:[#allocation124_spill] sm:$0xff] %v7947_v46  ;;  %3012 = vmatpush.msra.mxu0 %v7962_v25  ;;  %v7965_v46 = vld [vmem:[#allocation4 + $0x148] sm:$0xff] }
 0x544   :  { %10147 = vst [vmem:[#allocation125_spill] sm:$0xff] %v7950_v20  ;;  %3032 = vmatpush.msra.mxu1 %v7965_v46  ;;  %v7968_v20 = vld [vmem:[#allocation4 + $0x150] sm:$0xff] }
 0x545   :  { %10148 = vst [vmem:[#allocation126_spill] sm:$0xff] %v7953_v2  ;;  %3052 = vmatpush.msrb.mxu2 %v7968_v20  ;;  %v7971_v2 = vld [vmem:[#allocation4 + $0x158] sm:$0xff] }
 0x546   :  { %10149 = vst [vmem:[#allocation127_spill] sm:$0xff] %v7956_v48  ;;  %3072 = vmatpush.msrb.mxu3 %v7971_v2  ;;  %v7974_v48 = vld [vmem:[#allocation4 + $0x120] sm:$0xff] }
 0x547   :  { %10150 = vst [vmem:[#allocation128_spill] sm:$0xff] %v7959_v33  ;;  %3013 = vmatpush.msra.mxu0 %v7974_v48  ;;  %v7977_v33 = vld [vmem:[#allocation4 + $0x128] sm:$0xff] }
 0x548   :  { %10151 = vst [vmem:[#allocation129_spill] sm:$0xff] %v7962_v25  ;;  %3033 = vmatpush.msra.mxu1 %v7977_v33  ;;  %v7980_v25 = vld [vmem:[#allocation4 + $0x130] sm:$0xff] }
 0x549   :  { %10152 = vst [vmem:[#allocation130_spill] sm:$0xff] %v7965_v46  ;;  %3053 = vmatpush.msrb.mxu2 %v7980_v25  ;;  %v7983_v46 = vld [vmem:[#allocation4 + $0x138] sm:$0xff] }
 0x54a   :  { %10153 = vst [vmem:[#allocation131_spill] sm:$0xff] %v7968_v20  ;;  %3073 = vmatpush.msrb.mxu3 %v7983_v46  ;;  %v7986_v20 = vld [vmem:[#allocation4 + $0x100] sm:$0xff]  ;;  %v2569_v34 = vpop.f32.mrf.mxu1 }
 0x54b   :  { %10154 = vst [vmem:[#allocation132_spill] sm:$0xff] %v7971_v2  ;;  %3014 = vmatpush.msra.mxu0 %v7986_v20  ;;  %v7989_v2 = vld [vmem:[#allocation4 + $0x108] sm:$0xff] }
 0x54c   :  { %10155 = vst [vmem:[#allocation133_spill] sm:$0xff] %v7974_v48  ;;  %3034 = vmatpush.msra.mxu1 %v7989_v2  ;;  %v7992_v48 = vld [vmem:[#allocation4 + $0x110] sm:$0xff] }
 0x54d   :  { %10156 = vst [vmem:[#allocation135_spill] sm:$0xff] %v7977_v33  ;;  %3054 = vmatpush.msrb.mxu2 %v7992_v48  ;;  %v7995_v33 = vld [vmem:[#allocation4 + $0x118] sm:$0xff] }
 0x54e   :  { %10157 = vst [vmem:[#allocation136_spill] sm:$0xff] %v7980_v25  ;;  %3074 = vmatpush.msrb.mxu3 %v7995_v33  ;;  %v7998_v25 = vld [vmem:[#allocation4 + $0xe0] sm:$0xff] }
 0x54f   :  { %10158 = vst [vmem:[#allocation137_spill] sm:$0xff] %v7983_v46  ;;  %3015 = vmatpush.msra.mxu0 %v7998_v25  ;;  %v8001_v46 = vld [vmem:[#allocation4 + $0xe8] sm:$0xff] }
 0x550   :  { %10159 = vst [vmem:[#allocation138_spill] sm:$0xff] %v7986_v20  ;;  %3035 = vmatpush.msra.mxu1 %v8001_v46  ;;  %v8004_v20 = vld [vmem:[#allocation4 + $0xf0] sm:$0xff] }
 0x551   :  { %10160 = vst [vmem:[#allocation139_spill] sm:$0xff] %v7989_v2  ;;  %3055 = vmatpush.msrb.mxu2 %v8004_v20  ;;  %v8007_v2 = vld [vmem:[#allocation4 + $0xf8] sm:$0xff]  ;;  %v2589_v62 = vpop.f32.mrf.mxu2 }
 0x552   :  { %10161 = vst [vmem:[#allocation140_spill] sm:$0xff] %v7992_v48  ;;  %3075 = vmatpush.msrb.mxu3 %v8007_v2  ;;  %v8010_v48 = vld [vmem:[#allocation4 + $0xc0] sm:$0xff] }
 0x553   :  { %10162 = vst [vmem:[#allocation141_spill] sm:$0xff] %v7995_v33  ;;  %3016 = vmatpush.msra.mxu0 %v8010_v48  ;;  %v8013_v33 = vld [vmem:[#allocation4 + $0xc8] sm:$0xff] }
 0x554   :  { %10163 = vst [vmem:[#allocation142_spill] sm:$0xff] %v7998_v25  ;;  %3036 = vmatpush.msra.mxu1 %v8013_v33  ;;  %v8016_v25 = vld [vmem:[#allocation4 + $0xd0] sm:$0xff] }
 0x555   :  { %10164 = vst [vmem:[#allocation143_spill] sm:$0xff] %v8001_v46  ;;  %3056 = vmatpush.msrb.mxu2 %v8016_v25  ;;  %v8019_v46 = vld [vmem:[#allocation4 + $0xd8] sm:$0xff] }
 0x556   :  { %10165 = vst [vmem:[#allocation144_spill] sm:$0xff] %v8004_v20  ;;  %3076 = vmatpush.msrb.mxu3 %v8019_v46  ;;  %v8022_v20 = vld [vmem:[#allocation4 + $0xa0] sm:$0xff] }
 0x557   :  { %10166 = vst [vmem:[#allocation145_spill] sm:$0xff] %v8007_v2  ;;  %3017 = vmatpush.msra.mxu0 %v8022_v20  ;;  %v8025_v2 = vld [vmem:[#allocation4 + $0xa8] sm:$0xff] }
 0x558   :  { %10167 = vst [vmem:[#allocation146_spill] sm:$0xff] %v8010_v48  ;;  %3037 = vmatpush.msra.mxu1 %v8025_v2  ;;  %v8028_v48 = vld [vmem:[#allocation4 + $0xb0] sm:$0xff] }
 0x559   :  { %10168 = vst [vmem:[#allocation147_spill] sm:$0xff] %v8013_v33  ;;  %3057 = vmatpush.msrb.mxu2 %v8028_v48  ;;  %v8031_v33 = vld [vmem:[#allocation4 + $0xb8] sm:$0xff] }
 0x55a   :  { %10169 = vst [vmem:[#allocation148_spill] sm:$0xff] %v8016_v25  ;;  %3077 = vmatpush.msrb.mxu3 %v8031_v33  ;;  %v8034_v25 = vld [vmem:[#allocation4 + $0x80] sm:$0xff] }
 0x55b   :  { %10170 = vst [vmem:[#allocation149_spill] sm:$0xff] %v8019_v46  ;;  %3018 = vmatpush.msra.mxu0 %v8034_v25  ;;  %v8037_v46 = vld [vmem:[#allocation4 + $0x88] sm:$0xff] }
 0x55c   :  { %10171 = vst [vmem:[#allocation151_spill] sm:$0xff] %v8022_v20  ;;  %3038 = vmatpush.msra.mxu1 %v8037_v46  ;;  %v8040_v20 = vld [vmem:[#allocation4 + $0x90] sm:$0xff]  ;;  %v2652_v49 = vpop.f32.mrf.mxu1 }
 0x55d   :  { %10172 = vst [vmem:[#allocation156_spill] sm:$0xff] %v8025_v2  ;;  %3058 = vmatpush.msrb.mxu2 %v8040_v20  ;;  %v8043_v2 = vld [vmem:[#allocation4 + $0x98] sm:$0xff]  ;;  %v2653_v30 = vadd.f32 %v2652_v49, %v2569_v34 }
 0x55e   :  { %10173 = vst [vmem:[#allocation157_spill] sm:$0xff] %v8028_v48  ;;  %3078 = vmatpush.msrb.mxu3 %v8043_v2  ;;  %v8046_v48 = vld [vmem:[#allocation4 + $0x60] sm:$0xff] }
 0x55f   :  { %10174 = vst [vmem:[#allocation158_spill] sm:$0xff] %v8031_v33  ;;  %3019 = vmatpush.msra.mxu0 %v8046_v48  ;;  %v8049_v33 = vld [vmem:[#allocation4 + $0x68] sm:$0xff]  ;;  %v2696_v37 = vadd.f32 %v2653_v30, %v10025_v50 }
 0x560   :  { %10175 = vst [vmem:[#allocation159_spill] sm:$0xff] %v8034_v25  ;;  %3039 = vmatpush.msra.mxu1 %v8049_v33  ;;  %v8052_v25 = vld [vmem:[#allocation4 + $0x70] sm:$0xff] }
 0x561   :  { %10176 = vst [vmem:[#allocation160_spill] sm:$0xff] %v8037_v46  ;;  %3059 = vmatpush.msrb.mxu2 %v8052_v25  ;;  %v8055_v46 = vld [vmem:[#allocation4 + $0x78] sm:$0xff]  ;;  %v3657_v17 = vmul.f32 -1.442695, %v2696_v37 }
 0x562   :  { %10177 = vst [vmem:[#allocation161_spill] sm:$0xff] %v8040_v20  ;;  %3079 = vmatpush.msrb.mxu3 %v8055_v46  ;;  %v8058_v20 = vld [vmem:[#allocation4 + $0x40] sm:$0xff] }
 0x563   :  { %10178 = vst [vmem:[#allocation162_spill] sm:$0xff] %v8043_v2  ;;  %3020 = vmatpush.msra.mxu0 %v8058_v20  ;;  %v8061_v2 = vld [vmem:[#allocation4 + $0x48] sm:$0xff] }
 0x564   :  { %10179 = vst [vmem:[#allocation163_spill] sm:$0xff] %v8046_v48  ;;  %3040 = vmatpush.msra.mxu1 %v8061_v2  ;;  %v8064_v48 = vld [vmem:[#allocation4 + $0x50] sm:$0xff] }
 0x565   :  { %10180 = vst [vmem:[#allocation164_spill] sm:$0xff] %v8049_v33  ;;  %3060 = vmatpush.msrb.mxu2 %v8064_v48  ;;  %v8067_v33 = vld [vmem:[#allocation4 + $0x58] sm:$0xff] }
 0x566   :  { %10181 = vst [vmem:[#allocation165_spill] sm:$0xff] %v8052_v25  ;;  %3080 = vmatpush.msrb.mxu3 %v8067_v33  ;;  %v8070_v25 = vld [vmem:[#allocation4 + $0x20] sm:$0xff] }
 0x567   :  { %10182 = vst [vmem:[#allocation166_spill] sm:$0xff] %v8055_v46  ;;  %3021 = vmatpush.msra.mxu0 %v8070_v25  ;;  %v8073_v46 = vld [vmem:[#allocation4 + $0x28] sm:$0xff] }
 0x568   :  { %10183 = vst [vmem:[#allocation167_spill] sm:$0xff] %v8058_v20  ;;  %3041 = vmatpush.msra.mxu1 %v8073_v46  ;;  %v8076_v20 = vld [vmem:[#allocation4 + $0x30] sm:$0xff] }
 0x569   :  { %10184 = vst [vmem:[#allocation168_spill] sm:$0xff] %v8061_v2  ;;  %3061 = vmatpush.msrb.mxu2 %v8076_v20  ;;  %v8079_v2 = vld [vmem:[#allocation4 + $0x38] sm:$0xff] }
 0x56a   :  { %10185 = vst [vmem:[#allocation169_spill] sm:$0xff] %v8064_v48  ;;  %3081 = vmatpush.msrb.mxu3 %v8079_v2  ;;  %v8082_v48 = vld [vmem:[#allocation4] sm:$0xff] }
 0x56b   :  { %10186 = vst [vmem:[#allocation170_spill] sm:$0xff] %v8067_v33  ;;  %3022 = vmatpush.msra.mxu0 %v8082_v48  ;;  %v8085_v33 = vld [vmem:[#allocation4 + $0x8] sm:$0xff] }
 0x56c   :  { %10187 = vst [vmem:[#allocation171_spill] sm:$0xff] %v8070_v25  ;;  %3042 = vmatpush.msra.mxu1 %v8085_v33  ;;  %v8088_v25 = vld [vmem:[#allocation4 + $0x10] sm:$0xff] }
 0x56d   :  { %10188 = vst [vmem:[#allocation172_spill] sm:$0xff] %v8073_v46  ;;  %3062 = vmatpush.msrb.mxu2 %v8088_v25  ;;  %v8091_v46 = vld [vmem:[#allocation4 + $0x18] sm:$0xff] }
 0x56e   :  { %10189 = vst [vmem:[#allocation173_spill] sm:$0xff] %v8076_v20  ;;  %3082 = vmatpush.msrb.mxu3 %v8091_v46  ;;  %v2549_v20 = vpop.f32.mrf.mxu0 }
 0x56f   :  { %10190 = vst [vmem:[#allocation174_spill] sm:$0xff] %v8079_v2 }
 0x570   :  { %10191 = vst [vmem:[#allocation175_spill] sm:$0xff] %v8082_v48 }
 0x571   :  { %10192 = vst [vmem:[#allocation176_spill] sm:$0xff] %v8085_v33  ;;  %v2609_v33 = vpop.f32.mrf.mxu3 }
 0x572   :  { %10193 = vst [vmem:[#allocation177_spill] sm:$0xff] %v8088_v25  ;;  %v2672_v25 = vpop.f32.mrf.mxu2 }
 0x573   :  { %10194 = vst [vmem:[#allocation178_spill] sm:$0xff] %v8091_v46  ;;  %v2673_v45 = vadd.f32 %v2672_v25, %v2589_v62 }
 0x575   :  { %v2697_v46 = vadd.f32 %v2673_v45, %v10026_v11 }
 0x576   :  { %v2632_v2 = vpop.f32.mrf.mxu0 }
 0x577   :  { %v2633_v57 = vadd.f32 %v2632_v2, %v2549_v20  ;;  %v3658_v21 = vmul.f32 -1.442695, %v2697_v46  ;;  %v2799_v20 = vpop.f32.mrf.mxu1 }
 0x578   :  { %v2847_v37 = vrot.slane %v2799_v20, 4 }
 0x579   :  { %v2695_v48 = vadd.f32 %v2633_v57, %v10024_v47  ;;  %v2692_v56 = vpop.f32.mrf.mxu3 }
 0x57a   :  { %v2693_v57 = vadd.f32 %v2692_v56, %v2609_v33  ;;  %v2855_v25 = vadd.f32 %v2847_v37, %v10028_v24 }
 0x57b   :  { %v3656_v36 = vmul.f32 -1.442695, %v2695_v48 }
 0x57c   :  { %v3660_v2 = vmul.f32 -1.442695, %v2855_v25 }
 0x57d   :  { %3858 = vpow2.f32 %v3656_v36 }
 0x57e   :  { %3860 = vpow2.f32 %v3657_v17  ;;  %v2779_v30 = vpop.f32.mrf.mxu0  ;;  %v2698_v17 = vadd.f32 %v2693_v57, %v10029_v27 }
 0x57f   :  { %3862 = vpow2.f32 %v3658_v21  ;;  %v2846_v48 = vrot.slane %v2779_v30, 4  ;;  %v2819_v30 = vpop.f32.mrf.mxu2 }
 0x581   :  { %v2854_v45 = vadd.f32 %v2846_v48, %v10027_v16 }
 0x583   :  { %v3859_v52 = vpop.eup %3858 }
 0x584   :  { %v3861_v63 = vpop.eup %3860  ;;  %v2708_v35 = vadd.f32 1.0, %v3859_v52 }
 0x585   :  { %v2709_v49 = vadd.f32 1.0, %v3861_v63  ;;  %v3863_v36 = vpop.eup %3862  ;;  %v3659_v63 = vmul.f32 -1.442695, %v2854_v45 }
 0x586   :  { %3864 = vrcp.f32 %v2708_v35  ;;  %v8098_v62 = vadd.f32 1.0, %v3863_v36  ;;  %v2720_v33 = vand.u32 2147483647, %v2708_v35  ;;  %v2722_v20 = vand.u32 2147483648, %v2708_v35 }
 0x587   :  { %3866 = vrcp.f32 %v2709_v49  ;;  %v2848_v36 = vrot.slane %v2819_v30, 4  ;;  %v2737_v48 = vand.u32 2147483648, %v2709_v49  ;;  %v2735_v37 = vand.u32 2147483647, %v2709_v49 }
 0x588   :  { %3868 = vrcp.f32 %v8098_v62  ;;  %vm2731_vm8 = vweird.f32 %v2709_v49  ;;  %vm2716_vm9 = vweird.f32 %v2708_v35  ;;  %vm2721_vm12 = vcmp.eq.f32.partialorder %v2720_v33, 8.507059e+37 }
 0x589   :  { %3870 = vtanh.f32 %v2698_v17  ;;  %v2856_v16 = vadd.f32 %v2848_v36, %v7190_v6  ;;  %vm2736_vm13 = vcmp.eq.f32.partialorder %v2735_v37, 8.507059e+37  ;;  %vm2746_vm15 = vweird.f32 %v8098_v62 }
 0x58a   :  { %3872 = vpow2.f32 %v3659_v63  ;;  %v2723_v63 = vor.u32 1.1754944e-38, %v2722_v20 }
 0x58b   :  { %3874 = vpow2.f32 %v3660_v2  ;;  %v3661_v2 = vmul.f32 -1.442695, %v2856_v16 }
 0x58c   :  { %v3865_v46 = vpop.eup %3864 }
 0x58d   :  { %v3867_v52 = vpop.eup %3866  ;;  %v2712_v21 = vmul.f32 %v3865_v46, %v2708_v35  ;;  %vm2717_vm6 = vweird.f32 %v3865_v46  ;;  %3876 = vpow2.f32 %v3661_v2 }
 0x58e   :  { %v2727_v56 = vmul.f32 %v3867_v52, %v2709_v49  ;;  %vm2732_vm7 = vweird.f32 %v3867_v52  ;;  %v3869_v45 = vpop.eup %3868  ;;  %vm2718_vm10 = vmor %vm2716_vm9, %vm2717_vm6 }
 0x58f   :  { %v2713_v34 = vsub.f32 1.0, %v2712_v21  ;;  %v3871_v25 = vpop.eup %3870  ;;  %v2742_v21 = vmul.f32 %v3869_v45, %v8098_v62  ;;  %vm2733_vm11 = vmor %vm2731_vm8, %vm2732_vm7  ;;  %vm2747_vm14 = vweird.f32 %v3869_v45 }
 0x590   :  { %v2728_v57 = vsub.f32 1.0, %v2727_v56  ;;  %v3873_v30 = vpop.eup %3872  ;;  %vm2748_vm0 = vmor %vm2746_vm15, %vm2747_vm14 }
 0x591   :  { %v2714_v27 = vmul.f32 %v3865_v46, %v2713_v34  ;;  %v2738_v34 = vor.u32 1.1754944e-38, %v2737_v48  ;;  %v2743_v50 = vsub.f32 1.0, %v2742_v21  ;;  %v2867_v49 = vadd.f32 1.0, %v3873_v30 }
 0x592   :  { %v2729_v24 = vmul.f32 %v3867_v52, %v2728_v57  ;;  %v3875_v57 = vpop.eup %3874 }
 0x593   :  { %v2715_v17 = vadd.f32 %v3865_v46, %v2714_v27  ;;  %v2839_v27 = vpop.f32.mrf.mxu3  ;;  %v8105_v40 = vadd.f32 1.0, %v3875_v57  ;;  %3878 = vrcp.f32 %v2867_v49  ;;  %v2744_v33 = vmul.f32 %v3869_v45, %v2743_v50 }
 0x594   :  { %v2730_v56 = vadd.f32 %v3867_v52, %v2729_v24  ;;  %v2849_v16 = vrot.slane %v2839_v27, 4  ;;  %v2879_v30 = vand.u32 2147483647, %v2867_v49  ;;  %vm2875_vm4 = vweird.f32 %v2867_v49 }
 0x595   :  { %v2719_v11 = vsel %vm2718_vm10, %v3865_v46, %v2715_v17  ;;  %3880 = vrcp.f32 %v8105_v40  ;;  %v2896_v57 = vand.u32 2147483648, %v8105_v40  ;;  %vm2890_vm5 = vweird.f32 %v8105_v40 }
 0x596   :  { %v2724_v36 = vsel %vm2721_vm12, %v2723_v63, %v2719_v11  ;;  %v2734_v6 = vsel %vm2733_vm11, %v3867_v52, %v2730_v56  ;;  %v2745_v11 = vadd.f32 %v3869_v45, %v2744_v33  ;;  %v2752_v52 = vand.u32 2147483648, %v8098_v62 }
 0x597   :  { %v2739_v35 = vsel %vm2736_vm13, %v2738_v34, %v2734_v6  ;;  %v2758_v47 = vmul.f32 %v3871_v25, %v2724_v36  ;;  %v3877_v6 = vpop.eup %3876  ;;  %v2857_v20 = vadd.f32 %v2849_v16, %v7208_v1  ;;  %v2881_v34 = vand.u32 2147483648, %v2867_v49 }
 0x598   :  { %v2757_v24 = vmul.f32 %v2739_v35, %v7459_v60  ;;  %v2750_v60 = vand.u32 2147483647, %v8098_v62  ;;  %v8116_v37 = vadd.f32 1.0, %v3877_v6  ;;  %v2749_v50 = vsel %vm2748_vm0, %v3869_v45, %v2745_v11 }
 0x599   :  { %v3879_v48 = vpop.eup %3878  ;;  %v2753_v21 = vor.u32 1.1754944e-38, %v2752_v52  ;;  %v2894_v45 = vand.u32 2147483647, %v8105_v40  ;;  %v2882_v33 = vor.u32 1.1754944e-38, %v2881_v34  ;;  %v2897_v6 = vor.u32 1.1754944e-38, %v2896_v57  ;;  %v10224_v34 = vld [vmem:[#allocation41_spill] sm:$0xff] }
 0x59a   :  { %v8109_v46 = vadd.f32 %v2758_v47, %v2757_v24  ;;  %v2871_v17 = vmul.f32 %v3879_v48, %v2867_v49  ;;  %vm2751_vm1 = vcmp.eq.f32.partialorder %v2750_v60, 8.507059e+37  ;;  %vm2876_vm2 = vweird.f32 %v3879_v48  ;;  %v10226_v57 = vld [vmem:[#allocation44_spill] sm:$0xff] }
 0x59b   :  { %v3881_v47 = vpop.eup %3880  ;;  %v2754_v62 = vsel %vm2751_vm1, %v2753_v21, %v2749_v50  ;;  %vm2877_vm6 = vmor %vm2875_vm4, %vm2876_vm2  ;;  %vm2880_vm8 = vcmp.eq.f32.partialorder %v2879_v30, 8.507059e+37  ;;  %v2917_v49 = vrot.slane %v7509_v22, 6  ;;  %vm2895_vm9 = vcmp.eq.f32.partialorder %v2894_v45, 8.507059e+37  ;;  %v10223_v30 = vld [vmem:[#allocation42_spill] sm:$0xff]  ;;  %v10230_v45 = vld [vmem:[#allocation48_spill] sm:$0xff] }
 0x59c   :  { %3882 = vtanh.f32 %v8109_v46  ;;  %v2886_v25 = vmul.f32 %v3881_v47, %v8105_v40  ;;  %v2872_v63 = vsub.f32 1.0, %v2871_v17  ;;  %vm2891_vm3 = vweird.f32 %v3881_v47 }
 0x59d   :  { %3884 = vrcp.f32 %v8116_v37  ;;  %vm2892_vm7 = vmor %vm2890_vm5, %vm2891_vm3  ;;  %vm2905_vm11 = vweird.f32 %v8116_v37 }
 0x59e   :  { %3886 = vtanh.f32 %v2857_v20  ;;  %v2887_v2 = vsub.f32 1.0, %v2886_v25  ;;  %v2873_v36 = vmul.f32 %v3879_v48, %v2872_v63  ;;  %v10220_v63 = vld [vmem:[#allocation37_spill] sm:$0xff] }
 0x5a0   :  { %v2888_v35 = vmul.f32 %v3881_v47, %v2887_v2  ;;  %v2874_v24 = vadd.f32 %v3879_v48, %v2873_v36  ;;  %v10222_v2 = vld [vmem:[#allocation40_spill] sm:$0xff]  ;;  %v10227_v36 = vld [vmem:[#allocation45_spill] sm:$0xff] }
 0x5a2   :  { %v3883_v56 = vpop.eup %3882  ;;  %v2889_v11 = vadd.f32 %v3881_v47, %v2888_v35  ;;  %v2878_v60 = vsel %vm2877_vm6, %v3879_v48, %v2874_v24  ;;  %v10229_v35 = vld [vmem:[#allocation47_spill] sm:$0xff]  ;;  %v10231_v24 = vld [vmem:[#allocation49_spill] sm:$0xff] }
 0x5a3   :  { %v2761_v27 = vmul.f32 %v3883_v56, %v2754_v62  ;;  %v3885_v16 = vpop.eup %3884  ;;  %v2883_v17 = vsel %vm2880_vm8, %v2882_v33, %v2878_v60  ;;  %v10221_v56 = vld [vmem:[#allocation39_spill] sm:$0xff]  ;;  %v10238_v60 = vld [vmem:[#allocation56_spill] sm:$0xff] }
 0x5a4   :  { %v3887_v52 = vpop.eup %3886  ;;  %v2901_v20 = vmul.f32 %v3885_v16, %v8116_v37  ;;  %v2893_v40 = vsel %vm2892_vm7, %v3881_v47, %v2889_v11  ;;  %vm2906_vm10 = vweird.f32 %v3885_v16  ;;  %v10219_v47 = vld [vmem:[#allocation38_spill] sm:$0xff]  ;;  %v10225_v62 = vld [vmem:[#allocation43_spill] sm:$0xff]  ;;  %v10234_v11 = vld [vmem:[#allocation52_spill] sm:$0xff] }
 0x5a5   :  { %2940 = vmatmul.f32.vlgmr.msrb.gmra.mxu0 %v2761_v27  ;;  %2960 = vmatmul.f32.vlgmr.msrb.gmra.mxu1 %v2761_v27  ;;  %v2898_v25 = vsel %vm2895_vm9, %v2897_v6, %v2893_v40  ;;  %v2920_v21 = vmul.f32 %v3887_v52, %v2883_v17  ;;  %vm2907_vm12 = vmor %vm2905_vm11, %vm2906_vm10  ;;  %v10233_v33 = vld [vmem:[#allocation51_spill] sm:$0xff]  ;;  %v10235_v52 = vld [vmem:[#allocation53_spill] sm:$0xff] }
 0x5a6   :  { %2980 = vmatmul.f32.vlgmr.msra.gmra.mxu2 %v2761_v27  ;;  %3000 = vmatmul.f32.vlgmr.msra.gmra.mxu3 %v2761_v27  ;;  %v2902_v50 = vsub.f32 1.0, %v2901_v20  ;;  %v2919_v48 = vmul.f32 %v2917_v49, %v2898_v25  ;;  %v10228_v27 = vld [vmem:[#allocation46_spill] sm:$0xff]  ;;  %v10237_v20 = vld [vmem:[#allocation55_spill] sm:$0xff]  ;;  %v10239_v49 = vld [vmem:[#allocation57_spill] sm:$0xff] }
 0x5a7   :  { %3154 = vmatpush.msrb.mxu0 %v7491_v39  ;;  %3174 = vmatpush.msrb.mxu1 %v7494_v42  ;;  %v10236_v6 = vld [vmem:[#allocation54_spill] sm:$0xff]  ;;  %v10241_v40 = vld [vmem:[#allocation59_spill] sm:$0xff]  ;;  %v10243_v25 = vld [vmem:[#allocation61_spill] sm:$0xff] }
 0x5a8   :  { %3194 = vmatpush.msra.mxu2 %v7497_v23  ;;  %3214 = vmatpush.msra.mxu3 %v7500_v32  ;;  %v2903_v39 = vmul.f32 %v3885_v16, %v2902_v50  ;;  %v8135_v42 = vadd.f32 %v2920_v21, %v2919_v48  ;;  %v2911_v32 = vand.u32 2147483648, %v8116_v37  ;;  %v10240_v17 = vld [vmem:[#allocation58_spill] sm:$0xff]  ;;  %v10242_v50 = vld [vmem:[#allocation60_spill] sm:$0xff]  ;;  %v10245_v48 = vld [vmem:[#allocation63_spill] sm:$0xff] }
 0x5a9   :  { %3155 = vmatpush.msrb.mxu0 %v7503_v43  ;;  %3175 = vmatpush.msrb.mxu1 %v7506_v29  ;;  %v2909_v43 = vand.u32 2147483647, %v8116_v37  ;;  %v10218_v37 = vld [vmem:[#allocation36_spill] sm:$0xff]  ;;  %v10244_v21 = vld [vmem:[#allocation62_spill] sm:$0xff] }
 0x5aa   :  { %3195 = vmatpush.msra.mxu2 %v7511_v18  ;;  %3215 = vmatpush.msra.mxu3 %v7514_v53  ;;  %v2904_v23 = vadd.f32 %v3885_v16, %v2903_v39  ;;  %3888 = vtanh.f32 %v8135_v42  ;;  %v2912_v22 = vor.u32 1.1754944e-38, %v2911_v32  ;;  %v10246_v39 = vld [vmem:[#allocation64_spill] sm:$0xff]  ;;  %v10248_v32 = vld [vmem:[#allocation66_spill] sm:$0xff] }
 0x5ab   :  { %3156 = vmatpush.msrb.mxu0 %v7519_v58  ;;  %3176 = vmatpush.msrb.mxu1 %v7522_v61  ;;  %vm2910_vm13 = vcmp.eq.f32.partialorder %v2909_v43, 8.507059e+37  ;;  %v10249_v43 = vld [vmem:[#allocation67_spill] sm:$0xff] }
 0x5ac   :  { %3196 = vmatpush.msra.mxu2 %v7527_v8  ;;  %3216 = vmatpush.msra.mxu3 %v7530_v54  ;;  %v2908_v29 = vsel %vm2907_vm12, %v3885_v16, %v2904_v23  ;;  %v10195_v8 = vld [vmem:[#allocation152_spill] sm:$0xff]  ;;  %v10196_v54 = vld [vmem:[#allocation153_spill] sm:$0xff]  ;;  %v10232_v16 = vld [vmem:[#allocation50_spill] sm:$0xff] }
 0x5ad   :  { %3157 = vmatpush.msrb.mxu0 %v7535_v7  ;;  %3177 = vmatpush.msrb.mxu1 %v7538_v51  ;;  %v2913_v53 = vsel %vm2910_vm13, %v2912_v22, %v2908_v29  ;;  %v10197_v7 = vld [vmem:[#allocation155_spill] sm:$0xff]  ;;  %v10198_v51 = vld [vmem:[#allocation16_spill] sm:$0xff]  ;;  %v10247_v23 = vld [vmem:[#allocation65_spill] sm:$0xff] }
 0x5ae   :  { %3197 = vmatpush.msra.mxu2 %v7547_v4  ;;  %3217 = vmatpush.msra.mxu3 %v7550_v41  ;;  %v10199_v4 = vld [vmem:[#allocation21_spill] sm:$0xff]  ;;  %v10250_v29 = vld [vmem:[#allocation68_spill] sm:$0xff] }
 0x5af   :  { %3158 = vmatpush.msrb.mxu0 %v7556_v12  ;;  %3178 = vmatpush.msrb.mxu1 %v7559_v44  ;;  %v10200_v41 = vld [vmem:[#allocation13_spill] sm:$0xff]  ;;  %v10201_v12 = vld [vmem:[#allocation22_spill] sm:$0xff]  ;;  %v10202_v44 = vld [vmem:[#allocation19_spill] sm:$0xff] }
 0x5b0   :  { %3198 = vmatpush.msra.mxu2 %v7562_v14  ;;  %3218 = vmatpush.msra.mxu3 %v7565_v15  ;;  %v3889_v18 = vpop.eup %3888  ;;  %v10203_v14 = vld [vmem:[#allocation25_spill] sm:$0xff]  ;;  %v10204_v15 = vld [vmem:[#allocation14_spill] sm:$0xff] }
 0x5b1   :  { %3159 = vmatpush.msrb.mxu0 %v7568_v10  ;;  %3179 = vmatpush.msrb.mxu1 %v7571_v19  ;;  %v2923_v58 = vmul.f32 %v3889_v18, %v2913_v53  ;;  %v10205_v10 = vld [vmem:[#allocation26_spill] sm:$0xff]  ;;  %v10206_v19 = vld [vmem:[#allocation23_spill] sm:$0xff]  ;;  %v10251_v22 = vld [vmem:[#allocation69_spill] sm:$0xff] }
 0x5b2   :  { %3199 = vmatpush.msra.mxu2 %v7574_v3  ;;  %3219 = vmatpush.msra.mxu3 %v7577_v9  ;;  %v10207_v3 = vld [vmem:[#allocation27_spill] sm:$0xff]  ;;  %v10208_v9 = vld [vmem:[#allocation20_spill] sm:$0xff]  ;;  %v10252_v18 = vld [vmem:[#allocation70_spill] sm:$0xff] }
 0x5b3   :  { %3160 = vmatpush.msrb.mxu0 %v7580_v59  ;;  %3180 = vmatpush.msrb.mxu1 %v7583_v31  ;;  %v3005_v61 = vrot.slane %v2923_v58, 4  ;;  %v10209_v59 = vld [vmem:[#allocation28_spill] sm:$0xff]  ;;  %v10210_v31 = vld [vmem:[#allocation29_spill] sm:$0xff]  ;;  %v10253_v53 = vld [vmem:[#allocation71_spill] sm:$0xff] }
 0x5b4   :  { %3200 = vmatpush.msra.mxu2 %v7586_v55  ;;  %3220 = vmatpush.msra.mxu3 %v7589_v38  ;;  %v10211_v55 = vld [vmem:[#allocation30_spill] sm:$0xff]  ;;  %v10212_v38 = vld [vmem:[#allocation24_spill] sm:$0xff] }
 0x5b5   :  { %3161 = vmatpush.msrb.mxu0 %v7594_v5  ;;  %3181 = vmatpush.msrb.mxu1 %v7597_v26  ;;  %v10213_v5 = vld [vmem:[#allocation31_spill] sm:$0xff]  ;;  %v10214_v26 = vld [vmem:[#allocation32_spill] sm:$0xff] }
 0x5b6   :  { %3201 = vmatpush.msra.mxu2 %v7600_v28  ;;  %3221 = vmatpush.msra.mxu3 %v7603_v13  ;;  %v10215_v28 = vld [vmem:[#allocation34_spill] sm:$0xff]  ;;  %v10216_v13 = vld [vmem:[#allocation33_spill] sm:$0xff]  ;;  %v10254_v58 = vld [vmem:[#allocation72_spill] sm:$0xff] }
 0x5b7   :  { %3162 = vmatpush.msrb.mxu0 %v7610_v0  ;;  %3182 = vmatpush.msrb.mxu1 %v10195_v8  ;;  %v10217_v0 = vld [vmem:[#allocation35_spill] sm:$0xff]  ;;  %v10256_v8 = vld [vmem:[#allocation74_spill] sm:$0xff] }
 0x5b8   :  { %3202 = vmatpush.msra.mxu2 %v10196_v54  ;;  %3222 = vmatpush.msra.mxu3 %v10197_v7  ;;  %v10257_v54 = vld [vmem:[#allocation75_spill] sm:$0xff]  ;;  %v10258_v7 = vld [vmem:[#allocation76_spill] sm:$0xff] }
 0x5b9   :  { %3163 = vmatpush.msrb.mxu0 %v10198_v51  ;;  %3183 = vmatpush.msrb.mxu1 %v10199_v4  ;;  %v10259_v51 = vld [vmem:[#allocation77_spill] sm:$0xff]  ;;  %v10260_v4 = vld [vmem:[#allocation78_spill] sm:$0xff] }
 0x5ba   :  { %3203 = vmatpush.msra.mxu2 %v10200_v41  ;;  %3223 = vmatpush.msra.mxu3 %v10201_v12  ;;  %v10261_v41 = vld [vmem:[#allocation79_spill] sm:$0xff]  ;;  %v10262_v12 = vld [vmem:[#allocation80_spill] sm:$0xff] }
 0x5bb   :  { %3023 = vmatmul.f32.vlgmr.msra.gmra.mxu0 %v3005_v61  ;;  %3043 = vmatmul.f32.vlgmr.msra.gmra.mxu1 %v3005_v61 }
 0x5bc   :  { %3063 = vmatmul.f32.vlgmr.msrb.gmra.mxu2 %v3005_v61  ;;  %3083 = vmatmul.f32.vlgmr.msrb.gmra.mxu3 %v3005_v61 }
 0x5bd   :  { %3164 = vmatpush.msrb.mxu0 %v10202_v44  ;;  %3184 = vmatpush.msrb.mxu1 %v10203_v14  ;;  %v10263_v44 = vld [vmem:[#allocation81_spill] sm:$0xff]  ;;  %v10264_v14 = vld [vmem:[#allocation82_spill] sm:$0xff] }
 0x5be   :  { %3204 = vmatpush.msra.mxu2 %v10204_v15  ;;  %3224 = vmatpush.msra.mxu3 %v10205_v10  ;;  %v10265_v15 = vld [vmem:[#allocation83_spill] sm:$0xff]  ;;  %v10266_v10 = vld [vmem:[#allocation84_spill] sm:$0xff] }
 0x5bf   :  { %3165 = vmatpush.msrb.mxu0 %v10206_v19  ;;  %3185 = vmatpush.msrb.mxu1 %v10207_v3  ;;  %v10267_v19 = vld [vmem:[#allocation85_spill] sm:$0xff]  ;;  %v10268_v3 = vld [vmem:[#allocation86_spill] sm:$0xff] }
 0x5c0   :  { %3205 = vmatpush.msra.mxu2 %v10208_v9  ;;  %3225 = vmatpush.msra.mxu3 %v10209_v59  ;;  %v10269_v9 = vld [vmem:[#allocation87_spill] sm:$0xff]  ;;  %v10270_v59 = vld [vmem:[#allocation88_spill] sm:$0xff] }
 0x5c1   :  { %3166 = vmatpush.msrb.mxu0 %v10210_v31  ;;  %3186 = vmatpush.msrb.mxu1 %v10211_v55  ;;  %v10271_v31 = vld [vmem:[#allocation89_spill] sm:$0xff]  ;;  %v10272_v55 = vld [vmem:[#allocation90_spill] sm:$0xff] }
 0x5c2   :  { %3206 = vmatpush.msra.mxu2 %v10212_v38  ;;  %3226 = vmatpush.msra.mxu3 %v10213_v5  ;;  %v10273_v38 = vld [vmem:[#allocation91_spill] sm:$0xff]  ;;  %v10274_v5 = vld [vmem:[#allocation92_spill] sm:$0xff] }
 0x5c3   :  { %3167 = vmatpush.msrb.mxu0 %v10214_v26  ;;  %3187 = vmatpush.msrb.mxu1 %v10215_v28  ;;  %v10275_v26 = vld [vmem:[#allocation93_spill] sm:$0xff]  ;;  %v10276_v28 = vld [vmem:[#allocation94_spill] sm:$0xff] }
 0x5c4   :  { %3207 = vmatpush.msra.mxu2 %v10216_v13  ;;  %3227 = vmatpush.msra.mxu3 %v10217_v0  ;;  %v10277_v13 = vld [vmem:[#allocation95_spill] sm:$0xff]  ;;  %v10278_v0 = vld [vmem:[#allocation96_spill] sm:$0xff] }
 0x5c5   :  { %3168 = vmatpush.msrb.mxu0 %v10218_v37  ;;  %3188 = vmatpush.msrb.mxu1 %v10219_v47  ;;  %v10279_v37 = vld [vmem:[#allocation97_spill] sm:$0xff]  ;;  %v10280_v47 = vld [vmem:[#allocation98_spill] sm:$0xff] }
 0x5c6   :  { %3208 = vmatpush.msra.mxu2 %v10220_v63  ;;  %3228 = vmatpush.msra.mxu3 %v10221_v56  ;;  %v10281_v63 = vld [vmem:[#allocation99_spill] sm:$0xff]  ;;  %v10282_v56 = vld [vmem:[#allocation100_spill] sm:$0xff] }
 0x5c7   :  { %3169 = vmatpush.msrb.mxu0 %v10222_v2  ;;  %3189 = vmatpush.msrb.mxu1 %v10223_v30  ;;  %v10283_v2 = vld [vmem:[#allocation101_spill] sm:$0xff]  ;;  %v10284_v30 = vld [vmem:[#allocation102_spill] sm:$0xff] }
 0x5c8   :  { %3209 = vmatpush.msra.mxu2 %v10224_v34  ;;  %3229 = vmatpush.msra.mxu3 %v10225_v62  ;;  %v10285_v34 = vld [vmem:[#allocation103_spill] sm:$0xff]  ;;  %v10286_v62 = vld [vmem:[#allocation104_spill] sm:$0xff] }
 0x5c9   :  { %3170 = vmatmul.f32.vlgmr.msrb.gmra.mxu0 %v3005_v61  ;;  %3190 = vmatmul.f32.vlgmr.msrb.gmra.mxu1 %v3005_v61 }
 0x5ca   :  { %3210 = vmatmul.f32.vlgmr.msra.gmra.mxu2 %v3005_v61  ;;  %3230 = vmatmul.f32.vlgmr.msra.gmra.mxu3 %v3005_v61  ;;  %v10255_v61 = vld [vmem:[#allocation73_spill] sm:$0xff] }
 0x5cb   :  { %3316 = vmatpush.msra.mxu0 %v10226_v57  ;;  %3336 = vmatpush.msra.mxu1 %v10227_v36  ;;  %v10287_v57 = vld [vmem:[#allocation105_spill] sm:$0xff]  ;;  %v10288_v36 = vld [vmem:[#allocation106_spill] sm:$0xff] }
 0x5cc   :  { %3356 = vmatpush.msrb.mxu2 %v10228_v27  ;;  %3376 = vmatpush.msrb.mxu3 %v10229_v35  ;;  %v10289_v27 = vld [vmem:[#allocation107_spill] sm:$0xff]  ;;  %v10290_v35 = vld [vmem:[#allocation108_spill] sm:$0xff] }
 0x5cd   :  { %3317 = vmatpush.msra.mxu0 %v10230_v45  ;;  %3337 = vmatpush.msra.mxu1 %v10231_v24  ;;  %v10291_v45 = vld [vmem:[#allocation109_spill] sm:$0xff]  ;;  %v10292_v24 = vld [vmem:[#allocation110_spill] sm:$0xff] }
 0x5ce   :  { %3357 = vmatpush.msrb.mxu2 %v10232_v16  ;;  %3377 = vmatpush.msrb.mxu3 %v10233_v33  ;;  %v10293_v16 = vld [vmem:[#allocation111_spill] sm:$0xff]  ;;  %v10294_v33 = vld [vmem:[#allocation112_spill] sm:$0xff] }
 0x5cf   :  { %3318 = vmatpush.msra.mxu0 %v10234_v11  ;;  %3338 = vmatpush.msra.mxu1 %v10235_v52  ;;  %v10295_v11 = vld [vmem:[#allocation113_spill] sm:$0xff]  ;;  %v10296_v52 = vld [vmem:[#allocation114_spill] sm:$0xff] }
 0x5d0   :  { %3358 = vmatpush.msrb.mxu2 %v10236_v6  ;;  %3378 = vmatpush.msrb.mxu3 %v10237_v20  ;;  %v10297_v6 = vld [vmem:[#allocation115_spill] sm:$0xff]  ;;  %v10298_v20 = vld [vmem:[#allocation116_spill] sm:$0xff] }
 0x5d1   :  { %3319 = vmatpush.msra.mxu0 %v10238_v60  ;;  %3339 = vmatpush.msra.mxu1 %v10239_v49  ;;  %v10299_v60 = vld [vmem:[#allocation117_spill] sm:$0xff]  ;;  %v10300_v49 = vld [vmem:[#allocation118_spill] sm:$0xff] }
 0x5d2   :  { %3359 = vmatpush.msrb.mxu2 %v10240_v17  ;;  %3379 = vmatpush.msrb.mxu3 %v10241_v40  ;;  %v10301_v17 = vld [vmem:[#allocation119_spill] sm:$0xff]  ;;  %v10302_v40 = vld [vmem:[#allocation120_spill] sm:$0xff] }
 0x5d3   :  { %3320 = vmatpush.msra.mxu0 %v10242_v50  ;;  %3340 = vmatpush.msra.mxu1 %v10243_v25  ;;  %v10303_v50 = vld [vmem:[#allocation121_spill] sm:$0xff]  ;;  %v10304_v25 = vld [vmem:[#allocation123_spill] sm:$0xff] }
 0x5d4   :  { %3360 = vmatpush.msrb.mxu2 %v10244_v21  ;;  %3380 = vmatpush.msrb.mxu3 %v10245_v48  ;;  %v10305_v21 = vld [vmem:[#allocation124_spill] sm:$0xff]  ;;  %v10306_v48 = vld [vmem:[#allocation125_spill] sm:$0xff] }
 0x5d5   :  { %3321 = vmatpush.msra.mxu0 %v10246_v39  ;;  %3341 = vmatpush.msra.mxu1 %v10247_v23  ;;  %v10307_v39 = vld [vmem:[#allocation126_spill] sm:$0xff]  ;;  %v10308_v23 = vld [vmem:[#allocation127_spill] sm:$0xff] }
 0x5d6   :  { %3361 = vmatpush.msrb.mxu2 %v10248_v32  ;;  %3381 = vmatpush.msrb.mxu3 %v10249_v43  ;;  %v10309_v32 = vld [vmem:[#allocation128_spill] sm:$0xff]  ;;  %v10310_v43 = vld [vmem:[#allocation129_spill] sm:$0xff] }
 0x5d7   :  { %3322 = vmatpush.msra.mxu0 %v10250_v29  ;;  %3342 = vmatpush.msra.mxu1 %v10251_v22  ;;  %v10311_v29 = vld [vmem:[#allocation130_spill] sm:$0xff]  ;;  %v10312_v22 = vld [vmem:[#allocation131_spill] sm:$0xff] }
 0x5d8   :  { %3362 = vmatpush.msrb.mxu2 %v10252_v18  ;;  %3382 = vmatpush.msrb.mxu3 %v10253_v53  ;;  %v10313_v18 = vld [vmem:[#allocation132_spill] sm:$0xff]  ;;  %v10314_v53 = vld [vmem:[#allocation133_spill] sm:$0xff] }
 0x5d9   :  { %3323 = vmatpush.msra.mxu0 %v10254_v58  ;;  %3343 = vmatpush.msra.mxu1 %v10255_v61  ;;  %v10315_v58 = vld [vmem:[#allocation135_spill] sm:$0xff]  ;;  %v10316_v61 = vld [vmem:[#allocation136_spill] sm:$0xff] }
 0x5da   :  { %3363 = vmatpush.msrb.mxu2 %v10256_v8  ;;  %3383 = vmatpush.msrb.mxu3 %v10257_v54  ;;  %v10317_v8 = vld [vmem:[#allocation137_spill] sm:$0xff]  ;;  %v10318_v54 = vld [vmem:[#allocation138_spill] sm:$0xff] }
 0x5db   :  { %3324 = vmatpush.msra.mxu0 %v10258_v7  ;;  %3344 = vmatpush.msra.mxu1 %v10259_v51  ;;  %v10319_v7 = vld [vmem:[#allocation139_spill] sm:$0xff]  ;;  %v10320_v51 = vld [vmem:[#allocation140_spill] sm:$0xff] }
 0x5dc   :  { %3364 = vmatpush.msrb.mxu2 %v10260_v4  ;;  %3384 = vmatpush.msrb.mxu3 %v10261_v41  ;;  %v10321_v4 = vld [vmem:[#allocation141_spill] sm:$0xff]  ;;  %v10322_v41 = vld [vmem:[#allocation142_spill] sm:$0xff] }
 0x5dd   :  { %3325 = vmatpush.msra.mxu0 %v10262_v12  ;;  %3345 = vmatpush.msra.mxu1 %v10263_v44  ;;  %v10323_v12 = vld [vmem:[#allocation143_spill] sm:$0xff]  ;;  %v10324_v44 = vld [vmem:[#allocation144_spill] sm:$0xff] }
 0x5de   :  { %3365 = vmatpush.msrb.mxu2 %v10264_v14  ;;  %3385 = vmatpush.msrb.mxu3 %v10265_v15  ;;  %v10325_v14 = vld [vmem:[#allocation145_spill] sm:$0xff]  ;;  %v10326_v15 = vld [vmem:[#allocation146_spill] sm:$0xff] }
 0x5df   :  { %3326 = vmatpush.msra.mxu0 %v10266_v10  ;;  %3346 = vmatpush.msra.mxu1 %v10267_v19  ;;  %v10327_v10 = vld [vmem:[#allocation147_spill] sm:$0xff]  ;;  %v10328_v19 = vld [vmem:[#allocation148_spill] sm:$0xff] }
 0x5e0   :  { %3366 = vmatpush.msrb.mxu2 %v10268_v3  ;;  %3386 = vmatpush.msrb.mxu3 %v10269_v9  ;;  %v10329_v3 = vld [vmem:[#allocation149_spill] sm:$0xff]  ;;  %v10330_v9 = vld [vmem:[#allocation151_spill] sm:$0xff] }
 0x5e1   :  { %3327 = vmatpush.msra.mxu0 %v10270_v59  ;;  %3347 = vmatpush.msra.mxu1 %v10271_v31  ;;  %v10331_v59 = vld [vmem:[#allocation156_spill] sm:$0xff]  ;;  %v10332_v31 = vld [vmem:[#allocation157_spill] sm:$0xff] }
 0x5e2   :  { %3367 = vmatpush.msrb.mxu2 %v10272_v55  ;;  %3387 = vmatpush.msrb.mxu3 %v10273_v38  ;;  %v10333_v55 = vld [vmem:[#allocation158_spill] sm:$0xff]  ;;  %v10334_v38 = vld [vmem:[#allocation159_spill] sm:$0xff] }
 0x5e3   :  { %3328 = vmatpush.msra.mxu0 %v10274_v5  ;;  %3348 = vmatpush.msra.mxu1 %v10275_v26  ;;  %v10335_v5 = vld [vmem:[#allocation160_spill] sm:$0xff]  ;;  %v10336_v26 = vld [vmem:[#allocation161_spill] sm:$0xff] }
 0x5e4   :  { %3368 = vmatpush.msrb.mxu2 %v10276_v28  ;;  %3388 = vmatpush.msrb.mxu3 %v10277_v13  ;;  %v10337_v28 = vld [vmem:[#allocation162_spill] sm:$0xff]  ;;  %v10338_v13 = vld [vmem:[#allocation163_spill] sm:$0xff] }
 0x5e5   :  { %3329 = vmatpush.msra.mxu0 %v10278_v0  ;;  %3349 = vmatpush.msra.mxu1 %v10279_v37  ;;  %v10339_v0 = vld [vmem:[#allocation164_spill] sm:$0xff]  ;;  %v10340_v37 = vld [vmem:[#allocation165_spill] sm:$0xff] }
 0x5e6   :  { %3369 = vmatpush.msrb.mxu2 %v10280_v47  ;;  %3389 = vmatpush.msrb.mxu3 %v10281_v63  ;;  %v10341_v47 = vld [vmem:[#allocation166_spill] sm:$0xff]  ;;  %v10342_v63 = vld [vmem:[#allocation167_spill] sm:$0xff] }
 0x5e7   :  { %3330 = vmatpush.msra.mxu0 %v10282_v56  ;;  %3350 = vmatpush.msra.mxu1 %v10283_v2  ;;  %v10343_v56 = vld [vmem:[#allocation168_spill] sm:$0xff]  ;;  %v10344_v2 = vld [vmem:[#allocation169_spill] sm:$0xff] }
 0x5e8   :  { %3370 = vmatpush.msrb.mxu2 %v10284_v30  ;;  %3390 = vmatpush.msrb.mxu3 %v10285_v34  ;;  %v10345_v30 = vld [vmem:[#allocation170_spill] sm:$0xff]  ;;  %v10346_v34 = vld [vmem:[#allocation171_spill] sm:$0xff] }
 0x5e9   :  { %3331 = vmatpush.msra.mxu0 %v10286_v62  ;;  %3351 = vmatpush.msra.mxu1 %v10287_v57  ;;  %v10347_v62 = vld [vmem:[#allocation172_spill] sm:$0xff]  ;;  %v10348_v57 = vld [vmem:[#allocation173_spill] sm:$0xff] }
 0x5ea   :  { %3371 = vmatpush.msrb.mxu2 %v10288_v36  ;;  %3391 = vmatpush.msrb.mxu3 %v10289_v27  ;;  %v10349_v36 = vld [vmem:[#allocation174_spill] sm:$0xff]  ;;  %v10350_v27 = vld [vmem:[#allocation175_spill] sm:$0xff] }
 0x5eb   :  { %3399 = vmatpush.msrb.mxu0 %v10290_v35  ;;  %3419 = vmatpush.msrb.mxu1 %v10291_v45  ;;  %v10351_v35 = vld [vmem:[#allocation176_spill] sm:$0xff]  ;;  %v10352_v45 = vld [vmem:[#allocation177_spill] sm:$0xff] }
 0x5ec   :  { %3439 = vmatpush.msra.mxu2 %v10292_v24  ;;  %3459 = vmatpush.msra.mxu3 %v10293_v16  ;;  %v10353_v24 = vld [vmem:[#allocation178_spill] sm:$0xff] }
 0x5ed   :  { %3400 = vmatpush.msrb.mxu0 %v10294_v33  ;;  %3420 = vmatpush.msrb.mxu1 %v10295_v11 }
 0x5ee   :  { %3440 = vmatpush.msra.mxu2 %v10296_v52  ;;  %3460 = vmatpush.msra.mxu3 %v10297_v6 }
 0x5ef   :  { %3401 = vmatpush.msrb.mxu0 %v10298_v20  ;;  %3421 = vmatpush.msrb.mxu1 %v10299_v60 }
 0x5f0   :  { %3441 = vmatpush.msra.mxu2 %v10300_v49  ;;  %3461 = vmatpush.msra.mxu3 %v10301_v17  ;;  %v10354_v49 = vld [vmem:[#allocation15_spill] sm:$0xff] }
 0x5f1   :  { %3402 = vmatpush.msrb.mxu0 %v10302_v40  ;;  %3422 = vmatpush.msrb.mxu1 %v10303_v50  ;;  %v10355_v40 = vld [vmem:[#allocation17_spill] sm:$0xff] }
 0x5f2   :  { %3442 = vmatpush.msra.mxu2 %v10304_v25  ;;  %3462 = vmatpush.msra.mxu3 %v10305_v21 }
 0x5f3   :  { %3403 = vmatpush.msrb.mxu0 %v10306_v48  ;;  %3423 = vmatpush.msrb.mxu1 %v10307_v39 }
 0x5f4   :  { %3443 = vmatpush.msra.mxu2 %v10308_v23  ;;  %3463 = vmatpush.msra.mxu3 %v10309_v32  ;;  %v10356_v32 = vld [vmem:[#allocation12_spill] sm:$0xff] }
 0x5f5   :  { %3404 = vmatpush.msrb.mxu0 %v10310_v43  ;;  %3424 = vmatpush.msrb.mxu1 %v10311_v29 }
 0x5f6   :  { %3444 = vmatpush.msra.mxu2 %v10312_v22  ;;  %3464 = vmatpush.msra.mxu3 %v10313_v18 }
 0x5f7   :  { %3405 = vmatpush.msrb.mxu0 %v10314_v53  ;;  %3425 = vmatpush.msrb.mxu1 %v10315_v58 }
 0x5f8   :  { %3445 = vmatpush.msra.mxu2 %v10316_v61  ;;  %3465 = vmatpush.msra.mxu3 %v10317_v8 }
 0x5f9   :  { %3406 = vmatpush.msrb.mxu0 %v10318_v54  ;;  %3426 = vmatpush.msrb.mxu1 %v10319_v7 }
 0x5fa   :  { %3446 = vmatpush.msra.mxu2 %v10320_v51  ;;  %3466 = vmatpush.msra.mxu3 %v10321_v4 }
 0x5fb   :  { %3407 = vmatpush.msrb.mxu0 %v10322_v41  ;;  %3427 = vmatpush.msrb.mxu1 %v10323_v12  ;;  %v10357_v41 = vld [vmem:[#allocation154_spill] sm:$0xff] }
 0x5fc   :  { %3447 = vmatpush.msra.mxu2 %v10324_v44  ;;  %3467 = vmatpush.msra.mxu3 %v10325_v14  ;;  %v10358_v44 = vld [vmem:[#allocation134_spill] sm:$0xff] }
 0x5fd   :  { %3408 = vmatpush.msrb.mxu0 %v10326_v15  ;;  %3428 = vmatpush.msrb.mxu1 %v10327_v10 }
 0x5fe   :  { %3448 = vmatpush.msra.mxu2 %v10328_v19  ;;  %3468 = vmatpush.msra.mxu3 %v10329_v3 }
 0x5ff   :  { %3409 = vmatpush.msrb.mxu0 %v10330_v9  ;;  %3429 = vmatpush.msrb.mxu1 %v10331_v59  ;;  %v10359_v9 = vld [vmem:[#allocation18_spill] sm:$0xff] }
 0x600   :  { %3449 = vmatpush.msra.mxu2 %v10332_v31  ;;  %3469 = vmatpush.msra.mxu3 %v10333_v55 }
 0x601   :  { %3410 = vmatpush.msrb.mxu0 %v10334_v38  ;;  %3430 = vmatpush.msrb.mxu1 %v10335_v5 }
 0x602   :  { %3450 = vmatpush.msra.mxu2 %v10336_v26  ;;  %3470 = vmatpush.msra.mxu3 %v10337_v28 }
 0x603   :  { %3411 = vmatpush.msrb.mxu0 %v10338_v13  ;;  %3431 = vmatpush.msrb.mxu1 %v10339_v0  ;;  %v10360_v13 = vld [vmem:[#allocation122_spill] sm:$0xff] }
 0x604   :  { %3451 = vmatpush.msra.mxu2 %v10340_v37  ;;  %3471 = vmatpush.msra.mxu3 %v10341_v47 }
 0x605   :  { %3412 = vmatpush.msrb.mxu0 %v10342_v63  ;;  %3432 = vmatpush.msrb.mxu1 %v10343_v56 }
 0x606   :  { %3452 = vmatpush.msra.mxu2 %v10344_v2  ;;  %3472 = vmatpush.msra.mxu3 %v10345_v30 }
 0x607   :  { %3413 = vmatpush.msrb.mxu0 %v10346_v34  ;;  %3433 = vmatpush.msrb.mxu1 %v10347_v62 }
 0x608   :  { %3453 = vmatpush.msra.mxu2 %v10348_v57  ;;  %3473 = vmatpush.msra.mxu3 %v10349_v36 }
 0x609   :  { %3414 = vmatpush.msrb.mxu0 %v10350_v27  ;;  %3434 = vmatpush.msrb.mxu1 %v10351_v35 }
 0x60a   :  { %3454 = vmatpush.msra.mxu2 %v10352_v45  ;;  %3474 = vmatpush.msra.mxu3 %v10353_v24 }
 0x622   :  { %v2941_v16 = vpop.f32.mrf.mxu0  ;;  %v2961_v33 = vpop.f32.mrf.mxu1 }
 0x629   :  { %v2981_v11 = vpop.f32.mrf.mxu2  ;;  %v3001_v25 = vpop.f32.mrf.mxu3 }
 0x638   :  { %v3024_v52 = vpop.f32.mrf.mxu0  ;;  %v3044_v6 = vpop.f32.mrf.mxu1 }
 0x639   :  { %v3025_v20 = vadd.f32 %v3024_v52, %v2941_v16  ;;  %v3045_v60 = vadd.f32 %v3044_v6, %v2961_v33 }
 0x63b   :  { %v3087_v17 = vadd.f32 %v3025_v20, %v10354_v49  ;;  %v3088_v50 = vadd.f32 %v3045_v60, %v10355_v40 }
 0x63d   :  { %v3662_v21 = vmul.f32 -1.442695, %v3087_v17  ;;  %v3663_v48 = vmul.f32 -1.442695, %v3088_v50 }
 0x63f   :  { %3890 = vpow2.f32 %v3662_v21  ;;  %v3064_v39 = vpop.f32.mrf.mxu2  ;;  %v3084_v18 = vpop.f32.mrf.mxu3 }
 0x640   :  { %3892 = vpow2.f32 %v3663_v48  ;;  %v3065_v23 = vadd.f32 %v3064_v39, %v2981_v11  ;;  %v3085_v4 = vadd.f32 %v3084_v18, %v3001_v25 }
 0x642   :  { %v3089_v43 = vadd.f32 %v3065_v23, %v10356_v32  ;;  %v3090_v59 = vadd.f32 %v3085_v4, %v10359_v9 }
 0x644   :  { %v3664_v29 = vmul.f32 -1.442695, %v3089_v43 }
 0x645   :  { %v3891_v22 = vpop.eup %3890 }
 0x646   :  { %v3893_v53 = vpop.eup %3892  ;;  %v3100_v58 = vadd.f32 1.0, %v3891_v22  ;;  %3894 = vpow2.f32 %v3664_v29  ;;  %v3171_v61 = vpop.f32.mrf.mxu0 }
 0x647   :  { %v3191_v8 = vpop.f32.mrf.mxu1  ;;  %v3101_v54 = vadd.f32 1.0, %v3893_v53  ;;  %v3238_v7 = vrot.slane %v3171_v61, 2 }
 0x648   :  { %v3239_v51 = vrot.slane %v3191_v8, 2  ;;  %3896 = vrcp.f32 %v3100_v58  ;;  %v3112_v47 = vand.u32 2147483647, %v3100_v58  ;;  %v3114_v2 = vand.u32 2147483648, %v3100_v58 }
 0x649   :  { %3898 = vrcp.f32 %v3101_v54  ;;  %v3246_v12 = vadd.f32 %v3238_v7, %v10357_v41  ;;  %v3129_v56 = vand.u32 2147483648, %v3101_v54  ;;  %v3127_v62 = vand.u32 2147483647, %v3101_v54 }
 0x64a   :  { %v3247_v14 = vadd.f32 %v3239_v51, %v10358_v44  ;;  %vm3108_vm0 = vweird.f32 %v3100_v58  ;;  %vm3123_vm1 = vweird.f32 %v3101_v54  ;;  %vm8335_vm2 = vcmp.eq.f32.partialorder %v3112_v47, 8.507059e+37 }
 0x64b   :  { %v3665_v10 = vmul.f32 -1.442695, %v3246_v12  ;;  %v3130_v11 = vor.u32 1.1754944e-38, %v3129_v56  ;;  %v3115_v6 = vor.u32 1.1754944e-38, %v3114_v2  ;;  %vm3128_vm5 = vcmp.eq.f32.partialorder %v3127_v62, 8.507059e+37 }
 0x64c   :  { %v3895_v15 = vpop.eup %3894  ;;  %v3666_v19 = vmul.f32 -1.442695, %v3247_v14  ;;  %v3309_v62 = vrot.slane %v8135_v42, 6 }
 0x64d   :  { %v8328_v3 = vadd.f32 1.0, %v3895_v15  ;;  %v3211_v31 = vpop.f32.mrf.mxu2  ;;  %3900 = vpow2.f32 %v3665_v10  ;;  %v3231_v16 = vpop.f32.mrf.mxu3 }
 0x64e   :  { %v3897_v55 = vpop.eup %3896  ;;  %v3240_v38 = vrot.slane %v3211_v31, 2  ;;  %v3241_v39 = vrot.slane %v3231_v16, 2 }
 0x64f   :  { %v3899_v5 = vpop.eup %3898  ;;  %v3104_v26 = vmul.f32 %v3897_v55, %v3100_v58  ;;  %3902 = vrcp.f32 %v8328_v3  ;;  %vm3109_vm14 = vweird.f32 %v3897_v55  ;;  %v3142_v8 = vand.u32 2147483647, %v8328_v3 }
 0x650   :  { %v3119_v28 = vmul.f32 %v3899_v5, %v3101_v54  ;;  %3904 = vpow2.f32 %v3666_v19  ;;  %v3248_v0 = vadd.f32 %v3240_v38, %v10360_v13  ;;  %vm3124_vm15 = vweird.f32 %v3899_v5  ;;  %vm3110_vm3 = vmor %vm3108_vm0, %vm3109_vm14 }
 0x651   :  { %v3105_v37 = vsub.f32 1.0, %v3104_v26  ;;  %3906 = vtanh.f32 %v3090_v59  ;;  %vm3125_vm4 = vmor %vm3123_vm1, %vm3124_vm15  ;;  %v3249_v61 = vadd.f32 %v3241_v39, %v7208_v1  ;;  %v3144_v51 = vand.u32 2147483648, %v8328_v3 }
 0x652   :  { %v3120_v63 = vsub.f32 1.0, %v3119_v28  ;;  %v3667_v30 = vmul.f32 -1.442695, %v3248_v0  ;;  %vm3138_vm7 = vweird.f32 %v8328_v3  ;;  %vm3143_vm9 = vcmp.eq.f32.partialorder %v3142_v8, 8.507059e+37  ;;  %v3555_v8 = vld [vmem:[#allocation7 + $0x40] sm:$0xff] }
 0x653   :  { %v3106_v34 = vmul.f32 %v3897_v55, %v3105_v37  ;;  %v3901_v57 = vpop.eup %3900  ;;  %v3145_v15 = vor.u32 1.1754944e-38, %v3144_v51  ;;  %v3554_v51 = vld [vmem:[#allocation7 + $0x38] sm:$0xff] }
 0x654   :  { %v3121_v36 = vmul.f32 %v3899_v5, %v3120_v63  ;;  %3908 = vpow2.f32 %v3667_v30  ;;  %v8339_v24 = vadd.f32 1.0, %v3901_v57 }
 0x655   :  { %v8333_v27 = vpop.eup %3902  ;;  %v3107_v35 = vadd.f32 %v3897_v55, %v3106_v34 }
 0x656   :  { %v3905_v33 = vpop.eup %3904  ;;  %v3134_v52 = vmul.f32 %v8333_v27, %v8328_v3  ;;  %v3122_v20 = vadd.f32 %v3899_v5, %v3121_v36  ;;  %3910 = vrcp.f32 %v8339_v24  ;;  %vm3139_vm6 = vweird.f32 %v8333_v27 }
 0x657   :  { %v3907_v60 = vpop.eup %3906  ;;  %v3111_v17 = vsel %vm3110_vm3, %v3897_v55, %v3107_v35  ;;  %v8346_v50 = vadd.f32 1.0, %v3905_v33  ;;  %vm8367_vm8 = vmor %vm3138_vm7, %vm3139_vm6  ;;  %v3273_v44 = vand.u32 2147483648, %v8339_v24  ;;  %v3271_v3 = vand.u32 2147483647, %v8339_v24 }
 0x658   :  { %v3135_v25 = vsub.f32 1.0, %v3134_v52  ;;  %v3116_v21 = vsel %vm8335_vm2, %v3115_v6, %v3111_v17  ;;  %v3126_v48 = vsel %vm3125_vm4, %v3899_v5, %v3122_v20  ;;  %vm3267_vm12 = vweird.f32 %v8339_v24 }
 0x659   :  { %v3131_v23 = vsel %vm3128_vm5, %v3130_v11, %v3126_v48  ;;  %v3150_v43 = vmul.f32 %v3907_v60, %v3116_v21  ;;  %3912 = vrcp.f32 %v8346_v50  ;;  %v3288_v31 = vand.u32 2147483648, %v8346_v50  ;;  %v3560_v21 = vld [vmem:[#allocation7 + $0x68] sm:$0xff] }
 0x65a   :  { %v3909_v29 = vpop.eup %3908  ;;  %v3149_v22 = vmul.f32 %v3131_v23, %v8109_v46  ;;  %v3136_v53 = vmul.f32 %v8333_v27, %v3135_v25  ;;  %v3286_v55 = vand.u32 2147483647, %v8346_v50  ;;  %vm3282_vm13 = vweird.f32 %v8346_v50  ;;  %v3561_v25 = vld [vmem:[#allocation7 + $0x70] sm:$0xff]  ;;  %v3559_v23 = vld [vmem:[#allocation7 + $0x60] sm:$0xff] }
 0x65b   :  { %v8352_v18 = vadd.f32 1.0, %v3909_v29  ;;  %v3274_v0 = vor.u32 1.1754944e-38, %v3273_v44  ;;  %vm3272_vm15 = vcmp.eq.f32.partialorder %v3271_v3, 8.507059e+37  ;;  %v3289_v30 = vor.u32 1.1754944e-38, %v3288_v31  ;;  %v3557_v29 = vld [vmem:[#allocation7 + $0x50] sm:$0xff]  ;;  %v3552_v44 = vld [vmem:[#allocation7 + $0x28] sm:$0xff] }
 0x65c   :  { %v8355_v58 = vadd.f32 %v3150_v43, %v3149_v22  ;;  %v3911_v54 = vpop.eup %3910  ;;  %v3137_v7 = vadd.f32 %v8333_v27, %v3136_v53  ;;  %vm3287_vm1 = vcmp.eq.f32.partialorder %v3286_v55, 8.507059e+37  ;;  %v3558_v43 = vld [vmem:[#allocation7 + $0x58] sm:$0xff]  ;;  %v3556_v22 = vld [vmem:[#allocation7 + $0x48] sm:$0xff] }
 0x65d   :  { %3914 = vrcp.f32 %v8352_v18  ;;  %v3263_v46 = vmul.f32 %v3911_v54, %v8339_v24  ;;  %vm3268_vm10 = vweird.f32 %v3911_v54  ;;  %v3303_v33 = vand.u32 2147483648, %v8352_v18  ;;  %v3550_v3 = vld [vmem:[#allocation7 + $0x18] sm:$0xff]  ;;  %v3548_v31 = vld [vmem:[#allocation7 + $0x8] sm:$0xff] }
 0x65e   :  { %3916 = vtanh.f32 %v8355_v58  ;;  %v3141_v14 = vsel %vm8367_vm8, %v8333_v27, %v3137_v7  ;;  %vm3269_vm14 = vmor %vm3267_vm12, %vm3268_vm10  ;;  %vm3297_vm3 = vweird.f32 %v8352_v18  ;;  %v3301_v42 = vand.u32 2147483647, %v8352_v18 }
 0x65f   :  { %v3913_v4 = vpop.eup %3912  ;;  %v3264_v41 = vsub.f32 1.0, %v3263_v46  ;;  %3918 = vtanh.f32 %v3249_v61  ;;  %v3146_v13 = vsel %vm3143_vm9, %v3145_v15, %v3141_v14  ;;  %v3304_v52 = vor.u32 1.1754944e-38, %v3303_v33  ;;  %v3551_v14 = vld [vmem:[#allocation7 + $0x20] sm:$0xff] }
 0x660   :  { %v3278_v1 = vmul.f32 %v3913_v4, %v8346_v50  ;;  %vm3283_vm11 = vweird.f32 %v3913_v4  ;;  %vm3302_vm5 = vcmp.eq.f32.partialorder %v3301_v42, 8.507059e+37  ;;  %v3562_v50 = vld [vmem:[#allocation7 + $0x78] sm:$0xff] }
 0x661   :  { %v3265_v19 = vmul.f32 %v3911_v54, %v3264_v41  ;;  %vm3284_vm0 = vmor %vm3282_vm13, %vm3283_vm11  ;;  %v3553_v41 = vld [vmem:[#allocation7 + $0x30] sm:$0xff] }
 0x662   :  { %v3279_v10 = vsub.f32 1.0, %v3278_v1 }
 0x663   :  { %v3915_v59 = vpop.eup %3914  ;;  %v3266_v28 = vadd.f32 %v3911_v54, %v3265_v19 }
 0x664   :  { %v3917_v38 = vpop.eup %3916  ;;  %v3280_v5 = vmul.f32 %v3913_v4, %v3279_v10  ;;  %v3293_v26 = vmul.f32 %v3915_v59, %v8352_v18  ;;  %vm3298_vm2 = vweird.f32 %v3915_v59 }
 0x665   :  { %v3153_v37 = vmul.f32 %v3917_v38, %v3146_v13  ;;  %v3919_v47 = vpop.eup %3918  ;;  %v3270_v56 = vsel %vm3269_vm14, %v3911_v54, %v3266_v28  ;;  %vm3299_vm4 = vmor %vm3297_vm3, %vm3298_vm2 }
 0x666   :  { %v3294_v63 = vsub.f32 1.0, %v3293_v26  ;;  %v3281_v2 = vadd.f32 %v3913_v4, %v3280_v5  ;;  %v3275_v34 = vsel %vm3272_vm15, %v3274_v0, %v3270_v56  ;;  %v3547_v26 = vld [vmem:[#allocation7] sm:$0xff] }
 0x667   :  { %3332 = vmatmul.f32.vlgmr.msra.gmra.mxu0 %v3153_v37  ;;  %3352 = vmatmul.f32.vlgmr.msra.gmra.mxu1 %v3153_v37  ;;  %v3312_v36 = vmul.f32 %v3919_v47, %v3275_v34 }
 0x668   :  { %v3285_v57 = vsel %vm3284_vm0, %v3913_v4, %v3281_v2  ;;  %3372 = vmatmul.f32.vlgmr.msrb.gmra.mxu2 %v3153_v37  ;;  %3392 = vmatmul.f32.vlgmr.msrb.gmra.mxu3 %v3153_v37  ;;  %v3295_v35 = vmul.f32 %v3915_v59, %v3294_v63 }
 0x669   :  { %v3290_v27 = vsel %vm3287_vm1, %v3289_v30, %v3285_v57  ;;  %3567 = vmatpush.msra.mxu0 %v3562_v50 }
 0x66a   :  { %v3311_v45 = vmul.f32 %v3309_v62, %v3290_v27  ;;  %v3296_v16 = vadd.f32 %v3915_v59, %v3295_v35 }
 0x66b   :  { %3568 = vmatpush.msra.mxu0 %v3561_v25 }
 0x66c   :  { %v3313_v24 = vadd.f32 %v3312_v36, %v3311_v45  ;;  %v3300_v11 = vsel %vm3299_vm4, %v3915_v59, %v3296_v16 }
 0x66d   :  { %v3305_v20 = vsel %vm3302_vm5, %v3304_v52, %v3300_v11  ;;  %3569 = vmatpush.msra.mxu0 %v3560_v21 }
 0x66e   :  { %3920 = vtanh.f32 %v3313_v24  ;;  %3589 = vst [vmem:[%s8422_s13 - $0x6] sm:$0xc0] %v3313_v24 }
 0x66f   :  { %3570 = vmatpush.msra.mxu0 %v3559_v23 }
 0x671   :  { %3571 = vmatpush.msra.mxu0 %v3558_v43 }
 0x673   :  { %3572 = vmatpush.msra.mxu0 %v3557_v29 }
 0x674   :  { %v3921_v6 = vpop.eup %3920 }
 0x675   :  { %v3315_v60 = vmul.f32 %v3921_v6, %v3305_v20  ;;  %3573 = vmatpush.msra.mxu0 %v3556_v22 }
 0x677   :  { %v3397_v17 = vrot.slane %v3315_v60, 6  ;;  %3588 = vst [vmem:[%s8421_s12 - $0x6] sm:$0xc0] %v3315_v60  ;;  %3574 = vmatpush.msra.mxu0 %v3555_v8 }
 0x679   :  { %3415 = vmatmul.f32.vlgmr.msrb.gmra.mxu0 %v3397_v17  ;;  %3435 = vmatmul.f32.vlgmr.msrb.gmra.mxu1 %v3397_v17 }
 0x67a   :  { %3455 = vmatmul.f32.vlgmr.msra.gmra.mxu2 %v3397_v17  ;;  %3475 = vmatmul.f32.vlgmr.msra.gmra.mxu3 %v3397_v17 }
 0x67b   :  { %3575 = vmatpush.msra.mxu0 %v3554_v51 }
 0x67d   :  { %3576 = vmatpush.msra.mxu0 %v3553_v41 }
 0x67f   :  { %3577 = vmatpush.msra.mxu0 %v3552_v44 }
 0x681   :  { %3578 = vmatpush.msra.mxu0 %v3551_v14 }
 0x683   :  { %3579 = vmatpush.msra.mxu0 %v3550_v3 }
 0x6e4   :  { %v3333_v48 = vpop.f32.mrf.mxu0  ;;  %v3353_v39 = vpop.f32.mrf.mxu1 }
 0x6eb   :  { %v3373_v18 = vpop.f32.mrf.mxu2  ;;  %v3393_v15 = vpop.f32.mrf.mxu3 }
 0x6f6   :  { %v3416_v53 = vpop.f32.mrf.mxu0  ;;  %v3436_v61 = vpop.f32.mrf.mxu1 }
 0x6f7   :  { %v3417_v54 = vadd.f32 %v3416_v53, %v3333_v48  ;;  %v3437_v7 = vadd.f32 %v3436_v61, %v3353_v39 }
 0x6f9   :  { %v3479_v46 = vadd.f32 %v3417_v54, %v10354_v49  ;;  %v3480_v4 = vadd.f32 %v3437_v7, %v10355_v40  ;;  %v3549_v49 = vld [vmem:[#allocation7 + $0x10] sm:$0xff] }
 0x6fa   :  { %3580 = vmatpush.msra.mxu0 %v3549_v49 }
 0x6fb   :  { %v3668_v1 = vmul.f32 -1.442695, %v3479_v46  ;;  %v3669_v12 = vmul.f32 -1.442695, %v3480_v4 }
 0x6fc   :  { %3581 = vmatpush.msra.mxu0 %v3548_v31 }
 0x6fd   :  { %3922 = vpow2.f32 %v3668_v1  ;;  %v3456_v10 = vpop.f32.mrf.mxu2  ;;  %v3476_v13 = vpop.f32.mrf.mxu3 }
 0x6fe   :  { %3924 = vpow2.f32 %v3669_v12  ;;  %v3457_v19 = vadd.f32 %v3456_v10, %v3373_v18  ;;  %3582 = vmatpush.msra.mxu0 %v3547_v26  ;;  %v3477_v0 = vadd.f32 %v3476_v13, %v3393_v15 }
 0x700   :  { %v3481_v59 = vadd.f32 %v3457_v19, %v10356_v32  ;;  %v3482_v63 = vadd.f32 %v3477_v0, %v10359_v9 }
 0x702   :  { %v3670_v40 = vmul.f32 -1.442695, %v3481_v59 }
 0x703   :  { %v3923_v55 = vpop.eup %3922 }
 0x704   :  { %v3925_v38 = vpop.eup %3924  ;;  %v3492_v5 = vadd.f32 1.0, %v3923_v55  ;;  %3926 = vpow2.f32 %v3670_v40 }
 0x705   :  { %v3493_v28 = vadd.f32 1.0, %v3925_v38 }
 0x706   :  { %3928 = vrcp.f32 %v3492_v5  ;;  %v3506_v57 = vand.u32 2147483648, %v3492_v5  ;;  %v3504_v35 = vand.u32 2147483647, %v3492_v5  ;;  %vm3500_vm8 = vweird.f32 %v3492_v5 }
 0x707   :  { %3930 = vrcp.f32 %v3493_v28  ;;  %v3521_v36 = vand.u32 2147483648, %v3493_v28  ;;  %v3519_v24 = vand.u32 2147483647, %v3493_v28  ;;  %vm3515_vm9 = vweird.f32 %v3493_v28 }
 0x708   :  { %v3507_v42 = vor.u32 1.1754944e-38, %v3506_v57  ;;  %vm3505_vm12 = vcmp.eq.f32.partialorder %v3504_v35, 8.507059e+37 }
 0x709   :  { %v3522_v52 = vor.u32 1.1754944e-38, %v3521_v36  ;;  %vm3520_vm13 = vcmp.eq.f32.partialorder %v3519_v24, 8.507059e+37 }
 0x70a   :  { %v3927_v37 = vpop.eup %3926 }
 0x70b   :  { %v3494_v47 = vadd.f32 1.0, %v3927_v37 }
 0x70c   :  { %v3929_v32 = vpop.eup %3928 }
 0x70d   :  { %v3931_v56 = vpop.eup %3930  ;;  %v3496_v2 = vmul.f32 %v3929_v32, %v3492_v5  ;;  %3932 = vrcp.f32 %v3494_v47  ;;  %vm3501_vm6 = vweird.f32 %v3929_v32  ;;  %v3536_v29 = vand.u32 2147483648, %v3494_v47 }
 0x70e   :  { %v3511_v30 = vmul.f32 %v3931_v56, %v3493_v28  ;;  %3934 = vtanh.f32 %v3482_v63  ;;  %vm3516_vm7 = vweird.f32 %v3931_v56  ;;  %vm3502_vm10 = vmor %vm3500_vm8, %vm3501_vm6  ;;  %vm3530_vm15 = vweird.f32 %v3494_v47 }
 0x70f   :  { %v3497_v34 = vsub.f32 1.0, %v3496_v2  ;;  %vm3517_vm11 = vmor %vm3515_vm9, %vm3516_vm7  ;;  %v3534_v22 = vand.u32 2147483647, %v3494_v47  ;;  %v3537_v53 = vor.u32 1.1754944e-38, %v3536_v29 }
 0x710   :  { %v3512_v62 = vsub.f32 1.0, %v3511_v30 }
 0x711   :  { %v3498_v27 = vmul.f32 %v3929_v32, %v3497_v34  ;;  %vm3535_vm1 = vcmp.eq.f32.partialorder %v3534_v22, 8.507059e+37 }
 0x712   :  { %v3513_v45 = vmul.f32 %v3931_v56, %v3512_v62 }
 0x713   :  { %v3933_v16 = vpop.eup %3932  ;;  %v3499_v33 = vadd.f32 %v3929_v32, %v3498_v27 }
 0x714   :  { %v3526_v9 = vmul.f32 %v3933_v16, %v3494_v47  ;;  %v3514_v11 = vadd.f32 %v3931_v56, %v3513_v45  ;;  %v3935_v20 = vpop.eup %3934  ;;  %vm3531_vm14 = vweird.f32 %v3933_v16 }
 0x715   :  { %v3503_v6 = vsel %vm3502_vm10, %v3929_v32, %v3499_v33  ;;  %vm3532_vm0 = vmor %vm3530_vm15, %vm3531_vm14 }
 0x716   :  { %v3527_v60 = vsub.f32 1.0, %v3526_v9  ;;  %v3508_v17 = vsel %vm3505_vm12, %v3507_v42, %v3503_v6  ;;  %v3518_v50 = vsel %vm3517_vm11, %v3931_v56, %v3514_v11 }
 0x717   :  { %v3523_v25 = vsel %vm3520_vm13, %v3522_v52, %v3518_v50  ;;  %v3542_v21 = vmul.f32 %v3935_v20, %v3508_v17 }
 0x718   :  { %v3528_v48 = vmul.f32 %v3933_v16, %v3527_v60  ;;  %v3541_v39 = vmul.f32 %v3523_v25, %v8355_v58  ;;  %v3681_v58 = vld [vmem:[%s8419_s10] ss:$0 sm:$0xff] }
 0x71a   :  { %v3543_v23 = vadd.f32 %v3542_v21, %v3541_v39  ;;  %v3529_v43 = vadd.f32 %v3933_v16, %v3528_v48 }
 0x71c   :  { %3936 = vtanh.f32 %v3543_v23  ;;  %3672 = vst [vmem:[%s8422_s13 + $0x2] sm:$0x3] %v3543_v23  ;;  %v3533_v18 = vsel %vm3532_vm0, %v3933_v16, %v3529_v43 }
 0x71d   :  { %v3538_v8 = vsel %vm3535_vm1, %v3537_v53, %v3533_v18 }
 0x722   :  { %v3937_v61 = vpop.eup %3936 }
 0x723   :  { %v3545_v54 = vmul.f32 %v3937_v61, %v3538_v8 }
 0x725   :  { %v3546_v7 = vmax.f32 %v3545_v54, 0.0  ;;  %3671 = vst [vmem:[%s8421_s12 + $0x2] sm:$0x3] %v3545_v54 }
 0x727   :  { %3583 = vmatmul.f32.vlgmr.msra.gmra.mxu0 %v3546_v7 }
 0x7a4   :  { %v3584_v51 = vpop.f32.mrf.mxu0 }
 0x7a5   :  { %v3585_v46 = vadd.f32 %v3681_v58, %v3584_v51 }
 0x7a7   :  { %3587 = vst [vmem:[%s8420_s11] sm:$0x3] %v3585_v46 }
 0x7a8   :  { %3606 = vsyncpa [#allocation3], 1 }
 0x7a9   :  { %3607 = vsyncpa [#allocation5], 1 }
 0x7aa   :  { %3608 = vsyncpa [#allocation8], 1 }

</bundles_post_ra>
